<compile_context>
chip_gen: v7x
topology: tpu7x:2x2x1
jax: 0.10.0
libtpu: 0.0.40
codegen_flags: <defaults>
</compile_context>

<pallas_src>
import functools

import jax
import jax.numpy as jnp
from jax import lax
from jax.experimental import pallas as pl
from jax.experimental.pallas import tpu as pltpu

EPS = 1e-5
LANE = 128
SUBLANE_BF16 = 16            # bf16 sublane tile -> row-stride alignment
ROW_TILE = 512               # f32 accumulator row tile inside the conv kernel
VMEM_LIMIT = 48 * 1024 * 1024


def _round_up(x, m):
    return (x + m - 1) // m * m


# ---------------------------------------------------------------------------
# Pallas kernels
# ---------------------------------------------------------------------------
def _conv_kernel(*refs, H, W, Wr, D, fuse_affine):
    """3x3x3 conv for one (n, d) output plane + fused BN batch-stat partials.

    Plane layout: flat rows r = h * Wr + w  (Wr >= W+2, multiple of 16).

    fuse_affine=False (layer 1):
      refs = (x0, x1, x2, w, y, st); x{kd}: pre-padded halo planes
      (1, (H+3)*Wr, Cin_p) bf16 at padded depths d, d+1, d+2.
    fuse_affine=True (layer 2):
      refs = (y0, y1, y2, scale, shift, w, y, st); y{kd}: *compact*
      (1, H*Wr, Cin_p) outputs of the previous conv.  BN1 scale/shift + ReLU
      and the zero spatial/depth halo are applied in-kernel.
    """
    if fuse_affine:
        x0, x1, x2, sc_ref, sh_ref, w_ref, y_ref, st_ref = refs
    else:
        x0, x1, x2, w_ref, y_ref, st_ref = refs

    cout_p = w_ref.shape[2]
    HWr = H * Wr
    d = pl.program_id(1)

    planes = []
    for kd, xr in enumerate((x0, x1, x2)):
        p = xr[0]
        if fuse_affine:
            z = jnp.maximum(
                p.astype(jnp.float32) * sc_ref[...] + sh_ref[...], 0.0)
            col = lax.broadcasted_iota(jnp.int32, z.shape, 0) % Wr
            ok = jnp.logical_and(d + kd >= 1, d + kd <= D)   # depth halo -> 0
            z = jnp.where(jnp.logical_and(col < W, ok), z, 0.0)
            z = z.astype(jnp.bfloat16)
            # Rebuild the zero-padded plane: data lands at rows/cols + 1.
            p = jnp.concatenate(
                [jnp.zeros((Wr + 1, z.shape[1]), jnp.bfloat16), z,
                 jnp.zeros((2 * Wr - 1, z.shape[1]), jnp.bfloat16)], axis=0)
        planes.append(p)

    # Pack the 3 depth taps along the contraction dim: K = 3 * Cin_p.
    cat = jnp.concatenate(planes, axis=-1)               # ((H+3)*Wr, 3*Cin_p)
    # Only two sublane-shifted copies per step (kw = 1, 2); every matmul LHS
    # below is an aligned full-width slice of these (no per-tap relayout).
    shifted = [cat[kw:kw + (H + 2) * Wr, :] for kw in range(3)]

    tm = min(ROW_TILE, HWr)
    s1 = jnp.zeros((1, cout_p), jnp.float32)
    s2 = jnp.zeros((1, cout_p), jnp.float32)
    for m0 in range(0, HWr, tm):
        m1 = min(m0 + tm, HWr)
        acc = jnp.zeros((m1 - m0, cout_p), jnp.float32)
        for kw in range(3):
            src = shifted[kw]
            for kh in range(3):
                lhs = src[kh * Wr + m0: kh * Wr + m1, :]
                acc = acc + jnp.dot(lhs, w_ref[kh * 3 + kw],
                                    preferred_element_type=jnp.float32)
        y_ref[0, m0:m1, :] = acc.astype(y_ref.dtype)
        col = (lax.broadcasted_iota(jnp.int32, acc.shape, 0) + m0) % Wr
        am = jnp.where(col < W, acc, 0.0)                 # drop pad columns
        s1 = s1 + jnp.sum(am, axis=0, keepdims=True)
        s2 = s2 + jnp.sum(am * am, axis=0, keepdims=True)

    # Full 8-sublane stats block: rows 0/1 = sum / sum-of-squares.
    st_ref[0] = jnp.concatenate(
        [s1, s2, jnp.zeros((6, cout_p), jnp.float32)], axis=0)


def _bn_relu_kernel(y_ref, scale_ref, shift_ref, o_ref):
    y = y_ref[...].astype(jnp.float32)
    o_ref[...] = jnp.maximum(
        y * scale_ref[...] + shift_ref[...], 0.0).astype(o_ref.dtype)


# ---------------------------------------------------------------------------
# Pallas wrappers
# ---------------------------------------------------------------------------
def _plane_map_padded(kd, D):
    def idx(n, d):
        return (n * (D + 2) + d + kd, 0, 0)
    return idx


def _plane_map_compact(kd, D):
    def idx(n, d):
        src = jnp.minimum(jnp.maximum(d + kd - 1, 0), D - 1)
        return (n * D + src, 0, 0)
    return idx


def _conv_layer(planes, w_mat, *, N, D, H, W, Wr, cin_p, cout_p,
                fuse_affine, scale=None, shift=None):
    Hp = H + 3
    HWr = H * Wr
    if fuse_affine:
        in_rows = HWr                       # compact previous-layer planes
        plane_map = lambda kd: _plane_map_compact(kd, D)
    else:
        in_rows = Hp * Wr                   # pre-padded halo planes
        plane_map = lambda kd: _plane_map_padded(kd, D)

    in_specs = [pl.BlockSpec((1, in_rows, cin_p), plane_map(kd))
                for kd in range(3)]
    inputs = [planes, planes, planes]
    if fuse_affine:
        in_specs += [pl.BlockSpec((1, cin_p), lambda n, d: (0, 0)),
                     pl.BlockSpec((1, cin_p), lambda n, d: (0, 0))]
        inputs += [scale, shift]
    in_specs.append(pl.BlockSpec((9, 3 * cin_p, cout_p),
                                 lambda n, d: (0, 0, 0)))
    inputs.append(w_mat)

    out_specs = [
        pl.BlockSpec((1, HWr, cout_p), lambda n, d: (n * D + d, 0, 0)),
        pl.BlockSpec((1, 8, cout_p), lambda n, d: (n * D + d, 0, 0)),
    ]
    kernel = functools.partial(_conv_kernel, H=H, W=W, Wr=Wr, D=D,
                               fuse_affine=fuse_affine)
    return pl.pallas_call(
        kernel,
        out_shape=(jax.ShapeDtypeStruct((N * D, HWr, cout_p), jnp.bfloat16),
                   jax.ShapeDtypeStruct((N * D, 8, cout_p), jnp.float32)),
        grid_spec=pltpu.PrefetchScalarGridSpec(
            num_scalar_prefetch=0,
            grid=(N, D),
            in_specs=in_specs,
            out_specs=out_specs,
        ),
        compiler_params=pltpu.CompilerParams(
            dimension_semantics=("parallel", "parallel"),
            vmem_limit_bytes=VMEM_LIMIT),
    )(*inputs)


def _bn_relu(y2d, scale, shift, *, tm):
    M, C = y2d.shape
    return pl.pallas_call(
        _bn_relu_kernel,
        out_shape=jax.ShapeDtypeStruct((M, C), y2d.dtype),
        grid_spec=pltpu.PrefetchScalarGridSpec(
            num_scalar_prefetch=0,
            grid=(pl.cdiv(M, tm),),
            in_specs=[
                pl.BlockSpec((tm, C), lambda i: (i, 0)),
                pl.BlockSpec((1, C), lambda i: (0, 0)),
                pl.BlockSpec((1, C), lambda i: (0, 0)),
            ],
            out_specs=pl.BlockSpec((tm, C), lambda i: (i, 0)),
        ),
        input_output_aliases={0: 0},          # normalize y in place
        compiler_params=pltpu.CompilerParams(
            dimension_semantics=("parallel",),
            vmem_limit_bytes=VMEM_LIMIT),
    )(y2d, scale, shift)


# ---------------------------------------------------------------------------
# Glue (layout plumbing + tiny reductions only)
# ---------------------------------------------------------------------------
def _prep_weight(w, cin_p, cout_p):
    """PyTorch (Cout, Cin, kd, kh, kw) -> (9, 3*Cin_p, Cout_p) bf16,
    indexed by kh*3+kw, with the K dim ordered [kd=0 | kd=1 | kd=2]."""
    cout, cin = w.shape[0], w.shape[1]
    wt = jnp.transpose(w, (3, 4, 2, 1, 0))                # (kh, kw, kd, ci, co)
    wt = jnp.pad(wt, ((0, 0), (0, 0), (0, 0),
                      (0, cin_p - cin), (0, cout_p - cout)))
    return wt.reshape(9, 3 * cin_p, cout_p).astype(jnp.bfloat16)


def _pad_vec(v, n):
    return jnp.pad(v, (0, n - v.shape[0]))


def _bn_affine(st, gamma, beta, cnt, c_p):
    """Training-mode BatchNorm3d scale/shift from fused batch-stat partials."""
    s = jnp.sum(st, axis=0)                               # (8, Cout_p)
    mean = s[0] / cnt
    var = jnp.maximum(s[1] / cnt - mean * mean, 0.0)
    scale = _pad_vec(gamma, c_p) / jnp.sqrt(var + EPS)
    shift = _pad_vec(beta, c_p) - mean * scale
    return (scale.reshape(1, c_p).astype(jnp.float32),
            shift.reshape(1, c_p).astype(jnp.float32))


@functools.partial(jax.jit, static_argnames=("tm_bn",))
def double_conv(x_ncdhw, params, *, tm_bn=4096):
    N, cin, D, H, W = x_ncdhw.shape
    cout = params["w1"].shape[0]
    cin_p = _round_up(cin, LANE)
    cout_p = _round_up(cout, LANE)
    Wr = _round_up(W + 2, SUBLANE_BF16)    # padded row stride (>= W+2)
    Hp = H + 3                             # top halo 1, bottom halo 1 + overrun
    cnt = N * D * H * W

    # Layer-1 input: channel-last, lanes padded, zero halo, flat planes.
    # TODO(synk): for tiny in_ch (1-4) pack taps into K instead of padding
    #             Cin to 128 (first-layer special case not implemented).
    x = jnp.transpose(x_ncdhw, (0, 2, 3, 4, 1)).astype(jnp.bfloat16)
    x = jnp.pad(x, ((0, 0), (1, 1), (1, 2), (1, Wr - W - 1),
                    (0, cin_p - cin)))
    xp = x.reshape(N * (D + 2), Hp * Wr, cin_p)

    w1 = _prep_weight(params["w1"], cin_p, cout_p)
    w2 = _prep_weight(params["w2"], cout_p, cout_p)

    # Conv1 (+ fused BN1 batch stats).  Bias dropped: cancelled by BN mean.
    y1, st1 = _conv_layer(xp, w1, N=N, D=D, H=H, W=W, Wr=Wr,
                          cin_p=cin_p, cout_p=cout_p, fuse_affine=False)
    scale1, shift1 = _bn_affine(st1, params["g1"], params["beta1"], cnt, cout_p)

    # Conv2 with BN1 + ReLU + zero halo fused onto its input planes: the
    # normalized / padded intermediate never makes an extra HBM pass.
    y2, st2 = _conv_layer(y1, w2, N=N, D=D, H=H, W=W, Wr=Wr,
                          cin_p=cout_p, cout_p=cout_p, fuse_affine=True,
                          scale=scale1, shift=shift1)
    scale2, shift2 = _bn_affine(st2, params["g2"], params["beta2"], cnt, cout_p)

    # Final BN2 + ReLU: lane-dense elementwise pass, big tiles, in place.
    M = N * D * H * Wr
    out = _bn_relu(y2.reshape(M, cout_p), scale2, shift2,
                   tm=min(tm_bn, _round_up(M, 8)))
    out = out.reshape(N, D, H, Wr, cout_p)[:, :, :, :W, :cout]
    return jnp.transpose(out, (0, 4, 1, 2, 3)).astype(jnp.float32)   # NCDHW


# ---------------------------------------------------------------------------
# Reference (pure JAX) and parameter init
# ---------------------------------------------------------------------------
def _reference(x, params):
    def block(h, w, b, g, beta):
        y = lax.conv_general_dilated(
            h, w, window_strides=(1, 1, 1),
            padding=((1, 1), (1, 1), (1, 1)),
            dimension_numbers=("NCDHW", "OIDHW", "NCDHW"),
            precision=lax.Precision.HIGHEST)
        y = y + b.reshape(1, -1, 1, 1, 1)
        mean = jnp.mean(y, axis=(0, 2, 3, 4), keepdims=True)
        var = jnp.var(y, axis=(0, 2, 3, 4), keepdims=True)
        yn = (y - mean) / jnp.sqrt(var + EPS)
        return jnp.maximum(yn * g.reshape(1, -1, 1, 1, 1)
                           + beta.reshape(1, -1, 1, 1, 1), 0.0)

    h = block(x, params["w1"], params["b1"], params["g1"], params["beta1"])
    return block(h, params["w2"], params["b2"], params["g2"], params["beta2"])


def init_params(key, in_ch, out_ch):
    k1, k2, k3, k4 = jax.random.split(key, 4)
    fan1 = in_ch * 27
    fan2 = out_ch * 27
    return {
        "w1": jax.random.normal(k1, (out_ch, in_ch, 3, 3, 3), jnp.float32)
        / jnp.sqrt(fan1),
        "b1": jax.random.normal(k2, (out_ch,), jnp.float32) * 0.01,
        "g1": jnp.ones((out_ch,), jnp.float32),
        "beta1": jnp.zeros((out_ch,), jnp.float32),
        "w2": jax.random.normal(k3, (out_ch, out_ch, 3, 3, 3), jnp.float32)
        / jnp.sqrt(fan2),
        "b2": jax.random.normal(k4, (out_ch,), jnp.float32) * 0.01,
        "g2": jnp.ones((out_ch,), jnp.float32),
        "beta2": jnp.zeros((out_ch,), jnp.float32),
    }


if __name__ == "__main__":
    key = jax.random.PRNGKey(0)
    kx, kp = jax.random.split(key)

    N, Cin, Cout = 2, 4, 8
    D = H = W = 8
    x = jax.random.normal(kx, (N, Cin, D, H, W), jnp.float32)
    params = init_params(kp, Cin, Cout)

    out = jax.block_until_ready(double_conv(x, params))
    assert out.shape == (N, Cout, D, H, W)
    assert bool(jnp.all(out >= 0.0))      # ReLU output

    ref = _reference(x, params)
    err = float(jnp.max(jnp.abs(out - ref)))
    assert err < 0.3, f"max |out - ref| too large: {err}"   # bf16 tolerance
    print("KERNEL_OK")
</pallas_src>

<mosaic_0001>
module attributes {stable_mosaic.version = 11 : i64} {
  func.func @_conv_kernel(%arg0: i32, %arg1: i32, %arg2: memref<1x176x128xbf16, #tpu.memory_space<vmem>>, %arg3: memref<1x176x128xbf16, #tpu.memory_space<vmem>>, %arg4: memref<1x176x128xbf16, #tpu.memory_space<vmem>>, %arg5: memref<9x384x128xbf16, #tpu.memory_space<vmem>>, %arg6: memref<1x128x128xbf16, #tpu.memory_space<vmem>>, %arg7: memref<1x8x128xf32, #tpu.memory_space<vmem>>) attributes {dimension_semantics = [#tpu.dimension_semantics<parallel>, #tpu.dimension_semantics<parallel>], iteration_bounds = array<i64: 2, 8>, scalar_prefetch = 0 : i64, scratch_operands = 0 : i64, tpu.core_type = #tpu.core_type<tc>, window_params = [{transform_indices = @transform_0, window_bounds = array<i64: 1, 176, 128>}, {transform_indices = @transform_1, window_bounds = array<i64: 1, 176, 128>}, {transform_indices = @transform_2, window_bounds = array<i64: 1, 176, 128>}, {pipeline_mode = #tpu.pipeline_mode<synchronous>, transform_indices = @transform_3, window_bounds = array<i64: 9, 384, 128>}, {transform_indices = @transform_4, window_bounds = array<i64: 1, 128, 128>}, {transform_indices = @transform_5, window_bounds = array<i64: 1, 8, 128>}]} {
    %c0 = arith.constant 0 : index
    %c0_0 = arith.constant 0 : index
    %c0_1 = arith.constant 0 : index
    %0 = vector.load %arg2[%c0, %c0_0, %c0_1] : memref<1x176x128xbf16, #tpu.memory_space<vmem>>, vector<1x176x128xbf16>
    %1 = vector.shape_cast %0 : vector<1x176x128xbf16> to vector<176x128xbf16>
    %c0_2 = arith.constant 0 : index
    %c0_3 = arith.constant 0 : index
    %c0_4 = arith.constant 0 : index
    %2 = vector.load %arg3[%c0_2, %c0_3, %c0_4] : memref<1x176x128xbf16, #tpu.memory_space<vmem>>, vector<1x176x128xbf16>
    %3 = vector.shape_cast %2 : vector<1x176x128xbf16> to vector<176x128xbf16>
    %c0_5 = arith.constant 0 : index
    %c0_6 = arith.constant 0 : index
    %c0_7 = arith.constant 0 : index
    %4 = vector.load %arg4[%c0_5, %c0_6, %c0_7] : memref<1x176x128xbf16, #tpu.memory_space<vmem>>, vector<1x176x128xbf16>
    %5 = vector.shape_cast %4 : vector<1x176x128xbf16> to vector<176x128xbf16>
    %6 = tpu.concatenate %1, %3, %5 in 1 : vector<176x128xbf16>, vector<176x128xbf16>, vector<176x128xbf16> -> vector<176x384xbf16>
    %7 = vector.extract_strided_slice %6 {offsets = [0, 0], sizes = [160, 384], strides = [1, 1]} : vector<176x384xbf16> to vector<160x384xbf16>
    %8 = vector.extract_strided_slice %6 {offsets = [1, 0], sizes = [160, 384], strides = [1, 1]} : vector<176x384xbf16> to vector<160x384xbf16>
    %9 = vector.extract_strided_slice %6 {offsets = [2, 0], sizes = [160, 384], strides = [1, 1]} : vector<176x384xbf16> to vector<160x384xbf16>
    %cst = arith.constant 0.000000e+00 : f32
    %10 = vector.broadcast %cst : f32 to vector<1x128xf32>
    %cst_8 = arith.constant 0.000000e+00 : f32
    %11 = vector.broadcast %cst_8 : f32 to vector<1x128xf32>
    %cst_9 = arith.constant 0.000000e+00 : f32
    %12 = vector.broadcast %cst_9 : f32 to vector<128x128xf32>
    %13 = vector.extract_strided_slice %7 {offsets = [0, 0], sizes = [128, 384], strides = [1, 1]} : vector<160x384xbf16> to vector<128x384xbf16>
    %c0_10 = arith.constant 0 : index
    %c0_11 = arith.constant 0 : index
    %c0_12 = arith.constant 0 : index
    %14 = vector.load %arg5[%c0_10, %c0_11, %c0_12] : memref<9x384x128xbf16, #tpu.memory_space<vmem>>, vector<1x384x128xbf16>
    %15 = vector.shape_cast %14 : vector<1x384x128xbf16> to vector<384x128xbf16>
    %cst_13 = arith.constant dense<0.000000e+00> : vector<128x128xf32>
    %16 = tpu.matmul %13, %15, %cst_13 {dimension_numbers = #tpu.dot_dimension_numbers<[1], [0], [0], [1], [0, 0, 1, 1], [], []>} : vector<128x384xbf16>, vector<384x128xbf16>, vector<128x128xf32> -> vector<128x128xf32>
    %17 = arith.addf %12, %16 : vector<128x128xf32>
    %18 = vector.extract_strided_slice %7 {offsets = [16, 0], sizes = [128, 384], strides = [1, 1]} : vector<160x384xbf16> to vector<128x384xbf16>
    %c3 = arith.constant 3 : index
    %c0_14 = arith.constant 0 : index
    %c0_15 = arith.constant 0 : index
    %19 = vector.load %arg5[%c3, %c0_14, %c0_15] : memref<9x384x128xbf16, #tpu.memory_space<vmem>>, vector<1x384x128xbf16>
    %20 = vector.shape_cast %19 : vector<1x384x128xbf16> to vector<384x128xbf16>
    %cst_16 = arith.constant dense<0.000000e+00> : vector<128x128xf32>
    %21 = tpu.matmul %18, %20, %cst_16 {dimension_numbers = #tpu.dot_dimension_numbers<[1], [0], [0], [1], [0, 0, 1, 1], [], []>} : vector<128x384xbf16>, vector<384x128xbf16>, vector<128x128xf32> -> vector<128x128xf32>
    %22 = arith.addf %17, %21 : vector<128x128xf32>
    %23 = vector.extract_strided_slice %7 {offsets = [32, 0], sizes = [128, 384], strides = [1, 1]} : vector<160x384xbf16> to vector<128x384xbf16>
    %c6 = arith.constant 6 : index
    %c0_17 = arith.constant 0 : index
    %c0_18 = arith.constant 0 : index
    %24 = vector.load %arg5[%c6, %c0_17, %c0_18] : memref<9x384x128xbf16, #tpu.memory_space<vmem>>, vector<1x384x128xbf16>
    %25 = vector.shape_cast %24 : vector<1x384x128xbf16> to vector<384x128xbf16>
    %cst_19 = arith.constant dense<0.000000e+00> : vector<128x128xf32>
    %26 = tpu.matmul %23, %25, %cst_19 {dimension_numbers = #tpu.dot_dimension_numbers<[1], [0], [0], [1], [0, 0, 1, 1], [], []>} : vector<128x384xbf16>, vector<384x128xbf16>, vector<128x128xf32> -> vector<128x128xf32>
    %27 = arith.addf %22, %26 : vector<128x128xf32>
    %28 = vector.extract_strided_slice %8 {offsets = [0, 0], sizes = [128, 384], strides = [1, 1]} : vector<160x384xbf16> to vector<128x384xbf16>
    %c1 = arith.constant 1 : index
    %c0_20 = arith.constant 0 : index
    %c0_21 = arith.constant 0 : index
    %29 = vector.load %arg5[%c1, %c0_20, %c0_21] : memref<9x384x128xbf16, #tpu.memory_space<vmem>>, vector<1x384x128xbf16>
    %30 = vector.shape_cast %29 : vector<1x384x128xbf16> to vector<384x128xbf16>
    %cst_22 = arith.constant dense<0.000000e+00> : vector<128x128xf32>
    %31 = tpu.matmul %28, %30, %cst_22 {dimension_numbers = #tpu.dot_dimension_numbers<[1], [0], [0], [1], [0, 0, 1, 1], [], []>} : vector<128x384xbf16>, vector<384x128xbf16>, vector<128x128xf32> -> vector<128x128xf32>
    %32 = arith.addf %27, %31 : vector<128x128xf32>
    %33 = vector.extract_strided_slice %8 {offsets = [16, 0], sizes = [128, 384], strides = [1, 1]} : vector<160x384xbf16> to vector<128x384xbf16>
    %c4 = arith.constant 4 : index
    %c0_23 = arith.constant 0 : index
    %c0_24 = arith.constant 0 : index
    %34 = vector.load %arg5[%c4, %c0_23, %c0_24] : memref<9x384x128xbf16, #tpu.memory_space<vmem>>, vector<1x384x128xbf16>
    %35 = vector.shape_cast %34 : vector<1x384x128xbf16> to vector<384x128xbf16>
    %cst_25 = arith.constant dense<0.000000e+00> : vector<128x128xf32>
    %36 = tpu.matmul %33, %35, %cst_25 {dimension_numbers = #tpu.dot_dimension_numbers<[1], [0], [0], [1], [0, 0, 1, 1], [], []>} : vector<128x384xbf16>, vector<384x128xbf16>, vector<128x128xf32> -> vector<128x128xf32>
    %37 = arith.addf %32, %36 : vector<128x128xf32>
    %38 = vector.extract_strided_slice %8 {offsets = [32, 0], sizes = [128, 384], strides = [1, 1]} : vector<160x384xbf16> to vector<128x384xbf16>
    %c7 = arith.constant 7 : index
    %c0_26 = arith.constant 0 : index
    %c0_27 = arith.constant 0 : index
    %39 = vector.load %arg5[%c7, %c0_26, %c0_27] : memref<9x384x128xbf16, #tpu.memory_space<vmem>>, vector<1x384x128xbf16>
    %40 = vector.shape_cast %39 : vector<1x384x128xbf16> to vector<384x128xbf16>
    %cst_28 = arith.constant dense<0.000000e+00> : vector<128x128xf32>
    %41 = tpu.matmul %38, %40, %cst_28 {dimension_numbers = #tpu.dot_dimension_numbers<[1], [0], [0], [1], [0, 0, 1, 1], [], []>} : vector<128x384xbf16>, vector<384x128xbf16>, vector<128x128xf32> -> vector<128x128xf32>
    %42 = arith.addf %37, %41 : vector<128x128xf32>
    %43 = vector.extract_strided_slice %9 {offsets = [0, 0], sizes = [128, 384], strides = [1, 1]} : vector<160x384xbf16> to vector<128x384xbf16>
    %c2 = arith.constant 2 : index
    %c0_29 = arith.constant 0 : index
    %c0_30 = arith.constant 0 : index
    %44 = vector.load %arg5[%c2, %c0_29, %c0_30] : memref<9x384x128xbf16, #tpu.memory_space<vmem>>, vector<1x384x128xbf16>
    %45 = vector.shape_cast %44 : vector<1x384x128xbf16> to vector<384x128xbf16>
    %cst_31 = arith.constant dense<0.000000e+00> : vector<128x128xf32>
    %46 = tpu.matmul %43, %45, %cst_31 {dimension_numbers = #tpu.dot_dimension_numbers<[1], [0], [0], [1], [0, 0, 1, 1], [], []>} : vector<128x384xbf16>, vector<384x128xbf16>, vector<128x128xf32> -> vector<128x128xf32>
    %47 = arith.addf %42, %46 : vector<128x128xf32>
    %48 = vector.extract_strided_slice %9 {offsets = [16, 0], sizes = [128, 384], strides = [1, 1]} : vector<160x384xbf16> to vector<128x384xbf16>
    %c5 = arith.constant 5 : index
    %c0_32 = arith.constant 0 : index
    %c0_33 = arith.constant 0 : index
    %49 = vector.load %arg5[%c5, %c0_32, %c0_33] : memref<9x384x128xbf16, #tpu.memory_space<vmem>>, vector<1x384x128xbf16>
    %50 = vector.shape_cast %49 : vector<1x384x128xbf16> to vector<384x128xbf16>
    %cst_34 = arith.constant dense<0.000000e+00> : vector<128x128xf32>
    %51 = tpu.matmul %48, %50, %cst_34 {dimension_numbers = #tpu.dot_dimension_numbers<[1], [0], [0], [1], [0, 0, 1, 1], [], []>} : vector<128x384xbf16>, vector<384x128xbf16>, vector<128x128xf32> -> vector<128x128xf32>
    %52 = arith.addf %47, %51 : vector<128x128xf32>
    %53 = vector.extract_strided_slice %9 {offsets = [32, 0], sizes = [128, 384], strides = [1, 1]} : vector<160x384xbf16> to vector<128x384xbf16>
    %c8 = arith.constant 8 : index
    %c0_35 = arith.constant 0 : index
    %c0_36 = arith.constant 0 : index
    %54 = vector.load %arg5[%c8, %c0_35, %c0_36] : memref<9x384x128xbf16, #tpu.memory_space<vmem>>, vector<1x384x128xbf16>
    %55 = vector.shape_cast %54 : vector<1x384x128xbf16> to vector<384x128xbf16>
    %cst_37 = arith.constant dense<0.000000e+00> : vector<128x128xf32>
    %56 = tpu.matmul %53, %55, %cst_37 {dimension_numbers = #tpu.dot_dimension_numbers<[1], [0], [0], [1], [0, 0, 1, 1], [], []>} : vector<128x384xbf16>, vector<384x128xbf16>, vector<128x128xf32> -> vector<128x128xf32>
    %57 = arith.addf %52, %56 : vector<128x128xf32>
    %58 = arith.truncf %57 : vector<128x128xf32> to vector<128x128xbf16>
    %c0_38 = arith.constant 0 : index
    %c0_39 = arith.constant 0 : index
    %c0_40 = arith.constant 0 : index
    %59 = vector.load %arg6[%c0_38, %c0_39, %c0_40] : memref<1x128x128xbf16, #tpu.memory_space<vmem>>, vector<1x128x128xbf16>
    %60 = vector.shape_cast %59 : vector<1x128x128xbf16> to vector<128x128xbf16>
    %61 = vector.shape_cast %58 : vector<128x128xbf16> to vector<1x128x128xbf16>
    tpu.vector_store %arg6[%c0_38, %c0_39, %c0_40], %61 {strides = array<i32>} : memref<1x128x128xbf16, #tpu.memory_space<vmem>>, vector<1x128x128xbf16>,
    %62 = tpu.iota {dimensions = array<i32: 0>} : vector<128x128xi32>
    %c0_i32 = arith.constant 0 : i32
    %63 = vector.broadcast %c0_i32 : i32 to vector<128x128xi32>
    %64 = arith.addi %62, %63 : vector<128x128xi32>
    %c16_i32 = arith.constant 16 : i32
    %c0_i32_41 = arith.constant 0 : i32
    %65 = arith.cmpi eq, %c16_i32, %c0_i32_41 : i32
    %c1_i32 = arith.constant 1 : i32
    %66 = arith.select %65, %c1_i32, %c16_i32 : i32
    %67 = vector.broadcast %66 : i32 to vector<128x128xi32>
    %68 = arith.remsi %64, %67 : vector<128x128xi32>
    %c0_i32_42 = arith.constant 0 : i32
    %69 = vector.broadcast %c0_i32_42 : i32 to vector<128x128xi32>
    %70 = arith.cmpi ne, %68, %69 : vector<128x128xi32>
    %c0_i32_43 = arith.constant 0 : i32
    %71 = vector.broadcast %c0_i32_43 : i32 to vector<128x128xi32>
    %72 = arith.cmpi slt, %68, %71 : vector<128x128xi32>
    %c0_i32_44 = arith.constant 0 : i32
    %73 = arith.cmpi slt, %66, %c0_i32_44 : i32
    %74 = vector.broadcast %73 : i1 to vector<128x128xi1>
    %75 = vector.broadcast %74 : vector<128x128xi1> to vector<128x128xi1>
    %76 = arith.xori %72, %75 : vector<128x128xi1>
    %77 = arith.andi %76, %70 : vector<128x128xi1>
    %78 = vector.broadcast %66 : i32 to vector<128x128xi32>
    %79 = arith.addi %68, %78 : vector<128x128xi32>
    %80 = arith.select %77, %79, %68 : vector<128x128xi1>, vector<128x128xi32>
    %c8_i32 = arith.constant 8 : i32
    %81 = vector.broadcast %c8_i32 : i32 to vector<128x128xi32>
    %82 = arith.cmpi slt, %80, %81 : vector<128x128xi32>
    %cst_45 = arith.constant 0.000000e+00 : f32
    %83 = vector.broadcast %cst_45 : f32 to vector<128x128xf32>
    %84 = arith.select %82, %57, %83 : vector<128x128xi1>, vector<128x128xf32>
    %cst_46 = arith.constant dense<0.000000e+00> : vector<128xf32>
    %85 = vector.multi_reduction <add>, %84, %cst_46 [0] : vector<128x128xf32> to vector<128xf32>
    %86 = vector.shape_cast %85 : vector<128xf32> to vector<1x128xf32>
    %87 = arith.addf %10, %86 : vector<1x128xf32>
    %88 = arith.mulf %84, %84 : vector<128x128xf32>
    %cst_47 = arith.constant dense<0.000000e+00> : vector<128xf32>
    %89 = vector.multi_reduction <add>, %88, %cst_47 [0] : vector<128x128xf32> to vector<128xf32>
    %90 = vector.shape_cast %89 : vector<128xf32> to vector<1x128xf32>
    %91 = arith.addf %11, %90 : vector<1x128xf32>
    %cst_48 = arith.constant 0.000000e+00 : f32
    %92 = vector.broadcast %cst_48 : f32 to vector<6x128xf32>
    %93 = tpu.concatenate %87, %91, %92 in 0 : vector<1x128xf32>, vector<1x128xf32>, vector<6x128xf32> -> vector<8x128xf32>
    %c0_49 = arith.constant 0 : index
    %c0_50 = arith.constant 0 : index
    %c0_51 = arith.constant 0 : index
    %94 = vector.load %arg7[%c0_49, %c0_50, %c0_51] : memref<1x8x128xf32, #tpu.memory_space<vmem>>, vector<1x8x128xf32>
    %95 = vector.shape_cast %94 : vector<1x8x128xf32> to vector<8x128xf32>
    %96 = vector.shape_cast %93 : vector<8x128xf32> to vector<1x8x128xf32>
    tpu.vector_store %arg7[%c0_49, %c0_50, %c0_51], %96 {strides = array<i32>} : memref<1x8x128xf32, #tpu.memory_space<vmem>>, vector<1x8x128xf32>,
    return
  }
  func.func @transform_0(%arg0: i32, %arg1: i32) -> (i32, i32, i32) {
    %c10_i32 = arith.constant 10 : i32
    %0 = arith.muli %arg0, %c10_i32 : i32
    %1 = arith.addi %0, %arg1 : i32
    %c0_i32 = arith.constant 0 : i32
    %2 = arith.addi %1, %c0_i32 : i32
    %c0_i32_0 = arith.constant 0 : i32
    %c0_i32_1 = arith.constant 0 : i32
    %c0_i32_2 = arith.constant 0 : i32
    return %2, %c0_i32_0, %c0_i32_1 : i32, i32, i32
  }
  func.func @transform_1(%arg0: i32, %arg1: i32) -> (i32, i32, i32) {
    %c10_i32 = arith.constant 10 : i32
    %0 = arith.muli %arg0, %c10_i32 : i32
    %1 = arith.addi %0, %arg1 : i32
    %c1_i32 = arith.constant 1 : i32
    %2 = arith.addi %1, %c1_i32 : i32
    %c0_i32 = arith.constant 0 : i32
    %c0_i32_0 = arith.constant 0 : i32
    %c0_i32_1 = arith.constant 0 : i32
    return %2, %c0_i32, %c0_i32_0 : i32, i32, i32
  }
  func.func @transform_2(%arg0: i32, %arg1: i32) -> (i32, i32, i32) {
    %c10_i32 = arith.constant 10 : i32
    %0 = arith.muli %arg0, %c10_i32 : i32
    %1 = arith.addi %0, %arg1 : i32
    %c2_i32 = arith.constant 2 : i32
    %2 = arith.addi %1, %c2_i32 : i32
    %c0_i32 = arith.constant 0 : i32
    %c0_i32_0 = arith.constant 0 : i32
    %c0_i32_1 = arith.constant 0 : i32
    return %2, %c0_i32, %c0_i32_0 : i32, i32, i32
  }
  func.func @transform_3(%arg0: i32, %arg1: i32) -> (i32, i32, i32) {
    %c0_i32 = arith.constant 0 : i32
    %c0_i32_0 = arith.constant 0 : i32
    %c0_i32_1 = arith.constant 0 : i32
    %c0_i32_2 = arith.constant 0 : i32
    return %c0_i32, %c0_i32_0, %c0_i32_1 : i32, i32, i32
  }
  func.func @transform_4(%arg0: i32, %arg1: i32) -> (i32, i32, i32) {
    %c8_i32 = arith.constant 8 : i32
    %0 = arith.muli %arg0, %c8_i32 : i32
    %1 = arith.addi %0, %arg1 : i32
    %c0_i32 = arith.constant 0 : i32
    %c0_i32_0 = arith.constant 0 : i32
    %c0_i32_1 = arith.constant 0 : i32
    return %1, %c0_i32, %c0_i32_0 : i32, i32, i32
  }
  func.func @transform_5(%arg0: i32, %arg1: i32) -> (i32, i32, i32) {
    %c8_i32 = arith.constant 8 : i32
    %0 = arith.muli %arg0, %c8_i32 : i32
    %1 = arith.addi %0, %arg1 : i32
    %c0_i32 = arith.constant 0 : i32
    %c0_i32_0 = arith.constant 0 : i32
    %c0_i32_1 = arith.constant 0 : i32
    return %1, %c0_i32, %c0_i32_0 : i32, i32, i32
  }
}

module attributes {stable_mosaic.version = 11 : i64} {
  func.func @_conv_kernel(%arg0: i32, %arg1: i32, %arg2: memref<1x128x128xbf16, #tpu.memory_space<vmem>>, %arg3: memref<1x128x128xbf16, #tpu.memory_space<vmem>>, %arg4: memref<1x128x128xbf16, #tpu.memory_space<vmem>>, %arg5: memref<1x128xf32, #tpu.memory_space<vmem>>, %arg6: memref<1x128xf32, #tpu.memory_space<vmem>>, %arg7: memref<9x384x128xbf16, #tpu.memory_space<vmem>>, %arg8: memref<1x128x128xbf16, #tpu.memory_space<vmem>>, %arg9: memref<1x8x128xf32, #tpu.memory_space<vmem>>) attributes {dimension_semantics = [#tpu.dimension_semantics<parallel>, #tpu.dimension_semantics<parallel>], iteration_bounds = array<i64: 2, 8>, scalar_prefetch = 0 : i64, scratch_operands = 0 : i64, tpu.core_type = #tpu.core_type<tc>, window_params = [{transform_indices = @transform_0, window_bounds = array<i64: 1, 128, 128>}, {transform_indices = @transform_1, window_bounds = array<i64: 1, 128, 128>}, {transform_indices = @transform_2, window_bounds = array<i64: 1, 128, 128>}, {pipeline_mode = #tpu.pipeline_mode<synchronous>, transform_indices = @transform_3, window_bounds = array<i64: 1, 128>}, {pipeline_mode = #tpu.pipeline_mode<synchronous>, transform_indices = @transform_4, window_bounds = array<i64: 1, 128>}, {pipeline_mode = #tpu.pipeline_mode<synchronous>, transform_indices = @transform_5, window_bounds = array<i64: 9, 384, 128>}, {transform_indices = @transform_6, window_bounds = array<i64: 1, 128, 128>}, {transform_indices = @transform_7, window_bounds = array<i64: 1, 8, 128>}]} {
    %c0 = arith.constant 0 : index
    %c0_0 = arith.constant 0 : index
    %c0_1 = arith.constant 0 : index
    %0 = vector.load %arg2[%c0, %c0_0, %c0_1] : memref<1x128x128xbf16, #tpu.memory_space<vmem>>, vector<1x128x128xbf16>
    %1 = vector.shape_cast %0 : vector<1x128x128xbf16> to vector<128x128xbf16>
    %2 = arith.extf %1 : vector<128x128xbf16> to vector<128x128xf32>
    %c0_2 = arith.constant 0 : index
    %c0_3 = arith.constant 0 : index
    %3 = vector.load %arg5[%c0_2, %c0_3] : memref<1x128xf32, #tpu.memory_space<vmem>>, vector<1x128xf32>
    %4 = vector.broadcast %3 : vector<1x128xf32> to vector<128x128xf32>
    %5 = arith.mulf %2, %4 : vector<128x128xf32>
    %c0_4 = arith.constant 0 : index
    %c0_5 = arith.constant 0 : index
    %6 = vector.load %arg6[%c0_4, %c0_5] : memref<1x128xf32, #tpu.memory_space<vmem>>, vector<1x128xf32>
    %7 = vector.broadcast %6 : vector<1x128xf32> to vector<128x128xf32>
    %8 = arith.addf %5, %7 : vector<128x128xf32>
    %cst = arith.constant 0.000000e+00 : f32
    %9 = vector.broadcast %cst : f32 to vector<128x128xf32>
    %10 = arith.maximumf %8, %9 : vector<128x128xf32>
    %11 = tpu.iota {dimensions = array<i32: 0>} : vector<128x128xi32>
    %c16_i32 = arith.constant 16 : i32
    %c0_i32 = arith.constant 0 : i32
    %12 = arith.cmpi eq, %c16_i32, %c0_i32 : i32
    %c1_i32 = arith.constant 1 : i32
    %13 = arith.select %12, %c1_i32, %c16_i32 : i32
    %14 = vector.broadcast %13 : i32 to vector<128x128xi32>
    %15 = arith.remsi %11, %14 : vector<128x128xi32>
    %c0_i32_6 = arith.constant 0 : i32
    %16 = vector.broadcast %c0_i32_6 : i32 to vector<128x128xi32>
    %17 = arith.cmpi ne, %15, %16 : vector<128x128xi32>
    %c0_i32_7 = arith.constant 0 : i32
    %18 = vector.broadcast %c0_i32_7 : i32 to vector<128x128xi32>
    %19 = arith.cmpi slt, %15, %18 : vector<128x128xi32>
    %c0_i32_8 = arith.constant 0 : i32
    %20 = arith.cmpi slt, %13, %c0_i32_8 : i32
    %21 = vector.broadcast %20 : i1 to vector<128x128xi1>
    %22 = vector.broadcast %21 : vector<128x128xi1> to vector<128x128xi1>
    %23 = arith.xori %19, %22 : vector<128x128xi1>
    %24 = arith.andi %23, %17 : vector<128x128xi1>
    %25 = vector.broadcast %13 : i32 to vector<128x128xi32>
    %26 = arith.addi %15, %25 : vector<128x128xi32>
    %27 = arith.select %24, %26, %15 : vector<128x128xi1>, vector<128x128xi32>
    %c0_i32_9 = arith.constant 0 : i32
    %28 = arith.addi %arg1, %c0_i32_9 : i32
    %c1_i32_10 = arith.constant 1 : i32
    %29 = arith.cmpi sge, %28, %c1_i32_10 : i32
    %c0_i32_11 = arith.constant 0 : i32
    %30 = arith.addi %arg1, %c0_i32_11 : i32
    %c8_i32 = arith.constant 8 : i32
    %31 = arith.cmpi sle, %30, %c8_i32 : i32
    %32 = arith.andi %29, %31 : i1
    %c8_i32_12 = arith.constant 8 : i32
    %33 = vector.broadcast %c8_i32_12 : i32 to vector<128x128xi32>
    %34 = arith.cmpi slt, %27, %33 : vector<128x128xi32>
    %35 = vector.broadcast %32 : i1 to vector<128x128xi1>
    %36 = arith.andi %34, %35 : vector<128x128xi1>
    %cst_13 = arith.constant 0.000000e+00 : f32
    %37 = vector.broadcast %cst_13 : f32 to vector<128x128xf32>
    %38 = arith.select %36, %10, %37 : vector<128x128xi1>, vector<128x128xf32>
    %39 = arith.truncf %38 : vector<128x128xf32> to vector<128x128xbf16>
    %cst_14 = arith.constant 0.000000e+00 : bf16
    %40 = vector.broadcast %cst_14 : bf16 to vector<17x128xbf16>
    %cst_15 = arith.constant 0.000000e+00 : bf16
    %41 = vector.broadcast %cst_15 : bf16 to vector<31x128xbf16>
    %42 = tpu.concatenate %40, %39, %41 in 0 : vector<17x128xbf16>, vector<128x128xbf16>, vector<31x128xbf16> -> vector<176x128xbf16>
    %c0_16 = arith.constant 0 : index
    %c0_17 = arith.constant 0 : index
    %c0_18 = arith.constant 0 : index
    %43 = vector.load %arg3[%c0_16, %c0_17, %c0_18] : memref<1x128x128xbf16, #tpu.memory_space<vmem>>, vector<1x128x128xbf16>
    %44 = vector.shape_cast %43 : vector<1x128x128xbf16> to vector<128x128xbf16>
    %45 = arith.extf %44 : vector<128x128xbf16> to vector<128x128xf32>
    %c0_19 = arith.constant 0 : index
    %c0_20 = arith.constant 0 : index
    %46 = vector.load %arg5[%c0_19, %c0_20] : memref<1x128xf32, #tpu.memory_space<vmem>>, vector<1x128xf32>
    %47 = vector.broadcast %46 : vector<1x128xf32> to vector<128x128xf32>
    %48 = arith.mulf %45, %47 : vector<128x128xf32>
    %c0_21 = arith.constant 0 : index
    %c0_22 = arith.constant 0 : index
    %49 = vector.load %arg6[%c0_21, %c0_22] : memref<1x128xf32, #tpu.memory_space<vmem>>, vector<1x128xf32>
    %50 = vector.broadcast %49 : vector<1x128xf32> to vector<128x128xf32>
    %51 = arith.addf %48, %50 : vector<128x128xf32>
    %cst_23 = arith.constant 0.000000e+00 : f32
    %52 = vector.broadcast %cst_23 : f32 to vector<128x128xf32>
    %53 = arith.maximumf %51, %52 : vector<128x128xf32>
    %54 = tpu.iota {dimensions = array<i32: 0>} : vector<128x128xi32>
    %c16_i32_24 = arith.constant 16 : i32
    %c0_i32_25 = arith.constant 0 : i32
    %55 = arith.cmpi eq, %c16_i32_24, %c0_i32_25 : i32
    %c1_i32_26 = arith.constant 1 : i32
    %56 = arith.select %55, %c1_i32_26, %c16_i32_24 : i32
    %57 = vector.broadcast %56 : i32 to vector<128x128xi32>
    %58 = arith.remsi %54, %57 : vector<128x128xi32>
    %c0_i32_27 = arith.constant 0 : i32
    %59 = vector.broadcast %c0_i32_27 : i32 to vector<128x128xi32>
    %60 = arith.cmpi ne, %58, %59 : vector<128x128xi32>
    %c0_i32_28 = arith.constant 0 : i32
    %61 = vector.broadcast %c0_i32_28 : i32 to vector<128x128xi32>
    %62 = arith.cmpi slt, %58, %61 : vector<128x128xi32>
    %c0_i32_29 = arith.constant 0 : i32
    %63 = arith.cmpi slt, %56, %c0_i32_29 : i32
    %64 = vector.broadcast %63 : i1 to vector<128x128xi1>
    %65 = vector.broadcast %64 : vector<128x128xi1> to vector<128x128xi1>
    %66 = arith.xori %62, %65 : vector<128x128xi1>
    %67 = arith.andi %66, %60 : vector<128x128xi1>
    %68 = vector.broadcast %56 : i32 to vector<128x128xi32>
    %69 = arith.addi %58, %68 : vector<128x128xi32>
    %70 = arith.select %67, %69, %58 : vector<128x128xi1>, vector<128x128xi32>
    %c1_i32_30 = arith.constant 1 : i32
    %71 = arith.addi %arg1, %c1_i32_30 : i32
    %c1_i32_31 = arith.constant 1 : i32
    %72 = arith.cmpi sge, %71, %c1_i32_31 : i32
    %c1_i32_32 = arith.constant 1 : i32
    %73 = arith.addi %arg1, %c1_i32_32 : i32
    %c8_i32_33 = arith.constant 8 : i32
    %74 = arith.cmpi sle, %73, %c8_i32_33 : i32
    %75 = arith.andi %72, %74 : i1
    %c8_i32_34 = arith.constant 8 : i32
    %76 = vector.broadcast %c8_i32_34 : i32 to vector<128x128xi32>
    %77 = arith.cmpi slt, %70, %76 : vector<128x128xi32>
    %78 = vector.broadcast %75 : i1 to vector<128x128xi1>
    %79 = arith.andi %77, %78 : vector<128x128xi1>
    %cst_35 = arith.constant 0.000000e+00 : f32
    %80 = vector.broadcast %cst_35 : f32 to vector<128x128xf32>
    %81 = arith.select %79, %53, %80 : vector<128x128xi1>, vector<128x128xf32>
    %82 = arith.truncf %81 : vector<128x128xf32> to vector<128x128xbf16>
    %cst_36 = arith.constant 0.000000e+00 : bf16
    %83 = vector.broadcast %cst_36 : bf16 to vector<17x128xbf16>
    %cst_37 = arith.constant 0.000000e+00 : bf16
    %84 = vector.broadcast %cst_37 : bf16 to vector<31x128xbf16>
    %85 = tpu.concatenate %83, %82, %84 in 0 : vector<17x128xbf16>, vector<128x128xbf16>, vector<31x128xbf16> -> vector<176x128xbf16>
    %c0_38 = arith.constant 0 : index
    %c0_39 = arith.constant 0 : index
    %c0_40 = arith.constant 0 : index
    %86 = vector.load %arg4[%c0_38, %c0_39, %c0_40] : memref<1x128x128xbf16, #tpu.memory_space<vmem>>, vector<1x128x128xbf16>
    %87 = vector.shape_cast %86 : vector<1x128x128xbf16> to vector<128x128xbf16>
    %88 = arith.extf %87 : vector<128x128xbf16> to vector<128x128xf32>
    %c0_41 = arith.constant 0 : index
    %c0_42 = arith.constant 0 : index
    %89 = vector.load %arg5[%c0_41, %c0_42] : memref<1x128xf32, #tpu.memory_space<vmem>>, vector<1x128xf32>
    %90 = vector.broadcast %89 : vector<1x128xf32> to vector<128x128xf32>
    %91 = arith.mulf %88, %90 : vector<128x128xf32>
    %c0_43 = arith.constant 0 : index
    %c0_44 = arith.constant 0 : index
    %92 = vector.load %arg6[%c0_43, %c0_44] : memref<1x128xf32, #tpu.memory_space<vmem>>, vector<1x128xf32>
    %93 = vector.broadcast %92 : vector<1x128xf32> to vector<128x128xf32>
    %94 = arith.addf %91, %93 : vector<128x128xf32>
    %cst_45 = arith.constant 0.000000e+00 : f32
    %95 = vector.broadcast %cst_45 : f32 to vector<128x128xf32>
    %96 = arith.maximumf %94, %95 : vector<128x128xf32>
    %97 = tpu.iota {dimensions = array<i32: 0>} : vector<128x128xi32>
    %c16_i32_46 = arith.constant 16 : i32
    %c0_i32_47 = arith.constant 0 : i32
    %98 = arith.cmpi eq, %c16_i32_46, %c0_i32_47 : i32
    %c1_i32_48 = arith.constant 1 : i32
    %99 = arith.select %98, %c1_i32_48, %c16_i32_46 : i32
    %100 = vector.broadcast %99 : i32 to vector<128x128xi32>
    %101 = arith.remsi %97, %100 : vector<128x128xi32>
    %c0_i32_49 = arith.constant 0 : i32
    %102 = vector.broadcast %c0_i32_49 : i32 to vector<128x128xi32>
    %103 = arith.cmpi ne, %101, %102 : vector<128x128xi32>
    %c0_i32_50 = arith.constant 0 : i32
    %104 = vector.broadcast %c0_i32_50 : i32 to vector<128x128xi32>
    %105 = arith.cmpi slt, %101, %104 : vector<128x128xi32>
    %c0_i32_51 = arith.constant 0 : i32
    %106 = arith.cmpi slt, %99, %c0_i32_51 : i32
    %107 = vector.broadcast %106 : i1 to vector<128x128xi1>
    %108 = vector.broadcast %107 : vector<128x128xi1> to vector<128x128xi1>
    %109 = arith.xori %105, %108 : vector<128x128xi1>
    %110 = arith.andi %109, %103 : vector<128x128xi1>
    %111 = vector.broadcast %99 : i32 to vector<128x128xi32>
    %112 = arith.addi %101, %111 : vector<128x128xi32>
    %113 = arith.select %110, %112, %101 : vector<128x128xi1>, vector<128x128xi32>
    %c2_i32 = arith.constant 2 : i32
    %114 = arith.addi %arg1, %c2_i32 : i32
    %c1_i32_52 = arith.constant 1 : i32
    %115 = arith.cmpi sge, %114, %c1_i32_52 : i32
    %c2_i32_53 = arith.constant 2 : i32
    %116 = arith.addi %arg1, %c2_i32_53 : i32
    %c8_i32_54 = arith.constant 8 : i32
    %117 = arith.cmpi sle, %116, %c8_i32_54 : i32
    %118 = arith.andi %115, %117 : i1
    %c8_i32_55 = arith.constant 8 : i32
    %119 = vector.broadcast %c8_i32_55 : i32 to vector<128x128xi32>
    %120 = arith.cmpi slt, %113, %119 : vector<128x128xi32>
    %121 = vector.broadcast %118 : i1 to vector<128x128xi1>
    %122 = arith.andi %120, %121 : vector<128x128xi1>
    %cst_56 = arith.constant 0.000000e+00 : f32
    %123 = vector.broadcast %cst_56 : f32 to vector<128x128xf32>
    %124 = arith.select %122, %96, %123 : vector<128x128xi1>, vector<128x128xf32>
    %125 = arith.truncf %124 : vector<128x128xf32> to vector<128x128xbf16>
    %cst_57 = arith.constant 0.000000e+00 : bf16
    %126 = vector.broadcast %cst_57 : bf16 to vector<17x128xbf16>
    %cst_58 = arith.constant 0.000000e+00 : bf16
    %127 = vector.broadcast %cst_58 : bf16 to vector<31x128xbf16>
    %128 = tpu.concatenate %126, %125, %127 in 0 : vector<17x128xbf16>, vector<128x128xbf16>, vector<31x128xbf16> -> vector<176x128xbf16>
    %129 = tpu.concatenate %42, %85, %128 in 1 : vector<176x128xbf16>, vector<176x128xbf16>, vector<176x128xbf16> -> vector<176x384xbf16>
    %130 = vector.extract_strided_slice %129 {offsets = [0, 0], sizes = [160, 384], strides = [1, 1]} : vector<176x384xbf16> to vector<160x384xbf16>
    %131 = vector.extract_strided_slice %129 {offsets = [1, 0], sizes = [160, 384], strides = [1, 1]} : vector<176x384xbf16> to vector<160x384xbf16>
    %132 = vector.extract_strided_slice %129 {offsets = [2, 0], sizes = [160, 384], strides = [1, 1]} : vector<176x384xbf16> to vector<160x384xbf16>
    %cst_59 = arith.constant 0.000000e+00 : f32
    %133 = vector.broadcast %cst_59 : f32 to vector<1x128xf32>
    %cst_60 = arith.constant 0.000000e+00 : f32
    %134 = vector.broadcast %cst_60 : f32 to vector<1x128xf32>
    %cst_61 = arith.constant 0.000000e+00 : f32
    %135 = vector.broadcast %cst_61 : f32 to vector<128x128xf32>
    %136 = vector.extract_strided_slice %130 {offsets = [0, 0], sizes = [128, 384], strides = [1, 1]} : vector<160x384xbf16> to vector<128x384xbf16>
    %c0_62 = arith.constant 0 : index
    %c0_63 = arith.constant 0 : index
    %c0_64 = arith.constant 0 : index
    %137 = vector.load %arg7[%c0_62, %c0_63, %c0_64] : memref<9x384x128xbf16, #tpu.memory_space<vmem>>, vector<1x384x128xbf16>
    %138 = vector.shape_cast %137 : vector<1x384x128xbf16> to vector<384x128xbf16>
    %cst_65 = arith.constant dense<0.000000e+00> : vector<128x128xf32>
    %139 = tpu.matmul %136, %138, %cst_65 {dimension_numbers = #tpu.dot_dimension_numbers<[1], [0], [0], [1], [0, 0, 1, 1], [], []>} : vector<128x384xbf16>, vector<384x128xbf16>, vector<128x128xf32> -> vector<128x128xf32>
    %140 = arith.addf %135, %139 : vector<128x128xf32>
    %141 = vector.extract_strided_slice %130 {offsets = [16, 0], sizes = [128, 384], strides = [1, 1]} : vector<160x384xbf16> to vector<128x384xbf16>
    %c3 = arith.constant 3 : index
    %c0_66 = arith.constant 0 : index
    %c0_67 = arith.constant 0 : index
    %142 = vector.load %arg7[%c3, %c0_66, %c0_67] : memref<9x384x128xbf16, #tpu.memory_space<vmem>>, vector<1x384x128xbf16>
    %143 = vector.shape_cast %142 : vector<1x384x128xbf16> to vector<384x128xbf16>
    %cst_68 = arith.constant dense<0.000000e+00> : vector<128x128xf32>
    %144 = tpu.matmul %141, %143, %cst_68 {dimension_numbers = #tpu.dot_dimension_numbers<[1], [0], [0], [1], [0, 0, 1, 1], [], []>} : vector<128x384xbf16>, vector<384x128xbf16>, vector<128x128xf32> -> vector<128x128xf32>
    %145 = arith.addf %140, %144 : vector<128x128xf32>
    %146 = vector.extract_strided_slice %130 {offsets = [32, 0], sizes = [128, 384], strides = [1, 1]} : vector<160x384xbf16> to vector<128x384xbf16>
    %c6 = arith.constant 6 : index
    %c0_69 = arith.constant 0 : index
    %c0_70 = arith.constant 0 : index
    %147 = vector.load %arg7[%c6, %c0_69, %c0_70] : memref<9x384x128xbf16, #tpu.memory_space<vmem>>, vector<1x384x128xbf16>
    %148 = vector.shape_cast %147 : vector<1x384x128xbf16> to vector<384x128xbf16>
    %cst_71 = arith.constant dense<0.000000e+00> : vector<128x128xf32>
    %149 = tpu.matmul %146, %148, %cst_71 {dimension_numbers = #tpu.dot_dimension_numbers<[1], [0], [0], [1], [0, 0, 1, 1], [], []>} : vector<128x384xbf16>, vector<384x128xbf16>, vector<128x128xf32> -> vector<128x128xf32>
    %150 = arith.addf %145, %149 : vector<128x128xf32>
    %151 = vector.extract_strided_slice %131 {offsets = [0, 0], sizes = [128, 384], strides = [1, 1]} : vector<160x384xbf16> to vector<128x384xbf16>
    %c1 = arith.constant 1 : index
    %c0_72 = arith.constant 0 : index
    %c0_73 = arith.constant 0 : index
    %152 = vector.load %arg7[%c1, %c0_72, %c0_73] : memref<9x384x128xbf16, #tpu.memory_space<vmem>>, vector<1x384x128xbf16>
    %153 = vector.shape_cast %152 : vector<1x384x128xbf16> to vector<384x128xbf16>
    %cst_74 = arith.constant dense<0.000000e+00> : vector<128x128xf32>
    %154 = tpu.matmul %151, %153, %cst_74 {dimension_numbers = #tpu.dot_dimension_numbers<[1], [0], [0], [1], [0, 0, 1, 1], [], []>} : vector<128x384xbf16>, vector<384x128xbf16>, vector<128x128xf32> -> vector<128x128xf32>
    %155 = arith.addf %150, %154 : vector<128x128xf32>
    %156 = vector.extract_strided_slice %131 {offsets = [16, 0], sizes = [128, 384], strides = [1, 1]} : vector<160x384xbf16> to vector<128x384xbf16>
    %c4 = arith.constant 4 : index
    %c0_75 = arith.constant 0 : index
    %c0_76 = arith.constant 0 : index
    %157 = vector.load %arg7[%c4, %c0_75, %c0_76] : memref<9x384x128xbf16, #tpu.memory_space<vmem>>, vector<1x384x128xbf16>
    %158 = vector.shape_cast %157 : vector<1x384x128xbf16> to vector<384x128xbf16>
    %cst_77 = arith.constant dense<0.000000e+00> : vector<128x128xf32>
    %159 = tpu.matmul %156, %158, %cst_77 {dimension_numbers = #tpu.dot_dimension_numbers<[1], [0], [0], [1], [0, 0, 1, 1], [], []>} : vector<128x384xbf16>, vector<384x128xbf16>, vector<128x128xf32> -> vector<128x128xf32>
    %160 = arith.addf %155, %159 : vector<128x128xf32>
    %161 = vector.extract_strided_slice %131 {offsets = [32, 0], sizes = [128, 384], strides = [1, 1]} : vector<160x384xbf16> to vector<128x384xbf16>
    %c7 = arith.constant 7 : index
    %c0_78 = arith.constant 0 : index
    %c0_79 = arith.constant 0 : index
    %162 = vector.load %arg7[%c7, %c0_78, %c0_79] : memref<9x384x128xbf16, #tpu.memory_space<vmem>>, vector<1x384x128xbf16>
    %163 = vector.shape_cast %162 : vector<1x384x128xbf16> to vector<384x128xbf16>
    %cst_80 = arith.constant dense<0.000000e+00> : vector<128x128xf32>
    %164 = tpu.matmul %161, %163, %cst_80 {dimension_numbers = #tpu.dot_dimension_numbers<[1], [0], [0], [1], [0, 0, 1, 1], [], []>} : vector<128x384xbf16>, vector<384x128xbf16>, vector<128x128xf32> -> vector<128x128xf32>
    %165 = arith.addf %160, %164 : vector<128x128xf32>
    %166 = vector.extract_strided_slice %132 {offsets = [0, 0], sizes = [128, 384], strides = [1, 1]} : vector<160x384xbf16> to vector<128x384xbf16>
    %c2 = arith.constant 2 : index
    %c0_81 = arith.constant 0 : index
    %c0_82 = arith.constant 0 : index
    %167 = vector.load %arg7[%c2, %c0_81, %c0_82] : memref<9x384x128xbf16, #tpu.memory_space<vmem>>, vector<1x384x128xbf16>
    %168 = vector.shape_cast %167 : vector<1x384x128xbf16> to vector<384x128xbf16>
    %cst_83 = arith.constant dense<0.000000e+00> : vector<128x128xf32>
    %169 = tpu.matmul %166, %168, %cst_83 {dimension_numbers = #tpu.dot_dimension_numbers<[1], [0], [0], [1], [0, 0, 1, 1], [], []>} : vector<128x384xbf16>, vector<384x128xbf16>, vector<128x128xf32> -> vector<128x128xf32>
    %170 = arith.addf %165, %169 : vector<128x128xf32>
    %171 = vector.extract_strided_slice %132 {offsets = [16, 0], sizes = [128, 384], strides = [1, 1]} : vector<160x384xbf16> to vector<128x384xbf16>
    %c5 = arith.constant 5 : index
    %c0_84 = arith.constant 0 : index
    %c0_85 = arith.constant 0 : index
    %172 = vector.load %arg7[%c5, %c0_84, %c0_85] : memref<9x384x128xbf16, #tpu.memory_space<vmem>>, vector<1x384x128xbf16>
    %173 = vector.shape_cast %172 : vector<1x384x128xbf16> to vector<384x128xbf16>
    %cst_86 = arith.constant dense<0.000000e+00> : vector<128x128xf32>
    %174 = tpu.matmul %171, %173, %cst_86 {dimension_numbers = #tpu.dot_dimension_numbers<[1], [0], [0], [1], [0, 0, 1, 1], [], []>} : vector<128x384xbf16>, vector<384x128xbf16>, vector<128x128xf32> -> vector<128x128xf32>
    %175 = arith.addf %170, %174 : vector<128x128xf32>
    %176 = vector.extract_strided_slice %132 {offsets = [32, 0], sizes = [128, 384], strides = [1, 1]} : vector<160x384xbf16> to vector<128x384xbf16>
    %c8 = arith.constant 8 : index
    %c0_87 = arith.constant 0 : index
    %c0_88 = arith.constant 0 : index
    %177 = vector.load %arg7[%c8, %c0_87, %c0_88] : memref<9x384x128xbf16, #tpu.memory_space<vmem>>, vector<1x384x128xbf16>
    %178 = vector.shape_cast %177 : vector<1x384x128xbf16> to vector<384x128xbf16>
    %cst_89 = arith.constant dense<0.000000e+00> : vector<128x128xf32>
    %179 = tpu.matmul %176, %178, %cst_89 {dimension_numbers = #tpu.dot_dimension_numbers<[1], [0], [0], [1], [0, 0, 1, 1], [], []>} : vector<128x384xbf16>, vector<384x128xbf16>, vector<128x128xf32> -> vector<128x128xf32>
    %180 = arith.addf %175, %179 : vector<128x128xf32>
    %181 = arith.truncf %180 : vector<128x128xf32> to vector<128x128xbf16>
    %c0_90 = arith.constant 0 : index
    %c0_91 = arith.constant 0 : index
    %c0_92 = arith.constant 0 : index
    %182 = vector.load %arg8[%c0_90, %c0_91, %c0_92] : memref<1x128x128xbf16, #tpu.memory_space<vmem>>, vector<1x128x128xbf16>
    %183 = vector.shape_cast %182 : vector<1x128x128xbf16> to vector<128x128xbf16>
    %184 = vector.shape_cast %181 : vector<128x128xbf16> to vector<1x128x128xbf16>
    tpu.vector_store %arg8[%c0_90, %c0_91, %c0_92], %184 {strides = array<i32>} : memref<1x128x128xbf16, #tpu.memory_space<vmem>>, vector<1x128x128xbf16>,
    %185 = tpu.iota {dimensions = array<i32: 0>} : vector<128x128xi32>
    %c0_i32_93 = arith.constant 0 : i32
    %186 = vector.broadcast %c0_i32_93 : i32 to vector<128x128xi32>
    %187 = arith.addi %185, %186 : vector<128x128xi32>
    %c16_i32_94 = arith.constant 16 : i32
    %c0_i32_95 = arith.constant 0 : i32
    %188 = arith.cmpi eq, %c16_i32_94, %c0_i32_95 : i32
    %c1_i32_96 = arith.constant 1 : i32
    %189 = arith.select %188, %c1_i32_96, %c16_i32_94 : i32
    %190 = vector.broadcast %189 : i32 to vector<128x128xi32>
    %191 = arith.remsi %187, %190 : vector<128x128xi32>
    %c0_i32_97 = arith.constant 0 : i32
    %192 = vector.broadcast %c0_i32_97 : i32 to vector<128x128xi32>
    %193 = arith.cmpi ne, %191, %192 : vector<128x128xi32>
    %c0_i32_98 = arith.constant 0 : i32
    %194 = vector.broadcast %c0_i32_98 : i32 to vector<128x128xi32>
    %195 = arith.cmpi slt, %191, %194 : vector<128x128xi32>
    %c0_i32_99 = arith.constant 0 : i32
    %196 = arith.cmpi slt, %189, %c0_i32_99 : i32
    %197 = vector.broadcast %196 : i1 to vector<128x128xi1>
    %198 = vector.broadcast %197 : vector<128x128xi1> to vector<128x128xi1>
    %199 = arith.xori %195, %198 : vector<128x128xi1>
    %200 = arith.andi %199, %193 : vector<128x128xi1>
    %201 = vector.broadcast %189 : i32 to vector<128x128xi32>
    %202 = arith.addi %191, %201 : vector<128x128xi32>
    %203 = arith.select %200, %202, %191 : vector<128x128xi1>, vector<128x128xi32>
    %c8_i32_100 = arith.constant 8 : i32
    %204 = vector.broadcast %c8_i32_100 : i32 to vector<128x128xi32>
    %205 = arith.cmpi slt, %203, %204 : vector<128x128xi32>
    %cst_101 = arith.constant 0.000000e+00 : f32
    %206 = vector.broadcast %cst_101 : f32 to vector<128x128xf32>
    %207 = arith.select %205, %180, %206 : vector<128x128xi1>, vector<128x128xf32>
    %cst_102 = arith.constant dense<0.000000e+00> : vector<128xf32>
    %208 = vector.multi_reduction <add>, %207, %cst_102 [0] : vector<128x128xf32> to vector<128xf32>
    %209 = vector.shape_cast %208 : vector<128xf32> to vector<1x128xf32>
    %210 = arith.addf %133, %209 : vector<1x128xf32>
    %211 = arith.mulf %207, %207 : vector<128x128xf32>
    %cst_103 = arith.constant dense<0.000000e+00> : vector<128xf32>
    %212 = vector.multi_reduction <add>, %211, %cst_103 [0] : vector<128x128xf32> to vector<128xf32>
    %213 = vector.shape_cast %212 : vector<128xf32> to vector<1x128xf32>
    %214 = arith.addf %134, %213 : vector<1x128xf32>
    %cst_104 = arith.constant 0.000000e+00 : f32
    %215 = vector.broadcast %cst_104 : f32 to vector<6x128xf32>
    %216 = tpu.concatenate %210, %214, %215 in 0 : vector<1x128xf32>, vector<1x128xf32>, vector<6x128xf32> -> vector<8x128xf32>
    %c0_105 = arith.constant 0 : index
    %c0_106 = arith.constant 0 : index
    %c0_107 = arith.constant 0 : index
    %217 = vector.load %arg9[%c0_105, %c0_106, %c0_107] : memref<1x8x128xf32, #tpu.memory_space<vmem>>, vector<1x8x128xf32>
    %218 = vector.shape_cast %217 : vector<1x8x128xf32> to vector<8x128xf32>
    %219 = vector.shape_cast %216 : vector<8x128xf32> to vector<1x8x128xf32>
    tpu.vector_store %arg9[%c0_105, %c0_106, %c0_107], %219 {strides = array<i32>} : memref<1x8x128xf32, #tpu.memory_space<vmem>>, vector<1x8x128xf32>,
    return
  }
  func.func @transform_0(%arg0: i32, %arg1: i32) -> (i32, i32, i32) {
    %c0_i32 = arith.constant 0 : i32
    %0 = arith.addi %arg1, %c0_i32 : i32
    %c1_i32 = arith.constant 1 : i32
    %1 = arith.subi %0, %c1_i32 : i32
    %c0_i32_0 = arith.constant 0 : i32
    %2 = arith.maxsi %1, %c0_i32_0 : i32
    %c7_i32 = arith.constant 7 : i32
    %3 = arith.minsi %2, %c7_i32 : i32
    %c8_i32 = arith.constant 8 : i32
    %4 = arith.muli %arg0, %c8_i32 : i32
    %5 = arith.addi %4, %3 : i32
    %c0_i32_1 = arith.constant 0 : i32
    %c0_i32_2 = arith.constant 0 : i32
    %c0_i32_3 = arith.constant 0 : i32
    return %5, %c0_i32_1, %c0_i32_2 : i32, i32, i32
  }
  func.func @transform_1(%arg0: i32, %arg1: i32) -> (i32, i32, i32) {
    %c1_i32 = arith.constant 1 : i32
    %0 = arith.addi %arg1, %c1_i32 : i32
    %c1_i32_0 = arith.constant 1 : i32
    %1 = arith.subi %0, %c1_i32_0 : i32
    %c0_i32 = arith.constant 0 : i32
    %2 = arith.maxsi %1, %c0_i32 : i32
    %c7_i32 = arith.constant 7 : i32
    %3 = arith.minsi %2, %c7_i32 : i32
    %c8_i32 = arith.constant 8 : i32
    %4 = arith.muli %arg0, %c8_i32 : i32
    %5 = arith.addi %4, %3 : i32
    %c0_i32_1 = arith.constant 0 : i32
    %c0_i32_2 = arith.constant 0 : i32
    %c0_i32_3 = arith.constant 0 : i32
    return %5, %c0_i32_1, %c0_i32_2 : i32, i32, i32
  }
  func.func @transform_2(%arg0: i32, %arg1: i32) -> (i32, i32, i32) {
    %c2_i32 = arith.constant 2 : i32
    %0 = arith.addi %arg1, %c2_i32 : i32
    %c1_i32 = arith.constant 1 : i32
    %1 = arith.subi %0, %c1_i32 : i32
    %c0_i32 = arith.constant 0 : i32
    %2 = arith.maxsi %1, %c0_i32 : i32
    %c7_i32 = arith.constant 7 : i32
    %3 = arith.minsi %2, %c7_i32 : i32
    %c8_i32 = arith.constant 8 : i32
    %4 = arith.muli %arg0, %c8_i32 : i32
    %5 = arith.addi %4, %3 : i32
    %c0_i32_0 = arith.constant 0 : i32
    %c0_i32_1 = arith.constant 0 : i32
    %c0_i32_2 = arith.constant 0 : i32
    return %5, %c0_i32_0, %c0_i32_1 : i32, i32, i32
  }
  func.func @transform_3(%arg0: i32, %arg1: i32) -> (i32, i32) {
    %c0_i32 = arith.constant 0 : i32
    %c0_i32_0 = arith.constant 0 : i32
    %c0_i32_1 = arith.constant 0 : i32
    return %c0_i32, %c0_i32_0 : i32, i32
  }
  func.func @transform_4(%arg0: i32, %arg1: i32) -> (i32, i32) {
    %c0_i32 = arith.constant 0 : i32
    %c0_i32_0 = arith.constant 0 : i32
    %c0_i32_1 = arith.constant 0 : i32
    return %c0_i32, %c0_i32_0 : i32, i32
  }
  func.func @transform_5(%arg0: i32, %arg1: i32) -> (i32, i32, i32) {
    %c0_i32 = arith.constant 0 : i32
    %c0_i32_0 = arith.constant 0 : i32
    %c0_i32_1 = arith.constant 0 : i32
    %c0_i32_2 = arith.constant 0 : i32
    return %c0_i32, %c0_i32_0, %c0_i32_1 : i32, i32, i32
  }
  func.func @transform_6(%arg0: i32, %arg1: i32) -> (i32, i32, i32) {
    %c8_i32 = arith.constant 8 : i32
    %0 = arith.muli %arg0, %c8_i32 : i32
    %1 = arith.addi %0, %arg1 : i32
    %c0_i32 = arith.constant 0 : i32
    %c0_i32_0 = arith.constant 0 : i32
    %c0_i32_1 = arith.constant 0 : i32
    return %1, %c0_i32, %c0_i32_0 : i32, i32, i32
  }
  func.func @transform_7(%arg0: i32, %arg1: i32) -> (i32, i32, i32) {
    %c8_i32 = arith.constant 8 : i32
    %0 = arith.muli %arg0, %c8_i32 : i32
    %1 = arith.addi %0, %arg1 : i32
    %c0_i32 = arith.constant 0 : i32
    %c0_i32_0 = arith.constant 0 : i32
    %c0_i32_1 = arith.constant 0 : i32
    return %1, %c0_i32, %c0_i32_0 : i32, i32, i32
  }
}

module attributes {stable_mosaic.version = 11 : i64} {
  func.func @_bn_relu_kernel(%arg0: i32, %arg1: memref<2048x128xbf16, #tpu.memory_space<vmem>>, %arg2: memref<1x128xf32, #tpu.memory_space<vmem>>, %arg3: memref<1x128xf32, #tpu.memory_space<vmem>>, %arg4: memref<2048x128xbf16, #tpu.memory_space<vmem>>) attributes {dimension_semantics = [#tpu.dimension_semantics<parallel>], iteration_bounds = array<i64: 1>, scalar_prefetch = 0 : i64, scratch_operands = 0 : i64, tpu.core_type = #tpu.core_type<tc>, window_params = [{transform_indices = @transform_0, window_bounds = array<i64: 2048, 128>}, {pipeline_mode = #tpu.pipeline_mode<synchronous>, transform_indices = @transform_1, window_bounds = array<i64: 1, 128>}, {pipeline_mode = #tpu.pipeline_mode<synchronous>, transform_indices = @transform_2, window_bounds = array<i64: 1, 128>}, {transform_indices = @transform_3, window_bounds = array<i64: 2048, 128>}]} {
    %c0 = arith.constant 0 : index
    %c0_0 = arith.constant 0 : index
    %0 = vector.load %arg1[%c0, %c0_0] : memref<2048x128xbf16, #tpu.memory_space<vmem>>, vector<2048x128xbf16>
    %1 = arith.extf %0 : vector<2048x128xbf16> to vector<2048x128xf32>
    %c0_1 = arith.constant 0 : index
    %c0_2 = arith.constant 0 : index
    %2 = vector.load %arg2[%c0_1, %c0_2] : memref<1x128xf32, #tpu.memory_space<vmem>>, vector<1x128xf32>
    %3 = vector.broadcast %2 : vector<1x128xf32> to vector<2048x128xf32>
    %4 = arith.mulf %1, %3 : vector<2048x128xf32>
    %c0_3 = arith.constant 0 : index
    %c0_4 = arith.constant 0 : index
    %5 = vector.load %arg3[%c0_3, %c0_4] : memref<1x128xf32, #tpu.memory_space<vmem>>, vector<1x128xf32>
    %6 = vector.broadcast %5 : vector<1x128xf32> to vector<2048x128xf32>
    %7 = arith.addf %4, %6 : vector<2048x128xf32>
    %cst = arith.constant 0.000000e+00 : f32
    %8 = vector.broadcast %cst : f32 to vector<2048x128xf32>
    %9 = arith.maximumf %7, %8 : vector<2048x128xf32>
    %10 = arith.truncf %9 : vector<2048x128xf32> to vector<2048x128xbf16>
    %c0_5 = arith.constant 0 : index
    %c0_6 = arith.constant 0 : index
    %11 = vector.load %arg4[%c0_5, %c0_6] : memref<2048x128xbf16, #tpu.memory_space<vmem>>, vector<2048x128xbf16>
    tpu.vector_store %arg4[%c0_5, %c0_6], %10 {strides = array<i32>} : memref<2048x128xbf16, #tpu.memory_space<vmem>>, vector<2048x128xbf16>,
    return
  }
  func.func @transform_0(%arg0: i32) -> (i32, i32) {
    %c0_i32 = arith.constant 0 : i32
    %c0_i32_0 = arith.constant 0 : i32
    return %arg0, %c0_i32 : i32, i32
  }
  func.func @transform_1(%arg0: i32) -> (i32, i32) {
    %c0_i32 = arith.constant 0 : i32
    %c0_i32_0 = arith.constant 0 : i32
    %c0_i32_1 = arith.constant 0 : i32
    return %c0_i32, %c0_i32_0 : i32, i32
  }
  func.func @transform_2(%arg0: i32) -> (i32, i32) {
    %c0_i32 = arith.constant 0 : i32
    %c0_i32_0 = arith.constant 0 : i32
    %c0_i32_1 = arith.constant 0 : i32
    return %c0_i32, %c0_i32_0 : i32, i32
  }
  func.func @transform_3(%arg0: i32) -> (i32, i32) {
    %c0_i32 = arith.constant 0 : i32
    %c0_i32_0 = arith.constant 0 : i32
    return %arg0, %c0_i32 : i32, i32
  }
}

</mosaic_0001>

<bundles_post_ra>
// kernel: double_conv.3
= control target key start
LH: loop header
LB: loop body
LE: loop exit
PB: predicated region body
PF: predicated region fallthrough
CT: control target
= control target key end

     0   :  { %s7540_s18 = smov 0   ;;  %s7542_s19 = smov 0   ;;  %s9263_s0 = inlined_call_operand.vmem [shape: bf16[20,176,128], index: 0, kind: input, shape index: {}, may-alias: {0,1,2}]   ;;  %s9264_s1 = inlined_call_operand.vmem [shape: bf16[20,176,128], index: 1, kind: input, shape index: {}, may-alias: {0,1,2}]   ;;  %s9265_s2 = inlined_call_operand.vmem [shape: bf16[20,176,128], index: 2, kind: input, shape index: {}, may-alias: {0,1,2}]   ;;  %s9266_s3 = inlined_call_operand.vmem [shape: bf16[9,384,128], index: 3, kind: input, shape index: {}]   ;;  %s9267_s4 = inlined_call_operand.vmem [shape: bf16[16,128,128], index: 4, kind: output, shape index: {0}]   ;;  %s9268_s5 = inlined_call_operand.vmem [shape: f32[16,8,128], index: 5, kind: output, shape index: {1}]  }
   0x1   :  { %s7544_s20 = smov 0   ;;  %s7546_s21 = smov 0  }
   0x2   :  { %s7548_s22 = smov 0  }
   0x3 LB: > { %s25_s23 = sadd.s32 1, %s7500_s20  ;;  %s28_s24 = sadd.s32 1, %s7504_s21  ;;  %s7508_s22 = sphi %s7548_s22, %s16_s22   ;;  %s7504_s21 = sphi %s7546_s21, %s9272_s21   ;;  %s7500_s20 = sphi %s7544_s20, %s9271_s20   ;;  %s7496_s19 = sphi %s7542_s19, %s9270_s19   ;;  %s7492_s18 = sphi %s7540_s18, %s9269_s18  }
   0x4   : > { %p26_p0 = scmp.ge.s32.totalorder %s25_s23, 8  ;;  %p5125_p1 = scmp.ge.s32.totalorder %s7508_s22, 1 }
   0x5   : > { %p262_p2 = scmp.lt.s32.totalorder %s7508_s22, 17 }
   0x6   : > { %s9274_s23 = smov (%p26_p0, %s25_s23), 0  ;;  %s9276_s24 = smov (!%p26_p0, %s28_s24), %s7504_s21 }
   0x7   : > { %p263_p3 = pnand %p5125_p1, %p262_p2  ;;  %p30_p4 = scmp.ge.s32.totalorder %s9276_s24, 2 }
   0x8   : > { %v7172_v0 = vld [vmem:[%s9266_s3 + $0x280] sm:$0xff] (!%p263_p3)   ;;  %s316_s27 = smul.u32 (!%p263_p3), 10, %s7496_s19  ;;  %v7175_v3 = vld [vmem:[%s9266_s3 + $0x288] sm:$0xff] (!%p263_p3)   ;;  %v7178_v6 = vld [vmem:[%s9266_s3 + $0x290] sm:$0xff] (!%p263_p3)   ;;  %vm1851_vm0 = vsmask.f32 (!%p263_p3), 7424 }
   0x9   : > { %s9278_s24 = smov (%p30_p4, %s9276_s24), 0  ;;  %266 = sbr.rel (%p263_p3) target bundleno = 721 (0x2d1), region = 36 }
   0xa   : > { %v7173_v1 = vld [vmem:[%s9266_s3 + $0x2c0] sm:$0xff] (!%p263_p3)   ;;  %5849 = vmatprep.subr.bf16.mxu0 (!%p263_p3), %v7172_v0  ;;  %s7585_s7 = sadd.s32 (!%p263_p3), %s7492_s18, %s316_s27  ;;  %v7176_v4 = vld [vmem:[%s9266_s3 + $0x2c8] sm:$0xff] (!%p263_p3)   ;;  %v7179_v7 = vld [vmem:[%s9266_s3 + $0x2d0] sm:$0xff] (!%p263_p3)   ;;  %vm3343_vm1 = vcmask (!%p263_p3), 1046528   ;;  %s5129_s12 = sshll.u32 (!%p263_p3), %s7496_s19, 3  ;;  %vm4978_vm2 = vcmask (!%p263_p3), 1040384  }
   0xb   : > { %v7174_v2 = vld [vmem:[%s9266_s3 + $0x240] sm:$0xff] (!%p263_p3)   ;;  %6569 = vmatprep.subr.bf16.mxu1 (!%p263_p3), %v7173_v1  ;;  %v7177_v5 = vld [vmem:[%s9266_s3 + $0x248] sm:$0xff] (!%p263_p3)   ;;  %s327_s14 = sadd.s32 (!%p263_p3), 1, %s7585_s7  ;;  %s338_s26 = sadd.s32 (!%p263_p3), 2, %s7585_s7  ;;  %v7180_v8 = vld [vmem:[%s9266_s3 + $0x250] sm:$0xff] (!%p263_p3)   ;;  %vm4980_vm3 = vcmask (!%p263_p3), 1041408  }
   0xc   : > { %5850 = vmatpush3.bf16.msra.mxu0 (!%p263_p3), %v7174_v2  ;;  %6570 = vmatpush3.bf16.msra.mxu1 (!%p263_p3), %v7173_v1  ;;  %p328_p5 = scmp.lt.s32.totalorder (!%p263_p3), %s327_s14, 19  ;;  %v7181_v9 = vld [vmem:[%s9266_s3 + $0x298] sm:$0xff] (!%p263_p3)   ;;  %p339_p6 = scmp.lt.s32.totalorder (!%p263_p3), %s338_s26, 19  ;;  %v7184_v12 = vld [vmem:[%s9266_s3 + $0x2a0] sm:$0xff] (!%p263_p3)   ;;  %v7187_v15 = vld [vmem:[%s9266_s3 + $0x2a8] sm:$0xff] (!%p263_p3)  }
   0xd   : > { %5851 = vmatprep.subr.bf16.mxu0 (!%p263_p3), %v7175_v3  ;;  %6571 = vmatprep.subr.bf16.mxu1 (!%p263_p3), %v7176_v4  ;;  %v7182_v10 = vld [vmem:[%s9266_s3 + $0x2d8] sm:$0xff] (!%p263_p3)   ;;  %v7185_v13 = vld [vmem:[%s9266_s3 + $0x2e0] sm:$0xff] (!%p263_p3)   ;;  %p318_p7 = scmp.lt.s32.totalorder (!%p263_p3), %s7585_s7, 19  ;;  %v7188_v16 = vld [vmem:[%s9266_s3 + $0x2e8] sm:$0xff] (!%p263_p3)   ;;  %s348_s13 = sadd.s32 (!%p263_p3), %s7492_s18, %s5129_s12 }
   0xe   : > { %v7183_v11 = vld [vmem:[%s9266_s3 + $0x258] sm:$0xff] (!%p263_p3)   ;;  %v7186_v14 = vld [vmem:[%s9266_s3 + $0x260] sm:$0xff] (!%p263_p3)   ;;  %v7189_v17 = vld [vmem:[%s9266_s3 + $0x268] sm:$0xff] (!%p263_p3)   ;;  %p349_p8 = scmp.lt.s32.totalorder (!%p263_p3), %s348_s13, 15 }
   0xf   : > { %v7190_v18 = vld [vmem:[%s9266_s3 + $0x2b0] sm:$0xff] (!%p263_p3)   ;;  %v7193_v21 = vld [vmem:[%s9266_s3 + $0x2b8] sm:$0xff] (!%p263_p3)   ;;  %v7200_v26 = vld [vmem:[%s9266_s3 + $0x40] sm:$0xff] (!%p263_p3)  }
  0x10   : > { %5852 = vmatpush3.bf16.msra.mxu0 %v7177_v5  ;;  %6572 = vmatpush3.bf16.msra.mxu1 %v7176_v4  ;;  %s9280_s14 = smov (!%p328_p5, %s327_s14), 19  ;;  %s9282_s26 = smov (!%p339_p6, %s338_s26), 19  ;;  %v7191_v19 = vld [vmem:[%s9266_s3 + $0x2f0] sm:$0xff]   ;;  %v7194_v22 = vld [vmem:[%s9266_s3 + $0x2f8] sm:$0xff]   ;;  %v7201_v28 = vld [vmem:[%s9266_s3 + $0x4c0] sm:$0xff]  }
  0x11   : > { %5853 = vmatprep.subr.bf16.mxu0 %v7178_v6  ;;  %6573 = vmatprep.subr.bf16.mxu1 %v7179_v7  ;;  %s7130_s28 = smul.u32 88, %s9280_s14  ;;  %s9284_s7 = smov (!%p318_p7, %s7585_s7), 19  ;;  %v7192_v20 = vld [vmem:[%s9266_s3 + $0x270] sm:$0xff]   ;;  %v7195_v25 = vld [vmem:[%s9266_s3 + $0x278] sm:$0xff]   ;;  %v7202_v30 = vld [vmem:[%s9266_s3] sm:$0xff]  }
  0x12   : > { %s7131_s6 = smul.u32 88, %s9282_s26  ;;  %v7203_v31 = vld [vmem:[%s9266_s3 + $0x480] sm:$0xff]   ;;  %v7204_v32 = vld [vmem:[%s9266_s3 + $0x48] sm:$0xff]   ;;  %v7210_v38 = vld [vmem:[%s9266_s3 + $0x50] sm:$0xff]   ;;  %s9286_s13 = smov (!%p349_p8, %s348_s13), 15 }
  0x13   : > { %s7645_s26 = scalar_lea.vmem %s9264_s1, %s7130_s28  ;;  %s7129_s16 = smul.u32 88, %s9284_s7  ;;  %v7205_v35 = vld [vmem:[%s9266_s3 + $0x8] sm:$0xff]   ;;  %v7212_v40 = vld [vmem:[%s9266_s3 + $0x10] sm:$0xff]   ;;  %v7214_v42 = vld [vmem:[%s9266_s3 + $0x58] sm:$0xff]  }
  0x14   : > { %5854 = vmatpush3.bf16.msra.mxu0 %v7180_v8  ;;  %6574 = vmatpush3.bf16.msra.mxu1 %v7179_v7  ;;  %s7653_s30 = scalar_lea.vmem %s9265_s2, %s7131_s6  ;;  %v7662_v23 = vld [vmem:[%s7645_s26 + $0x8] sm:$0xff]   ;;  %v7699_v33 = vld [vmem:[%s7645_s26 + $0x10] sm:$0xff]   ;;  %v7215_v43 = vld [vmem:[%s9266_s3 + $0x18] sm:$0xff]   ;;  %s5785_s18 = sshll.u32 %s9286_s13, 6 }
  0x15   : > { %5855 = vmatprep.subr.bf16.mxu0 %v7181_v9  ;;  %6575 = vmatprep.subr.bf16.mxu1 %v7182_v10  ;;  %v7665_v24 = vld [vmem:[%s7653_s30 + $0x8] sm:$0xff]   ;;  %s7670_s6 = scalar_lea.vmem %s9263_s0, %s7129_s16  ;;  %v7687_v29 = vld [vmem:[%s7653_s30 + $0x10] sm:$0xff]   ;;  %v7704_v34 = vld [vmem:[%s7653_s30 + $0x18] sm:$0xff]   ;;  %s9214_s15 = scalar_lea.vmem %s9267_s4, %s5785_s18 }
  0x16   : > { %899 = vmatprep.mubr.bf16.mxu0 %v7662_v23  ;;  %6585 = vmatprep.mubr.bf16.mxu1 %v7665_v24  ;;  %v7681_v27 = vld [vmem:[%s7670_s6 + $0x8] sm:$0xff]   ;;  %v7711_v36 = vld [vmem:[%s7670_s6 + $0x10] sm:$0xff]   ;;  %v7714_v37 = vld [vmem:[%s7653_s30 + $0x20] sm:$0xff]   ;;  %s5133_s16 = sshll.u32 %s9286_s13, 3 }
  0x17   : > { %v7211_v39 = vld [vmem:[%s9266_s3 + $0x4c8] sm:$0xff]   ;;  %v7738_v44 = vld [vmem:[%s7645_s26 + $0x18] sm:$0xff]   ;;  %v7749_v47 = vld [vmem:[%s7653_s30 + $0x30] sm:$0xff]   ;;  %s361_s25 = scalar_lea.vmem %s9268_s5, %s5133_s16 }
  0x18   : > { %5856 = vmatpush3.bf16.msra.mxu0 %v7183_v11  ;;  %6576 = vmatpush3.bf16.msra.mxu1 %v7182_v10  ;;  %v7213_v41 = vld [vmem:[%s9266_s3 + $0x488] sm:$0xff]   ;;  %v7745_v46 = vld [vmem:[%s7670_s6 + $0x18] sm:$0xff]   ;;  %v7220_v48 = vld [vmem:[%s9266_s3 + $0x60] sm:$0xff]  }
  0x19   : > { %5857 = vmatprep.subr.bf16.mxu0 %v7184_v12  ;;  %6577 = vmatprep.subr.bf16.mxu1 %v7185_v13  ;;  %v7741_v45 = vld [vmem:[%s7653_s30 + $0x28] sm:$0xff]   ;;  %v7221_v49 = vld [vmem:[%s9266_s3 + $0x4d0] sm:$0xff]   ;;  %v7222_v50 = vld [vmem:[%s9266_s3 + $0x20] sm:$0xff]  }
  0x1a   : > { %v7223_v51 = vld [vmem:[%s9266_s3 + $0x490] sm:$0xff]   ;;  %v7224_v52 = vld [vmem:[%s9266_s3 + $0x68] sm:$0xff]   ;;  %v7772_v54 = vld [vmem:[%s7645_s26 + $0x20] sm:$0xff]  }
  0x1b   : > { %v7225_v53 = vld [vmem:[%s9266_s3 + $0x28] sm:$0xff]   ;;  %v7775_v55 = vld [vmem:[%s7653_s30 + $0x38] sm:$0xff]   ;;  %v7779_v56 = vld [vmem:[%s7670_s6 + $0x20] sm:$0xff]  }
  0x1c   : > { %5858 = vmatpush3.bf16.msra.mxu0 %v7186_v14  ;;  %6578 = vmatpush3.bf16.msra.mxu1 %v7185_v13  ;;  %v7229_v57 = vld [vmem:[%s7653_s30 + $0x40] sm:$0xff]   ;;  %v7230_v58 = vld [vmem:[%s9266_s3 + $0x70] sm:$0xff]   ;;  %v7231_v59 = vld [vmem:[%s9266_s3 + $0x4d8] sm:$0xff]  }
  0x1d   : > { %5859 = vmatprep.subr.bf16.mxu0 %v7187_v15  ;;  %6579 = vmatprep.subr.bf16.mxu1 %v7188_v16  ;;  %v7232_v60 = vld [vmem:[%s9266_s3 + $0x30] sm:$0xff]   ;;  %v7233_v61 = vld [vmem:[%s9266_s3 + $0x498] sm:$0xff]   ;;  %v7803_v0 = vld [vmem:[%s7645_s26 + $0x28] sm:$0xff]  }
  0x1e   : > { %v7234_v62 = vld [vmem:[%s9266_s3 + $0x78] sm:$0xff]   ;;  %v7806_v1 = vld [vmem:[%s7645_s26] sm:$0xff]   ;;  %v7810_v2 = vld [vmem:[%s7670_s6 + $0x28] sm:$0xff]  }
  0x1f   : > { %v7235_v63 = vld [vmem:[%s9266_s3 + $0x38] sm:$0xff]   ;;  %v7814_v3 = vld [vmem:[%s7670_s6] sm:$0xff]   ;;  %v7825_v6 = vld [vmem:[%s7645_s26 + $0x30] sm:$0xff]  }
  0x20   : > { %5860 = vmatpush3.bf16.msra.mxu0 %v7189_v17  ;;  %6580 = vmatpush3.bf16.msra.mxu1 %v7188_v16  ;;  %v7240_v4 = vld [vmem:[%s9266_s3 + $0x4e0] sm:$0xff]   ;;  %v7829_v7 = vld [vmem:[%s7670_s6 + $0x30] sm:$0xff]   ;;  %v7244_v8 = vld [vmem:[%s9266_s3 + $0x4e8] sm:$0xff]  }
  0x21   : > { %5861 = vmatprep.subr.bf16.mxu0 %v7190_v18  ;;  %6581 = vmatprep.subr.bf16.mxu1 %v7191_v19  ;;  %v7241_v5 = vld [vmem:[%s9266_s3 + $0x4a0] sm:$0xff]   ;;  %v7245_v9 = vld [vmem:[%s9266_s3 + $0x4a8] sm:$0xff]   ;;  %v7839_v10 = vld [vmem:[%s7645_s26 + $0x38] sm:$0xff]  }
  0x22   : > { %v7248_v11 = vld [vmem:[%s9266_s3 + $0x4f0] sm:$0xff]   ;;  %v7852_v13 = vld [vmem:[%s7670_s6 + $0x38] sm:$0xff]   ;;  %v7855_v14 = vld [vmem:[%s7645_s26 + $0x40] sm:$0xff]  }
  0x23   : > { %v7249_v12 = vld [vmem:[%s9266_s3 + $0x4b0] sm:$0xff]   ;;  %v7252_v15 = vld [vmem:[%s9266_s3 + $0x4f8] sm:$0xff]   ;;  %v7254_v17 = vld [vmem:[%s9266_s3 + $0x80] sm:$0xff]  }
  0x24   : > { %5862 = vmatpush3.bf16.msra.mxu0 %v7192_v20  ;;  %6582 = vmatpush3.bf16.msra.mxu1 %v7191_v19  ;;  %v7253_v16 = vld [vmem:[%s9266_s3 + $0x4b8] sm:$0xff]   ;;  %v7255_v18 = vld [vmem:[%s9266_s3 + $0x100] sm:$0xff]   ;;  %v7257_v19 = vld [vmem:[%s9266_s3 + $0x88] sm:$0xff]  }
  0x25   : > { %5863 = vmatprep.subr.bf16.mxu0 %v7193_v21  ;;  %6583 = vmatprep.subr.bf16.mxu1 %v7194_v22  ;;  %v7877_v20 = vld [vmem:[%s7670_s6 + $0x40] sm:$0xff]   ;;  %v7258_v21 = vld [vmem:[%s9266_s3 + $0x90] sm:$0xff]  }
  0x28   : > { %5864 = vmatpush3.bf16.msra.mxu0 %v7195_v25  ;;  %6584 = vmatpush3.bf16.msra.mxu1 %v7194_v22  ;;  %v7261_v22 = vld [vmem:[%s9266_s3 + $0x98] sm:$0xff]   ;;  %v7262_v25 = vld [vmem:[%s9266_s3 + $0xa0] sm:$0xff]  }
  0x29   : > { %5929 = vmatprep.subr.bf16.mxu1 %v7200_v26  ;;  %6009 = vmatprep.subr.bf16.mxu0 %v7201_v28  ;;  %v7256_v26 = vld [vmem:[%s9266_s3 + $0xc0] sm:$0xff]   ;;  %v7259_v28 = vld [vmem:[%s9266_s3 + $0x108] sm:$0xff]  }
  0x2b   : > { %900 = vmatmul.mubr.bf16.vlgmr.msra.gmra.mrb[0].mxu0 %v7681_v27  ;;  %6586 = vmatmul.mubr.bf16.vlgmr.msra.gmra.mrb[0].mxu1 %v7687_v29 }
  0x2c   : > { %5930 = vmatpush3.bf16.msra.mxu1 %v7202_v30  ;;  %6010 = vmatpush3.bf16.msra.mxu0 %v7203_v31  ;;  %v7265_v30 = vld [vmem:[%s9266_s3 + $0xa8] sm:$0xff]  }
  0x2d   : > { %5931 = vmatprep.subr.bf16.mxu1 %v7204_v32  ;;  %907 = vmatprep.mubr.bf16.mxu0 %v7699_v33  ;;  %v7260_v31 = vld [vmem:[%s9266_s3 + $0xc8] sm:$0xff]   ;;  %v7263_v32 = vld [vmem:[%s9266_s3 + $0x110] sm:$0xff]  }
  0x2e   : > { %6589 = vmatprep.mubr.bf16.mxu1 %v7704_v34  ;;  %6011 = vmatprep.subr.bf16.mxu0 %v7211_v39  ;;  %v7267_v39 = vld [vmem:[%s9266_s3 + $0x118] sm:$0xff]  }
  0x30   : > { %5932 = vmatpush3.bf16.msra.mxu1 %v7205_v35  ;;  %6012 = vmatpush3.bf16.msra.mxu0 %v7213_v41  ;;  %v7266_v35 = vld [vmem:[%s9266_s3 + $0xb0] sm:$0xff]   ;;  %v7268_v41 = vld [vmem:[%s9266_s3 + $0xd8] sm:$0xff]  }
  0x31   : > { %5933 = vmatprep.subr.bf16.mxu1 %v7210_v38  ;;  %6013 = vmatprep.subr.bf16.mxu0 %v7221_v49  ;;  %v7264_v38 = vld [vmem:[%s9266_s3 + $0xd0] sm:$0xff]   ;;  %v7276_v49 = vld [vmem:[%s9266_s3 + $0x128] sm:$0xff]  }
  0x33   : > { %908 = vmatmul.mubr.bf16.gmra.mrb[4].mxu0 %v7711_v36  ;;  %6590 = vmatmul.mubr.bf16.gmra.mrb[4].mxu1 %v7714_v37 }
  0x34   : > { %5934 = vmatpush3.bf16.msra.mxu1 %v7212_v40  ;;  %915 = vmatprep.mubr.bf16.mxu0 %v7738_v44  ;;  %v7269_v40 = vld [vmem:[%s9266_s3 + $0xb8] sm:$0xff]  }
  0x35   : > { %5935 = vmatprep.subr.bf16.mxu1 %v7214_v42  ;;  %6593 = vmatprep.mubr.bf16.mxu1 %v7741_v45  ;;  %v7272_v42 = vld [vmem:[%s9266_s3 + $0x120] sm:$0xff]  }
  0x36   : > { %6014 = vmatpush3.bf16.msra.mxu0 %v7223_v51  ;;  %v7280_v51 = vld [vmem:[%s9266_s3 + $0x130] sm:$0xff]  }
  0x37   : > { %6015 = vmatprep.subr.bf16.mxu0 %v7231_v59  ;;  %v7290_v59 = vld [vmem:[%s9266_s3 + $0x340] sm:$0xff]  }
  0x38   : > { %5936 = vmatpush3.bf16.msra.mxu1 %v7215_v43  ;;  %v7271_v43 = vld [vmem:[%s9266_s3 + $0x500] sm:$0xff]  }
  0x39   : > { %5937 = vmatprep.subr.bf16.mxu1 %v7220_v48  ;;  %v7273_v48 = vld [vmem:[%s9266_s3 + $0xe0] sm:$0xff]  }
  0x3a   : > { %6016 = vmatpush3.bf16.msra.mxu0 %v7233_v61  ;;  %v7275_v61 = vld [vmem:[%s9266_s3 + $0x510] sm:$0xff]  }
  0x3b   : > { %916 = vmatmul.mubr.bf16.gmra.mrb[8].mxu0 %v7745_v46  ;;  %6594 = vmatmul.mubr.bf16.gmra.mrb[8].mxu1 %v7749_v47 }
  0x3c   : > { %5938 = vmatpush3.bf16.msra.mxu1 %v7222_v50  ;;  %923 = vmatprep.mubr.bf16.mxu0 %v7772_v54  ;;  %v7277_v50 = vld [vmem:[%s9266_s3 + $0xe8] sm:$0xff]  }
  0x3d   : > { %5939 = vmatprep.subr.bf16.mxu1 %v7224_v52  ;;  %6597 = vmatprep.mubr.bf16.mxu1 %v7775_v55  ;;  %v7953_v52 = vld [vmem:[%s7653_s30] sm:$0xff]  }
  0x3e   : > { %6017 = vmatprep.subr.bf16.mxu0 %v7240_v4  ;;  %v7283_v4 = vld [vmem:[%s7645_s26 + $0x48] sm:$0xff]  }
  0x3f   : > { %6018 = vmatpush3.bf16.msra.mxu0 %v7241_v5  ;;  %v1872_v5 = vshll.u32 %v7662_v23, 16 }
  0x40   : > { %5940 = vmatpush3.bf16.msra.mxu1 %v7225_v53  ;;  %6019 = vmatprep.subr.bf16.mxu0 %v7244_v8  ;;  %v7281_v53 = vld [vmem:[%s9266_s3 + $0xf0] sm:$0xff]   ;;  %v7282_v8 = vld [vmem:[%s9266_s3 + $0x528] sm:$0xff]  }
  0x41   : > { %5941 = vmatprep.subr.bf16.mxu1 %v7230_v58  ;;  %v7287_v58 = vld [vmem:[%s9266_s3 + $0xf8] sm:$0xff]  }
  0x43   : > { %924 = vmatmul.mubr.bf16.gmra.mrb[12].mxu0 %v7779_v56  ;;  %6598 = vmatmul.mubr.bf16.gmra.mrb[12].mxu1 %v7229_v57  ;;  %v7286_v57 = vld [vmem:[%s9266_s3 + $0x138] sm:$0xff]  }
  0x44   : > { %5942 = vmatpush3.bf16.msra.mxu1 %v7232_v60  ;;  %931 = vmatprep.mubr.bf16.mxu0 %v7803_v0  ;;  %v7274_v60 = vld [vmem:[%s9266_s3 + $0x508] sm:$0xff]  }
  0x45   : > { %5943 = vmatprep.subr.bf16.mxu1 %v7234_v62  ;;  %1237 = vmatprep.mubr.bf16.mxu1 %v7806_v1  ;;  %v7278_v62 = vld [vmem:[%s9266_s3 + $0x518] sm:$0xff]  }
  0x46   : > { %6020 = vmatpush3.bf16.msra.mxu0 %v7245_v9  ;;  %v1855_v9 = vshll.u32 %v7814_v3, 16 }
  0x47   : > { %6021 = vmatprep.subr.bf16.mxu0 %v7248_v11  ;;  %v7284_v11 = vld [vmem:[%s7670_s6 + $0x48] sm:$0xff]  }
  0x48   : > { %5944 = vmatpush3.bf16.msra.mxu1 %v7235_v63  ;;  %v7279_v63 = vld [vmem:[%s9266_s3 + $0x520] sm:$0xff]  }
  0x49   : > { %6601 = vmatprep.subr.bf16.mxu1 %v7254_v17 }
  0x4a   : > { %6022 = vmatpush3.bf16.msra.mxu0 %v7249_v12  ;;  %v1860_v12 = vshll.u32 %v7681_v27, 16 }
  0x4b   : > { %932 = vmatmul.mubr.bf16.gmra.mrb[16].mxu0 %v7810_v2  ;;  %1238 = vmatmul.mubr.bf16.vlgmr.msra.gmra.mrb[16].mxu1 %v7814_v3 }
  0x4c   : > { %1245 = vmatprep.mubr.bf16.mxu1 %v7662_v23  ;;  %939 = vmatprep.mubr.bf16.mxu0 %v7825_v6  ;;  %v7285_v23 = vld [vmem:[%s9266_s3 + $0x530] sm:$0xff]  }
  0x4d   : > { %6023 = vmatprep.subr.bf16.mxu0 %v7252_v15  ;;  %6602 = vmatpush3.bf16.msra.mxu1 %v7254_v17  ;;  %v7421_v15 = vld [vmem:[%s7645_s26 + $0x8] sm:$0xff]   ;;  %v1900_v17 = vshll.u32 %v7699_v33, 16 }
  0x4e   : > { %6024 = vmatpush3.bf16.msra.mxu0 %v7253_v16  ;;  %6603 = vmatprep.subr.bf16.mxu1 %v7257_v19  ;;  %v1896_v16 = vshrl.u32 %v7421_v15, 16  ;;  %v7308_v15 = vld [vmem:[%s9266_s3 + $0x320] sm:$0xff]  }
  0x4f   : > { %6089 = vmatprep.subr.bf16.mxu0 %v7255_v18  ;;  %v7289_v18 = vld [vmem:[%s9266_s3 + $0x140] sm:$0xff]  }
  0x51   : > { %6604 = vmatpush3.bf16.msra.mxu1 %v7257_v19 }
  0x52   : > { %6605 = vmatprep.subr.bf16.mxu1 %v7258_v21 }
  0x53   : > { %940 = vmatmul.mubr.bf16.gmra.mrb[20].mxu0 %v7829_v7  ;;  %1246 = vmatmul.mubr.bf16.gmra.mrb[20].mxu1 %v7681_v27 }
  0x54   : > { %947 = vmatprep.mubr.bf16.mxu0 %v7839_v10  ;;  %1253 = vmatprep.mubr.bf16.mxu1 %v7699_v33 }
  0x55   : > { %6606 = vmatpush3.bf16.msra.mxu1 %v7258_v21  ;;  %v7422_v21 = vld [vmem:[%s7670_s6 + $0x8] sm:$0xff]  }
  0x56   : > { %6607 = vmatprep.subr.bf16.mxu1 %v7261_v22 }
  0x59   : > { %6608 = vmatpush3.bf16.msra.mxu1 %v7261_v22  ;;  %v1888_v22 = vshrl.u32 %v7422_v21, 16 }
  0x5a   : > { %6609 = vmatprep.subr.bf16.mxu1 %v7262_v25 }
  0x5b   : > { %948 = vmatmul.mubr.bf16.gmra.mrb[24].mxu0 %v7852_v13  ;;  %1254 = vmatmul.mubr.bf16.gmra.mrb[24].mxu1 %v7711_v36 }
  0x5c   : > { %955 = vmatprep.mubr.bf16.mxu0 %v7855_v14  ;;  %1261 = vmatprep.mubr.bf16.mxu1 %v7738_v44 }
  0x5d   : > { %6610 = vmatpush3.bf16.msra.mxu1 %v7262_v25 }
  0x5e   : > { %6611 = vmatprep.subr.bf16.mxu1 %v7265_v30 }
  0x61   : > { %6612 = vmatpush3.bf16.msra.mxu1 %v7265_v30  ;;  %v7292_v30 = vld [vmem:[%s9266_s3 + $0x148] sm:$0xff]  }
  0x62   : > { %6613 = vmatprep.subr.bf16.mxu1 %v7266_v35 }
  0x63   : > { %956 = vmatmul.mubr.bf16.gmra.mrb[28].mxu0 %v7877_v20  ;;  %1262 = vmatmul.mubr.bf16.gmra.mrb[28].mxu1 %v7745_v46 }
  0x64   : > { %1624 = vmatprep.mubr.bf16.mxu0 %v7699_v33  ;;  %1269 = vmatprep.mubr.bf16.mxu1 %v7772_v54 }
  0x65   : > { %6614 = vmatpush3.bf16.msra.mxu1 %v7266_v35  ;;  %v8038_v35 = vld [vmem:[%s7653_s30 + $0x18] sm:$0xff]  }
  0x66   : > { %6615 = vmatprep.subr.bf16.mxu1 %v7269_v40 }
  0x69   : > { %6616 = vmatpush3.bf16.msra.mxu1 %v7269_v40 }
  0x6a   : > { %6633 = vmatprep.subr.bf16.mxu1 %v7271_v43 }
  0x6b   : > { %1625 = vmatmul.mubr.bf16.vlgmr.msra.gmra.mrb[32].mxu0 %v7711_v36  ;;  %1270 = vmatmul.mubr.bf16.gmra.mrb[32].mxu1 %v7779_v56 }
  0x6c   : > { %6090 = vmatpush3.bf16.msra.mxu0 %v7256_v26  ;;  %1277 = vmatprep.mubr.bf16.mxu1 %v7803_v0  ;;  %v1892_v26 = vshll.u32 %v7711_v36, 16  ;;  %v1916_v36 = vshll.u32 %v7745_v46, 16 }
  0x6d   : > { %1632 = vmatprep.mubr.bf16.mxu0 %v7738_v44  ;;  %6091 = vmatprep.subr.bf16.mxu0 %v7259_v28  ;;  %v1924_v28 = vshll.u32 %v7738_v44, 16 }
  0x70   : > { %6092 = vmatpush3.bf16.msra.mxu0 %v7260_v31 }
  0x71   : > { %6093 = vmatprep.subr.bf16.mxu0 %v7263_v32  ;;  %v7294_v32 = vld [vmem:[%s9266_s3 + $0x348] sm:$0xff]  }
  0x73   : > { %1633 = vmatmul.mubr.bf16.gmra.mrb[36].mxu0 %v7745_v46  ;;  %1278 = vmatmul.mubr.bf16.gmra.mrb[36].mxu1 %v7810_v2 }
  0x74   : > { %1640 = vmatprep.mubr.bf16.mxu0 %v7772_v54  ;;  %1285 = vmatprep.mubr.bf16.mxu1 %v7825_v6 }
  0x75   : > { %6094 = vmatpush3.bf16.msra.mxu0 %v7264_v38  ;;  %v1894_v38 = vrot.slane %v1892_v26, 1 }
  0x76   : > { %6095 = vmatprep.subr.bf16.mxu0 %v7267_v39  ;;  %v7295_v39 = vld [vmem:[%s9266_s3 + $0x308] sm:$0xff]  }
  0x79   : > { %6096 = vmatpush3.bf16.msra.mxu0 %v7268_v41  ;;  %v1926_v41 = vrot.slane %v1924_v28, 1  ;;  %v1992_v28 = vshrl.u32 %v7803_v0, 16 }
  0x7a   : > { %6097 = vmatprep.subr.bf16.mxu0 %v7272_v42  ;;  %v7298_v42 = vld [vmem:[%s9266_s3 + $0x350] sm:$0xff]  }
  0x7b   : > { %1641 = vmatmul.mubr.bf16.gmra.mrb[40].mxu0 %v7779_v56  ;;  %1286 = vmatmul.mubr.bf16.gmra.mrb[40].mxu1 %v7829_v7 }
  0x7c   : > { %1648 = vmatprep.mubr.bf16.mxu0 %v7803_v0  ;;  %1293 = vmatprep.mubr.bf16.mxu1 %v7839_v10 }
  0x7d   : > { %6098 = vmatpush3.bf16.msra.mxu0 %v7273_v48  ;;  %v7424_v48 = vld [vmem:[%s7670_s6 + $0x10] sm:$0xff]  }
  0x7e   : > { %6099 = vmatprep.subr.bf16.mxu0 %v7276_v49  ;;  %v1912_v49 = vshrl.u32 %v7424_v48, 16 }
  0x81   : > { %6100 = vmatpush3.bf16.msra.mxu0 %v7277_v50  ;;  %v1918_v50 = vrot.slane %v1916_v36, 1 }
  0x82   : > { %6101 = vmatprep.subr.bf16.mxu0 %v7280_v51  ;;  %v1948_v51 = vshll.u32 %v7772_v54, 16 }
  0x83   : > { %1649 = vmatmul.mubr.bf16.gmra.mrb[44].mxu0 %v7810_v2  ;;  %1294 = vmatmul.mubr.bf16.gmra.mrb[44].mxu1 %v7852_v13 }
  0x84   : > { %1656 = vmatprep.mubr.bf16.mxu0 %v7825_v6  ;;  %6617 = vmatprep.mubr.bf16.mxu1 %v7953_v52 }
  0x85   : > { %6102 = vmatpush3.bf16.msra.mxu0 %v7281_v53  ;;  %v1940_v53 = vshll.u32 %v7779_v56, 16  ;;  %v7303_v56 = vld [vmem:[%s9266_s3 + $0x358] sm:$0xff]  }
  0x86   : > { %6103 = vmatprep.subr.bf16.mxu0 %v7286_v57  ;;  %v7296_v57 = vld [vmem:[%s9266_s3 + $0x158] sm:$0xff]  }
  0x89   : > { %6104 = vmatpush3.bf16.msra.mxu0 %v7287_v58 }
  0x8a   : > { %6169 = vmatprep.subr.bf16.mxu0 %v7290_v59  ;;  %v1944_v59 = vshrl.u32 %v7738_v44, 16  ;;  %v1914_v44 = vor.u32 %v1912_v49, %v1894_v38 }
  0x8b   : > { %1657 = vmatmul.mubr.bf16.gmra.mrb[48].mxu0 %v7829_v7  ;;  %6618 = vmatmul.mubr.bf16.vlgmr.msra.gmra.mrb[0].mxu1 %v7665_v24  ;;  %v1867_v24 = vshll.u32 %v7806_v1, 16  ;;  %v1865_v7 = vshrl.u32 %v7806_v1, 16 }
  0x8c   : > { %1664 = vmatprep.mubr.bf16.mxu0 %v7839_v10  ;;  %6634 = vmatpush3.bf16.msra.mxu1 %v7271_v43  ;;  %v1874_v10 = vrot.slane %v1872_v5, 1  ;;  %v7293_v43 = vld [vmem:[%s9266_s3 + $0x150] sm:$0xff]   ;;  %v8082_v5 = vrot.slane %v1940_v53, 1 }
  0x8d   : > { %6621 = vmatprep.mubr.bf16.mxu1 %v7687_v29  ;;  %6635 = vmatprep.subr.bf16.mxu1 %v7274_v60 }
  0x8e   : > { %v1898_v19 = vor.u32 %v1896_v16, %v1874_v10  ;;  %v7310_v16 = vld [vmem:[%s9266_s3 + $0x368] sm:$0xff]  }
  0x90   : > { %6636 = vmatpush3.bf16.msra.mxu1 %v7274_v60  ;;  %v7299_v60 = vld [vmem:[%s9266_s3 + $0x310] sm:$0xff]  }
  0x91   : > { %6637 = vmatprep.subr.bf16.mxu1 %v7275_v61 }
  0x93   : > { %1665 = vmatmul.mubr.bf16.gmra.mrb[52].mxu0 %v7852_v13  ;;  %6622 = vmatmul.mubr.bf16.gmra.mrb[4].mxu1 %v7704_v34  ;;  %v1869_v34 = vrot.slane %v1867_v24, 1  ;;  %v1857_v13 = vrot.slane %v1855_v9, 1  ;;  %v7304_v9 = vld [vmem:[%s9266_s3 + $0x318] sm:$0xff]  }
  0x94   : > { %1672 = vmatprep.mubr.bf16.mxu0 %v7855_v14  ;;  %6638 = vmatpush3.bf16.msra.mxu1 %v7275_v61  ;;  %v1936_v61 = vshrl.u32 %v7745_v46, 16  ;;  %v8085_v46 = vld [vmem:[%s7653_s30 + $0x30] sm:$0xff]  }
  0x95   : > { %6625 = vmatprep.mubr.bf16.mxu1 %v7714_v37  ;;  %6639 = vmatprep.subr.bf16.mxu1 %v7278_v62  ;;  %v1870_v1 = vor.u32 %v1869_v34, %v1865_v7  ;;  %v7297_v7 = vld [vmem:[%s9266_s3 + $0x160] sm:$0xff]   ;;  %v1946_v34 = vor.u32 %v1944_v59, %v1926_v41 }
  0x97   : > { %v1875_v14 = vsel %vm1851_vm0, %v1870_v1, %v1874_v10  ;;  %v7306_v10 = vld [vmem:[%s9266_s3 + $0x360] sm:$0xff]  }
  0x98   : > { %6640 = vmatpush3.bf16.msra.mxu1 %v7278_v62  ;;  %v8074_v62 = vld [vmem:[%s7653_s30 + $0x8] sm:$0xff]  }
  0x99   : > { %6641 = vmatprep.subr.bf16.mxu1 %v7279_v63  ;;  %v1884_v24 = vshll.u32 %v8074_v62, 16 }
  0x9b   : > { %1673 = vmatmul.mubr.bf16.gmra.mrb[56].mxu0 %v7877_v20  ;;  %6626 = vmatmul.mubr.bf16.gmra.mrb[8].mxu1 %v7741_v45  ;;  %v1853_v45 = vshrl.u32 %v7814_v3, 16  ;;  %v1862_v3 = vrot.slane %v1860_v12, 1  ;;  %v1902_v20 = vrot.slane %v1900_v17, 1  ;;  %v1886_v1 = vrot.slane %v1884_v24, 1  ;;  %v8120_v17 = vld [vmem:[%s7653_s30 + $0x38] sm:$0xff]  }
  0x9c   : > { %1680 = vmatprep.mubr.bf16.mxu0 %v7283_v4  ;;  %6642 = vmatpush3.bf16.msra.mxu1 %v7279_v63  ;;  %v8078_v63 = vld [vmem:[%s7653_s30 + $0x28] sm:$0xff]   ;;  %v1950_v4 = vrot.slane %v1948_v51, 1  ;;  %v1964_v12 = vshll.u32 %v7810_v2, 16  ;;  %v1904_v2 = vshrl.u32 %v8074_v62, 16  ;;  %v7320_v24 = vld [vmem:[%s9266_s3 + $0x338] sm:$0xff]  }
  0x9d   : > { %6629 = vmatprep.mubr.bf16.mxu1 %v7749_v47  ;;  %6643 = vmatprep.subr.bf16.mxu1 %v7282_v8  ;;  %v7288_v47 = vld [vmem:[%s9266_s3 + $0x538] sm:$0xff]   ;;  %v1858_v27 = vor.u32 %v1857_v13, %v1853_v45  ;;  %v8031_v31 = vsel %vm1851_vm0, %v1898_v19, %v1902_v20  ;;  %v7300_v45 = vld [vmem:[%s9266_s3 + $0x168] sm:$0xff]   ;;  %v8126_v19 = vld [vmem:[%s7653_s30 + $0x40] sm:$0xff]  }
  0x9e   : > { %v8108_v13 = vsel %vm1851_vm0, %v1946_v34, %v1950_v4  ;;  %v8133_v26 = vrot.slane %v1964_v12, 1  ;;  %v1906_v53 = vor.u32 %v1904_v2, %v1886_v1  ;;  %v7309_v12 = vld [vmem:[%s9266_s3 + $0x388] sm:$0xff]  }
  0x9f   : > { %v1863_v25 = vsel %vm1851_vm0, %v1858_v27, %v1862_v3 }
  0xa0   : > { %6644 = vmatpush3.bf16.msra.mxu1 %v7282_v8  ;;  %v1968_v8 = vshrl.u32 %v7772_v54, 16  ;;  %v1972_v54 = vshll.u32 %v7803_v0, 16 }
  0xa1   : > { %6645 = vmatprep.subr.bf16.mxu1 %v7285_v23 }
  0xa2   : > { %v1974_v27 = vrot.slane %v1972_v54, 1  ;;  %v1970_v21 = vor.u32 %v1968_v8, %v1950_v4  ;;  %v7323_v4 = vld [vmem:[%s9266_s3 + $0x1c0] sm:$0xff]   ;;  %v7435_v8 = vld [vmem:[%s7645_s26 + $0x30] sm:$0xff]  }
  0xa3   : > { %1681 = vmatmul.mubr.bf16.gmra.mrb[60].mxu0 %v7284_v11  ;;  %6630 = vmatmul.mubr.bf16.gmra.mrb[12].mxu1 %v7775_v55  ;;  %v7291_v55 = vld [vmem:[%s9266_s3 + $0x300] sm:$0xff]   ;;  %v8100_v11 = vsel %vm1851_vm0, %v1914_v44, %v1918_v50  ;;  %v1952_v44 = vshrl.u32 %v8038_v35, 16 }
  0xa4   : > { %2256 = vmatprep.mubr.bf16.mxu0 %v1875_v14  ;;  %6646 = vmatpush3.bf16.msra.mxu1 %v7285_v23  ;;  %v1879_v23 = vshll.u32 %v7953_v52, 16  ;;  %v1877_v14 = vshrl.u32 %v7953_v52, 16  ;;  %v1938_v52 = vor.u32 %v1936_v61, %v1918_v50  ;;  %v8154_v0 = vsel %vm1851_vm0, %v1970_v21, %v1974_v27  ;;  %v7432_v50 = vld [vmem:[%s7670_s6 + $0x28] sm:$0xff]  }
  0xa5   : > { %6649 = vmatprep.mubr.bf16.mxu1 %v7687_v29  ;;  %6647 = vmatprep.subr.bf16.mxu1 %v7288_v47  ;;  %v1920_v29 = vshrl.u32 %v7699_v33, 16  ;;  %v1890_v33 = vor.u32 %v1888_v22, %v1862_v3  ;;  %v7429_v3 = vld [vmem:[%s7670_s6 + $0x20] sm:$0xff]   ;;  %v7431_v22 = vld [vmem:[%s7653_s30 + $0x10] sm:$0xff]   ;;  %v1984_v51 = vshrl.u32 %v7432_v50, 16  ;;  %v1994_v59 = vor.u32 %v1992_v28, %v1974_v27 }
  0xa6   : > { %v8147_v36 = vsel %vm1851_vm0, %v1938_v52, %v8082_v5 }
  0xa7   : > { %v1922_v40 = vor.u32 %v1920_v29, %v1902_v20  ;;  %v7302_v20 = vld [vmem:[%s9266_s3 + $0x170] sm:$0xff]   ;;  %v7312_v29 = vld [vmem:[%s9266_s3 + $0x328] sm:$0xff]  }
  0xa8   : > { %6648 = vmatpush3.bf16.msra.mxu1 %v7288_v47  ;;  %v1881_v47 = vrot.slane %v1879_v23, 1 }
  0xa9   : > { %6665 = vmatprep.subr.bf16.mxu1 %v7289_v18  ;;  %v8062_v58 = vsel %vm1851_vm0, %v1922_v40, %v1926_v41  ;;  %v1928_v41 = vshrl.u32 %v7431_v22, 16 }
  0xab   : > { %2257 = vmatmul.mubr.bf16.vlgmr.msra.gmra.mrb[64].mxu0 %v1863_v25  ;;  %6650 = vmatmul.mubr.bf16.vlgmr.msra.gmra.mrb[0].mxu1 %v8038_v35  ;;  %v1908_v25 = vshll.u32 %v7431_v22, 16  ;;  %v7437_v22 = vld [vmem:[%s7670_s6 + $0x38] sm:$0xff]  }
  0xac   : > { %6170 = vmatpush3.bf16.msra.mxu0 %v7291_v55  ;;  %6666 = vmatpush3.bf16.msra.mxu1 %v7289_v18  ;;  %v1960_v18 = vshrl.u32 %v7429_v3, 16  ;;  %v1882_v55 = vor.u32 %v1881_v47, %v1877_v14  ;;  %v1980_v14 = vshll.u32 %v8078_v63, 16  ;;  %v1986_v47 = vor.u32 %v1984_v51, %v8133_v26 }
  0xad   : > { %6653 = vmatprep.mubr.bf16.mxu1 %v7714_v37  ;;  %6667 = vmatprep.subr.bf16.mxu1 %v7292_v30  ;;  %v8054_v37 = vsel %vm1851_vm0, %v1890_v33, %v1894_v38  ;;  %v1996_v33 = vshll.u32 %v7825_v6, 16  ;;  %v7305_v38 = vld [vmem:[%s9266_s3 + $0x178] sm:$0xff]   ;;  %v7316_v6 = vld [vmem:[%s9266_s3 + $0x330] sm:$0xff]  }
  0xae   : > { %2264 = vmatprep.mubr.bf16.mxu0 %v8031_v31  ;;  %6171 = vmatprep.subr.bf16.mxu0 %v7294_v32  ;;  %v8143_v32 = vld [vmem:[%s7653_s30 + $0x48] sm:$0xff]   ;;  %v1887_v40 = vsel %vm1851_vm0, %v1882_v55, %v1886_v1  ;;  %v1962_v48 = vor.u32 %v1960_v18, %v8082_v5  ;;  %v7311_v18 = vld [vmem:[%s9266_s3 + $0x390] sm:$0xff]   ;;  %v1982_v21 = vrot.slane %v1980_v14, 1  ;;  %v2000_v55 = vshrl.u32 %v8078_v63, 16  ;;  %v7321_v14 = vld [vmem:[%s9266_s3 + $0x3b8] sm:$0xff]  }
  0xaf   : > { %v1998_v49 = vrot.slane %v1996_v33, 1 }
  0xb0   : > { %6172 = vmatpush3.bf16.msra.mxu0 %v7295_v39  ;;  %6668 = vmatpush3.bf16.msra.mxu1 %v7292_v30  ;;  %v7314_v30 = vld [vmem:[%s9266_s3 + $0x370] sm:$0xff]   ;;  %v1932_v39 = vshll.u32 %v8038_v35, 16  ;;  %v8182_v5 = vsel %vm1851_vm0, %v1962_v48, %v8133_v26  ;;  %v7436_v35 = vld [vmem:[%s7645_s26 + $0x38] sm:$0xff]  }
  0xb1   : > { %6173 = vmatprep.subr.bf16.mxu0 %v7298_v42  ;;  %6669 = vmatprep.subr.bf16.mxu1 %v7293_v43  ;;  %v1910_v42 = vrot.slane %v1908_v25, 1  ;;  %v8190_v1 = vsel %vm1851_vm0, %v1994_v59, %v1998_v49  ;;  %v2012_v25 = vshll.u32 %v7437_v22, 16  ;;  %v2040_v28 = vshrl.u32 %v7436_v35, 16  ;;  %v8242_v59 = vld [vmem:[%s7670_s6 + $0x40] sm:$0xff]  }
  0xb3   : > { %2265 = vmatmul.mubr.bf16.gmra.mrb[68].mxu0 %v8054_v37  ;;  %6654 = vmatmul.mubr.bf16.gmra.mrb[4].mxu1 %v8078_v63  ;;  %v1930_v61 = vor.u32 %v1928_v41, %v1910_v42  ;;  %v8187_v23 = vsel %vm1851_vm0, %v1906_v53, %v1910_v42  ;;  %v7313_v63 = vld [vmem:[%s9266_s3 + $0x398] sm:$0xff]  }
  0xb4   : > { %2272 = vmatprep.mubr.bf16.mxu0 %v8062_v58  ;;  %6670 = vmatpush3.bf16.msra.mxu1 %v7293_v43  ;;  %v7318_v43 = vld [vmem:[%s9266_s3 + $0x378] sm:$0xff]  }
  0xb5   : > { %6657 = vmatprep.mubr.bf16.mxu1 %v8085_v46  ;;  %6671 = vmatprep.subr.bf16.mxu1 %v7296_v57 }
  0xb6   : > { %6174 = vmatpush3.bf16.msra.mxu0 %v7299_v60  ;;  %v1934_v60 = vrot.slane %v1932_v39, 1 }
  0xb7   : > { %6175 = vmatprep.subr.bf16.mxu0 %v7303_v56  ;;  %v7433_v56 = vld [vmem:[%s7670_s6 + $0x30] sm:$0xff]  }
  0xb8   : > { %6672 = vmatpush3.bf16.msra.mxu1 %v7296_v57  ;;  %v7307_v57 = vld [vmem:[%s9266_s3 + $0x380] sm:$0xff]   ;;  %v1988_v62 = vshll.u32 %v7433_v56, 16  ;;  %v2008_v3 = vshrl.u32 %v7433_v56, 16  ;;  %v2032_v56 = vshrl.u32 %v7437_v22, 16  ;;  %v7333_v22 = vld [vmem:[%s9266_s3 + $0x558] sm:$0xff]  }
  0xb9   : > { %6673 = vmatprep.subr.bf16.mxu1 %v7297_v7 }
  0xba   : > { %6176 = vmatpush3.bf16.msra.mxu0 %v7304_v9  ;;  %v2016_v9 = vshrl.u32 %v7435_v8, 16 }
  0xbb   : > { %2273 = vmatmul.mubr.bf16.gmra.mrb[72].mxu0 %v8100_v11  ;;  %6177 = vmatprep.subr.bf16.mxu0 %v7306_v10  ;;  %v2020_v10 = vshll.u32 %v7436_v35, 16 }
  0xbc   : > { %6658 = vmatmul.mubr.bf16.gmra.mrb[8].mxu1 %v8120_v17  ;;  %2280 = vmatprep.mubr.bf16.mxu0 %v8108_v13  ;;  %v2018_v52 = vor.u32 %v2016_v9, %v1998_v49  ;;  %v2002_v49 = vor.u32 %v2000_v55, %v1982_v21  ;;  %v7343_v55 = vld [vmem:[%s9266_s3 + $0x198] sm:$0xff]  }
  0xbd   : > { %6674 = vmatpush3.bf16.msra.mxu1 %v7297_v7  ;;  %6661 = vmatprep.mubr.bf16.mxu1 %v8126_v19  ;;  %v7434_v7 = vld [vmem:[%s7653_s30 + $0x20] sm:$0xff]   ;;  %v2022_v27 = vrot.slane %v2020_v10, 1  ;;  %v7319_v10 = vld [vmem:[%s9266_s3 + $0x3b0] sm:$0xff]  }
  0xbe   : > { %6675 = vmatprep.subr.bf16.mxu1 %v7300_v45  ;;  %6178 = vmatpush3.bf16.msra.mxu0 %v7308_v15  ;;  %v1956_v34 = vshll.u32 %v7434_v7, 16  ;;  %v1976_v54 = vshrl.u32 %v7434_v7, 16  ;;  %v1990_v15 = vrot.slane %v1988_v62, 1  ;;  %v7317_v7 = vld [vmem:[%s9266_s3 + $0x3a8] sm:$0xff]  }
  0xbf   : > { %6179 = vmatprep.subr.bf16.mxu0 %v7310_v16  ;;  %v1954_v16 = vor.u32 %v1952_v44, %v1934_v60  ;;  %v8218_v33 = vsel %vm1851_vm0, %v2018_v52, %v2022_v27  ;;  %v2042_v50 = vor.u32 %v2040_v28, %v2022_v27  ;;  %v2048_v44 = vshrl.u32 %v8120_v17, 16  ;;  %v7331_v52 = vld [vmem:[%s9266_s3 + $0x188] sm:$0xff]   ;;  %v7335_v27 = vld [vmem:[%s9266_s3 + $0x1d0] sm:$0xff]   ;;  %v7336_v28 = vld [vmem:[%s9266_s3 + $0x560] sm:$0xff]  }
  0xc0   : > { %v1958_v2 = vrot.slane %v1956_v34, 1  ;;  %v8211_v26 = vsel %vm1851_vm0, %v1986_v47, %v1990_v15  ;;  %v2010_v42 = vor.u32 %v2008_v3, %v1990_v15  ;;  %v7322_v47 = vld [vmem:[%s9266_s3 + $0x580] sm:$0xff]   ;;  %v7330_v3 = vld [vmem:[%s9266_s3 + $0x550] sm:$0xff]  }
  0xc1   : > { %6676 = vmatpush3.bf16.msra.mxu1 %v7300_v45  ;;  %v8197_v45 = vsel %vm1851_vm0, %v1930_v61, %v1934_v60  ;;  %v2036_v60 = vshll.u32 %v8242_v59, 16  ;;  %v7324_v15 = vld [vmem:[%s9266_s3 + $0x540] sm:$0xff]  }
  0xc2   : > { %6677 = vmatprep.subr.bf16.mxu1 %v7302_v20  ;;  %6180 = vmatpush3.bf16.msra.mxu0 %v7312_v29  ;;  %v2004_v29 = vshll.u32 %v8085_v46, 16 }
  0xc3   : > { %2281 = vmatmul.mubr.bf16.gmra.mrb[76].mxu0 %v8147_v36  ;;  %6181 = vmatprep.subr.bf16.mxu0 %v7314_v30  ;;  %v8215_v30 = vsel %vm1851_vm0, %v1954_v16, %v1958_v2  ;;  %v8263_v8 = vrot.slane %v2036_v60, 1  ;;  %v7327_v16 = vld [vmem:[%s9266_s3 + $0x548] sm:$0xff]   ;;  %v7350_v60 = vld [vmem:[%s9266_s3 + $0x1f0] sm:$0xff]  }
  0xc4   : > { %6662 = vmatmul.mubr.bf16.gmra.mrb[12].mxu1 %v8143_v32  ;;  %2288 = vmatprep.mubr.bf16.mxu0 %v8154_v0  ;;  %v2006_v48 = vrot.slane %v2004_v29, 1  ;;  %v7346_v29 = vld [vmem:[%s9266_s3 + $0x1e0] sm:$0xff]  }
  0xc5   : > { %6678 = vmatpush3.bf16.msra.mxu1 %v7302_v20  ;;  %6681 = vmatprep.mubr.bf16.mxu1 %v1887_v40  ;;  %v1978_v20 = vor.u32 %v1976_v54, %v1958_v2  ;;  %v2028_v40 = vshll.u32 %v8120_v17, 16  ;;  %v7325_v2 = vld [vmem:[%s9266_s3 + $0x180] sm:$0xff]  }
  0xc6   : > { %6679 = vmatprep.subr.bf16.mxu1 %v7305_v38  ;;  %6182 = vmatpush3.bf16.msra.mxu0 %v7316_v6  ;;  %v2024_v6 = vshrl.u32 %v8085_v46, 16  ;;  %v7315_v46 = vld [vmem:[%s9266_s3 + $0x3a0] sm:$0xff]   ;;  %v8249_v62 = vsel %vm1851_vm0, %v2002_v49, %v2006_v48 }
  0xc7   : > { %6183 = vmatprep.subr.bf16.mxu0 %v7318_v43  ;;  %v8229_v41 = vsel %vm1851_vm0, %v1978_v20, %v1982_v21  ;;  %v2014_v43 = vrot.slane %v2012_v25, 1  ;;  %v2030_v53 = vrot.slane %v2028_v40, 1  ;;  %v7337_v20 = vld [vmem:[%s9266_s3 + $0x190] sm:$0xff]   ;;  %v7341_v21 = vld [vmem:[%s9266_s3 + $0x1d8] sm:$0xff]   ;;  %v7334_v25 = vld [vmem:[%s9266_s3 + $0x5a0] sm:$0xff]   ;;  %v2499_v40 = vshrl.u32 %v8126_v19, 16 }
  0xc9   : > { %6680 = vmatpush3.bf16.msra.mxu1 %v7305_v38  ;;  %v8221_v38 = vld [vmem:[%s7645_s26 + $0x40] sm:$0xff]   ;;  %v8246_v61 = vsel %vm1851_vm0, %v2010_v42, %v2014_v43  ;;  %v2034_v9 = vor.u32 %v2032_v56, %v2014_v43  ;;  %v2050_v17 = vor.u32 %v2048_v44, %v2030_v53  ;;  %v7348_v42 = vld [vmem:[%s9266_s3 + $0x1e8] sm:$0xff]  }
  0xca   : > { %6697 = vmatprep.subr.bf16.mxu1 %v7307_v57  ;;  %6184 = vmatpush3.bf16.msra.mxu0 %v7320_v24  ;;  %v2044_v39 = vshll.u32 %v8221_v38, 16 }
  0xcb   : > { %2289 = vmatmul.mubr.bf16.gmra.mrb[80].mxu0 %v8182_v5  ;;  %6329 = vmatprep.subr.bf16.mxu0 %v7323_v4  ;;  %v2052_v4 = vshll.u32 %v8126_v19, 16  ;;  %v8276_v54 = vsel %vm1851_vm0, %v2034_v9, %v8263_v8  ;;  %v7344_v9 = vld [vmem:[%s9266_s3 + $0x5b8] sm:$0xff]  }
  0xcc   : > { %6682 = vmatmul.mubr.bf16.vlgmr.msra.gmra.mrb[0].mxu1 %v8187_v23  ;;  %2296 = vmatprep.mubr.bf16.mxu0 %v8190_v1  ;;  %v8236_v51 = vrot.slane %v2044_v39, 1  ;;  %v7338_v39 = vld [vmem:[%s9266_s3 + $0x5a8] sm:$0xff]  }
  0xcd   : > { %6698 = vmatpush3.bf16.msra.mxu1 %v7307_v57  ;;  %6685 = vmatprep.mubr.bf16.mxu1 %v8197_v45  ;;  %v2026_v57 = vor.u32 %v2024_v6, %v2006_v48  ;;  %v8269_v35 = vrot.slane %v2052_v4, 1  ;;  %v7347_v6 = vld [vmem:[%s9266_s3 + $0x1a0] sm:$0xff]  }
  0xce   : > { %6699 = vmatprep.subr.bf16.mxu1 %v7309_v12  ;;  %v8253_v24 = vsel %vm1851_vm0, %v2042_v50, %v8236_v51  ;;  %v7340_v50 = vld [vmem:[%s9266_s3 + $0x5b0] sm:$0xff]  }
  0xcf   : > { %v8261_v34 = vsel %vm1851_vm0, %v2026_v57, %v2030_v53  ;;  %v2501_v43 = vor.u32 %v2499_v40, %v8269_v35  ;;  %v7349_v53 = vld [vmem:[%s9266_s3 + $0x1a8] sm:$0xff]  }
  0xd1   : > { %6700 = vmatpush3.bf16.msra.mxu1 %v7309_v12  ;;  %v8280_v12 = vsel %vm1851_vm0, %v2050_v17, %v8269_v35  ;;  %v7351_v17 = vld [vmem:[%s9266_s3 + $0x1b0] sm:$0xff]   ;;  %v7352_v35 = vld [vmem:[%s9266_s3 + $0x1f8] sm:$0xff]  }
  0xd2   : > { %6701 = vmatprep.subr.bf16.mxu1 %v7311_v18 }
  0xd3   : > { %2297 = vmatmul.mubr.bf16.gmra.mrb[84].mxu0 %v8211_v26 }
  0xd4   : > { %6686 = vmatmul.mubr.bf16.gmra.mrb[4].mxu1 %v8215_v30  ;;  %2304 = vmatprep.mubr.bf16.mxu0 %v8218_v33 }
  0xd5   : > { %6702 = vmatpush3.bf16.msra.mxu1 %v7311_v18  ;;  %6689 = vmatprep.mubr.bf16.mxu1 %v8229_v41  ;;  %v7332_v18 = vld [vmem:[%s9266_s3 + $0x598] sm:$0xff]  }
  0xd6   : > { %6703 = vmatprep.subr.bf16.mxu1 %v7313_v63 }
  0xd9   : > { %6704 = vmatpush3.bf16.msra.mxu1 %v7313_v63  ;;  %v2503_v63 = vshll.u32 %v8143_v32, 16  ;;  %v7339_v32 = vld [vmem:[%s9266_s3 + $0x568] sm:$0xff]  }
  0xda   : > { %6705 = vmatprep.subr.bf16.mxu1 %v7315_v46 }
  0xdb   : > { %2305 = vmatmul.mubr.bf16.gmra.mrb[88].mxu0 %v8246_v61  ;;  %v8370_v48 = vrot.slane %v2503_v63, 1  ;;  %v7362_v63 = vld [vmem:[%s9266_s3 + $0x5e0] sm:$0xff]  }
  0xdc   : > { %6690 = vmatmul.mubr.bf16.gmra.mrb[8].mxu1 %v8249_v62  ;;  %2312 = vmatprep.mubr.bf16.mxu0 %v8253_v24 }
  0xdd   : > { %6706 = vmatpush3.bf16.msra.mxu1 %v7315_v46  ;;  %6693 = vmatprep.mubr.bf16.mxu1 %v8261_v34  ;;  %v8387_v4 = vsel %vm1851_vm0, %v2501_v43, %v8370_v48 }
  0xde   : > { %6707 = vmatprep.subr.bf16.mxu1 %v7317_v7 }
  0xe1   : > { %6708 = vmatpush3.bf16.msra.mxu1 %v7317_v7  ;;  %v7342_v7 = vld [vmem:[%s9266_s3 + $0x570] sm:$0xff]  }
  0xe2   : > { %6709 = vmatprep.subr.bf16.mxu1 %v7319_v10 }
  0xe3   : > { %2313 = vmatmul.mubr.bf16.gmra.mrb[92].mxu0 %v8276_v54 }
  0xe4   : > { %6694 = vmatmul.mubr.bf16.gmra.mrb[12].mxu1 %v8280_v12  ;;  %2686 = vmatprep.mubr.bf16.mxu0 %v8031_v31  ;;  %v7326_v31 = vld [vmem:[%s9266_s3 + $0x588] sm:$0xff]  }
  0xe5   : > { %6710 = vmatpush3.bf16.msra.mxu1 %v7319_v10  ;;  %6713 = vmatprep.mubr.bf16.mxu1 %v8187_v23  ;;  %v7329_v23 = vld [vmem:[%s9266_s3 + $0x1c8] sm:$0xff]  }
  0xe6   : > { %6711 = vmatprep.subr.bf16.mxu1 %v7321_v14 }
  0xe9   : > { %6712 = vmatpush3.bf16.msra.mxu1 %v7321_v14  ;;  %v7345_v14 = vld [vmem:[%s9266_s3 + $0x578] sm:$0xff]  }
  0xea   : > { %6249 = vmatprep.subr.bf16.mxu1 %v7322_v47 }
  0xeb   : > { %2687 = vmatmul.mubr.bf16.vlgmr.msra.gmra.mrb[96].mxu0 %v8054_v37  ;;  %v7328_v37 = vld [vmem:[%s9266_s3 + $0x590] sm:$0xff]  }
  0xec   : > { %6714 = vmatmul.mubr.bf16.vlgmr.msra.gmra.mrb[0].mxu1 %v8197_v45  ;;  %6330 = vmatpush3.bf16.msra.mxu0 %v7325_v2  ;;  %v7354_v2 = vld [vmem:[%s9266_s3 + $0x5c0] sm:$0xff]  }
  0xed   : > { %6250 = vmatpush3.bf16.msra.mxu1 %v7324_v15  ;;  %2694 = vmatprep.mubr.bf16.mxu0 %v8062_v58  ;;  %v7353_v15 = vld [vmem:[%s9266_s3 + $0x1b8] sm:$0xff]  }
  0xee   : > { %6251 = vmatprep.subr.bf16.mxu1 %v7326_v31  ;;  %6717 = vmatprep.mubr.bf16.mxu1 %v8215_v30 }
  0xef   : > { %6331 = vmatprep.subr.bf16.mxu0 %v7329_v23 }
  0xf0   : > { %6332 = vmatpush3.bf16.msra.mxu0 %v7331_v52 }
  0xf1   : > { %6252 = vmatpush3.bf16.msra.mxu1 %v7327_v16  ;;  %6333 = vmatprep.subr.bf16.mxu0 %v7335_v27  ;;  %v7355_v16 = vld [vmem:[%s9266_s3 + $0x400] sm:$0xff]   ;;  %v7357_v27 = vld [vmem:[%s9266_s3 + $0x5c8] sm:$0xff]  }
  0xf2   : > { %6253 = vmatprep.subr.bf16.mxu1 %v7328_v37 }
  0xf3   : > { %2695 = vmatmul.mubr.bf16.gmra.mrb[100].mxu0 %v8100_v11 }
  0xf4   : > { %6718 = vmatmul.mubr.bf16.gmra.mrb[4].mxu1 %v8229_v41  ;;  %2702 = vmatprep.mubr.bf16.mxu0 %v8108_v13 }
  0xf5   : > { %6254 = vmatpush3.bf16.msra.mxu1 %v7330_v3  ;;  %6721 = vmatprep.mubr.bf16.mxu1 %v8249_v62 }
  0xf6   : > { %6255 = vmatprep.subr.bf16.mxu1 %v7332_v18  ;;  %6334 = vmatpush3.bf16.msra.mxu0 %v7337_v20  ;;  %v7358_v18 = vld [vmem:[%s9266_s3 + $0x5d0] sm:$0xff]  }
  0xf7   : > { %6335 = vmatprep.subr.bf16.mxu0 %v7341_v21 }
  0xf9   : > { %6256 = vmatpush3.bf16.msra.mxu1 %v7333_v22 }
  0xfa   : > { %6257 = vmatprep.subr.bf16.mxu1 %v7334_v25  ;;  %6336 = vmatpush3.bf16.msra.mxu0 %v7343_v55  ;;  %v8437_v55 = vld [vmem:[%s7645_s26 + $0x48] sm:$0xff]  }
  0xfb   : > { %2703 = vmatmul.mubr.bf16.gmra.mrb[104].mxu0 %v8147_v36  ;;  %6337 = vmatprep.subr.bf16.mxu0 %v7346_v29  ;;  %v2495_v29 = vshll.u32 %v8437_v55, 16 }
  0xfc   : > { %6722 = vmatmul.mubr.bf16.gmra.mrb[8].mxu1 %v8261_v34  ;;  %2710 = vmatprep.mubr.bf16.mxu0 %v8154_v0 }
  0xfd   : > { %6258 = vmatpush3.bf16.msra.mxu1 %v7336_v28  ;;  %6725 = vmatprep.mubr.bf16.mxu1 %v8280_v12 }
  0xfe   : > { %v5865_v19 = vpop.f32.mrb[0].mxu0  ;;  %6259 = vmatprep.subr.bf16.mxu1 %v7338_v39  ;;  %6338 = vmatpush3.bf16.msra.mxu0 %v7347_v6  ;;  %v8448_v39 = vrot.slane %v2495_v29, 1 }
  0xff   : > { %v5866_v49 = vpop.f32.mrb[1].mxu0  ;;  %6339 = vmatprep.subr.bf16.mxu0 %v7348_v42 }
 0x100   : > { %v8378_v46 = vadd.f32 %v5866_v49, %v5865_v19  ;;  %v5868_v57 = vpop.f32.mrb[2].mxu0  ;;  %v2483_v19 = vshrl.u32 %v8242_v59, 16  ;;  %v7365_v49 = vld [vmem:[%s9266_s3 + $0x5e8] sm:$0xff]  }
 0x101   : > { %v5869_v56 = vpop.f32.mrb[3].mxu0  ;;  %6260 = vmatpush3.bf16.msra.mxu1 %v7339_v32 }
 0x102   : > { %v8383_v44 = vadd.f32 %v5869_v56, %v5868_v57  ;;  %6261 = vmatprep.subr.bf16.mxu1 %v7340_v50  ;;  %6340 = vmatpush3.bf16.msra.mxu0 %v7349_v53  ;;  %v2485_v59 = vor.u32 %v2483_v19, %v8263_v8  ;;  %v7442_v53 = vld [vmem:[%s7645_s26] sm:$0xff]  }
 0x103   : > { %2711 = vmatmul.mubr.bf16.gmra.mrb[108].mxu0 %v8182_v5  ;;  %6341 = vmatprep.subr.bf16.mxu0 %v7350_v60  ;;  %v3347_v57 = vrot.slane %v7442_v53, 1  ;;  %v7443_v60 = vld [vmem:[%s7645_s26 + $0x8] sm:$0xff]  }
 0x104   : > { %6726 = vmatmul.mubr.bf16.gmra.mrb[12].mxu1 %v8387_v4  ;;  %2718 = vmatprep.mubr.bf16.mxu0 %v8190_v1  ;;  %v3348_v56 = vrot.slane %v7443_v60, 1 }
 0x105   : > { %6262 = vmatpush3.bf16.msra.mxu1 %v7342_v7  ;;  %3116 = vmatprep.mubr.bf16.mxu1 %v8062_v58 }
 0x106   : > { %v5871_v10 = vpop.f32.mrb[4].mxu0  ;;  %6263 = vmatprep.subr.bf16.mxu1 %v7344_v9  ;;  %6342 = vmatpush3.bf16.msra.mxu0 %v7351_v17 }
 0x107   : > { %v5872_v47 = vpop.f32.mrb[5].mxu0  ;;  %6343 = vmatprep.subr.bf16.mxu0 %v7352_v35 }
 0x108   : > { %v8414_v31 = vadd.f32 %v5872_v47, %v5871_v10  ;;  %v5874_v23 = vpop.f32.mrb[6].mxu0 }
 0x109   : > { %v5875_v58 = vpop.f32.mrb[7].mxu0  ;;  %6264 = vmatpush3.bf16.msra.mxu1 %v7345_v14 }
 0x10a   : > { %v8419_v52 = vadd.f32 %v5875_v58, %v5874_v23  ;;  %6344 = vmatpush3.bf16.msra.mxu0 %v7353_v15  ;;  %6729 = vmatprep.subr.bf16.mxu1 %v7354_v2  ;;  %v7371_v58 = vld [vmem:[%s9266_s3 + $0x5f8] sm:$0xff]  }
 0x10b   : > { %2719 = vmatmul.mubr.bf16.gmra.mrb[112].mxu0 %v8211_v26  ;;  %6409 = vmatprep.subr.bf16.mxu0 %v7355_v16 }
 0x10c   : > { %3117 = vmatmul.mubr.bf16.vlgmr.msra.gmra.mrb[48].mxu1 %v8100_v11  ;;  %2726 = vmatprep.mubr.bf16.mxu0 %v8218_v33  ;;  %v2491_v11 = vshrl.u32 %v8221_v38, 16 }
 0x10d   : > { %3124 = vmatprep.mubr.bf16.mxu1 %v8108_v13  ;;  %6730 = vmatpush3.bf16.msra.mxu1 %v7354_v2  ;;  %v7361_v13 = vld [vmem:[%s9266_s3 + $0x5d8] sm:$0xff]   ;;  %v3349_v2 = vsel %vm3343_vm1, %v3347_v57, %v3348_v56  ;;  %v7359_v57 = vld [vmem:[%s9266_s3 + $0x408] sm:$0xff]  }
 0x10e   : > { %v5877_v37 = vpop.f32.mrb[8].mxu0  ;;  %6731 = vmatprep.subr.bf16.mxu1 %v7357_v27  ;;  %v2493_v38 = vor.u32 %v2491_v11, %v8236_v51 }
 0x10f   : > { %v5878_v3 = vpop.f32.mrb[9].mxu0 }
 0x110   : > { %v8431_v20 = vadd.f32 %v5878_v3, %v5877_v37  ;;  %v5880_v21 = vpop.f32.mrb[10].mxu0  ;;  %v8464_v43 = vsel %vm1851_vm0, %v2493_v38, %v8448_v39  ;;  %v7444_v3 = vld [vmem:[%s7670_s6] sm:$0xff]  }
 0x111   : > { %v5881_v22 = vpop.f32.mrb[11].mxu0  ;;  %6732 = vmatpush3.bf16.msra.mxu1 %v7357_v27 }
 0x112   : > { %v8433_v25 = vadd.f32 %v5881_v22, %v5880_v21  ;;  %6733 = vmatprep.subr.bf16.mxu1 %v7358_v18  ;;  %v7445_v21 = vld [vmem:[%s7670_s6 + $0x8] sm:$0xff]  }
 0x113   : > { %2727 = vmatmul.mubr.bf16.gmra.mrb[116].mxu0 %v8246_v61  ;;  %v3345_v22 = vrot.slane %v7445_v21, 1  ;;  %v7364_v21 = vld [vmem:[%s9266_s3 + $0x3d0] sm:$0xff]  }
 0x114   : > { %3125 = vmatmul.mubr.bf16.gmra.mrb[52].mxu1 %v8147_v36  ;;  %2734 = vmatprep.mubr.bf16.mxu0 %v8253_v24 }
 0x115   : > { %3132 = vmatprep.mubr.bf16.mxu1 %v8154_v0  ;;  %6734 = vmatpush3.bf16.msra.mxu1 %v7358_v18  ;;  %v8457_v0 = vld [vmem:[%s7670_s6 + $0x48] sm:$0xff]   ;;  %v3344_v18 = vrot.slane %v7444_v3, 1 }
 0x116   : > { %v5883_v28 = vpop.f32.mrb[12].mxu0  ;;  %6735 = vmatprep.subr.bf16.mxu1 %v7361_v13  ;;  %v2487_v51 = vshll.u32 %v8457_v0, 16 }
 0x117   : > { %v5884_v40 = vpop.f32.mrb[13].mxu0 }
 0x118   : > { %v8453_v6 = vadd.f32 %v5884_v40, %v5883_v28  ;;  %v5886_v42 = vpop.f32.mrb[14].mxu0  ;;  %v8473_v50 = vrot.slane %v2487_v51, 1  ;;  %v8508_v28 = vld [vmem:[%s9266_s3 + $0x200] sm:$0xff]  }
 0x119   : > { %v5887_v36 = vpop.f32.mrb[15].mxu0  ;;  %6736 = vmatpush3.bf16.msra.mxu1 %v7361_v13  ;;  %v7446_v13 = vld [vmem:[%s7645_s26 + $0x10] sm:$0xff]  }
 0x11a   : > { %v8460_v32 = vadd.f32 %v5887_v36, %v5886_v42  ;;  %6737 = vmatprep.subr.bf16.mxu1 %v7362_v63 }
 0x11b   : > { %2735 = vmatmul.mubr.bf16.gmra.mrb[120].mxu0 %v8276_v54 }
 0x11c   : > { %3133 = vmatmul.mubr.bf16.gmra.mrb[56].mxu1 %v8182_v5  ;;  %2742 = vmatprep.mubr.bf16.mxu0 %v8464_v43  ;;  %v7368_v5 = vld [vmem:[%s9266_s3 + $0x5f0] sm:$0xff]  }
 0x11d   : > { %3140 = vmatprep.mubr.bf16.mxu1 %v8190_v1  ;;  %6738 = vmatpush3.bf16.msra.mxu1 %v7362_v63  ;;  %v8485_v1 = vsel %vm1851_vm0, %v2485_v59, %v8473_v50 }
 0x11e   : > { %v5889_v7 = vpop.f32.mrb[16].mxu0  ;;  %6739 = vmatprep.subr.bf16.mxu1 %v7365_v49  ;;  %v5945_v9 = vpop.f32.mrb[16].mxu1 }
 0x11f   : > { %v5890_v17 = vpop.f32.mrb[17].mxu0  ;;  %v5946_v8 = vpop.f32.mrb[17].mxu1 }
 0x120   : > { %v8481_v35 = vadd.f32 %v5890_v17, %v5889_v7  ;;  %v5892_v10 = vpop.f32.mrb[18].mxu0  ;;  %v5947_v14 = vadd.f32 %v5946_v8, %v5945_v9  ;;  %v5948_v47 = vpop.f32.mrb[18].mxu1 }
 0x121   : > { %v5893_v15 = vpop.f32.mrb[19].mxu0  ;;  %6740 = vmatpush3.bf16.msra.mxu1 %v7365_v49  ;;  %v5949_v16 = vpop.f32.mrb[19].mxu1 }
 0x122   : > { %v8488_v23 = vadd.f32 %v5893_v15, %v5892_v10  ;;  %6741 = vmatprep.subr.bf16.mxu1 %v7368_v5  ;;  %v8494_v27 = vadd.f32 %v5947_v14, %v8378_v46  ;;  %v5950_v37 = vadd.f32 %v5949_v16, %v5948_v47  ;;  %v3355_v46 = vrot.slane %v7446_v13, 1  ;;  %v8543_v14 = vld [vmem:[%s7645_s26 + $0x50] sm:$0xff]  }
 0x123   : > { %2743 = vmatmul.mubr.bf16.gmra.mrb[124].mxu0 %v8485_v1 }
 0x124   : > { %3141 = vmatmul.mubr.bf16.gmra.mrb[60].mxu1 %v8211_v26  ;;  %3595 = vmatprep.mubr.bf16.mxu0 %v3349_v2  ;;  %v8501_v11 = vadd.f32 %v5950_v37, %v8383_v44  ;;  %v3346_v44 = vsel %vm3343_vm1, %v3344_v18, %v3345_v22  ;;  %v8519_v53 = vsel %vm3343_vm1, %v3348_v56, %v3355_v46  ;;  %v7360_v56 = vld [vmem:[%s9266_s3 + $0x3c8] sm:$0xff]  }
 0x125   : > { %3148 = vmatprep.mubr.bf16.mxu1 %v8218_v33  ;;  %6742 = vmatpush3.bf16.msra.mxu1 %v7368_v5  ;;  %v7356_v33 = vld [vmem:[%s9266_s3 + $0x3c0] sm:$0xff]   ;;  %v7447_v5 = vld [vmem:[%s7670_s6 + $0x10] sm:$0xff]  }
 0x126   : > { %v5895_v29 = vpop.f32.mrb[20].mxu0  ;;  %6743 = vmatprep.subr.bf16.mxu1 %v7371_v58  ;;  %v5951_v26 = vpop.f32.mrb[20].mxu1  ;;  %v3353_v9 = vrot.slane %v7447_v5, 1 }
 0x127   : > { %v5896_v38 = vpop.f32.mrb[21].mxu0  ;;  %v5952_v63 = vpop.f32.mrb[21].mxu1 }
 0x128   : > { %v8510_v40 = vadd.f32 %v5896_v38, %v5895_v29  ;;  %v5898_v42 = vpop.f32.mrb[22].mxu0  ;;  %v5953_v36 = vadd.f32 %v5952_v63, %v5951_v26  ;;  %v5954_v19 = vpop.f32.mrb[22].mxu1  ;;  %v2925_v26 = vshll.u32 %v8543_v14, 16  ;;  %v7369_v38 = vld [vmem:[%s9266_s3 + $0x418] sm:$0xff]  }
 0x129   : > { %v5899_v51 = vpop.f32.mrb[23].mxu0  ;;  %6744 = vmatpush3.bf16.msra.mxu1 %v7371_v58  ;;  %v5955_v59 = vpop.f32.mrb[23].mxu1 }
 0x12a   : > { %v8516_v49 = vadd.f32 %v5899_v51, %v5898_v42  ;;  %6761 = vmatprep.subr.bf16.mxu1 %v8508_v28  ;;  %v8526_v60 = vadd.f32 %v5953_v36, %v8414_v31  ;;  %v5956_v7 = vadd.f32 %v5955_v59, %v5954_v19  ;;  %v7448_v31 = vld [vmem:[%s7645_s26 + $0x18] sm:$0xff]   ;;  %v7450_v36 = vld [vmem:[%s7645_s26 + $0x20] sm:$0xff]   ;;  %v8576_v51 = vld [vmem:[%s7670_s6 + $0x50] sm:$0xff]  }
 0x12b   : > { %3596 = vmatmul.mubr.bf16.vlgmr.msra.gmra.mrb[128].mxu0 %v3346_v44  ;;  %v3361_v8 = vrot.slane %v7448_v31, 1  ;;  %v7449_v42 = vld [vmem:[%s7670_s6 + $0x18] sm:$0xff]   ;;  %v3367_v19 = vrot.slane %v7450_v36, 1  ;;  %v7452_v36 = vld [vmem:[%s7645_s26 + $0x28] sm:$0xff]  }
 0x12c   : > { %3149 = vmatmul.mubr.bf16.gmra.mrb[64].mxu1 %v8246_v61  ;;  %6410 = vmatpush3.bf16.msra.mxu0 %v7356_v33  ;;  %v8534_v17 = vadd.f32 %v5956_v7, %v8419_v52  ;;  %v7363_v61 = vld [vmem:[%s9266_s3 + $0x410] sm:$0xff]   ;;  %v3359_v44 = vrot.slane %v7449_v42, 1 }
 0x12d   : > { %3156 = vmatprep.mubr.bf16.mxu1 %v8253_v24  ;;  %3603 = vmatprep.mubr.bf16.mxu0 %v8519_v53  ;;  %v8548_v24 = vsel %vm3343_vm1, %v3345_v22, %v3353_v9  ;;  %v8551_v18 = vsel %vm3343_vm1, %v3355_v46, %v3361_v8  ;;  %v2921_v22 = vshrl.u32 %v8437_v55, 16 }
 0x12e   : > { %v5901_v10 = vpop.f32.mrb[24].mxu0  ;;  %6411 = vmatprep.subr.bf16.mxu0 %v7359_v57  ;;  %v5957_v47 = vpop.f32.mrb[24].mxu1  ;;  %v2927_v57 = vrot.slane %v2925_v26, 1 }
 0x12f   : > { %v5902_v15 = vpop.f32.mrb[25].mxu0  ;;  %v5958_v52 = vpop.f32.mrb[25].mxu1 }
 0x130   : > { %v8545_v2 = vadd.f32 %v5902_v15, %v5901_v10  ;;  %v5904_v16 = vpop.f32.mrb[26].mxu0  ;;  %6412 = vmatpush3.bf16.msra.mxu0 %v7360_v56  ;;  %v5959_v58 = vadd.f32 %v5958_v52, %v5957_v47  ;;  %v5960_v37 = vpop.f32.mrb[26].mxu1  ;;  %v2913_v52 = vshrl.u32 %v8457_v0, 16 }
 0x131   : > { %v5905_v3 = vpop.f32.mrb[27].mxu0  ;;  %6413 = vmatprep.subr.bf16.mxu0 %v7363_v61  ;;  %v5961_v13 = vpop.f32.mrb[27].mxu1  ;;  %v8588_v61 = vsel %vm3343_vm1, %v3353_v9, %v3359_v44 }
 0x132   : > { %v8556_v29 = vadd.f32 %v5905_v3, %v5904_v16  ;;  %v8564_v46 = vadd.f32 %v5959_v58, %v8431_v20  ;;  %v5962_v63 = vadd.f32 %v5961_v13, %v5960_v37  ;;  %v7370_v20 = vld [vmem:[%s9266_s3 + $0x3d8] sm:$0xff]   ;;  %v2917_v16 = vshll.u32 %v8576_v51, 16  ;;  %v7374_v58 = vld [vmem:[%s9266_s3 + $0x3e0] sm:$0xff]  }
 0x133   : > { %3604 = vmatmul.mubr.bf16.gmra.mrb[132].mxu0 %v8548_v24 }
 0x134   : > { %3157 = vmatmul.mubr.bf16.gmra.mrb[68].mxu1 %v8276_v54  ;;  %3611 = vmatprep.mubr.bf16.mxu0 %v8551_v18  ;;  %v8571_v33 = vadd.f32 %v5962_v63, %v8433_v25  ;;  %v2923_v54 = vor.u32 %v2921_v22, %v8448_v39  ;;  %v7373_v25 = vld [vmem:[%s9266_s3 + $0x420] sm:$0xff]   ;;  %v8591_v39 = vsel %vm3343_vm1, %v3361_v8, %v3367_v19  ;;  %v7377_v8 = vld [vmem:[%s9266_s3 + $0x428] sm:$0xff]   ;;  %v2919_v42 = vrot.slane %v2917_v16, 1 }
 0x135   : > { %3164 = vmatprep.mubr.bf16.mxu1 %v8464_v43  ;;  %6414 = vmatpush3.bf16.msra.mxu0 %v7364_v21  ;;  %v7451_v22 = vld [vmem:[%s7670_s6 + $0x20] sm:$0xff]   ;;  %v2915_v63 = vor.u32 %v2913_v52, %v8473_v50 }
 0x136   : > { %v5907_v59 = vpop.f32.mrb[28].mxu0  ;;  %6415 = vmatprep.subr.bf16.mxu0 %v7369_v38  ;;  %v5963_v7 = vpop.f32.mrb[28].mxu1  ;;  %v2928_v3 = vsel %vm1851_vm0, %v2923_v54, %v2927_v57  ;;  %v3365_v26 = vrot.slane %v7451_v22, 1  ;;  %v7454_v22 = vld [vmem:[%s7645_s26 + $0x30] sm:$0xff]  }
 0x137   : > { %v5908_v43 = vpop.f32.mrb[29].mxu0  ;;  %v5964_v56 = vpop.f32.mrb[29].mxu1 }
 0x138   : > { %v8585_v5 = vadd.f32 %v5908_v43, %v5907_v59  ;;  %v5910_v31 = vpop.f32.mrb[30].mxu0  ;;  %v5965_v10 = vadd.f32 %v5964_v56, %v5963_v7  ;;  %v5966_v47 = vpop.f32.mrb[30].mxu1  ;;  %v8623_v50 = vsel %vm3343_vm1, %v3359_v44, %v3365_v26 }
 0x139   : > { %v5911_v15 = vpop.f32.mrb[31].mxu0  ;;  %6416 = vmatpush3.bf16.msra.mxu0 %v7370_v20  ;;  %v5967_v9 = vpop.f32.mrb[31].mxu1  ;;  %v3373_v20 = vrot.slane %v7452_v36, 1 }
 0x13a   : > { %v8598_v37 = vadd.f32 %v5911_v15, %v5910_v31  ;;  %6417 = vmatprep.subr.bf16.mxu0 %v7373_v25  ;;  %v8605_v21 = vadd.f32 %v5965_v10, %v8453_v6  ;;  %v5968_v13 = vadd.f32 %v5967_v9, %v5966_v47  ;;  %v7378_v6 = vld [vmem:[%s9266_s3 + $0x3e8] sm:$0xff]   ;;  %v2920_v10 = vsel %vm1851_vm0, %v2915_v63, %v2919_v42  ;;  %v7382_v15 = vld [vmem:[%s9266_s3 + $0x3f0] sm:$0xff]  }
 0x13b   : > { %3612 = vmatmul.mubr.bf16.gmra.mrb[136].mxu0 %v8588_v61  ;;  %v8627_v47 = vsel %vm3343_vm1, %v3367_v19, %v3373_v20  ;;  %v3379_v63 = vrot.slane %v7454_v22, 1 }
 0x13c   : > { %3165 = vmatmul.mubr.bf16.gmra.mrb[72].mxu1 %v8485_v1  ;;  %3619 = vmatprep.mubr.bf16.mxu0 %v8591_v39  ;;  %v8612_v38 = vadd.f32 %v5968_v13, %v8460_v32  ;;  %v7381_v1 = vld [vmem:[%s9266_s3 + $0x430] sm:$0xff]  }
 0x13d   : > { %3172 = vmatprep.mubr.bf16.mxu1 %v2928_v3  ;;  %6418 = vmatpush3.bf16.msra.mxu0 %v7374_v58  ;;  %v7386_v58 = vld [vmem:[%s9266_s3 + $0x438] sm:$0xff]  }
 0x13e   : > { %v6025_v59 = vpop.f32.mrb[32].mxu0  ;;  %6419 = vmatprep.subr.bf16.mxu0 %v7377_v8  ;;  %v5969_v54 = vpop.f32.mrb[32].mxu1 }
 0x13f   : > { %v6026_v32 = vpop.f32.mrb[33].mxu0  ;;  %v5970_v57 = vpop.f32.mrb[33].mxu1 }
 0x140   : > { %v6027_v25 = vadd.f32 %v6026_v32, %v6025_v59  ;;  %v6028_v7 = vpop.f32.mrb[34].mxu0  ;;  %v5971_v43 = vadd.f32 %v5970_v57, %v5969_v54  ;;  %v5972_v56 = vpop.f32.mrb[34].mxu1 }
 0x141   : > { %v6029_v31 = vpop.f32.mrb[35].mxu0  ;;  %6420 = vmatpush3.bf16.msra.mxu0 %v7378_v6  ;;  %v5973_v44 = vpop.f32.mrb[35].mxu1 }
 0x142   : > { %v8633_v52 = vadd.f32 %v8494_v27, %v6027_v25  ;;  %v6030_v16 = vadd.f32 %v6029_v31, %v6028_v7  ;;  %6421 = vmatprep.subr.bf16.mxu0 %v7381_v1  ;;  %v8639_v9 = vadd.f32 %v5971_v43, %v8481_v35  ;;  %v5974_v19 = vadd.f32 %v5973_v44, %v5972_v56  ;;  %v7453_v27 = vld [vmem:[%s7670_s6 + $0x28] sm:$0xff]   ;;  %v7387_v35 = vld [vmem:[%s9266_s3 + $0x3f8] sm:$0xff]  }
 0x143   : > { %3620 = vmatmul.mubr.bf16.gmra.mrb[140].mxu0 %v8623_v50  ;;  %v3371_v8 = vrot.slane %v7453_v27, 1  ;;  %v8662_v25 = vsel %vm3343_vm1, %v3373_v20, %v3379_v63  ;;  %v7375_v31 = vld [vmem:[%s9266_s3 + $0x208] sm:$0xff]  }
 0x144   : > { %v8643_v3 = vadd.f32 %v8501_v11, %v6030_v16  ;;  %3173 = vmatmul.mubr.bf16.gmra.mrb[76].mxu1 %v2920_v10  ;;  %3627 = vmatprep.mubr.bf16.mxu0 %v8627_v47  ;;  %v8648_v13 = vadd.f32 %v5974_v19, %v8488_v23  ;;  %v7390_v11 = vld [vmem:[%s9266_s3 + $0x640] sm:$0xff]  }
 0x145   : > { %6745 = vmatprep.mubr.bf16.mxu1 %v8197_v45  ;;  %6422 = vmatpush3.bf16.msra.mxu0 %v7382_v15  ;;  %v8659_v45 = vsel %vm3343_vm1, %v3365_v26, %v3371_v8 }
 0x146   : > { %v6031_v42 = vpop.f32.mrb[36].mxu0  ;;  %6423 = vmatprep.subr.bf16.mxu0 %v7386_v58  ;;  %v5975_v36 = vpop.f32.mrb[36].mxu1 }
 0x147   : > { %v6032_v6 = vpop.f32.mrb[37].mxu0  ;;  %v5976_v59 = vpop.f32.mrb[37].mxu1 }
 0x148   : > { %v6033_v23 = vadd.f32 %v6032_v6, %v6031_v42  ;;  %v6034_v1 = vpop.f32.mrb[38].mxu0  ;;  %v5977_v54 = vadd.f32 %v5976_v59, %v5975_v36  ;;  %v5978_v32 = vpop.f32.mrb[38].mxu1 }
 0x149   : > { %v6035_v57 = vpop.f32.mrb[39].mxu0  ;;  %6424 = vmatpush3.bf16.msra.mxu0 %v7387_v35  ;;  %v5979_v43 = vpop.f32.mrb[39].mxu1 }
 0x14a   : > { %v8665_v7 = vadd.f32 %v8526_v60, %v6033_v23  ;;  %v6036_v56 = vadd.f32 %v6035_v57, %v6034_v1  ;;  %6489 = vmatprep.subr.bf16.mxu0 %v7390_v11  ;;  %v8671_v26 = vadd.f32 %v5977_v54, %v8510_v40  ;;  %v5980_v10 = vadd.f32 %v5979_v43, %v5978_v32  ;;  %v7455_v60 = vld [vmem:[%s7670_s6 + $0x30] sm:$0xff]   ;;  %v7456_v40 = vld [vmem:[%s7645_s26 + $0x38] sm:$0xff]  }
 0x14b   : > { %3628 = vmatmul.mubr.bf16.gmra.mrb[144].mxu0 %v8659_v45  ;;  %v3377_v15 = vrot.slane %v7455_v60, 1  ;;  %v3385_v16 = vrot.slane %v7456_v40, 1  ;;  %v8720_v43 = vld [vmem:[%s7653_s30 + $0x50] sm:$0xff]  }
 0x14c   : > { %v8675_v20 = vadd.f32 %v8534_v17, %v6036_v56  ;;  %6746 = vmatmul.mubr.bf16.vlgmr.msra.gmra.mrb[0].mxu1 %v8215_v30  ;;  %3635 = vmatprep.mubr.bf16.mxu0 %v8662_v25  ;;  %v8681_v44 = vadd.f32 %v5980_v10, %v8516_v49  ;;  %v7376_v17 = vld [vmem:[%s9266_s3 + $0x210] sm:$0xff]  }
 0x14d   : > { %6762 = vmatpush3.bf16.msra.mxu1 %v8508_v28  ;;  %6749 = vmatprep.mubr.bf16.mxu1 %v8229_v41  ;;  %v8690_v49 = vsel %vm3343_vm1, %v3371_v8, %v3377_v15  ;;  %v8693_v11 = vsel %vm3343_vm1, %v3379_v63, %v3385_v16  ;;  %v7379_v8 = vld [vmem:[%s9266_s3 + $0x218] sm:$0xff]  }
 0x14e   : > { %v6037_v58 = vpop.f32.mrb[40].mxu0  ;;  %6763 = vmatprep.subr.bf16.mxu1 %v7375_v31  ;;  %v5981_v30 = vpop.f32.mrb[40].mxu1 }
 0x14f   : > { %v6038_v19 = vpop.f32.mrb[41].mxu0  ;;  %v5982_v27 = vpop.f32.mrb[41].mxu1 }
 0x150   : > { %v6039_v22 = vadd.f32 %v6038_v19, %v6037_v58  ;;  %v6040_v35 = vpop.f32.mrb[42].mxu0  ;;  %v5983_v42 = vadd.f32 %v5982_v27, %v5981_v30  ;;  %v5984_v28 = vpop.f32.mrb[42].mxu1  ;;  %v8734_v19 = vld [vmem:[%s7653_s30 + $0x48] sm:$0xff]  }
 0x151   : > { %6764 = vmatpush3.bf16.msra.mxu1 %v7375_v31  ;;  %v6041_v41 = vpop.f32.mrb[43].mxu0  ;;  %v5985_v6 = vpop.f32.mrb[43].mxu1  ;;  %v2929_v27 = vshrl.u32 %v8734_v19, 16 }
 0x152   : > { %v8696_v36 = vadd.f32 %v8564_v46, %v6039_v22  ;;  %v6042_v59 = vadd.f32 %v6041_v41, %v6040_v35  ;;  %6765 = vmatprep.subr.bf16.mxu1 %v7376_v17  ;;  %v8702_v23 = vadd.f32 %v5983_v42, %v8545_v2  ;;  %v5986_v1 = vadd.f32 %v5985_v6, %v5984_v28  ;;  %v7457_v46 = vld [vmem:[%s7670_s6 + $0x38] sm:$0xff]   ;;  %v8716_v2 = vld [vmem:[%s7645_s26 + $0x40] sm:$0xff]   ;;  %v7383_v28 = vld [vmem:[%s9266_s3 + $0x228] sm:$0xff]  }
 0x153   : > { %3636 = vmatmul.mubr.bf16.gmra.mrb[148].mxu0 %v8690_v49  ;;  %v3383_v54 = vrot.slane %v7457_v46, 1  ;;  %v3391_v57 = vrot.slane %v8716_v2, 1  ;;  %v2933_v22 = vshll.u32 %v8720_v43, 16  ;;  %v3822_v2 = vrot.slane %v8457_v0, 1 }
 0x154   : > { %v8706_v63 = vadd.f32 %v8571_v33, %v6042_v59  ;;  %6750 = vmatmul.mubr.bf16.gmra.mrb[4].mxu1 %v8249_v62  ;;  %3643 = vmatprep.mubr.bf16.mxu0 %v8693_v11  ;;  %v8712_v32 = vadd.f32 %v5986_v1, %v8556_v29  ;;  %v7380_v62 = vld [vmem:[%s9266_s3 + $0x220] sm:$0xff]  }
 0x155   : > { %6766 = vmatpush3.bf16.msra.mxu1 %v7376_v17  ;;  %6753 = vmatprep.mubr.bf16.mxu1 %v8261_v34  ;;  %v8726_v34 = vsel %vm3343_vm1, %v3377_v15, %v3383_v54  ;;  %v8731_v30 = vsel %vm3343_vm1, %v3385_v16, %v3391_v57  ;;  %v2935_v1 = vrot.slane %v2933_v22, 1 }
 0x156   : > { %v6043_v33 = vpop.f32.mrb[44].mxu0  ;;  %6767 = vmatprep.subr.bf16.mxu1 %v7379_v8  ;;  %v5987_v56 = vpop.f32.mrb[44].mxu1 }
 0x157   : > { %v6044_v31 = vpop.f32.mrb[45].mxu0  ;;  %v5988_v29 = vpop.f32.mrb[45].mxu1 }
 0x158   : > { %v6045_v10 = vadd.f32 %v6044_v31, %v6043_v33  ;;  %v6046_v60 = vpop.f32.mrb[46].mxu0  ;;  %v5989_v40 = vadd.f32 %v5988_v29, %v5987_v56  ;;  %v5990_v58 = vpop.f32.mrb[46].mxu1  ;;  %v7462_v56 = vld [vmem:[%s7653_s30 + $0x8] sm:$0xff]  }
 0x159   : > { %6768 = vmatpush3.bf16.msra.mxu1 %v7379_v8  ;;  %v6047_v17 = vpop.f32.mrb[47].mxu0  ;;  %v5991_v15 = vpop.f32.mrb[47].mxu1  ;;  %v3351_v31 = vrot.slane %v7462_v56, 1 }
 0x15a   : > { %v8739_v35 = vadd.f32 %v8605_v21, %v6045_v10  ;;  %v6048_v42 = vadd.f32 %v6047_v17, %v6046_v60  ;;  %6769 = vmatprep.subr.bf16.mxu1 %v7380_v62  ;;  %v8745_v41 = vadd.f32 %v5989_v40, %v8585_v5  ;;  %v5992_v16 = vadd.f32 %v5991_v15, %v5990_v58  ;;  %v8754_v21 = vld [vmem:[%s7670_s6 + $0x40] sm:$0xff]   ;;  %v7388_v58 = vld [vmem:[%s9266_s3 + $0x238] sm:$0xff]  }
 0x15b   : > { %3644 = vmatmul.mubr.bf16.gmra.mrb[152].mxu0 %v8726_v34  ;;  %v3389_v59 = vrot.slane %v8754_v21, 1  ;;  %v2931_v5 = vor.u32 %v2929_v27, %v8370_v48  ;;  %v7389_v15 = vld [vmem:[%s9266_s3 + $0x440] sm:$0xff]   ;;  %v7420_v21 = vld [vmem:[%s9266_s3 + $0x6b8] sm:$0xff]  }
 0x15c   : > { %v8749_v6 = vadd.f32 %v8612_v38, %v6048_v42  ;;  %6754 = vmatmul.mubr.bf16.gmra.mrb[8].mxu1 %v8280_v12  ;;  %3651 = vmatprep.mubr.bf16.mxu0 %v8731_v30  ;;  %v8758_v8 = vadd.f32 %v5992_v16, %v8598_v37  ;;  %v7385_v12 = vld [vmem:[%s9266_s3 + $0x230] sm:$0xff]   ;;  %v7461_v38 = vld [vmem:[%s7653_s30] sm:$0xff]   ;;  %v7464_v42 = vld [vmem:[%s7653_s30 + $0x18] sm:$0xff]  }
 0x15d   : > { %6770 = vmatpush3.bf16.msra.mxu1 %v7380_v62  ;;  %6757 = vmatprep.mubr.bf16.mxu1 %v8387_v4  ;;  %v3350_v33 = vrot.slane %v7461_v38, 1  ;;  %v8770_v4 = vsel %vm3343_vm1, %v3383_v54, %v3389_v59  ;;  %v2936_v62 = vsel %vm1851_vm0, %v2931_v5, %v2935_v1 }
 0x15e   : > { %v6049_v46 = vpop.f32.mrb[48].mxu0  ;;  %6771 = vmatprep.subr.bf16.mxu1 %v7383_v28 }
 0x15f   : > { %v6050_v29 = vpop.f32.mrb[49].mxu0  ;;  %v3352_v17 = vsel %vm3343_vm1, %v3350_v33, %v3351_v31  ;;  %v7392_v33 = vld [vmem:[%s9266_s3 + $0x448] sm:$0xff]  }
 0x160   : > { %v6051_v10 = vadd.f32 %v6050_v29, %v6049_v46  ;;  %v6052_v37 = vpop.f32.mrb[50].mxu0 }
 0x161   : > { %6772 = vmatpush3.bf16.msra.mxu1 %v7383_v28  ;;  %v6053_v48 = vpop.f32.mrb[51].mxu0  ;;  %v3363_v28 = vrot.slane %v7464_v42, 1 }
 0x162   : > { %v8774_v60 = vadd.f32 %v8639_v9, %v6051_v10  ;;  %v6054_v40 = vadd.f32 %v6053_v48, %v6052_v37  ;;  %6773 = vmatprep.subr.bf16.mxu1 %v7385_v12  ;;  %v7463_v9 = vld [vmem:[%s7653_s30 + $0x10] sm:$0xff]   ;;  %v7465_v10 = vld [vmem:[%s7653_s30 + $0x20] sm:$0xff]  }
 0x163   : > { %3652 = vmatmul.mubr.bf16.gmra.mrb[156].mxu0 %v8770_v4  ;;  %v3357_v27 = vrot.slane %v7463_v9, 1  ;;  %v3369_v37 = vrot.slane %v7465_v10, 1 }
 0x164   : > { %v8782_v54 = vadd.f32 %v8648_v13, %v6054_v40  ;;  %6758 = vmatmul.mubr.bf16.gmra.mrb[12].mxu1 %v2936_v62  ;;  %4007 = vmatprep.mubr.bf16.mxu0 %v8519_v53  ;;  %v7391_v13 = vld [vmem:[%s9266_s3 + $0x600] sm:$0xff]   ;;  %v7466_v62 = vld [vmem:[%s7653_s30 + $0x28] sm:$0xff]  }
 0x165   : > { %6774 = vmatpush3.bf16.msra.mxu1 %v7385_v12  ;;  %6777 = vmatprep.mubr.bf16.mxu1 %v3352_v17  ;;  %v8794_v46 = vsel %vm3343_vm1, %v3351_v31, %v3357_v27  ;;  %v8803_v56 = vsel %vm3343_vm1, %v3357_v27, %v3363_v28  ;;  %v7394_v31 = vld [vmem:[%s9266_s3 + $0x648] sm:$0xff]   ;;  %v3375_v40 = vrot.slane %v7466_v62, 1 }
 0x166   : > { %v6055_v22 = vpop.f32.mrb[52].mxu0  ;;  %6775 = vmatprep.subr.bf16.mxu1 %v7388_v58 }
 0x167   : > { %v6056_v16 = vpop.f32.mrb[53].mxu0 }
 0x168   : > { %v6057_v5 = vadd.f32 %v6056_v16, %v6055_v22  ;;  %v6058_v1 = vpop.f32.mrb[54].mxu0  ;;  %v8827_v22 = vsel %vm3343_vm1, %v3363_v28, %v3369_v37  ;;  %v7396_v16 = vld [vmem:[%s9266_s3 + $0x458] sm:$0xff]  }
 0x169   : > { %6776 = vmatpush3.bf16.msra.mxu1 %v7388_v58  ;;  %v6059_v53 = vpop.f32.mrb[55].mxu0 }
 0x16a   : > { %v8797_v12 = vadd.f32 %v8671_v26, %v6057_v5  ;;  %v6060_v38 = vadd.f32 %v6059_v53, %v6058_v1  ;;  %6793 = vmatprep.subr.bf16.mxu1 %v7389_v15  ;;  %v7395_v26 = vld [vmem:[%s9266_s3 + $0x608] sm:$0xff]   ;;  %v8836_v5 = vsel %vm3343_vm1, %v3369_v37, %v3375_v40  ;;  %v7399_v1 = vld [vmem:[%s9266_s3 + $0x610] sm:$0xff]   ;;  %v7405_v37 = vld [vmem:[%s9266_s3 + $0x660] sm:$0xff]  }
 0x16b   : > { %4008 = vmatmul.mubr.bf16.vlgmr.msra.gmra.mrb[160].mxu0 %v8548_v24  ;;  %v7398_v24 = vld [vmem:[%s9266_s3 + $0x650] sm:$0xff]  }
 0x16c   : > { %v8810_v29 = vadd.f32 %v8681_v44, %v6060_v38  ;;  %6778 = vmatmul.mubr.bf16.vlgmr.msra.gmra.mrb[0].mxu1 %v8794_v46  ;;  %6490 = vmatpush3.bf16.msra.mxu0 %v7391_v13  ;;  %v7393_v44 = vld [vmem:[%s9266_s3 + $0x450] sm:$0xff]  }
 0x16d   : > { %6794 = vmatpush3.bf16.msra.mxu1 %v7389_v15  ;;  %6781 = vmatprep.mubr.bf16.mxu1 %v8803_v56  ;;  %v7467_v13 = vld [vmem:[%s7653_s30 + $0x30] sm:$0xff]  }
 0x16e   : > { %v6061_v48 = vpop.f32.mrb[56].mxu0  ;;  %6795 = vmatprep.subr.bf16.mxu1 %v7392_v33  ;;  %4015 = vmatprep.mubr.bf16.mxu0 %v8551_v18  ;;  %v3381_v53 = vrot.slane %v7467_v13, 1  ;;  %v7401_v13 = vld [vmem:[%s9266_s3 + $0x470] sm:$0xff]  }
 0x16f   : > { %v6062_v58 = vpop.f32.mrb[57].mxu0  ;;  %6491 = vmatprep.subr.bf16.mxu0 %v7394_v31  ;;  %v7468_v31 = vld [vmem:[%s7653_s30 + $0x38] sm:$0xff]  }
 0x170   : > { %v6063_v17 = vadd.f32 %v6062_v58, %v6061_v48  ;;  %v6064_v9 = vpop.f32.mrb[58].mxu0  ;;  %6492 = vmatpush3.bf16.msra.mxu0 %v7395_v26  ;;  %v3387_v26 = vrot.slane %v7468_v31, 1  ;;  %v8863_v62 = vsel %vm3343_vm1, %v3375_v40, %v3381_v53 }
 0x171   : > { %6796 = vmatpush3.bf16.msra.mxu1 %v7392_v33  ;;  %v6065_v27 = vpop.f32.mrb[59].mxu0  ;;  %6493 = vmatprep.subr.bf16.mxu0 %v7398_v24  ;;  %v7397_v33 = vld [vmem:[%s9266_s3 + $0x460] sm:$0xff]  }
 0x172   : > { %v8830_v15 = vadd.f32 %v8702_v23, %v6063_v17  ;;  %v6066_v42 = vadd.f32 %v6065_v27, %v6064_v9  ;;  %6797 = vmatprep.subr.bf16.mxu1 %v7393_v44  ;;  %v7402_v23 = vld [vmem:[%s9266_s3 + $0x658] sm:$0xff]   ;;  %v7400_v9 = vld [vmem:[%s9266_s3 + $0x468] sm:$0xff]   ;;  %v8872_v27 = vsel %vm3343_vm1, %v3381_v53, %v3387_v26 }
 0x173   : > { %4016 = vmatmul.mubr.bf16.gmra.mrb[164].mxu0 %v8588_v61 }
 0x174   : > { %v8846_v28 = vadd.f32 %v8712_v32, %v6066_v42  ;;  %6782 = vmatmul.mubr.bf16.gmra.mrb[4].mxu1 %v8827_v22  ;;  %4023 = vmatprep.mubr.bf16.mxu0 %v8591_v39  ;;  %v7403_v32 = vld [vmem:[%s9266_s3 + $0x618] sm:$0xff]   ;;  %v7407_v42 = vld [vmem:[%s9266_s3 + $0x620] sm:$0xff]  }
 0x175   : > { %6798 = vmatpush3.bf16.msra.mxu1 %v7393_v44  ;;  %6785 = vmatprep.mubr.bf16.mxu1 %v8836_v5 }
 0x176   : > { %v6067_v38 = vpop.f32.mrb[60].mxu0  ;;  %6799 = vmatprep.subr.bf16.mxu1 %v7396_v16  ;;  %6494 = vmatpush3.bf16.msra.mxu0 %v7399_v1 }
 0x177   : > { %v6068_v10 = vpop.f32.mrb[61].mxu0  ;;  %6495 = vmatprep.subr.bf16.mxu0 %v7402_v23 }
 0x178   : > { %v6069_v24 = vadd.f32 %v6068_v10, %v6067_v38  ;;  %v6070_v48 = vpop.f32.mrb[62].mxu0  ;;  %v7413_v38 = vld [vmem:[%s9266_s3 + $0x670] sm:$0xff]  }
 0x179   : > { %6800 = vmatpush3.bf16.msra.mxu1 %v7396_v16  ;;  %v6071_v44 = vpop.f32.mrb[63].mxu0  ;;  %v8888_v16 = vld [vmem:[%s7653_s30 + $0x40] sm:$0xff]  }
 0x17a   : > { %v8866_v58 = vadd.f32 %v8745_v41, %v6069_v24  ;;  %v6072_v17 = vadd.f32 %v6071_v44, %v6070_v48  ;;  %6801 = vmatprep.subr.bf16.mxu1 %v7397_v33  ;;  %6496 = vmatpush3.bf16.msra.mxu0 %v7403_v32  ;;  %v7409_v41 = vld [vmem:[%s9266_s3 + $0x668] sm:$0xff]   ;;  %v3393_v1 = vrot.slane %v8888_v16, 1  ;;  %v7404_v48 = vld [vmem:[%s9266_s3 + $0x478] sm:$0xff]   ;;  %v7415_v44 = vld [vmem:[%s9266_s3 + $0x630] sm:$0xff]  }
 0x17b   : > { %4024 = vmatmul.mubr.bf16.gmra.mrb[168].mxu0 %v8623_v50  ;;  %6497 = vmatprep.subr.bf16.mxu0 %v7405_v37 }
 0x17c   : > { %v8882_v40 = vadd.f32 %v8758_v8, %v6072_v17  ;;  %6786 = vmatmul.mubr.bf16.gmra.mrb[8].mxu1 %v8863_v62  ;;  %4031 = vmatprep.mubr.bf16.mxu0 %v8627_v47  ;;  %v7411_v8 = vld [vmem:[%s9266_s3 + $0x628] sm:$0xff]   ;;  %v8903_v10 = vsel %vm3343_vm1, %v3387_v26, %v3393_v1  ;;  %v7417_v26 = vld [vmem:[%s9266_s3 + $0x678] sm:$0xff]  }
 0x17d   : > { %6802 = vmatpush3.bf16.msra.mxu1 %v7397_v33  ;;  %6789 = vmatprep.mubr.bf16.mxu1 %v8872_v27 }
 0x17e   : > { %v6105_v23 = vpop.f32.mrb[64].mxu0  ;;  %6803 = vmatprep.subr.bf16.mxu1 %v7400_v9  ;;  %6498 = vmatpush3.bf16.msra.mxu0 %v7407_v42  ;;  %v7419_v42 = vld [vmem:[%s9266_s3 + $0x638] sm:$0xff]  }
 0x17f   : > { %v6106_v53 = vpop.f32.mrb[65].mxu0  ;;  %6499 = vmatprep.subr.bf16.mxu0 %v7409_v41 }
 0x180   : > { %v6107_v33 = vadd.f32 %v6106_v53, %v6105_v23  ;;  %v6108_v31 = vpop.f32.mrb[66].mxu0  ;;  %v7408_v53 = vld [vmem:[%s9266_s3 + $0x688] sm:$0xff]  }
 0x181   : > { %6804 = vmatpush3.bf16.msra.mxu1 %v7400_v9  ;;  %v6109_v32 = vpop.f32.mrb[67].mxu0  ;;  %v7406_v9 = vld [vmem:[%s9266_s3 + $0x680] sm:$0xff]  }
 0x182   : > { %v8906_v37 = vadd.f32 %v8633_v52, %v6107_v33  ;;  %v6110_v24 = vadd.f32 %v6109_v32, %v6108_v31  ;;  %6805 = vmatprep.subr.bf16.mxu1 %v7401_v13  ;;  %6500 = vmatpush3.bf16.msra.mxu0 %v7411_v8  ;;  %v7410_v33 = vld [vmem:[%s9266_s3 + $0x690] sm:$0xff]  }
 0x183   : > { %4032 = vmatmul.mubr.bf16.gmra.mrb[172].mxu0 %v8659_v45  ;;  %6501 = vmatprep.subr.bf16.mxu0 %v7413_v38 }
 0x184   : > { %v8919_v52 = vadd.f32 %v8643_v3, %v6110_v24  ;;  %6790 = vmatmul.mubr.bf16.gmra.mrb[12].mxu1 %v8903_v10  ;;  %4039 = vmatprep.mubr.bf16.mxu0 %v8662_v25 }
 0x185   : > { %6806 = vmatpush3.bf16.msra.mxu1 %v7401_v13  ;;  %6809 = vmatprep.mubr.bf16.mxu1 %v8794_v46 }
 0x186   : > { %v6111_v17 = vpop.f32.mrb[68].mxu0  ;;  %6807 = vmatprep.subr.bf16.mxu1 %v7404_v48  ;;  %6502 = vmatpush3.bf16.msra.mxu0 %v7415_v44 }
 0x187   : > { %v6112_v3 = vpop.f32.mrb[69].mxu0  ;;  %6503 = vmatprep.subr.bf16.mxu0 %v7417_v26  ;;  %v7412_v26 = vld [vmem:[%s9266_s3 + $0x698] sm:$0xff]  }
 0x188   : > { %v6113_v41 = vadd.f32 %v6112_v3, %v6111_v17  ;;  %v6114_v23 = vpop.f32.mrb[70].mxu0 }
 0x189   : > { %6808 = vmatpush3.bf16.msra.mxu1 %v7404_v48  ;;  %v6115_v8 = vpop.f32.mrb[71].mxu0 }
 0x18a   : > { %v8931_v13 = vadd.f32 %v8665_v7, %v6113_v41  ;;  %v6116_v46 = vadd.f32 %v6115_v8, %v6114_v23  ;;  %6825 = vmatprep.subr.bf16.mxu1 %v7406_v9  ;;  %6504 = vmatpush3.bf16.msra.mxu0 %v7419_v42  ;;  %v7414_v42 = vld [vmem:[%s9266_s3 + $0x6a0] sm:$0xff]  }
 0x18b   : > { %4040 = vmatmul.mubr.bf16.gmra.mrb[176].mxu0 %v8690_v49 }
 0x18c   : > { %v8938_v38 = vadd.f32 %v8675_v20, %v6116_v46  ;;  %6810 = vmatmul.mubr.bf16.vlgmr.msra.gmra.mrb[0].mxu1 %v8803_v56  ;;  %4047 = vmatprep.mubr.bf16.mxu0 %v8693_v11 }
 0x18d   : > { %6826 = vmatpush3.bf16.msra.mxu1 %v7406_v9  ;;  %6813 = vmatprep.mubr.bf16.mxu1 %v8827_v22 }
 0x18e   : > { %v6117_v7 = vpop.f32.mrb[72].mxu0  ;;  %6827 = vmatprep.subr.bf16.mxu1 %v7408_v53 }
 0x18f   : > { %v6118_v31 = vpop.f32.mrb[73].mxu0 }
 0x190   : > { %v6119_v32 = vadd.f32 %v6118_v31, %v6117_v7  ;;  %v6120_v24 = vpop.f32.mrb[74].mxu0  ;;  %v7416_v7 = vld [vmem:[%s9266_s3 + $0x6a8] sm:$0xff]   ;;  %v7418_v31 = vld [vmem:[%s9266_s3 + $0x6b0] sm:$0xff]  }
 0x191   : > { %6828 = vmatpush3.bf16.msra.mxu1 %v7408_v53  ;;  %v6121_v48 = vpop.f32.mrb[75].mxu0 }
 0x192   : > { %v8947_v20 = vadd.f32 %v8696_v36, %v6119_v32  ;;  %v6122_v44 = vadd.f32 %v6121_v48, %v6120_v24  ;;  %6829 = vmatprep.subr.bf16.mxu1 %v7410_v33  ;;  %v3824_v36 = vrot.slane %v8437_v55, 1  ;;  %v8993_v48 = vsel %vm3343_vm1, %v3389_v59, %v3822_v2 }
 0x193   : > { %4048 = vmatmul.mubr.bf16.gmra.mrb[180].mxu0 %v8726_v34 }
 0x194   : > { %v8954_v17 = vadd.f32 %v8706_v63, %v6122_v44  ;;  %6814 = vmatmul.mubr.bf16.gmra.mrb[4].mxu1 %v8836_v5  ;;  %4055 = vmatprep.mubr.bf16.mxu0 %v8731_v30  ;;  %v8968_v8 = vsel %vm3343_vm1, %v3391_v57, %v3824_v36  ;;  %v3826_v57 = vrot.slane %v8734_v19, 1 }
 0x195   : > { %6830 = vmatpush3.bf16.msra.mxu1 %v7410_v33  ;;  %6817 = vmatprep.mubr.bf16.mxu1 %v8863_v62 }
 0x196   : > { %v6123_v9 = vpop.f32.mrb[76].mxu0  ;;  %6831 = vmatprep.subr.bf16.mxu1 %v7412_v26 }
 0x197   : > { %v6124_v3 = vpop.f32.mrb[77].mxu0 }
 0x198   : > { %v6125_v41 = vadd.f32 %v6124_v3, %v6123_v9  ;;  %v6126_v23 = vpop.f32.mrb[78].mxu0 }
 0x199   : > { %6832 = vmatpush3.bf16.msra.mxu1 %v7412_v26  ;;  %v6127_v63 = vpop.f32.mrb[79].mxu0  ;;  %v3827_v26 = vsel %vm3343_vm1, %v3393_v1, %v3826_v57 }
 0x19a   : > { %v8971_v46 = vadd.f32 %v8739_v35, %v6125_v41  ;;  %v6128_v53 = vadd.f32 %v6127_v63, %v6126_v23  ;;  %6833 = vmatprep.subr.bf16.mxu1 %v7414_v42 }
 0x19b   : > { %4056 = vmatmul.mubr.bf16.gmra.mrb[184].mxu0 %v8770_v4 }
 0x19c   : > { %v8978_v33 = vadd.f32 %v8749_v6, %v6128_v53  ;;  %6818 = vmatmul.mubr.bf16.gmra.mrb[8].mxu1 %v8872_v27  ;;  %4063 = vmatprep.mubr.bf16.mxu0 %v8968_v8 }
 0x19d   : > { %6834 = vmatpush3.bf16.msra.mxu1 %v7414_v42  ;;  %6821 = vmatprep.mubr.bf16.mxu1 %v8903_v10 }
 0x19e   : > { %v6129_v35 = vpop.f32.mrb[80].mxu0  ;;  %6835 = vmatprep.subr.bf16.mxu1 %v7416_v7 }
 0x19f   : > { %v6130_v32 = vpop.f32.mrb[81].mxu0 }
 0x1a0   : > { %v6131_v6 = vadd.f32 %v6130_v32, %v6129_v35  ;;  %v6132_v24 = vpop.f32.mrb[82].mxu0 }
 0x1a1   : > { %6836 = vmatpush3.bf16.msra.mxu1 %v7416_v7  ;;  %v6133_v44 = vpop.f32.mrb[83].mxu0 }
 0x1a2   : > { %v9001_v9 = vadd.f32 %v8774_v60, %v6131_v6  ;;  %v6134_v42 = vadd.f32 %v6133_v44, %v6132_v24  ;;  %6837 = vmatprep.subr.bf16.mxu1 %v7418_v31 }
 0x1a3   : > { %4064 = vmatmul.mubr.bf16.gmra.mrb[188].mxu0 %v8993_v48 }
 0x1a4   : > { %v9008_v59 = vadd.f32 %v8782_v54, %v6134_v42  ;;  %6822 = vmatmul.mubr.bf16.gmra.mrb[12].mxu1 %v3827_v26  ;;  %4419 = vmatprep.mubr.bf16.mxu0 %v8551_v18 }
 0x1a5   : > { %6838 = vmatpush3.bf16.msra.mxu1 %v7418_v31  ;;  %6841 = vmatprep.mubr.bf16.mxu1 %v8803_v56 }
 0x1a6   : > { %v6135_v16 = vpop.f32.mrb[84].mxu0  ;;  %6839 = vmatprep.subr.bf16.mxu1 %v7420_v21 }
 0x1a7   : > { %v6136_v60 = vpop.f32.mrb[85].mxu0 }
 0x1a8   : > { %v6137_v1 = vadd.f32 %v6136_v60, %v6135_v16  ;;  %v6138_v3 = vpop.f32.mrb[86].mxu0 }
 0x1a9   : > { %6840 = vmatpush3.bf16.msra.mxu1 %v7420_v21  ;;  %v6139_v41 = vpop.f32.mrb[87].mxu0 }
 0x1aa   : > { %v9013_v23 = vadd.f32 %v8797_v12, %v6137_v1  ;;  %v6140_v63 = vadd.f32 %v6139_v41, %v6138_v3 }
 0x1ab   : > { %4420 = vmatmul.mubr.bf16.vlgmr.msra.gmra.mrb[192].mxu0 %v8588_v61 }
 0x1ac   : > { %v9017_v54 = vadd.f32 %v8810_v29, %v6140_v63  ;;  %6842 = vmatmul.mubr.bf16.vlgmr.msra.gmra.mrb[0].mxu1 %v8827_v22  ;;  %4427 = vmatprep.mubr.bf16.mxu0 %v8591_v39 }
 0x1ad   : > { %6845 = vmatprep.mubr.bf16.mxu1 %v8836_v5 }
 0x1ae   : > { %v6141_v18 = vpop.f32.mrb[88].mxu0 }
 0x1af   : > { %v6142_v56 = vpop.f32.mrb[89].mxu0 }
 0x1b0   : > { %v6143_v53 = vadd.f32 %v6142_v56, %v6141_v18  ;;  %v6144_v7 = vpop.f32.mrb[90].mxu0 }
 0x1b1   : > { %v6145_v35 = vpop.f32.mrb[91].mxu0 }
 0x1b2   : > { %v9023_v12 = vadd.f32 %v8830_v15, %v6143_v53  ;;  %v6146_v31 = vadd.f32 %v6145_v35, %v6144_v7 }
 0x1b3   : > { %4428 = vmatmul.mubr.bf16.gmra.mrb[196].mxu0 %v8623_v50 }
 0x1b4   : > { %v9027_v61 = vadd.f32 %v8846_v28, %v6146_v31  ;;  %6846 = vmatmul.mubr.bf16.gmra.mrb[4].mxu1 %v8863_v62  ;;  %4435 = vmatprep.mubr.bf16.mxu0 %v8627_v47  ;;  %v4238_v47 = vrot.slane %v8720_v43, 1 }
 0x1b5   : > { %6849 = vmatprep.mubr.bf16.mxu1 %v8872_v27 }
 0x1b6   : > { %v6147_v39 = vpop.f32.mrb[92].mxu0 }
 0x1b7   : > { %v6148_v29 = vpop.f32.mrb[93].mxu0 }
 0x1b8   : > { %v6149_v22 = vadd.f32 %v6148_v29, %v6147_v39  ;;  %v6150_v5 = vpop.f32.mrb[94].mxu0 }
 0x1b9   : > { %v6151_v32 = vpop.f32.mrb[95].mxu0 }
 0x1ba   : > { %v9033_v15 = vadd.f32 %v8866_v58, %v6149_v22  ;;  %v6152_v6 = vadd.f32 %v6151_v32, %v6150_v5  ;;  %v4239_v58 = vsel %vm3343_vm1, %v3826_v57, %v4238_v47 }
 0x1bb   : > { %4436 = vmatmul.mubr.bf16.gmra.mrb[200].mxu0 %v8659_v45 }
 0x1bc   : > { %v9037_v50 = vadd.f32 %v8882_v40, %v6152_v6  ;;  %6850 = vmatmul.mubr.bf16.gmra.mrb[8].mxu1 %v8903_v10  ;;  %4443 = vmatprep.mubr.bf16.mxu0 %v8662_v25 }
 0x1bd   : > { %6853 = vmatprep.mubr.bf16.mxu1 %v3827_v26 }
 0x1be   : > { %v6185_v28 = vpop.f32.mrb[96].mxu0 }
 0x1bf   : > { %v6186_v62 = vpop.f32.mrb[97].mxu0 }
 0x1c0   : > { %v6187_v27 = vadd.f32 %v6186_v62, %v6185_v28  ;;  %v6188_v24 = vpop.f32.mrb[98].mxu0 }
 0x1c1   : > { %v6189_v44 = vpop.f32.mrb[99].mxu0 }
 0x1c2   : > { %v6869_v45 = vadd.f32 %v8906_v37, %v6187_v27  ;;  %v6190_v40 = vadd.f32 %v6189_v44, %v6188_v24 }
 0x1c3   : > { %4444 = vmatmul.mubr.bf16.gmra.mrb[204].mxu0 %v8690_v49 }
 0x1c4   : > { %v6887_v10 = vadd.f32 %v8919_v52, %v6190_v40  ;;  %6854 = vmatmul.mubr.bf16.gmra.mrb[12].mxu1 %v4239_v58  ;;  %4451 = vmatprep.mubr.bf16.mxu0 %v8693_v11 }
 0x1c6   : > { %v6191_v25 = vpop.f32.mrb[100].mxu0 }
 0x1c7   : > { %v6192_v43 = vpop.f32.mrb[101].mxu0 }
 0x1c8   : > { %v6193_v26 = vadd.f32 %v6192_v43, %v6191_v25  ;;  %v6194_v42 = vpop.f32.mrb[102].mxu0 }
 0x1c9   : > { %v6195_v21 = vpop.f32.mrb[103].mxu0 }
 0x1ca   : > { %v6860_v16 = vadd.f32 %v8931_v13, %v6193_v26  ;;  %v6196_v19 = vadd.f32 %v6195_v21, %v6194_v42 }
 0x1cb   : > { %4452 = vmatmul.mubr.bf16.gmra.mrb[208].mxu0 %v8726_v34  ;;  %v4236_v34 = vrot.slane %v8543_v14, 1  ;;  %v4234_v14 = vrot.slane %v8576_v51, 1 }
 0x1cc   : > { %v6878_v37 = vadd.f32 %v8938_v38, %v6196_v19  ;;  %4459 = vmatprep.mubr.bf16.mxu0 %v8731_v30 }
 0x1ce   : > { %v6197_v49 = vpop.f32.mrb[104].mxu0 }
 0x1cf   : > { %v6198_v57 = vpop.f32.mrb[105].mxu0 }
 0x1d0   : > { %v6199_v52 = vadd.f32 %v6198_v57, %v6197_v49  ;;  %v6200_v60 = vpop.f32.mrb[106].mxu0 }
 0x1d1   : > { %v6201_v1 = vpop.f32.mrb[107].mxu0 }
 0x1d2   : > { %v9054_v11 = vadd.f32 %v8947_v20, %v6199_v52  ;;  %v6202_v3 = vadd.f32 %v6201_v1, %v6200_v60  ;;  %v4237_v20 = vsel %vm3343_vm1, %v3824_v36, %v4236_v34  ;;  %v4235_v36 = vsel %vm3343_vm1, %v3822_v2, %v4234_v14 }
 0x1d3   : > { %4460 = vmatmul.mubr.bf16.gmra.mrb[212].mxu0 %v8770_v4 }
 0x1d4   : > { %v9058_v13 = vadd.f32 %v8954_v17, %v6202_v3  ;;  %4467 = vmatprep.mubr.bf16.mxu0 %v8968_v8 }
 0x1d6   : > { %v6203_v38 = vpop.f32.mrb[108].mxu0 }
 0x1d7   : > { %v6204_v30 = vpop.f32.mrb[109].mxu0 }
 0x1d8   : > { %v6205_v41 = vadd.f32 %v6204_v30, %v6203_v38  ;;  %v6206_v63 = vpop.f32.mrb[110].mxu0 }
 0x1d9   : > { %v6207_v18 = vpop.f32.mrb[111].mxu0 }
 0x1da   : > { %v9066_v56 = vadd.f32 %v8971_v46, %v6205_v41  ;;  %v6208_v4 = vadd.f32 %v6207_v18, %v6206_v63 }
 0x1db   : > { %4468 = vmatmul.mubr.bf16.gmra.mrb[216].mxu0 %v8993_v48 }
 0x1dc   : > { %v9070_v17 = vadd.f32 %v8978_v33, %v6208_v4  ;;  %4475 = vmatprep.mubr.bf16.mxu0 %v4237_v20 }
 0x1de   : > { %v6209_v8 = vpop.f32.mrb[112].mxu0 }
 0x1df   : > { %v6265_v53 = vpop.f32.mrb[48].mxu1  ;;  %v6210_v7 = vpop.f32.mrb[113].mxu0 }
 0x1e0   : > { %v6211_v35 = vadd.f32 %v6210_v7, %v6209_v8  ;;  %v6266_v31 = vpop.f32.mrb[49].mxu1  ;;  %v6212_v55 = vpop.f32.mrb[114].mxu0 }
 0x1e1   : > { %v6267_v46 = vadd.f32 %v6266_v31, %v6265_v53  ;;  %v6268_v39 = vpop.f32.mrb[50].mxu1  ;;  %v6213_v29 = vpop.f32.mrb[115].mxu0 }
 0x1e2   : > { %v9077_v48 = vadd.f32 %v9001_v9, %v6211_v35  ;;  %v6214_v33 = vadd.f32 %v6213_v29, %v6212_v55  ;;  %v6269_v22 = vpop.f32.mrb[51].mxu1 }
 0x1e3   : > { %v6870_v5 = vadd.f32 %v6869_v45, %v6267_v46  ;;  %v6270_v51 = vadd.f32 %v6269_v22, %v6268_v39  ;;  %4476 = vmatmul.mubr.bf16.gmra.mrb[220].mxu0 %v4235_v36 }
 0x1e4   : > { %v9080_v32 = vadd.f32 %v9008_v59, %v6214_v33 }
 0x1e5   : > { %v9082_v6 = vadd.f32 %v6887_v10, %v6270_v51 }
 0x1e6   : > { %v6215_v47 = vpop.f32.mrb[116].mxu0 }
 0x1e7   : > { %v6271_v0 = vpop.f32.mrb[52].mxu1  ;;  %v6216_v28 = vpop.f32.mrb[117].mxu0 }
 0x1e8   : > { %v6217_v2 = vadd.f32 %v6216_v28, %v6215_v47  ;;  %v6272_v62 = vpop.f32.mrb[53].mxu1  ;;  %v6218_v27 = vpop.f32.mrb[118].mxu0 }
 0x1e9   : > { %v6273_v24 = vadd.f32 %v6272_v62, %v6271_v0  ;;  %v6274_v44 = vpop.f32.mrb[54].mxu1  ;;  %v6219_v9 = vpop.f32.mrb[119].mxu0 }
 0x1ea   : > { %v9085_v58 = vadd.f32 %v9013_v23, %v6217_v2  ;;  %v6220_v45 = vadd.f32 %v6219_v9, %v6218_v27  ;;  %v6275_v40 = vpop.f32.mrb[55].mxu1 }
 0x1eb   : > { %v6861_v25 = vadd.f32 %v6860_v16, %v6273_v24  ;;  %v6276_v43 = vadd.f32 %v6275_v40, %v6274_v44 }
 0x1ec   : > { %v9088_v59 = vadd.f32 %v9017_v54, %v6220_v45 }
 0x1ed   : > { %v9090_v10 = vadd.f32 %v6878_v37, %v6276_v43 }
 0x1ee   : > { %v6221_v26 = vpop.f32.mrb[120].mxu0 }
 0x1ef   : > { %v6277_v42 = vpop.f32.mrb[56].mxu1  ;;  %v6222_v21 = vpop.f32.mrb[121].mxu0 }
 0x1f0   : > { %v6223_v19 = vadd.f32 %v6222_v21, %v6221_v26  ;;  %v6278_v49 = vpop.f32.mrb[57].mxu1  ;;  %v6224_v57 = vpop.f32.mrb[122].mxu0 }
 0x1f1   : > { %v6279_v52 = vadd.f32 %v6278_v49, %v6277_v42  ;;  %v6280_v60 = vpop.f32.mrb[58].mxu1  ;;  %v6225_v1 = vpop.f32.mrb[123].mxu0 }
 0x1f2   : > { %v9093_v23 = vadd.f32 %v9023_v12, %v6223_v19  ;;  %v6226_v3 = vadd.f32 %v6225_v1, %v6224_v57  ;;  %v6281_v16 = vpop.f32.mrb[59].mxu1 }
 0x1f3   : > { %v6906_v34 = vadd.f32 %v9054_v11, %v6279_v52  ;;  %v6282_v54 = vadd.f32 %v6281_v16, %v6280_v60 }
 0x1f4   : > { %v9097_v37 = vadd.f32 %v9027_v61, %v6226_v3 }
 0x1f5   : > { %v9100_v38 = vadd.f32 %v9058_v13, %v6282_v54 }
 0x1f6   : > { %v6227_v30 = vpop.f32.mrb[124].mxu0 }
 0x1f7   : > { %v6283_v41 = vpop.f32.mrb[60].mxu1  ;;  %v6228_v63 = vpop.f32.mrb[125].mxu0 }
 0x1f8   : > { %v6229_v18 = vadd.f32 %v6228_v63, %v6227_v30  ;;  %v6284_v20 = vpop.f32.mrb[61].mxu1  ;;  %v6230_v4 = vpop.f32.mrb[126].mxu0 }
 0x1f9   : > { %v6285_v14 = vadd.f32 %v6284_v20, %v6283_v41  ;;  %v6286_v12 = vpop.f32.mrb[62].mxu1  ;;  %v6231_v8 = vpop.f32.mrb[127].mxu0 }
 0x1fa   : > { %v9103_v53 = vadd.f32 %v9033_v15, %v6229_v18  ;;  %v6232_v11 = vadd.f32 %v6231_v8, %v6230_v4  ;;  %v6287_v7 = vpop.f32.mrb[63].mxu1 }
 0x1fb   : > { %v6897_v61 = vadd.f32 %v9066_v56, %v6285_v14  ;;  %v6288_v35 = vadd.f32 %v6287_v7, %v6286_v12 }
 0x1fc   : > { %v9107_v13 = vadd.f32 %v9037_v50, %v6232_v11 }
 0x1fd   : > { %v9110_v31 = vadd.f32 %v9070_v17, %v6288_v35 }
 0x1fe   : > { %v6345_v55 = vpop.f32.mrb[128].mxu0 }
 0x1ff   : > { %v6289_v36 = vpop.f32.mrb[64].mxu1  ;;  %v6346_v46 = vpop.f32.mrb[129].mxu0 }
 0x200   : > { %v6290_v39 = vpop.f32.mrb[65].mxu1  ;;  %v6347_v29 = vadd.f32 %v6346_v46, %v6345_v55  ;;  %v6348_v33 = vpop.f32.mrb[130].mxu0 }
 0x201   : > { %v6291_v22 = vadd.f32 %v6290_v39, %v6289_v36  ;;  %v6292_v15 = vpop.f32.mrb[66].mxu1  ;;  %v6349_v51 = vpop.f32.mrb[131].mxu0 }
 0x202   : > { %v9112_v47 = vadd.f32 %v6870_v5, %v6347_v29  ;;  %v6293_v0 = vpop.f32.mrb[67].mxu1  ;;  %v6350_v56 = vadd.f32 %v6349_v51, %v6348_v33 }
 0x203   : > { %v6942_v28 = vadd.f32 %v9077_v48, %v6291_v22  ;;  %v6294_v50 = vadd.f32 %v6293_v0, %v6292_v15 }
 0x204   : > { %v9116_v2 = vadd.f32 %v9082_v6, %v6350_v56 }
 0x205   : > { %v6960_v17 = vadd.f32 %v9080_v32, %v6294_v50 }
 0x206   : > { %v6351_v62 = vpop.f32.mrb[132].mxu0 }
 0x207   : > { %v6295_v27 = vpop.f32.mrb[68].mxu1  ;;  %v6352_v24 = vpop.f32.mrb[133].mxu0 }
 0x208   : > { %v6296_v44 = vpop.f32.mrb[69].mxu1  ;;  %v6353_v9 = vadd.f32 %v6352_v24, %v6351_v62  ;;  %v6354_v45 = vpop.f32.mrb[134].mxu0 }
 0x209   : > { %v6297_v40 = vadd.f32 %v6296_v44, %v6295_v27  ;;  %v6298_v43 = vpop.f32.mrb[70].mxu1  ;;  %v6355_v5 = vpop.f32.mrb[135].mxu0 }
 0x20a   : > { %v9119_v26 = vadd.f32 %v6861_v25, %v6353_v9  ;;  %v6299_v42 = vpop.f32.mrb[71].mxu1  ;;  %v6356_v21 = vadd.f32 %v6355_v5, %v6354_v45 }
 0x20b   : > { %v6933_v48 = vadd.f32 %v9085_v58, %v6297_v40  ;;  %v6300_v19 = vadd.f32 %v6299_v42, %v6298_v43 }
 0x20c   : > { %v9123_v6 = vadd.f32 %v9090_v10, %v6356_v21 }
 0x20d   : > { %v6951_v32 = vadd.f32 %v9088_v59, %v6300_v19 }
 0x20e   : > { %v6357_v49 = vpop.f32.mrb[136].mxu0 }
 0x20f   : > { %v6301_v57 = vpop.f32.mrb[72].mxu1  ;;  %v6358_v52 = vpop.f32.mrb[137].mxu0 }
 0x210   : > { %v6302_v60 = vpop.f32.mrb[73].mxu1  ;;  %v6359_v1 = vadd.f32 %v6358_v52, %v6357_v49  ;;  %v6360_v3 = vpop.f32.mrb[138].mxu0 }
 0x211   : > { %v6303_v16 = vadd.f32 %v6302_v60, %v6301_v57  ;;  %v6304_v54 = vpop.f32.mrb[74].mxu1  ;;  %v6361_v25 = vpop.f32.mrb[139].mxu0 }
 0x212   : > { %v9126_v30 = vadd.f32 %v6906_v34, %v6359_v1  ;;  %v6305_v41 = vpop.f32.mrb[75].mxu1  ;;  %v6362_v63 = vadd.f32 %v6361_v25, %v6360_v3 }
 0x213   : > { %v6978_v58 = vadd.f32 %v9093_v23, %v6303_v16  ;;  %v6306_v18 = vadd.f32 %v6305_v41, %v6304_v54 }
 0x214   : > { %v9130_v10 = vadd.f32 %v9100_v38, %v6362_v63 }
 0x215   : > { %v6996_v59 = vadd.f32 %v9097_v37, %v6306_v18 }
 0x216   : > { %v6363_v20 = vpop.f32.mrb[140].mxu0 }
 0x217   : > { %v6307_v4 = vpop.f32.mrb[76].mxu1  ;;  %v6364_v14 = vpop.f32.mrb[141].mxu0 }
 0x218   : > { %v6308_v12 = vpop.f32.mrb[77].mxu1  ;;  %v6365_v8 = vadd.f32 %v6364_v14, %v6363_v20  ;;  %v6366_v11 = vpop.f32.mrb[142].mxu0 }
 0x219   : > { %v6309_v7 = vadd.f32 %v6308_v12, %v6307_v4  ;;  %v6310_v35 = vpop.f32.mrb[78].mxu1  ;;  %v6367_v34 = vpop.f32.mrb[143].mxu0 }
 0x21a   : > { %v9133_v55 = vadd.f32 %v6897_v61, %v6365_v8  ;;  %v6311_v36 = vpop.f32.mrb[79].mxu1  ;;  %v6368_v46 = vadd.f32 %v6367_v34, %v6366_v11 }
 0x21b   : > { %v6969_v23 = vadd.f32 %v9103_v53, %v6309_v7  ;;  %v6312_v39 = vadd.f32 %v6311_v36, %v6310_v35 }
 0x21c   : > { %v9137_v38 = vadd.f32 %v9110_v31, %v6368_v46 }
 0x21d   : > { %v6987_v37 = vadd.f32 %v9107_v13, %v6312_v39 }
 0x21e   : > { %v6369_v29 = vpop.f32.mrb[144].mxu0 }
 0x21f   : > { %v6370_v33 = vpop.f32.mrb[145].mxu0 }
 0x220   : > { %v6371_v22 = vadd.f32 %v6370_v33, %v6369_v29  ;;  %v6372_v15 = vpop.f32.mrb[146].mxu0 }
 0x221   : > { %v6373_v51 = vpop.f32.mrb[147].mxu0 }
 0x222   : > { %v9140_v0 = vadd.f32 %v6942_v28, %v6371_v22  ;;  %v6374_v56 = vadd.f32 %v6373_v51, %v6372_v15 }
 0x224   : > { %v9142_v61 = vadd.f32 %v6960_v17, %v6374_v56 }
 0x226   : > { %v6375_v50 = vpop.f32.mrb[148].mxu0 }
 0x227   : > { %v6376_v62 = vpop.f32.mrb[149].mxu0 }
 0x228   : > { %v6377_v27 = vadd.f32 %v6376_v62, %v6375_v50  ;;  %v6378_v53 = vpop.f32.mrb[150].mxu0 }
 0x229   : > { %v6379_v24 = vpop.f32.mrb[151].mxu0 }
 0x22a   : > { %v9144_v44 = vadd.f32 %v6933_v48, %v6377_v27  ;;  %v6380_v31 = vadd.f32 %v6379_v24, %v6378_v53 }
 0x22c   : > { %v9146_v9 = vadd.f32 %v6951_v32, %v6380_v31 }
 0x22e   : > { %v6381_v13 = vpop.f32.mrb[152].mxu0 }
 0x22f   : > { %v6382_v45 = vpop.f32.mrb[153].mxu0 }
 0x230   : > { %v6383_v40 = vadd.f32 %v6382_v45, %v6381_v13  ;;  %v6384_v43 = vpop.f32.mrb[154].mxu0 }
 0x231   : > { %v6385_v5 = vpop.f32.mrb[155].mxu0 }
 0x232   : > { %v9148_v28 = vadd.f32 %v6978_v58, %v6383_v40  ;;  %v6386_v42 = vadd.f32 %v6385_v5, %v6384_v43 }
 0x234   : > { %v9150_v17 = vadd.f32 %v6996_v59, %v6386_v42 }
 0x236   : > { %v6387_v21 = vpop.f32.mrb[156].mxu0 }
 0x237   : > { %v6388_v19 = vpop.f32.mrb[157].mxu0 }
 0x238   : > { %v6389_v49 = vadd.f32 %v6388_v19, %v6387_v21  ;;  %v6390_v57 = vpop.f32.mrb[158].mxu0 }
 0x239   : > { %v6391_v52 = vpop.f32.mrb[159].mxu0 }
 0x23a   : > { %v9152_v48 = vadd.f32 %v6969_v23, %v6389_v49  ;;  %v6392_v60 = vadd.f32 %v6391_v52, %v6390_v57 }
 0x23c   : > { %v9154_v32 = vadd.f32 %v6987_v37, %v6392_v60 }
 0x23e   : > { %v6425_v1 = vpop.f32.mrb[160].mxu0 }
 0x23f   : > { %v6426_v3 = vpop.f32.mrb[161].mxu0 }
 0x240   : > { %v6427_v16 = vadd.f32 %v6426_v3, %v6425_v1  ;;  %v6428_v54 = vpop.f32.mrb[162].mxu0 }
 0x241   : > { %v6429_v25 = vpop.f32.mrb[163].mxu0 }
 0x242   : > { %v9157_v41 = vadd.f32 %v9112_v47, %v6427_v16  ;;  %v6430_v63 = vadd.f32 %v6429_v25, %v6428_v54 }
 0x244   : > { %v9160_v58 = vadd.f32 %v9116_v2, %v6430_v63 }
 0x246   : > { %v6431_v18 = vpop.f32.mrb[164].mxu0 }
 0x247   : > { %v6432_v59 = vpop.f32.mrb[165].mxu0 }
 0x248   : > { %v6433_v20 = vadd.f32 %v6432_v59, %v6431_v18  ;;  %v6434_v4 = vpop.f32.mrb[166].mxu0 }
 0x249   : > { %v6435_v14 = vpop.f32.mrb[167].mxu0 }
 0x24a   : > { %v9163_v12 = vadd.f32 %v9119_v26, %v6433_v20  ;;  %v6436_v8 = vadd.f32 %v6435_v14, %v6434_v4 }
 0x24c   : > { %v9166_v11 = vadd.f32 %v9123_v6, %v6436_v8 }
 0x24e   : > { %v6437_v7 = vpop.f32.mrb[168].mxu0 }
 0x24f   : > { %v6438_v35 = vpop.f32.mrb[169].mxu0 }
 0x250   : > { %v6439_v47 = vadd.f32 %v6438_v35, %v6437_v7  ;;  %v6440_v34 = vpop.f32.mrb[170].mxu0 }
 0x251   : > { %v6441_v36 = vpop.f32.mrb[171].mxu0 }
 0x252   : > { %v9169_v2 = vadd.f32 %v9126_v30, %v6439_v47  ;;  %v6442_v46 = vadd.f32 %v6441_v36, %v6440_v34 }
 0x254   : > { %v9172_v23 = vadd.f32 %v9130_v10, %v6442_v46 }
 0x256   : > { %v6443_v39 = vpop.f32.mrb[172].mxu0 }
 0x257   : > { %v6444_v37 = vpop.f32.mrb[173].mxu0 }
 0x258   : > { %v6445_v26 = vadd.f32 %v6444_v37, %v6443_v39  ;;  %v6446_v29 = vpop.f32.mrb[174].mxu0 }
 0x259   : > { %v6447_v33 = vpop.f32.mrb[175].mxu0 }
 0x25a   : > { %v9175_v6 = vadd.f32 %v9133_v55, %v6445_v26  ;;  %v6448_v22 = vadd.f32 %v6447_v33, %v6446_v29 }
 0x25c   : > { %v9178_v15 = vadd.f32 %v9137_v38, %v6448_v22 }
 0x25e   : > { %v6449_v51 = vpop.f32.mrb[176].mxu0 }
 0x25f   : > { %v6450_v56 = vpop.f32.mrb[177].mxu0 }
 0x260   : > { %v6451_v30 = vadd.f32 %v6450_v56, %v6449_v51  ;;  %v6452_v50 = vpop.f32.mrb[178].mxu0 }
 0x261   : > { %v6453_v62 = vpop.f32.mrb[179].mxu0 }
 0x262   : > { %v9181_v10 = vadd.f32 %v9140_v0, %v6451_v30  ;;  %v6454_v27 = vadd.f32 %v6453_v62, %v6452_v50 }
 0x264   : > { %v9184_v53 = vadd.f32 %v9142_v61, %v6454_v27 }
 0x266   : > { %v6455_v24 = vpop.f32.mrb[180].mxu0 }
 0x267   : > { %v6456_v31 = vpop.f32.mrb[181].mxu0 }
 0x268   : > { %v6457_v55 = vadd.f32 %v6456_v31, %v6455_v24  ;;  %v6458_v13 = vpop.f32.mrb[182].mxu0 }
 0x269   : > { %v6459_v45 = vpop.f32.mrb[183].mxu0 }
 0x26a   : > { %v9187_v38 = vadd.f32 %v9144_v44, %v6457_v55  ;;  %v6460_v40 = vadd.f32 %v6459_v45, %v6458_v13 }
 0x26c   : > { %v9190_v43 = vadd.f32 %v9146_v9, %v6460_v40 }
 0x26e   : > { %v6461_v0 = vpop.f32.mrb[184].mxu0 }
 0x26f   : > { %v6462_v5 = vpop.f32.mrb[185].mxu0 }
 0x270   : > { %v6463_v42 = vadd.f32 %v6462_v5, %v6461_v0  ;;  %v6464_v21 = vpop.f32.mrb[186].mxu0 }
 0x271   : > { %v6465_v61 = vpop.f32.mrb[187].mxu0 }
 0x272   : > { %v9193_v19 = vadd.f32 %v9148_v28, %v6463_v42  ;;  %v6466_v49 = vadd.f32 %v6465_v61, %v6464_v21 }
 0x274   : > { %v9196_v57 = vadd.f32 %v9150_v17, %v6466_v49 }
 0x276   : > { %v6467_v52 = vpop.f32.mrb[188].mxu0 }
 0x277   : > { %v6468_v44 = vpop.f32.mrb[189].mxu0 }
 0x278   : > { %v6469_v60 = vadd.f32 %v6468_v44, %v6467_v52  ;;  %v6470_v1 = vpop.f32.mrb[190].mxu0 }
 0x279   : > { %v6471_v3 = vpop.f32.mrb[191].mxu0 }
 0x27a   : > { %v9201_v9 = vadd.f32 %v9152_v48, %v6469_v60  ;;  %v6472_v16 = vadd.f32 %v6471_v3, %v6470_v1 }
 0x27c   : > { %v9204_v54 = vadd.f32 %v9154_v32, %v6472_v16 }
 0x27e   : > { %v6505_v28 = vpop.f32.mrb[192].mxu0 }
 0x27f   : > { %v6843_v25 = vpop.f32.mrb[0].mxu1  ;;  %v6506_v63 = vpop.f32.mrb[193].mxu0 }
 0x280   : > { %v6507_v17 = vadd.f32 %v6506_v63, %v6505_v28  ;;  %v4518_v18 = vpop.f32.mrb[1].mxu1  ;;  %v6508_v59 = vpop.f32.mrb[194].mxu0 }
 0x281   : > { %v6844_v20 = vpop.f32.mrb[2].mxu1  ;;  %v6509_v4 = vpop.f32.mrb[195].mxu0 }
 0x282   : > { %v6873_v14 = vadd.f32 %v9157_v41, %v6507_v17  ;;  %v6510_v48 = vadd.f32 %v6509_v4, %v6508_v59  ;;  %v4521_v8 = vpop.f32.mrb[3].mxu1 }
 0x284   : > { %v6874_v7 = vadd.f32 %v6873_v14, %v4518_v18  ;;  %v6891_v32 = vadd.f32 %v9160_v58, %v6510_v48 }
 0x286   : > { %v6892_v35 = vadd.f32 %v6891_v32, %v4521_v8  ;;  %v6511_v47 = vpop.f32.mrb[196].mxu0  ;;  %v4940_v30 = vmul.f32 %v6874_v7, %v6874_v7 }
 0x287   : > { %v6847_v34 = vpop.f32.mrb[4].mxu1  ;;  %v6512_v36 = vpop.f32.mrb[197].mxu0 }
 0x288   : > { %v5805_v46 = vpack.c.bf16 %v6892_v35, %v6874_v7  ;;  %v6513_v39 = vadd.f32 %v6512_v36, %v6511_v47  ;;  %v4534_v37 = vpop.f32.mrb[5].mxu1  ;;  %v6514_v41 = vpop.f32.mrb[198].mxu0 }
 0x289   : > { %v6848_v26 = vpop.f32.mrb[6].mxu1  ;;  %v6515_v29 = vpop.f32.mrb[199].mxu0 }
 0x28a   : > { %5806 = vst [vmem:[%s9214_s15] sm:$0xff] %v5805_v46   ;;  %v6864_v33 = vadd.f32 %v9163_v12, %v6513_v39  ;;  %v6516_v58 = vadd.f32 %v6515_v29, %v6514_v41  ;;  %v4537_v22 = vpop.f32.mrb[7].mxu1 }
 0x28c   : > { %v6865_v51 = vadd.f32 %v6864_v33, %v6843_v25  ;;  %v6882_v56 = vadd.f32 %v9166_v11, %v6516_v58 }
 0x28e   : > { %v4919_v50 = vadd.f32 %v6874_v7, %v6865_v51  ;;  %v4942_v62 = vmul.f32 %v6865_v51, %v6865_v51  ;;  %v6883_v27 = vadd.f32 %v6882_v56, %v6844_v20  ;;  %v6517_v24 = vpop.f32.mrb[200].mxu0 }
 0x28f   : > { %v6851_v31 = vpop.f32.mrb[8].mxu1  ;;  %v6518_v55 = vpop.f32.mrb[201].mxu0 }
 0x290   : > { %v4957_v13 = vadd.f32 %v4942_v62, %v4940_v30  ;;  %v5810_v45 = vpack.c.bf16 %v6883_v27, %v6865_v51  ;;  %v6519_v40 = vadd.f32 %v6518_v55, %v6517_v24  ;;  %v4550_v0 = vpop.f32.mrb[9].mxu1  ;;  %v6520_v5 = vpop.f32.mrb[202].mxu0 }
 0x291   : > { %v6852_v42 = vpop.f32.mrb[10].mxu1  ;;  %v6521_v12 = vpop.f32.mrb[203].mxu0 }
 0x292   : > { %5842 = vst [vmem:[%s9214_s15 + $0x8] sm:$0xff] %v5810_v45   ;;  %v6909_v21 = vadd.f32 %v9169_v2, %v6519_v40  ;;  %v6522_v61 = vadd.f32 %v6521_v12, %v6520_v5  ;;  %v4553_v49 = vpop.f32.mrb[11].mxu1 }
 0x294   : > { %v6910_v11 = vadd.f32 %v6909_v21, %v4534_v37  ;;  %v6927_v52 = vadd.f32 %v9172_v23, %v6522_v61 }
 0x296   : > { %v4921_v44 = vadd.f32 %v6910_v11, %v4919_v50  ;;  %v4944_v60 = vmul.f32 %v6910_v11, %v6910_v11  ;;  %v6928_v1 = vadd.f32 %v6927_v52, %v4537_v22  ;;  %v6523_v3 = vpop.f32.mrb[204].mxu0 }
 0x297   : > { %v9222_v16 = vpop.f32.mrb[12].mxu1  ;;  %v6524_v28 = vpop.f32.mrb[205].mxu0 }
 0x298   : > { %v4959_v25 = vadd.f32 %v4957_v13, %v4944_v60  ;;  %v5815_v63 = vpack.c.bf16 %v6928_v1, %v6910_v11  ;;  %v6525_v17 = vadd.f32 %v6524_v28, %v6523_v3  ;;  %v4566_v18 = vpop.f32.mrb[13].mxu1  ;;  %v6526_v59 = vpop.f32.mrb[206].mxu0 }
 0x299   : > { %v9224_v20 = vpop.f32.mrb[14].mxu1  ;;  %v6527_v2 = vpop.f32.mrb[207].mxu0 }
 0x29a   : > { %5843 = vst [vmem:[%s9214_s15 + $0x10] sm:$0xff] %v5815_v63   ;;  %v6900_v4 = vadd.f32 %v9175_v6, %v6525_v17  ;;  %v6528_v23 = vadd.f32 %v6527_v2, %v6526_v59  ;;  %v4569_v14 = vpop.f32.mrb[15].mxu1 }
 0x29c   : > { %v6901_v48 = vadd.f32 %v6900_v4, %v6847_v34  ;;  %v6918_v8 = vadd.f32 %v9178_v15, %v6528_v23 }
 0x29e   : > { %v4923_v7 = vadd.f32 %v6901_v48, %v4921_v44  ;;  %v4946_v32 = vmul.f32 %v6901_v48, %v6901_v48  ;;  %v6919_v35 = vadd.f32 %v6918_v8, %v6848_v26  ;;  %v6529_v47 = vpop.f32.mrb[208].mxu0 }
 0x29f   : > { %v6530_v36 = vpop.f32.mrb[209].mxu0 }
 0x2a0   : > { %v4961_v46 = vadd.f32 %v4959_v25, %v4946_v32  ;;  %v5820_v39 = vpack.c.bf16 %v6919_v35, %v6901_v48  ;;  %v6531_v37 = vadd.f32 %v6530_v36, %v6529_v47  ;;  %v6532_v41 = vpop.f32.mrb[210].mxu0 }
 0x2a1   : > { %v6533_v29 = vpop.f32.mrb[211].mxu0 }
 0x2a2   : > { %5844 = vst [vmem:[%s9214_s15 + $0x18] sm:$0xff] %v5820_v39   ;;  %v6945_v33 = vadd.f32 %v9181_v10, %v6531_v37  ;;  %v6534_v6 = vadd.f32 %v6533_v29, %v6532_v41 }
 0x2a4   : > { %v6946_v58 = vadd.f32 %v6945_v33, %v4550_v0  ;;  %v6963_v34 = vadd.f32 %v9184_v53, %v6534_v6 }
 0x2a6   : > { %v4925_v22 = vadd.f32 %v6946_v58, %v4923_v7  ;;  %v4948_v15 = vmul.f32 %v6946_v58, %v6946_v58  ;;  %v6964_v51 = vadd.f32 %v6963_v34, %v4553_v49  ;;  %v6535_v56 = vpop.f32.mrb[212].mxu0 }
 0x2a7   : > { %v6536_v26 = vpop.f32.mrb[213].mxu0 }
 0x2a8   : > { %v4963_v30 = vadd.f32 %v4961_v46, %v4948_v15  ;;  %v5825_v50 = vpack.c.bf16 %v6964_v51, %v6946_v58  ;;  %v6537_v62 = vadd.f32 %v6536_v26, %v6535_v56  ;;  %v6538_v27 = vpop.f32.mrb[214].mxu0 }
 0x2a9   : > { %v6539_v24 = vpop.f32.mrb[215].mxu0 }
 0x2aa   : > { %5845 = vst [vmem:[%s9214_s15 + $0x20] sm:$0xff] %v5825_v50   ;;  %v6936_v55 = vadd.f32 %v9187_v38, %v6537_v62  ;;  %v6540_v13 = vadd.f32 %v6539_v24, %v6538_v27 }
 0x2ac   : > { %v6937_v10 = vadd.f32 %v6936_v55, %v6851_v31  ;;  %v6954_v45 = vadd.f32 %v9190_v43, %v6540_v13 }
 0x2ae   : > { %v4927_v40 = vadd.f32 %v6937_v10, %v4925_v22  ;;  %v4950_v53 = vmul.f32 %v6937_v10, %v6937_v10  ;;  %v6955_v0 = vadd.f32 %v6954_v45, %v6852_v42  ;;  %v6541_v5 = vpop.f32.mrb[216].mxu0 }
 0x2af   : > { %v6542_v12 = vpop.f32.mrb[217].mxu0 }
 0x2b0   : > { %v4965_v21 = vadd.f32 %v4963_v30, %v4950_v53  ;;  %v5830_v61 = vpack.c.bf16 %v6955_v0, %v6937_v10  ;;  %v6543_v49 = vadd.f32 %v6542_v12, %v6541_v5  ;;  %v6544_v11 = vpop.f32.mrb[218].mxu0 }
 0x2b1   : > { %v6545_v52 = vpop.f32.mrb[219].mxu0 }
 0x2b2   : > { %5846 = vst [vmem:[%s9214_s15 + $0x28] sm:$0xff] %v5830_v61   ;;  %v6981_v44 = vadd.f32 %v9193_v19, %v6543_v49  ;;  %v6546_v60 = vadd.f32 %v6545_v52, %v6544_v11 }
 0x2b4   : > { %v6982_v38 = vadd.f32 %v6981_v44, %v4566_v18  ;;  %v6999_v31 = vadd.f32 %v9196_v57, %v6546_v60 }
 0x2b6   : > { %v4929_v1 = vadd.f32 %v6982_v38, %v4927_v40  ;;  %v4952_v43 = vmul.f32 %v6982_v38, %v6982_v38  ;;  %v7000_v3 = vadd.f32 %v6999_v31, %v4569_v14  ;;  %v6547_v28 = vpop.f32.mrb[220].mxu0 }
 0x2b7   : > { %v6548_v42 = vpop.f32.mrb[221].mxu0 }
 0x2b8   : > { %v4967_v25 = vadd.f32 %v4965_v21, %v4952_v43  ;;  %v5835_v63 = vpack.c.bf16 %v7000_v3, %v6982_v38  ;;  %v6549_v17 = vadd.f32 %v6548_v42, %v6547_v28  ;;  %v6550_v59 = vpop.f32.mrb[222].mxu0 }
 0x2b9   : > { %v6551_v2 = vpop.f32.mrb[223].mxu0 }
 0x2ba   : > { %5847 = vst [vmem:[%s9214_s15 + $0x30] sm:$0xff] %v5835_v63   ;;  %v6972_v4 = vadd.f32 %v9201_v9, %v6549_v17  ;;  %v6552_v23 = vadd.f32 %v6551_v2, %v6550_v59 }
 0x2bc   : > { %v6973_v19 = vadd.f32 %v6972_v4, %v9222_v16  ;;  %v6990_v18 = vadd.f32 %v9204_v54, %v6552_v23 }
 0x2be   : > { %v4931_v57 = vadd.f32 %v6973_v19, %v4929_v1  ;;  %v4954_v48 = vmul.f32 %v6973_v19, %v6973_v19  ;;  %v6991_v14 = vadd.f32 %v6990_v18, %v9224_v20 }
 0x2c0   : > { %v4933_v8 = vrot.slane %v4931_v57, 4  ;;  %v4969_v7 = vadd.f32 %v4967_v25, %v4954_v48  ;;  %v5840_v32 = vpack.c.bf16 %v6991_v14, %v6973_v19 }
 0x2c2   : > { %v4934_v35 = vadd.f32 %v4933_v8, %v4931_v57  ;;  %v4971_v47 = vrot.slane %v4969_v7, 4  ;;  %5848 = vst [vmem:[%s9214_s15 + $0x38] sm:$0xff] %v5840_v32  }
 0x2c4   : > { %v4935_v36 = vrot.slane %v4934_v35, 2  ;;  %v4972_v46 = vadd.f32 %v4971_v47, %v4969_v7 }
 0x2c6   : > { %v4936_v39 = vadd.f32 %v4935_v36, %v4934_v35  ;;  %v4973_v9 = vrot.slane %v4972_v46, 2 }
 0x2c8   : > { %v4937_v37 = vrot.slane %v4936_v39, 1  ;;  %v4974_v41 = vadd.f32 %v4973_v9, %v4972_v46 }
 0x2ca   : > { %v4975_v16 = vrot.slane %v4974_v41, 1  ;;  %v4938_v54 = vadd.f32 %v4937_v37, %v4936_v39 }
 0x2cc   : > { %v4976_v29 = vadd.f32 %v4975_v16, %v4974_v41 }
 0x2ce   : > { %v4979_v20 = vsel %vm4978_vm2, %v4938_v54, %v4976_v29 }
 0x2cf   : > { %v4981_v33 = vsel %vm4980_vm3, %v4979_v20, 0.0 }
 0x2d0   : > { %4982 = vst [vmem:[%s361_s25] sm:$0xff] %v4981_v33 }
 0x2d1 PF: > { %s16_s22 = sadd.s32 1, %s7508_s22   ;;  %s9269_s18 = smov %s7500_s20 }
 0x2d2   : > { %p13_p9 = scmp.ge.s32.totalorder %s16_s22, 18   ;;  %s9270_s19 = smov %s7504_s21 }
 0x2d3   : > { %s9271_s20 = smov %s9274_s23  ;;  %s9272_s21 = smov %s9278_s24 }
 0x2d4   :  { %15 = sbr.rel (!%p13_p9) target bundleno = 3 (0x3), region = 92 }

// kernel: double_conv.5
= control target key start
LH: loop header
LB: loop body
LE: loop exit
PB: predicated region body
PF: predicated region fallthrough
CT: control target
= control target key end

     0   :  { %s5846_s0 = inlined_call_operand.vmem [shape: bf16[2048,128], index: 0, kind: input, shape index: {}, may-alias: {0,3}]   ;;  %s5847_s1 = inlined_call_operand.vmem [shape: f32[1,128], index: 1, kind: input, shape index: {}]   ;;  %s5848_s2 = inlined_call_operand.vmem [shape: f32[1,128], index: 2, kind: input, shape index: {}]   ;;  %s5849_s3 = inlined_call_operand.vmem [shape: bf16[2048,128], index: 3, kind: output, shape index: {}, may-alias: {0,3}]  }
   0x1   :  { %v3107_v0 = vld [vmem:[%s5846_s0] sm:$0xff]   ;;  %v4258_v4 = vld [vmem:[%s5846_s0 + $0x8] sm:$0xff]   ;;  %v4259_v5 = vld [vmem:[%s5846_s0 + $0x10] sm:$0xff]  }
   0x2   :  { %v4542_v1 = vld [vmem:[%s5847_s1] ss:$0 sm:$0xff]  ;;  %v3108_v2 = vunpack.c.l.bf16 %v3107_v0  ;;  %v3109_v3 = vunpack.c.h.bf16 %v3107_v0  ;;  %v4260_v6 = vld [vmem:[%s5846_s0 + $0x18] sm:$0xff]   ;;  %v3112_v8 = vunpack.c.l.bf16 %v4258_v4  ;;  %v3113_v9 = vunpack.c.h.bf16 %v4258_v4  ;;  %v4262_v33 = vld [vmem:[%s5846_s0 + $0x28] sm:$0xff]  }
   0x3   :  { %v4556_v7 = vld [vmem:[%s5848_s2] ss:$0 sm:$0xff]  ;;  %v3116_v10 = vunpack.c.l.bf16 %v4259_v5  ;;  %v3117_v11 = vunpack.c.h.bf16 %v4259_v5  ;;  %v3120_v14 = vunpack.c.l.bf16 %v4260_v6  ;;  %v3121_v15 = vunpack.c.h.bf16 %v4260_v6  ;;  %v4263_v38 = vld [vmem:[%s5846_s0 + $0x30] sm:$0xff]   ;;  %v4264_v43 = vld [vmem:[%s5846_s0 + $0x38] sm:$0xff]  }
   0x4   :  { %v533_v12 = vmul.f32 %v3108_v2, %v4542_v1  ;;  %v534_v13 = vmul.f32 %v3109_v3, %v4542_v1  ;;  %v535_v16 = vmul.f32 %v3112_v8, %v4542_v1  ;;  %v536_v17 = vmul.f32 %v3113_v9, %v4542_v1  ;;  %v4261_v28 = vld [vmem:[%s5846_s0 + $0x20] sm:$0xff]  }
   0x5   :  { %v537_v18 = vmul.f32 %v3116_v10, %v4542_v1  ;;  %v538_v19 = vmul.f32 %v3117_v11, %v4542_v1  ;;  %v539_v22 = vmul.f32 %v3120_v14, %v4542_v1  ;;  %v540_v23 = vmul.f32 %v3121_v15, %v4542_v1 }
   0x6   :  { %v796_v20 = vadd.f32 %v4556_v7, %v533_v12  ;;  %v797_v21 = vadd.f32 %v4556_v7, %v534_v13  ;;  %v798_v24 = vadd.f32 %v4556_v7, %v535_v16  ;;  %v799_v25 = vadd.f32 %v4556_v7, %v536_v17 }
   0x7   :  { %v800_v26 = vadd.f32 %v4556_v7, %v537_v18  ;;  %v801_v27 = vadd.f32 %v4556_v7, %v538_v19  ;;  %v802_v31 = vadd.f32 %v4556_v7, %v539_v22  ;;  %v803_v32 = vadd.f32 %v4556_v7, %v540_v23 }
   0x8   :  { %v1052_v29 = vmax.f32 %v796_v20, 0.0  ;;  %v1053_v30 = vmax.f32 %v797_v21, 0.0  ;;  %v1054_v34 = vmax.f32 %v798_v24, 0.0  ;;  %v1055_v35 = vmax.f32 %v799_v25, 0.0 }
   0x9   :  { %v1056_v36 = vmax.f32 %v800_v26, 0.0  ;;  %v1057_v37 = vmax.f32 %v801_v27, 0.0  ;;  %v1058_v40 = vmax.f32 %v802_v31, 0.0  ;;  %v1059_v41 = vmax.f32 %v803_v32, 0.0 }
   0xa   :  { %v3621_v39 = vpack.c.bf16 %v1053_v30, %v1052_v29  ;;  %v3124_v42 = vunpack.c.l.bf16 %v4261_v28  ;;  %v3626_v44 = vpack.c.bf16 %v1055_v35, %v1054_v34  ;;  %v3125_v46 = vunpack.c.h.bf16 %v4261_v28 }
   0xb   :  { %v3631_v45 = vpack.c.bf16 %v1057_v37, %v1056_v36  ;;  %v3128_v47 = vunpack.c.l.bf16 %v4262_v33  ;;  %v3636_v48 = vpack.c.bf16 %v1059_v41, %v1058_v40  ;;  %v3129_v50 = vunpack.c.h.bf16 %v4262_v33 }
   0xc   :  { %3622 = vst [vmem:[%s5849_s3] sm:$0xff] %v3621_v39   ;;  %v541_v49 = vmul.f32 %v3124_v42, %v4542_v1  ;;  %v3132_v51 = vunpack.c.l.bf16 %v4263_v38  ;;  %4385 = vst [vmem:[%s5849_s3 + $0x8] sm:$0xff] %v3626_v44   ;;  %v542_v52 = vmul.f32 %v3125_v46, %v4542_v1  ;;  %v3133_v54 = vunpack.c.h.bf16 %v4263_v38 }
   0xd   :  { %4386 = vst [vmem:[%s5849_s3 + $0x10] sm:$0xff] %v3631_v45   ;;  %v543_v53 = vmul.f32 %v3128_v47, %v4542_v1  ;;  %v3136_v55 = vunpack.c.l.bf16 %v4264_v43  ;;  %4387 = vst [vmem:[%s5849_s3 + $0x18] sm:$0xff] %v3636_v48   ;;  %v544_v57 = vmul.f32 %v3129_v50, %v4542_v1  ;;  %v3137_v59 = vunpack.c.h.bf16 %v4264_v43 }
   0xe   :  { %v804_v56 = vadd.f32 %v4556_v7, %v541_v49  ;;  %v545_v58 = vmul.f32 %v3132_v51, %v4542_v1  ;;  %v805_v60 = vadd.f32 %v4556_v7, %v542_v52  ;;  %v546_v62 = vmul.f32 %v3133_v54, %v4542_v1 }
   0xf   :  { %v806_v61 = vadd.f32 %v4556_v7, %v543_v53  ;;  %v547_v63 = vmul.f32 %v3136_v55, %v4542_v1  ;;  %v807_v3 = vadd.f32 %v4556_v7, %v544_v57  ;;  %v548_v5 = vmul.f32 %v3137_v59, %v4542_v1 }
  0x10   :  { %v1060_v2 = vmax.f32 %v804_v56, 0.0  ;;  %v808_v4 = vadd.f32 %v4556_v7, %v545_v58  ;;  %v1061_v6 = vmax.f32 %v805_v60, 0.0  ;;  %v809_v9 = vadd.f32 %v4556_v7, %v546_v62 }
  0x11   :  { %v1062_v8 = vmax.f32 %v806_v61, 0.0  ;;  %v810_v10 = vadd.f32 %v4556_v7, %v547_v63  ;;  %v1063_v12 = vmax.f32 %v807_v3, 0.0  ;;  %v811_v14 = vadd.f32 %v4556_v7, %v548_v5 }
  0x12   :  { %v1064_v13 = vmax.f32 %v808_v4, 0.0  ;;  %v3641_v17 = vpack.c.bf16 %v1061_v6, %v1060_v2  ;;  %v1065_v18 = vmax.f32 %v809_v9, 0.0 }
  0x13   :  { %v1066_v19 = vmax.f32 %v810_v10, 0.0  ;;  %v3646_v21 = vpack.c.bf16 %v1063_v12, %v1062_v8  ;;  %v1067_v22 = vmax.f32 %v811_v14, 0.0 }
  0x14   :  { %v4265_v0 = vld [vmem:[%s5846_s0 + $0x40] sm:$0xff]   ;;  %v4266_v11 = vld [vmem:[%s5846_s0 + $0x48] sm:$0xff]   ;;  %v4267_v16 = vld [vmem:[%s5846_s0 + $0x50] sm:$0xff]   ;;  %v3651_v26 = vpack.c.bf16 %v1065_v18, %v1064_v13 }
  0x15   :  { %v3140_v15 = vunpack.c.l.bf16 %v4265_v0  ;;  %v3141_v20 = vunpack.c.h.bf16 %v4265_v0  ;;  %v3144_v24 = vunpack.c.l.bf16 %v4266_v11  ;;  %v4268_v25 = vld [vmem:[%s5846_s0 + $0x58] sm:$0xff]   ;;  %v3145_v28 = vunpack.c.h.bf16 %v4266_v11 }
  0x16   :  { %4388 = vst [vmem:[%s5849_s3 + $0x20] sm:$0xff] %v3641_v17   ;;  %v3148_v29 = vunpack.c.l.bf16 %v4267_v16  ;;  %4389 = vst [vmem:[%s5849_s3 + $0x28] sm:$0xff] %v3646_v21   ;;  %v3656_v30 = vpack.c.bf16 %v1067_v22, %v1066_v19  ;;  %v3149_v33 = vunpack.c.h.bf16 %v4267_v16  ;;  %v3152_v37 = vunpack.c.l.bf16 %v4268_v25 }
  0x17   :  { %v549_v23 = vmul.f32 %v3140_v15, %v4542_v1  ;;  %v550_v27 = vmul.f32 %v3141_v20, %v4542_v1  ;;  %v551_v32 = vmul.f32 %v3144_v24, %v4542_v1  ;;  %4390 = vst [vmem:[%s5849_s3 + $0x30] sm:$0xff] %v3651_v26   ;;  %v552_v35 = vmul.f32 %v3145_v28, %v4542_v1 }
  0x18   :  { %v553_v36 = vmul.f32 %v3148_v29, %v4542_v1  ;;  %v554_v41 = vmul.f32 %v3149_v33, %v4542_v1  ;;  %v3153_v42 = vunpack.c.h.bf16 %v4268_v25  ;;  %v555_v46 = vmul.f32 %v3152_v37, %v4542_v1 }
  0x19   :  { %v812_v31 = vadd.f32 %v4556_v7, %v549_v23  ;;  %v813_v34 = vadd.f32 %v4556_v7, %v550_v27  ;;  %v814_v40 = vadd.f32 %v4556_v7, %v551_v32  ;;  %v815_v44 = vadd.f32 %v4556_v7, %v552_v35 }
  0x1a   :  { %v816_v45 = vadd.f32 %v4556_v7, %v553_v36  ;;  %v817_v48 = vadd.f32 %v4556_v7, %v554_v41  ;;  %v556_v49 = vmul.f32 %v3153_v42, %v4542_v1  ;;  %v818_v55 = vadd.f32 %v4556_v7, %v555_v46 }
  0x1b   :  { %v1068_v39 = vmax.f32 %v812_v31, 0.0  ;;  %v1069_v43 = vmax.f32 %v813_v34, 0.0  ;;  %v1070_v47 = vmax.f32 %v814_v40, 0.0  ;;  %v1071_v53 = vmax.f32 %v815_v44, 0.0 }
  0x1c   :  { %v1072_v54 = vmax.f32 %v816_v45, 0.0  ;;  %v1073_v56 = vmax.f32 %v817_v48, 0.0  ;;  %v819_v57 = vadd.f32 %v4556_v7, %v556_v49  ;;  %v1074_v62 = vmax.f32 %v818_v55, 0.0 }
  0x1d   :  { %v3661_v52 = vpack.c.bf16 %v1069_v43, %v1068_v39  ;;  %v3666_v61 = vpack.c.bf16 %v1071_v53, %v1070_v47 }
  0x1e   :  { %v4269_v38 = vld [vmem:[%s5846_s0 + $0x60] sm:$0xff]   ;;  %v3671_v3 = vpack.c.bf16 %v1073_v56, %v1072_v54  ;;  %v1075_v4 = vmax.f32 %v819_v57, 0.0 }
  0x1f   :  { %4391 = vst [vmem:[%s5849_s3 + $0x38] sm:$0xff] %v3656_v30   ;;  %v3156_v50 = vunpack.c.l.bf16 %v4269_v38  ;;  %v3157_v58 = vunpack.c.h.bf16 %v4269_v38 }
  0x20   :  { %v3676_v13 = vpack.c.bf16 %v1075_v4, %v1074_v62 }
  0x21   :  { %v557_v59 = vmul.f32 %v3156_v50, %v4542_v1  ;;  %v558_v5 = vmul.f32 %v3157_v58, %v4542_v1 }
  0x23   :  { %v820_v6 = vadd.f32 %v4556_v7, %v557_v59  ;;  %v821_v14 = vadd.f32 %v4556_v7, %v558_v5 }
  0x25   :  { %v1076_v15 = vmax.f32 %v820_v6, 0.0  ;;  %v1077_v21 = vmax.f32 %v821_v14, 0.0 }
  0x26   :  { %v4270_v51 = vld [vmem:[%s5846_s0 + $0x68] sm:$0xff]   ;;  %v4271_v60 = vld [vmem:[%s5846_s0 + $0x70] sm:$0xff]  }
  0x27   :  { %4392 = vst [vmem:[%s5849_s3 + $0x40] sm:$0xff] %v3661_v52   ;;  %v3160_v63 = vunpack.c.l.bf16 %v4270_v51  ;;  %v3161_v0 = vunpack.c.h.bf16 %v4270_v51  ;;  %v3164_v10 = vunpack.c.l.bf16 %v4271_v60  ;;  %v3165_v11 = vunpack.c.h.bf16 %v4271_v60 }
  0x28   :  { %v3681_v30 = vpack.c.bf16 %v1077_v21, %v1076_v15 }
  0x29   :  { %v559_v8 = vmul.f32 %v3160_v63, %v4542_v1  ;;  %v560_v9 = vmul.f32 %v3161_v0, %v4542_v1  ;;  %v561_v19 = vmul.f32 %v3164_v10, %v4542_v1  ;;  %v562_v20 = vmul.f32 %v3165_v11, %v4542_v1 }
  0x2b   :  { %v822_v17 = vadd.f32 %v4556_v7, %v559_v8  ;;  %v823_v18 = vadd.f32 %v4556_v7, %v560_v9  ;;  %v824_v27 = vadd.f32 %v4556_v7, %v561_v19  ;;  %v825_v28 = vadd.f32 %v4556_v7, %v562_v20 }
  0x2d   :  { %v1078_v25 = vmax.f32 %v822_v17, 0.0  ;;  %v1079_v26 = vmax.f32 %v823_v18, 0.0  ;;  %v1080_v36 = vmax.f32 %v824_v27, 0.0  ;;  %v1081_v37 = vmax.f32 %v825_v28, 0.0 }
  0x2e   :  { %v4272_v2 = vld [vmem:[%s5846_s0 + $0x78] sm:$0xff]  }
  0x2f   :  { %4393 = vst [vmem:[%s5849_s3 + $0x48] sm:$0xff] %v3666_v61   ;;  %v3168_v16 = vunpack.c.l.bf16 %v4272_v2  ;;  %v3169_v22 = vunpack.c.h.bf16 %v4272_v2  ;;  %v3686_v35 = vpack.c.bf16 %v1079_v26, %v1078_v25  ;;  %v3691_v44 = vpack.c.bf16 %v1081_v37, %v1080_v36 }
  0x31   :  { %v563_v23 = vmul.f32 %v3168_v16, %v4542_v1  ;;  %v564_v31 = vmul.f32 %v3169_v22, %v4542_v1 }
  0x33   :  { %v826_v32 = vadd.f32 %v4556_v7, %v563_v23  ;;  %v827_v39 = vadd.f32 %v4556_v7, %v564_v31 }
  0x35   :  { %v1082_v40 = vmax.f32 %v826_v32, 0.0  ;;  %v1083_v48 = vmax.f32 %v827_v39, 0.0 }
  0x36   :  { %v4273_v12 = vld [vmem:[%s5846_s0 + $0x80] sm:$0xff]  }
  0x37   :  { %4394 = vst [vmem:[%s5849_s3 + $0x50] sm:$0xff] %v3671_v3   ;;  %4395 = vst [vmem:[%s5849_s3 + $0x58] sm:$0xff] %v3676_v13   ;;  %v3172_v24 = vunpack.c.l.bf16 %v4273_v12  ;;  %v3173_v33 = vunpack.c.h.bf16 %v4273_v12  ;;  %v3696_v57 = vpack.c.bf16 %v1083_v48, %v1082_v40 }
  0x39   :  { %v565_v38 = vmul.f32 %v3172_v24, %v4542_v1  ;;  %v566_v41 = vmul.f32 %v3173_v33, %v4542_v1 }
  0x3b   :  { %v828_v45 = vadd.f32 %v4556_v7, %v565_v38  ;;  %v829_v49 = vadd.f32 %v4556_v7, %v566_v41 }
  0x3d   :  { %v1084_v52 = vmax.f32 %v828_v45, 0.0  ;;  %v1085_v58 = vmax.f32 %v829_v49, 0.0 }
  0x3e   :  { %v4274_v29 = vld [vmem:[%s5846_s0 + $0x88] sm:$0xff]   ;;  %v4275_v34 = vld [vmem:[%s5846_s0 + $0x90] sm:$0xff]  }
  0x3f   :  { %4396 = vst [vmem:[%s5849_s3 + $0x60] sm:$0xff] %v3681_v30   ;;  %v3176_v42 = vunpack.c.l.bf16 %v4274_v29  ;;  %v3177_v46 = vunpack.c.h.bf16 %v4274_v29  ;;  %v3180_v47 = vunpack.c.l.bf16 %v4275_v34  ;;  %v3181_v51 = vunpack.c.h.bf16 %v4275_v34 }
  0x40   :  { %v3701_v3 = vpack.c.bf16 %v1085_v58, %v1084_v52 }
  0x41   :  { %v567_v50 = vmul.f32 %v3176_v42, %v4542_v1  ;;  %v568_v53 = vmul.f32 %v3177_v46, %v4542_v1  ;;  %v569_v54 = vmul.f32 %v3180_v47, %v4542_v1  ;;  %v570_v60 = vmul.f32 %v3181_v51, %v4542_v1 }
  0x43   :  { %v830_v59 = vadd.f32 %v4556_v7, %v567_v50  ;;  %v831_v61 = vadd.f32 %v4556_v7, %v568_v53  ;;  %v832_v62 = vadd.f32 %v4556_v7, %v569_v54  ;;  %v833_v5 = vadd.f32 %v4556_v7, %v570_v60 }
  0x45   :  { %v1086_v4 = vmax.f32 %v830_v59, 0.0  ;;  %v1087_v8 = vmax.f32 %v831_v61, 0.0  ;;  %v1088_v9 = vmax.f32 %v832_v62, 0.0  ;;  %v1089_v12 = vmax.f32 %v833_v5, 0.0 }
  0x46   :  { %v4276_v43 = vld [vmem:[%s5846_s0 + $0x98] sm:$0xff]  }
  0x47   :  { %4397 = vst [vmem:[%s5849_s3 + $0x68] sm:$0xff] %v3686_v35   ;;  %4398 = vst [vmem:[%s5849_s3 + $0x70] sm:$0xff] %v3691_v44   ;;  %v3184_v55 = vunpack.c.l.bf16 %v4276_v43  ;;  %v3185_v63 = vunpack.c.h.bf16 %v4276_v43  ;;  %v3706_v17 = vpack.c.bf16 %v1087_v8, %v1086_v4  ;;  %v3711_v22 = vpack.c.bf16 %v1089_v12, %v1088_v9 }
  0x49   :  { %v571_v0 = vmul.f32 %v3184_v55, %v4542_v1  ;;  %v572_v10 = vmul.f32 %v3185_v63, %v4542_v1 }
  0x4b   :  { %v834_v11 = vadd.f32 %v4556_v7, %v571_v0  ;;  %v835_v18 = vadd.f32 %v4556_v7, %v572_v10 }
  0x4d   :  { %v1090_v19 = vmax.f32 %v834_v11, 0.0  ;;  %v1091_v26 = vmax.f32 %v835_v18, 0.0 }
  0x4e   :  { %v4277_v56 = vld [vmem:[%s5846_s0 + $0xa0] sm:$0xff]   ;;  %v4278_v2 = vld [vmem:[%s5846_s0 + $0xa8] sm:$0xff]  }
  0x4f   :  { %4399 = vst [vmem:[%s5849_s3 + $0x78] sm:$0xff] %v3696_v57   ;;  %v3188_v6 = vunpack.c.l.bf16 %v4277_v56  ;;  %4400 = vst [vmem:[%s5849_s3 + $0x80] sm:$0xff] %v3701_v3   ;;  %v3189_v13 = vunpack.c.h.bf16 %v4277_v56  ;;  %v3192_v15 = vunpack.c.l.bf16 %v4278_v2  ;;  %v3193_v20 = vunpack.c.h.bf16 %v4278_v2 }
  0x50   :  { %v3716_v35 = vpack.c.bf16 %v1091_v26, %v1090_v19 }
  0x51   :  { %v573_v14 = vmul.f32 %v3188_v6, %v4542_v1  ;;  %v574_v23 = vmul.f32 %v3189_v13, %v4542_v1  ;;  %v575_v25 = vmul.f32 %v3192_v15, %v4542_v1  ;;  %v576_v27 = vmul.f32 %v3193_v20, %v4542_v1 }
  0x53   :  { %v836_v24 = vadd.f32 %v4556_v7, %v573_v14  ;;  %v837_v30 = vadd.f32 %v4556_v7, %v574_v23  ;;  %v838_v32 = vadd.f32 %v4556_v7, %v575_v25  ;;  %v839_v36 = vadd.f32 %v4556_v7, %v576_v27 }
  0x55   :  { %v1092_v31 = vmax.f32 %v836_v24, 0.0  ;;  %v1093_v39 = vmax.f32 %v837_v30, 0.0  ;;  %v1094_v40 = vmax.f32 %v838_v32, 0.0  ;;  %v1095_v43 = vmax.f32 %v839_v36, 0.0 }
  0x56   :  { %v4279_v16 = vld [vmem:[%s5846_s0 + $0xb0] sm:$0xff]   ;;  %v4280_v21 = vld [vmem:[%s5846_s0 + $0xb8] sm:$0xff]  }
  0x57   :  { %4401 = vst [vmem:[%s5849_s3 + $0x88] sm:$0xff] %v3706_v17   ;;  %v3196_v28 = vunpack.c.l.bf16 %v4279_v16  ;;  %v3197_v29 = vunpack.c.h.bf16 %v4279_v16  ;;  %4402 = vst [vmem:[%s5849_s3 + $0x90] sm:$0xff] %v3711_v22   ;;  %v3200_v33 = vunpack.c.l.bf16 %v4280_v21  ;;  %v3201_v41 = vunpack.c.h.bf16 %v4280_v21 }
  0x58   :  { %v3721_v48 = vpack.c.bf16 %v1093_v39, %v1092_v31  ;;  %v3726_v53 = vpack.c.bf16 %v1095_v43, %v1094_v40 }
  0x59   :  { %v577_v37 = vmul.f32 %v3196_v28, %v4542_v1  ;;  %v578_v38 = vmul.f32 %v3197_v29, %v4542_v1  ;;  %v579_v42 = vmul.f32 %v3200_v33, %v4542_v1  ;;  %v580_v49 = vmul.f32 %v3201_v41, %v4542_v1 }
  0x5b   :  { %v840_v44 = vadd.f32 %v4556_v7, %v577_v37  ;;  %v841_v45 = vadd.f32 %v4556_v7, %v578_v38  ;;  %v842_v50 = vadd.f32 %v4556_v7, %v579_v42  ;;  %v843_v57 = vadd.f32 %v4556_v7, %v580_v49 }
  0x5d   :  { %v1096_v54 = vmax.f32 %v840_v44, 0.0  ;;  %v1097_v55 = vmax.f32 %v841_v45, 0.0  ;;  %v1098_v58 = vmax.f32 %v842_v50, 0.0  ;;  %v1099_v3 = vmax.f32 %v843_v57, 0.0 }
  0x5e   :  { %v4281_v34 = vld [vmem:[%s5846_s0 + $0xc0] sm:$0xff]  }
  0x5f   :  { %4403 = vst [vmem:[%s5849_s3 + $0x98] sm:$0xff] %v3716_v35   ;;  %v3204_v46 = vunpack.c.l.bf16 %v4281_v34  ;;  %v3205_v51 = vunpack.c.h.bf16 %v4281_v34  ;;  %v3731_v62 = vpack.c.bf16 %v1097_v55, %v1096_v54  ;;  %v3736_v13 = vpack.c.bf16 %v1099_v3, %v1098_v58 }
  0x61   :  { %v581_v56 = vmul.f32 %v3204_v46, %v4542_v1  ;;  %v582_v59 = vmul.f32 %v3205_v51, %v4542_v1 }
  0x63   :  { %v844_v63 = vadd.f32 %v4556_v7, %v581_v56  ;;  %v845_v4 = vadd.f32 %v4556_v7, %v582_v59 }
  0x65   :  { %v1100_v8 = vmax.f32 %v844_v63, 0.0  ;;  %v1101_v14 = vmax.f32 %v845_v4, 0.0 }
  0x66   :  { %v4282_v47 = vld [vmem:[%s5846_s0 + $0xc8] sm:$0xff]   ;;  %v4283_v52 = vld [vmem:[%s5846_s0 + $0xd0] sm:$0xff]  }
  0x67   :  { %4404 = vst [vmem:[%s5849_s3 + $0xa0] sm:$0xff] %v3721_v48   ;;  %v3208_v60 = vunpack.c.l.bf16 %v4282_v47  ;;  %v3209_v0 = vunpack.c.h.bf16 %v4282_v47  ;;  %v3212_v2 = vunpack.c.l.bf16 %v4283_v52  ;;  %v3213_v6 = vunpack.c.h.bf16 %v4283_v52 }
  0x68   :  { %v3741_v22 = vpack.c.bf16 %v1101_v14, %v1100_v8 }
  0x69   :  { %v583_v5 = vmul.f32 %v3208_v60, %v4542_v1  ;;  %v584_v9 = vmul.f32 %v3209_v0, %v4542_v1  ;;  %v585_v10 = vmul.f32 %v3212_v2, %v4542_v1  ;;  %v586_v16 = vmul.f32 %v3213_v6, %v4542_v1 }
  0x6b   :  { %v846_v15 = vadd.f32 %v4556_v7, %v583_v5  ;;  %v847_v17 = vadd.f32 %v4556_v7, %v584_v9  ;;  %v848_v18 = vadd.f32 %v4556_v7, %v585_v10  ;;  %v849_v24 = vadd.f32 %v4556_v7, %v586_v16 }
  0x6d   :  { %v1102_v23 = vmax.f32 %v846_v15, 0.0  ;;  %v1103_v26 = vmax.f32 %v847_v17, 0.0  ;;  %v1104_v27 = vmax.f32 %v848_v18, 0.0  ;;  %v1105_v30 = vmax.f32 %v849_v24, 0.0 }
  0x6e   :  { %v4284_v61 = vld [vmem:[%s5846_s0 + $0xd8] sm:$0xff]  }
  0x6f   :  { %4405 = vst [vmem:[%s5849_s3 + $0xa8] sm:$0xff] %v3726_v53   ;;  %4406 = vst [vmem:[%s5849_s3 + $0xb0] sm:$0xff] %v3731_v62   ;;  %v3216_v11 = vunpack.c.l.bf16 %v4284_v61  ;;  %v3217_v19 = vunpack.c.h.bf16 %v4284_v61  ;;  %v3746_v35 = vpack.c.bf16 %v1103_v26, %v1102_v23  ;;  %v3751_v40 = vpack.c.bf16 %v1105_v30, %v1104_v27 }
  0x71   :  { %v587_v20 = vmul.f32 %v3216_v11, %v4542_v1  ;;  %v588_v28 = vmul.f32 %v3217_v19, %v4542_v1 }
  0x73   :  { %v850_v29 = vadd.f32 %v4556_v7, %v587_v20  ;;  %v851_v36 = vadd.f32 %v4556_v7, %v588_v28 }
  0x75   :  { %v1106_v37 = vmax.f32 %v850_v29, 0.0  ;;  %v1107_v44 = vmax.f32 %v851_v36, 0.0 }
  0x76   :  { %v4285_v12 = vld [vmem:[%s5846_s0 + $0xe0] sm:$0xff]   ;;  %v4286_v21 = vld [vmem:[%s5846_s0 + $0xe8] sm:$0xff]  }
  0x77   :  { %4407 = vst [vmem:[%s5849_s3 + $0xb8] sm:$0xff] %v3736_v13   ;;  %v3220_v25 = vunpack.c.l.bf16 %v4285_v12  ;;  %4408 = vst [vmem:[%s5849_s3 + $0xc0] sm:$0xff] %v3741_v22   ;;  %v3221_v31 = vunpack.c.h.bf16 %v4285_v12  ;;  %v3224_v33 = vunpack.c.l.bf16 %v4286_v21  ;;  %v3225_v38 = vunpack.c.h.bf16 %v4286_v21 }
  0x78   :  { %v3756_v53 = vpack.c.bf16 %v1107_v44, %v1106_v37 }
  0x79   :  { %v589_v32 = vmul.f32 %v3220_v25, %v4542_v1  ;;  %v590_v41 = vmul.f32 %v3221_v31, %v4542_v1  ;;  %v591_v43 = vmul.f32 %v3224_v33, %v4542_v1  ;;  %v592_v45 = vmul.f32 %v3225_v38, %v4542_v1 }
  0x7b   :  { %v852_v42 = vadd.f32 %v4556_v7, %v589_v32  ;;  %v853_v48 = vadd.f32 %v4556_v7, %v590_v41  ;;  %v854_v50 = vadd.f32 %v4556_v7, %v591_v43  ;;  %v855_v54 = vadd.f32 %v4556_v7, %v592_v45 }
  0x7d   :  { %v1108_v49 = vmax.f32 %v852_v42, 0.0  ;;  %v1109_v57 = vmax.f32 %v853_v48, 0.0  ;;  %v1110_v58 = vmax.f32 %v854_v50, 0.0  ;;  %v1111_v61 = vmax.f32 %v855_v54, 0.0 }
  0x7e   :  { %v4287_v34 = vld [vmem:[%s5846_s0 + $0xf0] sm:$0xff]   ;;  %v4288_v39 = vld [vmem:[%s5846_s0 + $0xf8] sm:$0xff]  }
  0x7f   :  { %4409 = vst [vmem:[%s5849_s3 + $0xc8] sm:$0xff] %v3746_v35   ;;  %v3228_v46 = vunpack.c.l.bf16 %v4287_v34  ;;  %v3229_v47 = vunpack.c.h.bf16 %v4287_v34  ;;  %4410 = vst [vmem:[%s5849_s3 + $0xd0] sm:$0xff] %v3751_v40   ;;  %v3232_v51 = vunpack.c.l.bf16 %v4288_v39  ;;  %v3233_v59 = vunpack.c.h.bf16 %v4288_v39 }
  0x80   :  { %v3761_v3 = vpack.c.bf16 %v1109_v57, %v1108_v49  ;;  %v3766_v9 = vpack.c.bf16 %v1111_v61, %v1110_v58 }
  0x81   :  { %v593_v55 = vmul.f32 %v3228_v46, %v4542_v1  ;;  %v594_v56 = vmul.f32 %v3229_v47, %v4542_v1  ;;  %v595_v60 = vmul.f32 %v3232_v51, %v4542_v1  ;;  %v596_v4 = vmul.f32 %v3233_v59, %v4542_v1 }
  0x83   :  { %v856_v62 = vadd.f32 %v4556_v7, %v593_v55  ;;  %v857_v63 = vadd.f32 %v4556_v7, %v594_v56  ;;  %v858_v5 = vadd.f32 %v4556_v7, %v595_v60  ;;  %v859_v13 = vadd.f32 %v4556_v7, %v596_v4 }
  0x85   :  { %v1112_v10 = vmax.f32 %v856_v62, 0.0  ;;  %v1113_v11 = vmax.f32 %v857_v63, 0.0  ;;  %v1114_v14 = vmax.f32 %v858_v5, 0.0  ;;  %v1115_v22 = vmax.f32 %v859_v13, 0.0 }
  0x86   :  { %v4289_v52 = vld [vmem:[%s5846_s0 + $0x100] sm:$0xff]  }
  0x87   :  { %4411 = vst [vmem:[%s5849_s3 + $0xd8] sm:$0xff] %v3756_v53   ;;  %v3236_v0 = vunpack.c.l.bf16 %v4289_v52  ;;  %v3237_v6 = vunpack.c.h.bf16 %v4289_v52  ;;  %v3771_v18 = vpack.c.bf16 %v1113_v11, %v1112_v10  ;;  %v3776_v31 = vpack.c.bf16 %v1115_v22, %v1114_v14 }
  0x89   :  { %v597_v12 = vmul.f32 %v3236_v0, %v4542_v1  ;;  %v598_v15 = vmul.f32 %v3237_v6, %v4542_v1 }
  0x8b   :  { %v860_v19 = vadd.f32 %v4556_v7, %v597_v12  ;;  %v861_v23 = vadd.f32 %v4556_v7, %v598_v15 }
  0x8d   :  { %v1116_v26 = vmax.f32 %v860_v19, 0.0  ;;  %v1117_v32 = vmax.f32 %v861_v23, 0.0 }
  0x8e   :  { %v4290_v2 = vld [vmem:[%s5846_s0 + $0x108] sm:$0xff]   ;;  %v4291_v8 = vld [vmem:[%s5846_s0 + $0x110] sm:$0xff]  }
  0x8f   :  { %4412 = vst [vmem:[%s5849_s3 + $0xe0] sm:$0xff] %v3761_v3   ;;  %v3240_v16 = vunpack.c.l.bf16 %v4290_v2  ;;  %v3241_v20 = vunpack.c.h.bf16 %v4290_v2  ;;  %v3244_v21 = vunpack.c.l.bf16 %v4291_v8  ;;  %v3245_v25 = vunpack.c.h.bf16 %v4291_v8 }
  0x90   :  { %v3781_v40 = vpack.c.bf16 %v1117_v32, %v1116_v26 }
  0x91   :  { %v599_v24 = vmul.f32 %v3240_v16, %v4542_v1  ;;  %v600_v27 = vmul.f32 %v3241_v20, %v4542_v1  ;;  %v601_v28 = vmul.f32 %v3244_v21, %v4542_v1  ;;  %v602_v34 = vmul.f32 %v3245_v25, %v4542_v1 }
  0x93   :  { %v862_v33 = vadd.f32 %v4556_v7, %v599_v24  ;;  %v863_v35 = vadd.f32 %v4556_v7, %v600_v27  ;;  %v864_v36 = vadd.f32 %v4556_v7, %v601_v28  ;;  %v865_v42 = vadd.f32 %v4556_v7, %v602_v34 }
  0x95   :  { %v1118_v41 = vmax.f32 %v862_v33, 0.0  ;;  %v1119_v44 = vmax.f32 %v863_v35, 0.0  ;;  %v1120_v45 = vmax.f32 %v864_v36, 0.0  ;;  %v1121_v48 = vmax.f32 %v865_v42, 0.0 }
  0x96   :  { %v4292_v17 = vld [vmem:[%s5846_s0 + $0x118] sm:$0xff]  }
  0x97   :  { %4413 = vst [vmem:[%s5849_s3 + $0xe8] sm:$0xff] %v3766_v9   ;;  %4414 = vst [vmem:[%s5849_s3 + $0xf0] sm:$0xff] %v3771_v18   ;;  %v3248_v29 = vunpack.c.l.bf16 %v4292_v17  ;;  %v3249_v37 = vunpack.c.h.bf16 %v4292_v17  ;;  %v3786_v53 = vpack.c.bf16 %v1119_v44, %v1118_v41  ;;  %v3791_v58 = vpack.c.bf16 %v1121_v48, %v1120_v45 }
  0x99   :  { %v603_v38 = vmul.f32 %v3248_v29, %v4542_v1  ;;  %v604_v46 = vmul.f32 %v3249_v37, %v4542_v1 }
  0x9b   :  { %v866_v47 = vadd.f32 %v4556_v7, %v603_v38  ;;  %v867_v54 = vadd.f32 %v4556_v7, %v604_v46 }
  0x9d   :  { %v1122_v55 = vmax.f32 %v866_v47, 0.0  ;;  %v1123_v62 = vmax.f32 %v867_v54, 0.0 }
  0x9e   :  { %v4293_v30 = vld [vmem:[%s5846_s0 + $0x120] sm:$0xff]   ;;  %v4294_v39 = vld [vmem:[%s5846_s0 + $0x128] sm:$0xff]  }
  0x9f   :  { %4415 = vst [vmem:[%s5849_s3 + $0xf8] sm:$0xff] %v3776_v31   ;;  %v3252_v43 = vunpack.c.l.bf16 %v4293_v30  ;;  %4416 = vst [vmem:[%s5849_s3 + $0x100] sm:$0xff] %v3781_v40   ;;  %v3253_v49 = vunpack.c.h.bf16 %v4293_v30  ;;  %v3256_v51 = vunpack.c.l.bf16 %v4294_v39  ;;  %v3257_v56 = vunpack.c.h.bf16 %v4294_v39 }
  0xa0   :  { %v3796_v9 = vpack.c.bf16 %v1123_v62, %v1122_v55 }
  0xa1   :  { %v605_v50 = vmul.f32 %v3252_v43, %v4542_v1  ;;  %v606_v59 = vmul.f32 %v3253_v49, %v4542_v1  ;;  %v607_v61 = vmul.f32 %v3256_v51, %v4542_v1  ;;  %v608_v63 = vmul.f32 %v3257_v56, %v4542_v1 }
  0xa3   :  { %v868_v60 = vadd.f32 %v4556_v7, %v605_v50  ;;  %v869_v3 = vadd.f32 %v4556_v7, %v606_v59  ;;  %v870_v5 = vadd.f32 %v4556_v7, %v607_v61  ;;  %v871_v10 = vadd.f32 %v4556_v7, %v608_v63 }
  0xa5   :  { %v1124_v4 = vmax.f32 %v868_v60, 0.0  ;;  %v1125_v13 = vmax.f32 %v869_v3, 0.0  ;;  %v1126_v14 = vmax.f32 %v870_v5, 0.0  ;;  %v1127_v17 = vmax.f32 %v871_v10, 0.0 }
  0xa6   :  { %v4295_v52 = vld [vmem:[%s5846_s0 + $0x130] sm:$0xff]   ;;  %v4296_v57 = vld [vmem:[%s5846_s0 + $0x138] sm:$0xff]  }
  0xa7   :  { %4417 = vst [vmem:[%s5849_s3 + $0x108] sm:$0xff] %v3786_v53   ;;  %v3260_v0 = vunpack.c.l.bf16 %v4295_v52  ;;  %v3261_v2 = vunpack.c.h.bf16 %v4295_v52  ;;  %4418 = vst [vmem:[%s5849_s3 + $0x110] sm:$0xff] %v3791_v58   ;;  %v3264_v6 = vunpack.c.l.bf16 %v4296_v57  ;;  %v3265_v15 = vunpack.c.h.bf16 %v4296_v57 }
  0xa8   :  { %v3801_v22 = vpack.c.bf16 %v1125_v13, %v1124_v4  ;;  %v3806_v27 = vpack.c.bf16 %v1127_v17, %v1126_v14 }
  0xa9   :  { %v609_v11 = vmul.f32 %v3260_v0, %v4542_v1  ;;  %v610_v12 = vmul.f32 %v3261_v2, %v4542_v1  ;;  %v611_v16 = vmul.f32 %v3264_v6, %v4542_v1  ;;  %v612_v23 = vmul.f32 %v3265_v15, %v4542_v1 }
  0xab   :  { %v872_v18 = vadd.f32 %v4556_v7, %v609_v11  ;;  %v873_v19 = vadd.f32 %v4556_v7, %v610_v12  ;;  %v874_v24 = vadd.f32 %v4556_v7, %v611_v16  ;;  %v875_v31 = vadd.f32 %v4556_v7, %v612_v23 }
  0xad   :  { %v1128_v28 = vmax.f32 %v872_v18, 0.0  ;;  %v1129_v29 = vmax.f32 %v873_v19, 0.0  ;;  %v1130_v32 = vmax.f32 %v874_v24, 0.0  ;;  %v1131_v40 = vmax.f32 %v875_v31, 0.0 }
  0xae   :  { %v4297_v8 = vld [vmem:[%s5846_s0 + $0x140] sm:$0xff]  }
  0xaf   :  { %4419 = vst [vmem:[%s5849_s3 + $0x118] sm:$0xff] %v3796_v9   ;;  %v3268_v20 = vunpack.c.l.bf16 %v4297_v8  ;;  %v3269_v25 = vunpack.c.h.bf16 %v4297_v8  ;;  %v3811_v36 = vpack.c.bf16 %v1129_v29, %v1128_v28  ;;  %v3816_v49 = vpack.c.bf16 %v1131_v40, %v1130_v32 }
  0xb1   :  { %v613_v30 = vmul.f32 %v3268_v20, %v4542_v1  ;;  %v614_v33 = vmul.f32 %v3269_v25, %v4542_v1 }
  0xb3   :  { %v876_v37 = vadd.f32 %v4556_v7, %v613_v30  ;;  %v877_v41 = vadd.f32 %v4556_v7, %v614_v33 }
  0xb5   :  { %v1132_v44 = vmax.f32 %v876_v37, 0.0  ;;  %v1133_v50 = vmax.f32 %v877_v41, 0.0  ;;  %v5020_v41 = vld [vmem:[%s5847_s1] ss:$0 sm:$0xff] }
  0xb6   :  { %v4298_v21 = vld [vmem:[%s5846_s0 + $0x148] sm:$0xff]   ;;  %v4299_v26 = vld [vmem:[%s5846_s0 + $0x150] sm:$0xff]  }
  0xb7   :  { %4420 = vst [vmem:[%s5849_s3 + $0x120] sm:$0xff] %v3801_v22   ;;  %v3272_v34 = vunpack.c.l.bf16 %v4298_v21  ;;  %v3273_v38 = vunpack.c.h.bf16 %v4298_v21  ;;  %v3276_v39 = vunpack.c.l.bf16 %v4299_v26  ;;  %v3277_v43 = vunpack.c.h.bf16 %v4299_v26 }
  0xb8   :  { %v3821_v58 = vpack.c.bf16 %v1133_v50, %v1132_v44 }
  0xb9   :  { %v615_v42 = vmul.f32 %v3272_v34, %v4542_v1  ;;  %v616_v45 = vmul.f32 %v3273_v38, %v4542_v1  ;;  %v617_v46 = vmul.f32 %v3276_v39, %v4542_v1  ;;  %v618_v52 = vmul.f32 %v3277_v43, %v4542_v1 }
  0xbb   :  { %v878_v51 = vadd.f32 %v4556_v7, %v615_v42  ;;  %v879_v53 = vadd.f32 %v4556_v7, %v616_v45  ;;  %v880_v54 = vadd.f32 %v4556_v7, %v617_v46  ;;  %v881_v60 = vadd.f32 %v4556_v7, %v618_v52  ;;  %v5026_v42 = vld [vmem:[%s5848_s2] ss:$0 sm:$0xff] }
  0xbd   :  { %v1134_v59 = vmax.f32 %v878_v51, 0.0  ;;  %v1135_v62 = vmax.f32 %v879_v53, 0.0  ;;  %v1136_v63 = vmax.f32 %v880_v54, 0.0  ;;  %v1137_v3 = vmax.f32 %v881_v60, 0.0 }
  0xbe   :  { %v4300_v35 = vld [vmem:[%s5846_s0 + $0x158] sm:$0xff]  }
  0xbf   :  { %4421 = vst [vmem:[%s5849_s3 + $0x128] sm:$0xff] %v3806_v27   ;;  %4422 = vst [vmem:[%s5849_s3 + $0x130] sm:$0xff] %v3811_v36   ;;  %v3280_v47 = vunpack.c.l.bf16 %v4300_v35  ;;  %v3281_v55 = vunpack.c.h.bf16 %v4300_v35  ;;  %v3826_v9 = vpack.c.bf16 %v1135_v62, %v1134_v59  ;;  %v3831_v14 = vpack.c.bf16 %v1137_v3, %v1136_v63 }
  0xc1   :  { %v619_v56 = vmul.f32 %v3280_v47, %v4542_v1  ;;  %v620_v0 = vmul.f32 %v3281_v55, %v4542_v1 }
  0xc3   :  { %v882_v2 = vadd.f32 %v4556_v7, %v619_v56  ;;  %v883_v10 = vadd.f32 %v4556_v7, %v620_v0 }
  0xc5   :  { %v1138_v11 = vmax.f32 %v882_v2, 0.0  ;;  %v1139_v18 = vmax.f32 %v883_v10, 0.0 }
  0xc6   :  { %v4301_v48 = vld [vmem:[%s5846_s0 + $0x160] sm:$0xff]   ;;  %v4302_v57 = vld [vmem:[%s5846_s0 + $0x168] sm:$0xff]  }
  0xc7   :  { %4423 = vst [vmem:[%s5849_s3 + $0x138] sm:$0xff] %v3816_v49   ;;  %v3284_v61 = vunpack.c.l.bf16 %v4301_v48  ;;  %4424 = vst [vmem:[%s5849_s3 + $0x140] sm:$0xff] %v3821_v58   ;;  %v3285_v4 = vunpack.c.h.bf16 %v4301_v48  ;;  %v3288_v6 = vunpack.c.l.bf16 %v4302_v57  ;;  %v3289_v12 = vunpack.c.h.bf16 %v4302_v57 }
  0xc8   :  { %v3836_v27 = vpack.c.bf16 %v1139_v18, %v1138_v11 }
  0xc9   :  { %v621_v5 = vmul.f32 %v3284_v61, %v4542_v1  ;;  %v622_v15 = vmul.f32 %v3285_v4, %v4542_v1  ;;  %v623_v17 = vmul.f32 %v3288_v6, %v4542_v1  ;;  %v624_v19 = vmul.f32 %v3289_v12, %v4542_v1 }
  0xcb   :  { %v884_v16 = vadd.f32 %v4556_v7, %v621_v5  ;;  %v885_v22 = vadd.f32 %v4556_v7, %v622_v15  ;;  %v886_v24 = vadd.f32 %v4556_v7, %v623_v17  ;;  %v887_v28 = vadd.f32 %v4556_v7, %v624_v19 }
  0xcd   :  { %v1140_v23 = vmax.f32 %v884_v16, 0.0  ;;  %v1141_v31 = vmax.f32 %v885_v22, 0.0  ;;  %v1142_v32 = vmax.f32 %v886_v24, 0.0  ;;  %v1143_v35 = vmax.f32 %v887_v28, 0.0 }
  0xce   :  { %v4303_v8 = vld [vmem:[%s5846_s0 + $0x170] sm:$0xff]   ;;  %v4304_v13 = vld [vmem:[%s5846_s0 + $0x178] sm:$0xff]  }
  0xcf   :  { %4425 = vst [vmem:[%s5849_s3 + $0x148] sm:$0xff] %v3826_v9   ;;  %v3292_v20 = vunpack.c.l.bf16 %v4303_v8  ;;  %v3293_v21 = vunpack.c.h.bf16 %v4303_v8  ;;  %4426 = vst [vmem:[%s5849_s3 + $0x150] sm:$0xff] %v3831_v14   ;;  %v3296_v25 = vunpack.c.l.bf16 %v4304_v13  ;;  %v3297_v33 = vunpack.c.h.bf16 %v4304_v13 }
  0xd0   :  { %v3841_v40 = vpack.c.bf16 %v1141_v31, %v1140_v23  ;;  %v3846_v45 = vpack.c.bf16 %v1143_v35, %v1142_v32 }
  0xd1   :  { %v625_v29 = vmul.f32 %v3292_v20, %v4542_v1  ;;  %v626_v30 = vmul.f32 %v3293_v21, %v4542_v1  ;;  %v627_v34 = vmul.f32 %v3296_v25, %v4542_v1  ;;  %v628_v1 = vmul.f32 %v5020_v41, %v3297_v33 }
  0xd3   :  { %v888_v36 = vadd.f32 %v4556_v7, %v625_v29  ;;  %v889_v37 = vadd.f32 %v4556_v7, %v626_v30  ;;  %v890_v7 = vadd.f32 %v5026_v42, %v627_v34  ;;  %v891_v49 = vadd.f32 %v5026_v42, %v628_v1 }
  0xd5   :  { %v1144_v46 = vmax.f32 %v888_v36, 0.0  ;;  %v1145_v47 = vmax.f32 %v889_v37, 0.0  ;;  %v1146_v50 = vmax.f32 %v890_v7, 0.0  ;;  %v1147_v58 = vmax.f32 %v891_v49, 0.0 }
  0xd6   :  { %v4305_v26 = vld [vmem:[%s5846_s0 + $0x180] sm:$0xff]  }
  0xd7   :  { %4427 = vst [vmem:[%s5849_s3 + $0x158] sm:$0xff] %v3836_v27   ;;  %v3300_v38 = vunpack.c.l.bf16 %v4305_v26  ;;  %v3301_v43 = vunpack.c.h.bf16 %v4305_v26  ;;  %v3851_v54 = vpack.c.bf16 %v1145_v47, %v1144_v46  ;;  %v3856_v4 = vpack.c.bf16 %v1147_v58, %v1146_v50 }
  0xd9   :  { %v629_v48 = vmul.f32 %v5020_v41, %v3300_v38  ;;  %v630_v51 = vmul.f32 %v5020_v41, %v3301_v43 }
  0xdb   :  { %v892_v55 = vadd.f32 %v5026_v42, %v629_v48  ;;  %v893_v59 = vadd.f32 %v5026_v42, %v630_v51 }
  0xdd   :  { %v1148_v62 = vmax.f32 %v892_v55, 0.0  ;;  %v1149_v5 = vmax.f32 %v893_v59, 0.0 }
  0xde   :  { %v4306_v39 = vld [vmem:[%s5846_s0 + $0x188] sm:$0xff]   ;;  %v4307_v44 = vld [vmem:[%s5846_s0 + $0x190] sm:$0xff]  }
  0xdf   :  { %4428 = vst [vmem:[%s5849_s3 + $0x160] sm:$0xff] %v3841_v40   ;;  %v3304_v52 = vunpack.c.l.bf16 %v4306_v39  ;;  %v3305_v56 = vunpack.c.h.bf16 %v4306_v39  ;;  %v3308_v57 = vunpack.c.l.bf16 %v4307_v44  ;;  %v3309_v61 = vunpack.c.h.bf16 %v4307_v44 }
  0xe0   :  { %v3861_v14 = vpack.c.bf16 %v1149_v5, %v1148_v62 }
  0xe1   :  { %v631_v60 = vmul.f32 %v5020_v41, %v3304_v52  ;;  %v632_v63 = vmul.f32 %v5020_v41, %v3305_v56  ;;  %v633_v0 = vmul.f32 %v5020_v41, %v3308_v57  ;;  %v634_v8 = vmul.f32 %v5020_v41, %v3309_v61 }
  0xe3   :  { %v894_v6 = vadd.f32 %v5026_v42, %v631_v60  ;;  %v895_v9 = vadd.f32 %v5026_v42, %v632_v63  ;;  %v896_v10 = vadd.f32 %v5026_v42, %v633_v0  ;;  %v897_v16 = vadd.f32 %v5026_v42, %v634_v8 }
  0xe5   :  { %v1150_v15 = vmax.f32 %v894_v6, 0.0  ;;  %v1151_v18 = vmax.f32 %v895_v9, 0.0  ;;  %v1152_v19 = vmax.f32 %v896_v10, 0.0  ;;  %v1153_v22 = vmax.f32 %v897_v16, 0.0 }
  0xe6   :  { %v4308_v53 = vld [vmem:[%s5846_s0 + $0x198] sm:$0xff]  }
  0xe7   :  { %4429 = vst [vmem:[%s5849_s3 + $0x168] sm:$0xff] %v3846_v45   ;;  %4430 = vst [vmem:[%s5849_s3 + $0x170] sm:$0xff] %v3851_v54   ;;  %v3312_v2 = vunpack.c.l.bf16 %v4308_v53  ;;  %v3313_v11 = vunpack.c.h.bf16 %v4308_v53  ;;  %v3866_v27 = vpack.c.bf16 %v1151_v18, %v1150_v15  ;;  %v3871_v32 = vpack.c.bf16 %v1153_v22, %v1152_v19 }
  0xe9   :  { %v635_v12 = vmul.f32 %v5020_v41, %v3312_v2  ;;  %v636_v20 = vmul.f32 %v5020_v41, %v3313_v11 }
  0xeb   :  { %v898_v21 = vadd.f32 %v5026_v42, %v635_v12  ;;  %v899_v28 = vadd.f32 %v5026_v42, %v636_v20 }
  0xed   :  { %v1154_v29 = vmax.f32 %v898_v21, 0.0  ;;  %v1155_v36 = vmax.f32 %v899_v28, 0.0 }
  0xee   :  { %v4309_v3 = vld [vmem:[%s5846_s0 + $0x1a0] sm:$0xff]   ;;  %v4310_v13 = vld [vmem:[%s5846_s0 + $0x1a8] sm:$0xff]  }
  0xef   :  { %4431 = vst [vmem:[%s5849_s3 + $0x178] sm:$0xff] %v3856_v4   ;;  %v3316_v17 = vunpack.c.l.bf16 %v4309_v3  ;;  %4432 = vst [vmem:[%s5849_s3 + $0x180] sm:$0xff] %v3861_v14   ;;  %v3317_v23 = vunpack.c.h.bf16 %v4309_v3  ;;  %v3320_v25 = vunpack.c.l.bf16 %v4310_v13  ;;  %v3321_v30 = vunpack.c.h.bf16 %v4310_v13 }
  0xf0   :  { %v3876_v45 = vpack.c.bf16 %v1155_v36, %v1154_v29 }
  0xf1   :  { %v637_v24 = vmul.f32 %v5020_v41, %v3316_v17  ;;  %v638_v33 = vmul.f32 %v5020_v41, %v3317_v23  ;;  %v639_v35 = vmul.f32 %v5020_v41, %v3320_v25  ;;  %v640_v37 = vmul.f32 %v5020_v41, %v3321_v30 }
  0xf3   :  { %v900_v34 = vadd.f32 %v5026_v42, %v637_v24  ;;  %v901_v40 = vadd.f32 %v5026_v42, %v638_v33  ;;  %v902_v7 = vadd.f32 %v5026_v42, %v639_v35  ;;  %v903_v46 = vadd.f32 %v5026_v42, %v640_v37 }
  0xf5   :  { %v1156_v1 = vmax.f32 %v900_v34, 0.0  ;;  %v1157_v49 = vmax.f32 %v901_v40, 0.0  ;;  %v1158_v50 = vmax.f32 %v902_v7, 0.0  ;;  %v1159_v53 = vmax.f32 %v903_v46, 0.0 }
  0xf6   :  { %v4311_v26 = vld [vmem:[%s5846_s0 + $0x1b0] sm:$0xff]   ;;  %v4312_v31 = vld [vmem:[%s5846_s0 + $0x1b8] sm:$0xff]  }
  0xf7   :  { %4433 = vst [vmem:[%s5849_s3 + $0x188] sm:$0xff] %v3866_v27   ;;  %v3324_v38 = vunpack.c.l.bf16 %v4311_v26  ;;  %v3325_v39 = vunpack.c.h.bf16 %v4311_v26  ;;  %4434 = vst [vmem:[%s5849_s3 + $0x190] sm:$0xff] %v3871_v32   ;;  %v3328_v43 = vunpack.c.l.bf16 %v4312_v31  ;;  %v3329_v51 = vunpack.c.h.bf16 %v4312_v31 }
  0xf8   :  { %v3881_v58 = vpack.c.bf16 %v1157_v49, %v1156_v1  ;;  %v3886_v63 = vpack.c.bf16 %v1159_v53, %v1158_v50 }
  0xf9   :  { %v641_v47 = vmul.f32 %v5020_v41, %v3324_v38  ;;  %v642_v48 = vmul.f32 %v5020_v41, %v3325_v39  ;;  %v643_v52 = vmul.f32 %v5020_v41, %v3328_v43  ;;  %v644_v59 = vmul.f32 %v5020_v41, %v3329_v51 }
  0xfb   :  { %v904_v54 = vadd.f32 %v5026_v42, %v641_v47  ;;  %v905_v55 = vadd.f32 %v5026_v42, %v642_v48  ;;  %v906_v60 = vadd.f32 %v5026_v42, %v643_v52  ;;  %v907_v4 = vadd.f32 %v5026_v42, %v644_v59 }
  0xfd   :  { %v1160_v0 = vmax.f32 %v904_v54, 0.0  ;;  %v1161_v2 = vmax.f32 %v905_v55, 0.0  ;;  %v1162_v5 = vmax.f32 %v906_v60, 0.0  ;;  %v1163_v14 = vmax.f32 %v907_v4, 0.0 }
  0xfe   :  { %v4313_v44 = vld [vmem:[%s5846_s0 + $0x1c0] sm:$0xff]  }
  0xff   :  { %4435 = vst [vmem:[%s5849_s3 + $0x198] sm:$0xff] %v3876_v45   ;;  %v3332_v56 = vunpack.c.l.bf16 %v4313_v44  ;;  %v3333_v61 = vunpack.c.h.bf16 %v4313_v44  ;;  %v3891_v10 = vpack.c.bf16 %v1161_v2, %v1160_v0  ;;  %v3896_v23 = vpack.c.bf16 %v1163_v14, %v1162_v5 }
 0x101   :  { %v645_v3 = vmul.f32 %v5020_v41, %v3332_v56  ;;  %v646_v6 = vmul.f32 %v5020_v41, %v3333_v61 }
 0x103   :  { %v908_v11 = vadd.f32 %v5026_v42, %v645_v3  ;;  %v909_v15 = vadd.f32 %v5026_v42, %v646_v6 }
 0x105   :  { %v1164_v18 = vmax.f32 %v908_v11, 0.0  ;;  %v1165_v24 = vmax.f32 %v909_v15, 0.0 }
 0x106   :  { %v4314_v57 = vld [vmem:[%s5846_s0 + $0x1c8] sm:$0xff]   ;;  %v4315_v62 = vld [vmem:[%s5846_s0 + $0x1d0] sm:$0xff]  }
 0x107   :  { %4436 = vst [vmem:[%s5849_s3 + $0x1a0] sm:$0xff] %v3881_v58   ;;  %v3336_v8 = vunpack.c.l.bf16 %v4314_v57  ;;  %v3337_v12 = vunpack.c.h.bf16 %v4314_v57  ;;  %v3340_v13 = vunpack.c.l.bf16 %v4315_v62  ;;  %v3341_v17 = vunpack.c.h.bf16 %v4315_v62 }
 0x108   :  { %v3901_v32 = vpack.c.bf16 %v1165_v24, %v1164_v18 }
 0x109   :  { %v647_v16 = vmul.f32 %v5020_v41, %v3336_v8  ;;  %v648_v19 = vmul.f32 %v5020_v41, %v3337_v12  ;;  %v649_v20 = vmul.f32 %v5020_v41, %v3340_v13  ;;  %v650_v26 = vmul.f32 %v5020_v41, %v3341_v17 }
 0x10b   :  { %v910_v25 = vadd.f32 %v5026_v42, %v647_v16  ;;  %v911_v27 = vadd.f32 %v5026_v42, %v648_v19  ;;  %v912_v28 = vadd.f32 %v5026_v42, %v649_v20  ;;  %v913_v34 = vadd.f32 %v5026_v42, %v650_v26 }
 0x10d   :  { %v1166_v33 = vmax.f32 %v910_v25, 0.0  ;;  %v1167_v36 = vmax.f32 %v911_v27, 0.0  ;;  %v1168_v37 = vmax.f32 %v912_v28, 0.0  ;;  %v1169_v40 = vmax.f32 %v913_v34, 0.0 }
 0x10e   :  { %v4316_v9 = vld [vmem:[%s5846_s0 + $0x1d8] sm:$0xff]  }
 0x10f   :  { %4437 = vst [vmem:[%s5849_s3 + $0x1a8] sm:$0xff] %v3886_v63   ;;  %4438 = vst [vmem:[%s5849_s3 + $0x1b0] sm:$0xff] %v3891_v10   ;;  %v3344_v21 = vunpack.c.l.bf16 %v4316_v9  ;;  %v3345_v29 = vunpack.c.h.bf16 %v4316_v9  ;;  %v3906_v45 = vpack.c.bf16 %v1167_v36, %v1166_v33  ;;  %v3911_v50 = vpack.c.bf16 %v1169_v40, %v1168_v37 }
 0x111   :  { %v651_v30 = vmul.f32 %v5020_v41, %v3344_v21  ;;  %v652_v38 = vmul.f32 %v5020_v41, %v3345_v29 }
 0x113   :  { %v914_v39 = vadd.f32 %v5026_v42, %v651_v30  ;;  %v915_v46 = vadd.f32 %v5026_v42, %v652_v38 }
 0x115   :  { %v1170_v47 = vmax.f32 %v914_v39, 0.0  ;;  %v1171_v54 = vmax.f32 %v915_v46, 0.0 }
 0x116   :  { %v4317_v22 = vld [vmem:[%s5846_s0 + $0x1e0] sm:$0xff]   ;;  %v4318_v31 = vld [vmem:[%s5846_s0 + $0x1e8] sm:$0xff]  }
 0x117   :  { %4439 = vst [vmem:[%s5849_s3 + $0x1b8] sm:$0xff] %v3896_v23   ;;  %v3348_v35 = vunpack.c.l.bf16 %v4317_v22  ;;  %4440 = vst [vmem:[%s5849_s3 + $0x1c0] sm:$0xff] %v3901_v32   ;;  %v3349_v1 = vunpack.c.h.bf16 %v4317_v22  ;;  %v3352_v43 = vunpack.c.l.bf16 %v4318_v31  ;;  %v3353_v48 = vunpack.c.h.bf16 %v4318_v31 }
 0x118   :  { %v3916_v63 = vpack.c.bf16 %v1171_v54, %v1170_v47 }
 0x119   :  { %v653_v7 = vmul.f32 %v5020_v41, %v3348_v35  ;;  %v654_v51 = vmul.f32 %v5020_v41, %v3349_v1  ;;  %v655_v53 = vmul.f32 %v5020_v41, %v3352_v43  ;;  %v656_v55 = vmul.f32 %v5020_v41, %v3353_v48 }
 0x11b   :  { %v916_v52 = vadd.f32 %v5026_v42, %v653_v7  ;;  %v917_v58 = vadd.f32 %v5026_v42, %v654_v51  ;;  %v918_v60 = vadd.f32 %v5026_v42, %v655_v53  ;;  %v919_v0 = vadd.f32 %v5026_v42, %v656_v55 }
 0x11d   :  { %v1172_v59 = vmax.f32 %v916_v52, 0.0  ;;  %v1173_v4 = vmax.f32 %v917_v58, 0.0  ;;  %v1174_v5 = vmax.f32 %v918_v60, 0.0  ;;  %v1175_v9 = vmax.f32 %v919_v0, 0.0 }
 0x11e   :  { %v4319_v44 = vld [vmem:[%s5846_s0 + $0x1f0] sm:$0xff]   ;;  %v4320_v49 = vld [vmem:[%s5846_s0 + $0x1f8] sm:$0xff]  }
 0x11f   :  { %4441 = vst [vmem:[%s5849_s3 + $0x1c8] sm:$0xff] %v3906_v45   ;;  %v3356_v56 = vunpack.c.l.bf16 %v4319_v44  ;;  %v3357_v57 = vunpack.c.h.bf16 %v4319_v44  ;;  %4442 = vst [vmem:[%s5849_s3 + $0x1d0] sm:$0xff] %v3911_v50   ;;  %v3360_v61 = vunpack.c.l.bf16 %v4320_v49  ;;  %v3361_v6 = vunpack.c.h.bf16 %v4320_v49 }
 0x120   :  { %v3921_v14 = vpack.c.bf16 %v1173_v4, %v1172_v59  ;;  %v3926_v19 = vpack.c.bf16 %v1175_v9, %v1174_v5 }
 0x121   :  { %v657_v2 = vmul.f32 %v5020_v41, %v3356_v56  ;;  %v658_v3 = vmul.f32 %v5020_v41, %v3357_v57  ;;  %v659_v8 = vmul.f32 %v5020_v41, %v3360_v61  ;;  %v660_v15 = vmul.f32 %v5020_v41, %v3361_v6 }
 0x123   :  { %v920_v10 = vadd.f32 %v5026_v42, %v657_v2  ;;  %v921_v11 = vadd.f32 %v5026_v42, %v658_v3  ;;  %v922_v16 = vadd.f32 %v5026_v42, %v659_v8  ;;  %v923_v23 = vadd.f32 %v5026_v42, %v660_v15 }
 0x125   :  { %v1176_v20 = vmax.f32 %v920_v10, 0.0  ;;  %v1177_v21 = vmax.f32 %v921_v11, 0.0  ;;  %v1178_v24 = vmax.f32 %v922_v16, 0.0  ;;  %v1179_v32 = vmax.f32 %v923_v23, 0.0 }
 0x126   :  { %v4321_v62 = vld [vmem:[%s5846_s0 + $0x200] sm:$0xff]  }
 0x127   :  { %4443 = vst [vmem:[%s5849_s3 + $0x1d8] sm:$0xff] %v3916_v63   ;;  %v3364_v12 = vunpack.c.l.bf16 %v4321_v62  ;;  %v3365_v17 = vunpack.c.h.bf16 %v4321_v62  ;;  %v3931_v28 = vpack.c.bf16 %v1177_v21, %v1176_v20  ;;  %v3936_v1 = vpack.c.bf16 %v1179_v32, %v1178_v24 }
 0x129   :  { %v661_v22 = vmul.f32 %v5020_v41, %v3364_v12  ;;  %v662_v25 = vmul.f32 %v5020_v41, %v3365_v17 }
 0x12b   :  { %v924_v29 = vadd.f32 %v5026_v42, %v661_v22  ;;  %v925_v33 = vadd.f32 %v5026_v42, %v662_v25 }
 0x12d   :  { %v1180_v36 = vmax.f32 %v924_v29, 0.0  ;;  %v1181_v7 = vmax.f32 %v925_v33, 0.0 }
 0x12e   :  { %v4322_v13 = vld [vmem:[%s5846_s0 + $0x208] sm:$0xff]   ;;  %v4323_v18 = vld [vmem:[%s5846_s0 + $0x210] sm:$0xff]  }
 0x12f   :  { %4444 = vst [vmem:[%s5849_s3 + $0x1e0] sm:$0xff] %v3921_v14   ;;  %v3368_v26 = vunpack.c.l.bf16 %v4322_v13  ;;  %v3369_v30 = vunpack.c.h.bf16 %v4322_v13  ;;  %v3372_v31 = vunpack.c.l.bf16 %v4323_v18  ;;  %v3373_v35 = vunpack.c.h.bf16 %v4323_v18 }
 0x130   :  { %v3941_v50 = vpack.c.bf16 %v1181_v7, %v1180_v36 }
 0x131   :  { %v663_v34 = vmul.f32 %v5020_v41, %v3368_v26  ;;  %v664_v37 = vmul.f32 %v5020_v41, %v3369_v30  ;;  %v665_v38 = vmul.f32 %v5020_v41, %v3372_v31  ;;  %v666_v44 = vmul.f32 %v5020_v41, %v3373_v35 }
 0x133   :  { %v926_v43 = vadd.f32 %v5026_v42, %v663_v34  ;;  %v927_v45 = vadd.f32 %v5026_v42, %v664_v37  ;;  %v928_v46 = vadd.f32 %v5026_v42, %v665_v38  ;;  %v929_v52 = vadd.f32 %v5026_v42, %v666_v44 }
 0x135   :  { %v1182_v51 = vmax.f32 %v926_v43, 0.0  ;;  %v1183_v54 = vmax.f32 %v927_v45, 0.0  ;;  %v1184_v55 = vmax.f32 %v928_v46, 0.0  ;;  %v1185_v58 = vmax.f32 %v929_v52, 0.0 }
 0x136   :  { %v4324_v27 = vld [vmem:[%s5846_s0 + $0x218] sm:$0xff]  }
 0x137   :  { %4445 = vst [vmem:[%s5849_s3 + $0x1e8] sm:$0xff] %v3926_v19   ;;  %4446 = vst [vmem:[%s5849_s3 + $0x1f0] sm:$0xff] %v3931_v28   ;;  %v3376_v39 = vunpack.c.l.bf16 %v4324_v27  ;;  %v3377_v47 = vunpack.c.h.bf16 %v4324_v27  ;;  %v3946_v63 = vpack.c.bf16 %v1183_v54, %v1182_v51  ;;  %v3951_v5 = vpack.c.bf16 %v1185_v58, %v1184_v55 }
 0x139   :  { %v667_v48 = vmul.f32 %v5020_v41, %v3376_v39  ;;  %v668_v56 = vmul.f32 %v5020_v41, %v3377_v47 }
 0x13b   :  { %v930_v57 = vadd.f32 %v5026_v42, %v667_v48  ;;  %v931_v0 = vadd.f32 %v5026_v42, %v668_v56 }
 0x13d   :  { %v1186_v2 = vmax.f32 %v930_v57, 0.0  ;;  %v1187_v10 = vmax.f32 %v931_v0, 0.0 }
 0x13e   :  { %v4325_v40 = vld [vmem:[%s5846_s0 + $0x220] sm:$0xff]   ;;  %v4326_v49 = vld [vmem:[%s5846_s0 + $0x228] sm:$0xff]  }
 0x13f   :  { %4447 = vst [vmem:[%s5849_s3 + $0x1f8] sm:$0xff] %v3936_v1   ;;  %v3380_v53 = vunpack.c.l.bf16 %v4325_v40  ;;  %4448 = vst [vmem:[%s5849_s3 + $0x200] sm:$0xff] %v3941_v50   ;;  %v3381_v59 = vunpack.c.h.bf16 %v4325_v40  ;;  %v3384_v61 = vunpack.c.l.bf16 %v4326_v49  ;;  %v3385_v3 = vunpack.c.h.bf16 %v4326_v49 }
 0x140   :  { %v3956_v19 = vpack.c.bf16 %v1187_v10, %v1186_v2 }
 0x141   :  { %v669_v60 = vmul.f32 %v5020_v41, %v3380_v53  ;;  %v670_v6 = vmul.f32 %v5020_v41, %v3381_v59  ;;  %v671_v9 = vmul.f32 %v5020_v41, %v3384_v61  ;;  %v672_v11 = vmul.f32 %v5020_v41, %v3385_v3 }
 0x143   :  { %v932_v8 = vadd.f32 %v5026_v42, %v669_v60  ;;  %v933_v14 = vadd.f32 %v5026_v42, %v670_v6  ;;  %v934_v16 = vadd.f32 %v5026_v42, %v671_v9  ;;  %v935_v20 = vadd.f32 %v5026_v42, %v672_v11 }
 0x145   :  { %v1188_v15 = vmax.f32 %v932_v8, 0.0  ;;  %v1189_v23 = vmax.f32 %v933_v14, 0.0  ;;  %v1190_v24 = vmax.f32 %v934_v16, 0.0  ;;  %v1191_v27 = vmax.f32 %v935_v20, 0.0 }
 0x146   :  { %v4327_v62 = vld [vmem:[%s5846_s0 + $0x230] sm:$0xff]   ;;  %v4328_v4 = vld [vmem:[%s5846_s0 + $0x238] sm:$0xff]  }
 0x147   :  { %4449 = vst [vmem:[%s5849_s3 + $0x208] sm:$0xff] %v3946_v63   ;;  %v3388_v12 = vunpack.c.l.bf16 %v4327_v62  ;;  %v3389_v13 = vunpack.c.h.bf16 %v4327_v62  ;;  %4450 = vst [vmem:[%s5849_s3 + $0x210] sm:$0xff] %v3951_v5   ;;  %v3392_v17 = vunpack.c.l.bf16 %v4328_v4  ;;  %v3393_v25 = vunpack.c.h.bf16 %v4328_v4 }
 0x148   :  { %v3961_v32 = vpack.c.bf16 %v1189_v23, %v1188_v15  ;;  %v3966_v37 = vpack.c.bf16 %v1191_v27, %v1190_v24 }
 0x149   :  { %v673_v21 = vmul.f32 %v5020_v41, %v3388_v12  ;;  %v674_v22 = vmul.f32 %v5020_v41, %v3389_v13  ;;  %v675_v26 = vmul.f32 %v5020_v41, %v3392_v17  ;;  %v676_v33 = vmul.f32 %v5020_v41, %v3393_v25 }
 0x14b   :  { %v936_v28 = vadd.f32 %v5026_v42, %v673_v21  ;;  %v937_v29 = vadd.f32 %v5026_v42, %v674_v22  ;;  %v938_v34 = vadd.f32 %v5026_v42, %v675_v26  ;;  %v939_v1 = vadd.f32 %v5026_v42, %v676_v33 }
 0x14d   :  { %v1192_v38 = vmax.f32 %v936_v28, 0.0  ;;  %v1193_v39 = vmax.f32 %v937_v29, 0.0  ;;  %v1194_v7 = vmax.f32 %v938_v34, 0.0  ;;  %v1195_v50 = vmax.f32 %v939_v1, 0.0 }
 0x14e   :  { %v4329_v18 = vld [vmem:[%s5846_s0 + $0x240] sm:$0xff]  }
 0x14f   :  { %4451 = vst [vmem:[%s5849_s3 + $0x218] sm:$0xff] %v3956_v19   ;;  %v3396_v30 = vunpack.c.l.bf16 %v4329_v18  ;;  %v3397_v35 = vunpack.c.h.bf16 %v4329_v18  ;;  %v3971_v46 = vpack.c.bf16 %v1193_v39, %v1192_v38  ;;  %v3976_v59 = vpack.c.bf16 %v1195_v50, %v1194_v7 }
 0x151   :  { %v677_v40 = vmul.f32 %v5020_v41, %v3396_v30  ;;  %v678_v43 = vmul.f32 %v5020_v41, %v3397_v35 }
 0x153   :  { %v940_v47 = vadd.f32 %v5026_v42, %v677_v40  ;;  %v941_v51 = vadd.f32 %v5026_v42, %v678_v43 }
 0x155   :  { %v1196_v54 = vmax.f32 %v940_v47, 0.0  ;;  %v1197_v60 = vmax.f32 %v941_v51, 0.0 }
 0x156   :  { %v4330_v31 = vld [vmem:[%s5846_s0 + $0x248] sm:$0xff]   ;;  %v4331_v36 = vld [vmem:[%s5846_s0 + $0x250] sm:$0xff]  }
 0x157   :  { %4452 = vst [vmem:[%s5849_s3 + $0x220] sm:$0xff] %v3961_v32   ;;  %v3400_v44 = vunpack.c.l.bf16 %v4330_v31  ;;  %v3401_v48 = vunpack.c.h.bf16 %v4330_v31  ;;  %v3404_v49 = vunpack.c.l.bf16 %v4331_v36  ;;  %v3405_v53 = vunpack.c.h.bf16 %v4331_v36 }
 0x158   :  { %v3981_v5 = vpack.c.bf16 %v1197_v60, %v1196_v54 }
 0x159   :  { %v679_v52 = vmul.f32 %v5020_v41, %v3400_v44  ;;  %v680_v55 = vmul.f32 %v5020_v41, %v3401_v48  ;;  %v681_v56 = vmul.f32 %v5020_v41, %v3404_v49  ;;  %v682_v62 = vmul.f32 %v5020_v41, %v3405_v53 }
 0x15b   :  { %v942_v61 = vadd.f32 %v5026_v42, %v679_v52  ;;  %v943_v63 = vadd.f32 %v5026_v42, %v680_v55  ;;  %v944_v0 = vadd.f32 %v5026_v42, %v681_v56  ;;  %v945_v8 = vadd.f32 %v5026_v42, %v682_v62 }
 0x15d   :  { %v1198_v6 = vmax.f32 %v942_v61, 0.0  ;;  %v1199_v10 = vmax.f32 %v943_v63, 0.0  ;;  %v1200_v11 = vmax.f32 %v944_v0, 0.0  ;;  %v1201_v14 = vmax.f32 %v945_v8, 0.0 }
 0x15e   :  { %v4332_v45 = vld [vmem:[%s5846_s0 + $0x258] sm:$0xff]  }
 0x15f   :  { %4453 = vst [vmem:[%s5849_s3 + $0x228] sm:$0xff] %v3966_v37   ;;  %4454 = vst [vmem:[%s5849_s3 + $0x230] sm:$0xff] %v3971_v46   ;;  %v3408_v57 = vunpack.c.l.bf16 %v4332_v45  ;;  %v3409_v2 = vunpack.c.h.bf16 %v4332_v45  ;;  %v3986_v19 = vpack.c.bf16 %v1199_v10, %v1198_v6  ;;  %v3991_v24 = vpack.c.bf16 %v1201_v14, %v1200_v11 }
 0x161   :  { %v683_v3 = vmul.f32 %v5020_v41, %v3408_v57  ;;  %v684_v12 = vmul.f32 %v5020_v41, %v3409_v2 }
 0x163   :  { %v946_v13 = vadd.f32 %v5026_v42, %v683_v3  ;;  %v947_v20 = vadd.f32 %v5026_v42, %v684_v12 }
 0x165   :  { %v1202_v21 = vmax.f32 %v946_v13, 0.0  ;;  %v1203_v28 = vmax.f32 %v947_v20, 0.0 }
 0x166   :  { %v4333_v58 = vld [vmem:[%s5846_s0 + $0x260] sm:$0xff]   ;;  %v4334_v4 = vld [vmem:[%s5846_s0 + $0x268] sm:$0xff]  }
 0x167   :  { %4455 = vst [vmem:[%s5849_s3 + $0x238] sm:$0xff] %v3976_v59   ;;  %v3412_v9 = vunpack.c.l.bf16 %v4333_v58  ;;  %4456 = vst [vmem:[%s5849_s3 + $0x240] sm:$0xff] %v3981_v5   ;;  %v3413_v15 = vunpack.c.h.bf16 %v4333_v58  ;;  %v3416_v17 = vunpack.c.l.bf16 %v4334_v4  ;;  %v3417_v22 = vunpack.c.h.bf16 %v4334_v4 }
 0x168   :  { %v3996_v37 = vpack.c.bf16 %v1203_v28, %v1202_v21 }
 0x169   :  { %v685_v16 = vmul.f32 %v5020_v41, %v3412_v9  ;;  %v686_v25 = vmul.f32 %v5020_v41, %v3413_v15  ;;  %v687_v27 = vmul.f32 %v5020_v41, %v3416_v17  ;;  %v688_v29 = vmul.f32 %v5020_v41, %v3417_v22 }
 0x16b   :  { %v948_v26 = vadd.f32 %v5026_v42, %v685_v16  ;;  %v949_v32 = vadd.f32 %v5026_v42, %v686_v25  ;;  %v950_v34 = vadd.f32 %v5026_v42, %v687_v27  ;;  %v951_v38 = vadd.f32 %v5026_v42, %v688_v29 }
 0x16d   :  { %v1204_v33 = vmax.f32 %v948_v26, 0.0  ;;  %v1205_v1 = vmax.f32 %v949_v32, 0.0  ;;  %v1206_v7 = vmax.f32 %v950_v34, 0.0  ;;  %v1207_v45 = vmax.f32 %v951_v38, 0.0 }
 0x16e   :  { %v4335_v18 = vld [vmem:[%s5846_s0 + $0x270] sm:$0xff]   ;;  %v4336_v23 = vld [vmem:[%s5846_s0 + $0x278] sm:$0xff]  }
 0x16f   :  { %4457 = vst [vmem:[%s5849_s3 + $0x248] sm:$0xff] %v3986_v19   ;;  %v3420_v30 = vunpack.c.l.bf16 %v4335_v18  ;;  %v3421_v31 = vunpack.c.h.bf16 %v4335_v18  ;;  %4458 = vst [vmem:[%s5849_s3 + $0x250] sm:$0xff] %v3991_v24   ;;  %v3424_v35 = vunpack.c.l.bf16 %v4336_v23  ;;  %v3425_v43 = vunpack.c.h.bf16 %v4336_v23 }
 0x170   :  { %v4001_v50 = vpack.c.bf16 %v1205_v1, %v1204_v33  ;;  %v4006_v55 = vpack.c.bf16 %v1207_v45, %v1206_v7 }
 0x171   :  { %v689_v39 = vmul.f32 %v5020_v41, %v3420_v30  ;;  %v690_v40 = vmul.f32 %v5020_v41, %v3421_v31  ;;  %v691_v44 = vmul.f32 %v5020_v41, %v3424_v35  ;;  %v692_v51 = vmul.f32 %v5020_v41, %v3425_v43 }
 0x173   :  { %v952_v46 = vadd.f32 %v5026_v42, %v689_v39  ;;  %v953_v47 = vadd.f32 %v5026_v42, %v690_v40  ;;  %v954_v52 = vadd.f32 %v5026_v42, %v691_v44  ;;  %v955_v59 = vadd.f32 %v5026_v42, %v692_v51 }
 0x175   :  { %v1208_v56 = vmax.f32 %v952_v46, 0.0  ;;  %v1209_v57 = vmax.f32 %v953_v47, 0.0  ;;  %v1210_v60 = vmax.f32 %v954_v52, 0.0  ;;  %v1211_v5 = vmax.f32 %v955_v59, 0.0 }
 0x176   :  { %v4337_v36 = vld [vmem:[%s5846_s0 + $0x280] sm:$0xff]  }
 0x177   :  { %4459 = vst [vmem:[%s5849_s3 + $0x258] sm:$0xff] %v3996_v37   ;;  %v3428_v48 = vunpack.c.l.bf16 %v4337_v36  ;;  %v3429_v53 = vunpack.c.h.bf16 %v4337_v36  ;;  %v4011_v0 = vpack.c.bf16 %v1209_v57, %v1208_v56  ;;  %v4016_v15 = vpack.c.bf16 %v1211_v5, %v1210_v60 }
 0x179   :  { %v693_v58 = vmul.f32 %v5020_v41, %v3428_v48  ;;  %v694_v61 = vmul.f32 %v5020_v41, %v3429_v53 }
 0x17b   :  { %v956_v2 = vadd.f32 %v5026_v42, %v693_v58  ;;  %v957_v6 = vadd.f32 %v5026_v42, %v694_v61 }
 0x17d   :  { %v1212_v10 = vmax.f32 %v956_v2, 0.0  ;;  %v1213_v16 = vmax.f32 %v957_v6, 0.0 }
 0x17e   :  { %v4338_v49 = vld [vmem:[%s5846_s0 + $0x288] sm:$0xff]   ;;  %v4339_v54 = vld [vmem:[%s5846_s0 + $0x290] sm:$0xff]  }
 0x17f   :  { %4460 = vst [vmem:[%s5849_s3 + $0x260] sm:$0xff] %v4001_v50   ;;  %v3432_v62 = vunpack.c.l.bf16 %v4338_v49  ;;  %v3433_v3 = vunpack.c.h.bf16 %v4338_v49  ;;  %v3436_v4 = vunpack.c.l.bf16 %v4339_v54  ;;  %v3437_v9 = vunpack.c.h.bf16 %v4339_v54 }
 0x180   :  { %v4021_v24 = vpack.c.bf16 %v1213_v16, %v1212_v10 }
 0x181   :  { %v695_v8 = vmul.f32 %v5020_v41, %v3432_v62  ;;  %v696_v11 = vmul.f32 %v5020_v41, %v3433_v3  ;;  %v697_v12 = vmul.f32 %v5020_v41, %v3436_v4  ;;  %v698_v18 = vmul.f32 %v5020_v41, %v3437_v9 }
 0x183   :  { %v958_v17 = vadd.f32 %v5026_v42, %v695_v8  ;;  %v959_v19 = vadd.f32 %v5026_v42, %v696_v11  ;;  %v960_v20 = vadd.f32 %v5026_v42, %v697_v12  ;;  %v961_v26 = vadd.f32 %v5026_v42, %v698_v18 }
 0x185   :  { %v1214_v25 = vmax.f32 %v958_v17, 0.0  ;;  %v1215_v28 = vmax.f32 %v959_v19, 0.0  ;;  %v1216_v29 = vmax.f32 %v960_v20, 0.0  ;;  %v1217_v32 = vmax.f32 %v961_v26, 0.0 }
 0x186   :  { %v4340_v63 = vld [vmem:[%s5846_s0 + $0x298] sm:$0xff]  }
 0x187   :  { %4461 = vst [vmem:[%s5849_s3 + $0x268] sm:$0xff] %v4006_v55   ;;  %4462 = vst [vmem:[%s5849_s3 + $0x270] sm:$0xff] %v4011_v0   ;;  %v3440_v13 = vunpack.c.l.bf16 %v4340_v63  ;;  %v3441_v21 = vunpack.c.h.bf16 %v4340_v63  ;;  %v4026_v37 = vpack.c.bf16 %v1215_v28, %v1214_v25  ;;  %v4031_v7 = vpack.c.bf16 %v1217_v32, %v1216_v29 }
 0x189   :  { %v699_v22 = vmul.f32 %v5020_v41, %v3440_v13  ;;  %v700_v30 = vmul.f32 %v5020_v41, %v3441_v21 }
 0x18b   :  { %v962_v31 = vadd.f32 %v5026_v42, %v699_v22  ;;  %v963_v38 = vadd.f32 %v5026_v42, %v700_v30 }
 0x18d   :  { %v1218_v39 = vmax.f32 %v962_v31, 0.0  ;;  %v1219_v46 = vmax.f32 %v963_v38, 0.0 }
 0x18e   :  { %v4341_v14 = vld [vmem:[%s5846_s0 + $0x2a0] sm:$0xff]   ;;  %v4342_v23 = vld [vmem:[%s5846_s0 + $0x2a8] sm:$0xff]  }
 0x18f   :  { %4463 = vst [vmem:[%s5849_s3 + $0x278] sm:$0xff] %v4016_v15   ;;  %v3444_v27 = vunpack.c.l.bf16 %v4341_v14  ;;  %4464 = vst [vmem:[%s5849_s3 + $0x280] sm:$0xff] %v4021_v24   ;;  %v3445_v33 = vunpack.c.h.bf16 %v4341_v14  ;;  %v3448_v35 = vunpack.c.l.bf16 %v4342_v23  ;;  %v3449_v40 = vunpack.c.h.bf16 %v4342_v23 }
 0x190   :  { %v4036_v55 = vpack.c.bf16 %v1219_v46, %v1218_v39 }
 0x191   :  { %v701_v34 = vmul.f32 %v5020_v41, %v3444_v27  ;;  %v702_v43 = vmul.f32 %v5020_v41, %v3445_v33  ;;  %v703_v45 = vmul.f32 %v5020_v41, %v3448_v35  ;;  %v704_v47 = vmul.f32 %v5020_v41, %v3449_v40 }
 0x193   :  { %v964_v44 = vadd.f32 %v5026_v42, %v701_v34  ;;  %v965_v50 = vadd.f32 %v5026_v42, %v702_v43  ;;  %v966_v52 = vadd.f32 %v5026_v42, %v703_v45  ;;  %v967_v56 = vadd.f32 %v5026_v42, %v704_v47 }
 0x195   :  { %v1220_v51 = vmax.f32 %v964_v44, 0.0  ;;  %v1221_v59 = vmax.f32 %v965_v50, 0.0  ;;  %v1222_v60 = vmax.f32 %v966_v52, 0.0  ;;  %v1223_v63 = vmax.f32 %v967_v56, 0.0 }
 0x196   :  { %v4343_v36 = vld [vmem:[%s5846_s0 + $0x2b0] sm:$0xff]   ;;  %v4344_v1 = vld [vmem:[%s5846_s0 + $0x2b8] sm:$0xff]  }
 0x197   :  { %4465 = vst [vmem:[%s5849_s3 + $0x288] sm:$0xff] %v4026_v37   ;;  %v3452_v48 = vunpack.c.l.bf16 %v4343_v36  ;;  %v3453_v49 = vunpack.c.h.bf16 %v4343_v36  ;;  %4466 = vst [vmem:[%s5849_s3 + $0x290] sm:$0xff] %v4031_v7   ;;  %v3456_v53 = vunpack.c.l.bf16 %v4344_v1  ;;  %v3457_v61 = vunpack.c.h.bf16 %v4344_v1 }
 0x198   :  { %v4041_v5 = vpack.c.bf16 %v1221_v59, %v1220_v51  ;;  %v4046_v11 = vpack.c.bf16 %v1223_v63, %v1222_v60 }
 0x199   :  { %v705_v57 = vmul.f32 %v5020_v41, %v3452_v48  ;;  %v706_v58 = vmul.f32 %v5020_v41, %v3453_v49  ;;  %v707_v62 = vmul.f32 %v5020_v41, %v3456_v53  ;;  %v708_v6 = vmul.f32 %v5020_v41, %v3457_v61 }
 0x19b   :  { %v968_v0 = vadd.f32 %v5026_v42, %v705_v57  ;;  %v969_v2 = vadd.f32 %v5026_v42, %v706_v58  ;;  %v970_v8 = vadd.f32 %v5026_v42, %v707_v62  ;;  %v971_v15 = vadd.f32 %v5026_v42, %v708_v6 }
 0x19d   :  { %v1224_v12 = vmax.f32 %v968_v0, 0.0  ;;  %v1225_v13 = vmax.f32 %v969_v2, 0.0  ;;  %v1226_v16 = vmax.f32 %v970_v8, 0.0  ;;  %v1227_v24 = vmax.f32 %v971_v15, 0.0 }
 0x19e   :  { %v4345_v54 = vld [vmem:[%s5846_s0 + $0x2c0] sm:$0xff]  }
 0x19f   :  { %4467 = vst [vmem:[%s5849_s3 + $0x298] sm:$0xff] %v4036_v55   ;;  %v3460_v3 = vunpack.c.l.bf16 %v4345_v54  ;;  %v3461_v9 = vunpack.c.h.bf16 %v4345_v54  ;;  %v4051_v20 = vpack.c.bf16 %v1225_v13, %v1224_v12  ;;  %v4056_v33 = vpack.c.bf16 %v1227_v24, %v1226_v16  ;;  %v5504_v13 = vld [vmem:[%s5847_s1] ss:$0 sm:$0xff] }
 0x1a1   :  { %v709_v14 = vmul.f32 %v5020_v41, %v3460_v3  ;;  %v710_v17 = vmul.f32 %v5020_v41, %v3461_v9 }
 0x1a3   :  { %v972_v21 = vadd.f32 %v5026_v42, %v709_v14  ;;  %v973_v25 = vadd.f32 %v5026_v42, %v710_v17 }
 0x1a5   :  { %v1228_v28 = vmax.f32 %v972_v21, 0.0  ;;  %v1229_v34 = vmax.f32 %v973_v25, 0.0 }
 0x1a6   :  { %v4346_v4 = vld [vmem:[%s5846_s0 + $0x2c8] sm:$0xff]   ;;  %v4347_v10 = vld [vmem:[%s5846_s0 + $0x2d0] sm:$0xff]  }
 0x1a7   :  { %4468 = vst [vmem:[%s5849_s3 + $0x2a0] sm:$0xff] %v4041_v5   ;;  %v3464_v18 = vunpack.c.l.bf16 %v4346_v4  ;;  %v3465_v22 = vunpack.c.h.bf16 %v4346_v4  ;;  %v3468_v23 = vunpack.c.l.bf16 %v4347_v10  ;;  %v3469_v27 = vunpack.c.h.bf16 %v4347_v10 }
 0x1a8   :  { %v4061_v7 = vpack.c.bf16 %v1229_v34, %v1228_v28 }
 0x1a9   :  { %v711_v26 = vmul.f32 %v5020_v41, %v3464_v18  ;;  %v712_v29 = vmul.f32 %v5020_v41, %v3465_v22  ;;  %v713_v30 = vmul.f32 %v5020_v41, %v3468_v23  ;;  %v714_v36 = vmul.f32 %v5020_v41, %v3469_v27 }
 0x1ab   :  { %v974_v35 = vadd.f32 %v5026_v42, %v711_v26  ;;  %v975_v37 = vadd.f32 %v5026_v42, %v712_v29  ;;  %v976_v38 = vadd.f32 %v5026_v42, %v713_v30  ;;  %v977_v44 = vadd.f32 %v5026_v42, %v714_v36 }
 0x1ad   :  { %v1230_v43 = vmax.f32 %v974_v35, 0.0  ;;  %v1231_v46 = vmax.f32 %v975_v37, 0.0  ;;  %v1232_v47 = vmax.f32 %v976_v38, 0.0  ;;  %v1233_v50 = vmax.f32 %v977_v44, 0.0 }
 0x1ae   :  { %v4348_v19 = vld [vmem:[%s5846_s0 + $0x2d8] sm:$0xff]  }
 0x1af   :  { %4469 = vst [vmem:[%s5849_s3 + $0x2a8] sm:$0xff] %v4046_v11   ;;  %4470 = vst [vmem:[%s5849_s3 + $0x2b0] sm:$0xff] %v4051_v20   ;;  %v3472_v31 = vunpack.c.l.bf16 %v4348_v19  ;;  %v3473_v39 = vunpack.c.h.bf16 %v4348_v19  ;;  %v4066_v55 = vpack.c.bf16 %v1231_v46, %v1230_v43  ;;  %v4071_v60 = vpack.c.bf16 %v1233_v50, %v1232_v47 }
 0x1b1   :  { %v715_v40 = vmul.f32 %v5020_v41, %v3472_v31  ;;  %v716_v48 = vmul.f32 %v5020_v41, %v3473_v39 }
 0x1b3   :  { %v978_v49 = vadd.f32 %v5026_v42, %v715_v40  ;;  %v979_v56 = vadd.f32 %v5026_v42, %v716_v48 }
 0x1b5   :  { %v1234_v57 = vmax.f32 %v978_v49, 0.0  ;;  %v1235_v0 = vmax.f32 %v979_v56, 0.0 }
 0x1b6   :  { %v4349_v32 = vld [vmem:[%s5846_s0 + $0x2e0] sm:$0xff]   ;;  %v4350_v1 = vld [vmem:[%s5846_s0 + $0x2e8] sm:$0xff]  }
 0x1b7   :  { %4471 = vst [vmem:[%s5849_s3 + $0x2b8] sm:$0xff] %v4056_v33   ;;  %v3476_v45 = vunpack.c.l.bf16 %v4349_v32  ;;  %4472 = vst [vmem:[%s5849_s3 + $0x2c0] sm:$0xff] %v4061_v7   ;;  %v3477_v51 = vunpack.c.h.bf16 %v4349_v32  ;;  %v3480_v53 = vunpack.c.l.bf16 %v4350_v1  ;;  %v3481_v58 = vunpack.c.h.bf16 %v4350_v1 }
 0x1b8   :  { %v4076_v11 = vpack.c.bf16 %v1235_v0, %v1234_v57 }
 0x1b9   :  { %v717_v52 = vmul.f32 %v5020_v41, %v3476_v45  ;;  %v718_v61 = vmul.f32 %v5020_v41, %v3477_v51  ;;  %v719_v63 = vmul.f32 %v5020_v41, %v3480_v53  ;;  %v720_v2 = vmul.f32 %v5020_v41, %v3481_v58  ;;  %v5498_v41 = vld [vmem:[%s5848_s2] ss:$0 sm:$0xff] }
 0x1bb   :  { %v980_v62 = vadd.f32 %v5026_v42, %v717_v52  ;;  %v981_v5 = vadd.f32 %v5026_v42, %v718_v61  ;;  %v982_v8 = vadd.f32 %v5026_v42, %v719_v63  ;;  %v983_v12 = vadd.f32 %v5498_v41, %v720_v2 }
 0x1bd   :  { %v1236_v6 = vmax.f32 %v980_v62, 0.0  ;;  %v1237_v15 = vmax.f32 %v981_v5, 0.0  ;;  %v1238_v16 = vmax.f32 %v982_v8, 0.0  ;;  %v1239_v19 = vmax.f32 %v983_v12, 0.0 }
 0x1be   :  { %v4351_v54 = vld [vmem:[%s5846_s0 + $0x2f0] sm:$0xff]   ;;  %v4352_v59 = vld [vmem:[%s5846_s0 + $0x2f8] sm:$0xff]  }
 0x1bf   :  { %4473 = vst [vmem:[%s5849_s3 + $0x2c8] sm:$0xff] %v4066_v55   ;;  %v3484_v3 = vunpack.c.l.bf16 %v4351_v54  ;;  %v3485_v4 = vunpack.c.h.bf16 %v4351_v54  ;;  %4474 = vst [vmem:[%s5849_s3 + $0x2d0] sm:$0xff] %v4071_v60   ;;  %v3488_v9 = vunpack.c.l.bf16 %v4352_v59  ;;  %v3489_v17 = vunpack.c.h.bf16 %v4352_v59 }
 0x1c0   :  { %v4081_v24 = vpack.c.bf16 %v1237_v15, %v1236_v6  ;;  %v4086_v29 = vpack.c.bf16 %v1239_v19, %v1238_v16 }
 0x1c1   :  { %v721_v42 = vmul.f32 %v5504_v13, %v3484_v3  ;;  %v722_v14 = vmul.f32 %v5504_v13, %v3485_v4  ;;  %v723_v18 = vmul.f32 %v5504_v13, %v3488_v9  ;;  %v724_v25 = vmul.f32 %v5504_v13, %v3489_v17 }
 0x1c3   :  { %v984_v20 = vadd.f32 %v5498_v41, %v721_v42  ;;  %v985_v21 = vadd.f32 %v5498_v41, %v722_v14  ;;  %v986_v26 = vadd.f32 %v5498_v41, %v723_v18  ;;  %v987_v33 = vadd.f32 %v5498_v41, %v724_v25 }
 0x1c5   :  { %v1240_v30 = vmax.f32 %v984_v20, 0.0  ;;  %v1241_v31 = vmax.f32 %v985_v21, 0.0  ;;  %v1242_v34 = vmax.f32 %v986_v26, 0.0  ;;  %v1243_v7 = vmax.f32 %v987_v33, 0.0 }
 0x1c6   :  { %v4353_v10 = vld [vmem:[%s5846_s0 + $0x300] sm:$0xff]  }
 0x1c7   :  { %4475 = vst [vmem:[%s5849_s3 + $0x2d8] sm:$0xff] %v4076_v11   ;;  %v3492_v22 = vunpack.c.l.bf16 %v4353_v10  ;;  %v3493_v27 = vunpack.c.h.bf16 %v4353_v10  ;;  %v4091_v38 = vpack.c.bf16 %v1241_v31, %v1240_v30  ;;  %v4096_v51 = vpack.c.bf16 %v1243_v7, %v1242_v34 }
 0x1c9   :  { %v725_v32 = vmul.f32 %v5504_v13, %v3492_v22  ;;  %v726_v35 = vmul.f32 %v5504_v13, %v3493_v27 }
 0x1cb   :  { %v988_v39 = vadd.f32 %v5498_v41, %v725_v32  ;;  %v989_v43 = vadd.f32 %v5498_v41, %v726_v35 }
 0x1cd   :  { %v1244_v46 = vmax.f32 %v988_v39, 0.0  ;;  %v1245_v52 = vmax.f32 %v989_v43, 0.0 }
 0x1ce   :  { %v4354_v23 = vld [vmem:[%s5846_s0 + $0x308] sm:$0xff]   ;;  %v4355_v28 = vld [vmem:[%s5846_s0 + $0x310] sm:$0xff]  }
 0x1cf   :  { %4476 = vst [vmem:[%s5849_s3 + $0x2e0] sm:$0xff] %v4081_v24   ;;  %v3496_v36 = vunpack.c.l.bf16 %v4354_v23  ;;  %v3497_v40 = vunpack.c.h.bf16 %v4354_v23  ;;  %v3500_v1 = vunpack.c.l.bf16 %v4355_v28  ;;  %v3501_v45 = vunpack.c.h.bf16 %v4355_v28 }
 0x1d0   :  { %v4101_v60 = vpack.c.bf16 %v1245_v52, %v1244_v46 }
 0x1d1   :  { %v727_v44 = vmul.f32 %v5504_v13, %v3496_v36  ;;  %v728_v47 = vmul.f32 %v5504_v13, %v3497_v40  ;;  %v729_v48 = vmul.f32 %v5504_v13, %v3500_v1  ;;  %v730_v54 = vmul.f32 %v5504_v13, %v3501_v45 }
 0x1d3   :  { %v990_v53 = vadd.f32 %v5498_v41, %v727_v44  ;;  %v991_v55 = vadd.f32 %v5498_v41, %v728_v47  ;;  %v992_v56 = vadd.f32 %v5498_v41, %v729_v48  ;;  %v993_v62 = vadd.f32 %v5498_v41, %v730_v54 }
 0x1d5   :  { %v1246_v61 = vmax.f32 %v990_v53, 0.0  ;;  %v1247_v0 = vmax.f32 %v991_v55, 0.0  ;;  %v1248_v2 = vmax.f32 %v992_v56, 0.0  ;;  %v1249_v5 = vmax.f32 %v993_v62, 0.0 }
 0x1d6   :  { %v4356_v37 = vld [vmem:[%s5846_s0 + $0x318] sm:$0xff]  }
 0x1d7   :  { %4477 = vst [vmem:[%s5849_s3 + $0x2e8] sm:$0xff] %v4086_v29   ;;  %4478 = vst [vmem:[%s5849_s3 + $0x2f0] sm:$0xff] %v4091_v38   ;;  %v3504_v49 = vunpack.c.l.bf16 %v4356_v37  ;;  %v3505_v57 = vunpack.c.h.bf16 %v4356_v37  ;;  %v4106_v11 = vpack.c.bf16 %v1247_v0, %v1246_v61  ;;  %v4111_v16 = vpack.c.bf16 %v1249_v5, %v1248_v2 }
 0x1d9   :  { %v731_v58 = vmul.f32 %v5504_v13, %v3504_v49  ;;  %v732_v3 = vmul.f32 %v5504_v13, %v3505_v57 }
 0x1db   :  { %v994_v4 = vadd.f32 %v5498_v41, %v731_v58  ;;  %v995_v12 = vadd.f32 %v5498_v41, %v732_v3 }
 0x1dd   :  { %v1250_v42 = vmax.f32 %v994_v4, 0.0  ;;  %v1251_v20 = vmax.f32 %v995_v12, 0.0 }
 0x1de   :  { %v4357_v50 = vld [vmem:[%s5846_s0 + $0x320] sm:$0xff]   ;;  %v4358_v59 = vld [vmem:[%s5846_s0 + $0x328] sm:$0xff]  }
 0x1df   :  { %4479 = vst [vmem:[%s5849_s3 + $0x2f8] sm:$0xff] %v4096_v51   ;;  %v3508_v63 = vunpack.c.l.bf16 %v4357_v50  ;;  %4480 = vst [vmem:[%s5849_s3 + $0x300] sm:$0xff] %v4101_v60   ;;  %v3509_v6 = vunpack.c.h.bf16 %v4357_v50  ;;  %v3512_v9 = vunpack.c.l.bf16 %v4358_v59  ;;  %v3513_v14 = vunpack.c.h.bf16 %v4358_v59 }
 0x1e0   :  { %v4116_v29 = vpack.c.bf16 %v1251_v20, %v1250_v42 }
 0x1e1   :  { %v733_v8 = vmul.f32 %v5504_v13, %v3508_v63  ;;  %v734_v17 = vmul.f32 %v5504_v13, %v3509_v6  ;;  %v735_v19 = vmul.f32 %v5504_v13, %v3512_v9  ;;  %v736_v21 = vmul.f32 %v5504_v13, %v3513_v14 }
 0x1e3   :  { %v996_v18 = vadd.f32 %v5498_v41, %v733_v8  ;;  %v997_v24 = vadd.f32 %v5498_v41, %v734_v17  ;;  %v998_v26 = vadd.f32 %v5498_v41, %v735_v19  ;;  %v999_v30 = vadd.f32 %v5498_v41, %v736_v21 }
 0x1e5   :  { %v1252_v25 = vmax.f32 %v996_v18, 0.0  ;;  %v1253_v33 = vmax.f32 %v997_v24, 0.0  ;;  %v1254_v34 = vmax.f32 %v998_v26, 0.0  ;;  %v1255_v37 = vmax.f32 %v999_v30, 0.0 }
 0x1e6   :  { %v4359_v10 = vld [vmem:[%s5846_s0 + $0x330] sm:$0xff]   ;;  %v4360_v15 = vld [vmem:[%s5846_s0 + $0x338] sm:$0xff]  }
 0x1e7   :  { %4481 = vst [vmem:[%s5849_s3 + $0x308] sm:$0xff] %v4106_v11   ;;  %v3516_v22 = vunpack.c.l.bf16 %v4359_v10  ;;  %v3517_v23 = vunpack.c.h.bf16 %v4359_v10  ;;  %4482 = vst [vmem:[%s5849_s3 + $0x310] sm:$0xff] %v4111_v16   ;;  %v3520_v27 = vunpack.c.l.bf16 %v4360_v15  ;;  %v3521_v35 = vunpack.c.h.bf16 %v4360_v15 }
 0x1e8   :  { %v4121_v7 = vpack.c.bf16 %v1253_v33, %v1252_v25  ;;  %v4126_v47 = vpack.c.bf16 %v1255_v37, %v1254_v34 }
 0x1e9   :  { %v737_v31 = vmul.f32 %v5504_v13, %v3516_v22  ;;  %v738_v32 = vmul.f32 %v5504_v13, %v3517_v23  ;;  %v739_v36 = vmul.f32 %v5504_v13, %v3520_v27  ;;  %v740_v43 = vmul.f32 %v5504_v13, %v3521_v35 }
 0x1eb   :  { %v1000_v38 = vadd.f32 %v5498_v41, %v737_v31  ;;  %v1001_v39 = vadd.f32 %v5498_v41, %v738_v32  ;;  %v1002_v44 = vadd.f32 %v5498_v41, %v739_v36  ;;  %v1003_v51 = vadd.f32 %v5498_v41, %v740_v43 }
 0x1ed   :  { %v1256_v48 = vmax.f32 %v1000_v38, 0.0  ;;  %v1257_v49 = vmax.f32 %v1001_v39, 0.0  ;;  %v1258_v52 = vmax.f32 %v1002_v44, 0.0  ;;  %v1259_v60 = vmax.f32 %v1003_v51, 0.0 }
 0x1ee   :  { %v4361_v28 = vld [vmem:[%s5846_s0 + $0x340] sm:$0xff]  }
 0x1ef   :  { %4483 = vst [vmem:[%s5849_s3 + $0x318] sm:$0xff] %v4116_v29   ;;  %v3524_v40 = vunpack.c.l.bf16 %v4361_v28  ;;  %v3525_v45 = vunpack.c.h.bf16 %v4361_v28  ;;  %v4131_v56 = vpack.c.bf16 %v1257_v49, %v1256_v48  ;;  %v4136_v6 = vpack.c.bf16 %v1259_v60, %v1258_v52 }
 0x1f1   :  { %v741_v50 = vmul.f32 %v5504_v13, %v3524_v40  ;;  %v742_v53 = vmul.f32 %v5504_v13, %v3525_v45 }
 0x1f3   :  { %v1004_v57 = vadd.f32 %v5498_v41, %v741_v50  ;;  %v1005_v61 = vadd.f32 %v5498_v41, %v742_v53 }
 0x1f5   :  { %v1260_v0 = vmax.f32 %v1004_v57, 0.0  ;;  %v1261_v8 = vmax.f32 %v1005_v61, 0.0 }
 0x1f6   :  { %v4362_v1 = vld [vmem:[%s5846_s0 + $0x348] sm:$0xff]   ;;  %v4363_v46 = vld [vmem:[%s5846_s0 + $0x350] sm:$0xff]  }
 0x1f7   :  { %4484 = vst [vmem:[%s5849_s3 + $0x320] sm:$0xff] %v4121_v7   ;;  %v3528_v54 = vunpack.c.l.bf16 %v4362_v1  ;;  %v3529_v58 = vunpack.c.h.bf16 %v4362_v1  ;;  %v3532_v59 = vunpack.c.l.bf16 %v4363_v46  ;;  %v3533_v63 = vunpack.c.h.bf16 %v4363_v46 }
 0x1f8   :  { %v4141_v16 = vpack.c.bf16 %v1261_v8, %v1260_v0 }
 0x1f9   :  { %v743_v62 = vmul.f32 %v5504_v13, %v3528_v54  ;;  %v744_v2 = vmul.f32 %v5504_v13, %v3529_v58  ;;  %v745_v3 = vmul.f32 %v5504_v13, %v3532_v59  ;;  %v746_v10 = vmul.f32 %v5504_v13, %v3533_v63 }
 0x1fb   :  { %v1006_v9 = vadd.f32 %v5498_v41, %v743_v62  ;;  %v1007_v11 = vadd.f32 %v5498_v41, %v744_v2  ;;  %v1008_v12 = vadd.f32 %v5498_v41, %v745_v3  ;;  %v1009_v18 = vadd.f32 %v5498_v41, %v746_v10 }
 0x1fd   :  { %v1262_v17 = vmax.f32 %v1006_v9, 0.0  ;;  %v1263_v20 = vmax.f32 %v1007_v11, 0.0  ;;  %v1264_v21 = vmax.f32 %v1008_v12, 0.0  ;;  %v1265_v24 = vmax.f32 %v1009_v18, 0.0 }
 0x1fe   :  { %v4364_v55 = vld [vmem:[%s5846_s0 + $0x358] sm:$0xff]  }
 0x1ff   :  { %4485 = vst [vmem:[%s5849_s3 + $0x328] sm:$0xff] %v4126_v47   ;;  %4486 = vst [vmem:[%s5849_s3 + $0x330] sm:$0xff] %v4131_v56   ;;  %v3536_v4 = vunpack.c.l.bf16 %v4364_v55  ;;  %v3537_v42 = vunpack.c.h.bf16 %v4364_v55  ;;  %v4146_v29 = vpack.c.bf16 %v1263_v20, %v1262_v17  ;;  %v4151_v34 = vpack.c.bf16 %v1265_v24, %v1264_v21 }
 0x201   :  { %v747_v14 = vmul.f32 %v5504_v13, %v3536_v4  ;;  %v748_v22 = vmul.f32 %v5504_v13, %v3537_v42 }
 0x203   :  { %v1010_v23 = vadd.f32 %v5498_v41, %v747_v14  ;;  %v1011_v30 = vadd.f32 %v5498_v41, %v748_v22 }
 0x205   :  { %v1266_v31 = vmax.f32 %v1010_v23, 0.0  ;;  %v1267_v38 = vmax.f32 %v1011_v30, 0.0 }
 0x206   :  { %v4365_v5 = vld [vmem:[%s5846_s0 + $0x360] sm:$0xff]   ;;  %v4366_v15 = vld [vmem:[%s5846_s0 + $0x368] sm:$0xff]  }
 0x207   :  { %4487 = vst [vmem:[%s5849_s3 + $0x338] sm:$0xff] %v4136_v6   ;;  %v3540_v19 = vunpack.c.l.bf16 %v4365_v5  ;;  %4488 = vst [vmem:[%s5849_s3 + $0x340] sm:$0xff] %v4141_v16   ;;  %v3541_v25 = vunpack.c.h.bf16 %v4365_v5  ;;  %v3544_v27 = vunpack.c.l.bf16 %v4366_v15  ;;  %v3545_v32 = vunpack.c.h.bf16 %v4366_v15 }
 0x208   :  { %v4156_v47 = vpack.c.bf16 %v1267_v38, %v1266_v31 }
 0x209   :  { %v749_v26 = vmul.f32 %v5504_v13, %v3540_v19  ;;  %v750_v35 = vmul.f32 %v5504_v13, %v3541_v25  ;;  %v751_v37 = vmul.f32 %v5504_v13, %v3544_v27  ;;  %v752_v39 = vmul.f32 %v5504_v13, %v3545_v32 }
 0x20b   :  { %v1012_v36 = vadd.f32 %v5498_v41, %v749_v26  ;;  %v1013_v7 = vadd.f32 %v5498_v41, %v750_v35  ;;  %v1014_v44 = vadd.f32 %v5498_v41, %v751_v37  ;;  %v1015_v48 = vadd.f32 %v5498_v41, %v752_v39 }
 0x20d   :  { %v1268_v43 = vmax.f32 %v1012_v36, 0.0  ;;  %v1269_v51 = vmax.f32 %v1013_v7, 0.0  ;;  %v1270_v52 = vmax.f32 %v1014_v44, 0.0  ;;  %v1271_v55 = vmax.f32 %v1015_v48, 0.0 }
 0x20e   :  { %v4367_v28 = vld [vmem:[%s5846_s0 + $0x370] sm:$0xff]   ;;  %v4368_v33 = vld [vmem:[%s5846_s0 + $0x378] sm:$0xff]  }
 0x20f   :  { %4489 = vst [vmem:[%s5849_s3 + $0x348] sm:$0xff] %v4146_v29   ;;  %v3548_v40 = vunpack.c.l.bf16 %v4367_v28  ;;  %v3549_v1 = vunpack.c.h.bf16 %v4367_v28  ;;  %4490 = vst [vmem:[%s5849_s3 + $0x350] sm:$0xff] %v4151_v34   ;;  %v3552_v45 = vunpack.c.l.bf16 %v4368_v33  ;;  %v3553_v53 = vunpack.c.h.bf16 %v4368_v33 }
 0x210   :  { %v4161_v60 = vpack.c.bf16 %v1269_v51, %v1268_v43  ;;  %v4166_v2 = vpack.c.bf16 %v1271_v55, %v1270_v52 }
 0x211   :  { %v753_v49 = vmul.f32 %v5504_v13, %v3548_v40  ;;  %v754_v50 = vmul.f32 %v5504_v13, %v3549_v1  ;;  %v755_v54 = vmul.f32 %v5504_v13, %v3552_v45  ;;  %v756_v61 = vmul.f32 %v5504_v13, %v3553_v53 }
 0x213   :  { %v1016_v56 = vadd.f32 %v5498_v41, %v753_v49  ;;  %v1017_v57 = vadd.f32 %v5498_v41, %v754_v50  ;;  %v1018_v62 = vadd.f32 %v5498_v41, %v755_v54  ;;  %v1019_v6 = vadd.f32 %v5498_v41, %v756_v61 }
 0x215   :  { %v1272_v3 = vmax.f32 %v1016_v56, 0.0  ;;  %v1273_v4 = vmax.f32 %v1017_v57, 0.0  ;;  %v1274_v8 = vmax.f32 %v1018_v62, 0.0  ;;  %v1275_v16 = vmax.f32 %v1019_v6, 0.0 }
 0x216   :  { %v4369_v46 = vld [vmem:[%s5846_s0 + $0x380] sm:$0xff]  }
 0x217   :  { %4491 = vst [vmem:[%s5849_s3 + $0x358] sm:$0xff] %v4156_v47   ;;  %v3556_v58 = vunpack.c.l.bf16 %v4369_v46  ;;  %v3557_v63 = vunpack.c.h.bf16 %v4369_v46  ;;  %v4171_v12 = vpack.c.bf16 %v1273_v4, %v1272_v3  ;;  %v4176_v25 = vpack.c.bf16 %v1275_v16, %v1274_v8 }
 0x219   :  { %v757_v5 = vmul.f32 %v5504_v13, %v3556_v58  ;;  %v758_v9 = vmul.f32 %v5504_v13, %v3557_v63 }
 0x21b   :  { %v1020_v42 = vadd.f32 %v5498_v41, %v757_v5  ;;  %v1021_v17 = vadd.f32 %v5498_v41, %v758_v9 }
 0x21d   :  { %v1276_v20 = vmax.f32 %v1020_v42, 0.0  ;;  %v1277_v26 = vmax.f32 %v1021_v17, 0.0 }
 0x21e   :  { %v4370_v59 = vld [vmem:[%s5846_s0 + $0x388] sm:$0xff]   ;;  %v4371_v0 = vld [vmem:[%s5846_s0 + $0x390] sm:$0xff]  }
 0x21f   :  { %4492 = vst [vmem:[%s5849_s3 + $0x360] sm:$0xff] %v4161_v60   ;;  %v3560_v10 = vunpack.c.l.bf16 %v4370_v59  ;;  %v3561_v14 = vunpack.c.h.bf16 %v4370_v59  ;;  %v3564_v15 = vunpack.c.l.bf16 %v4371_v0  ;;  %v3565_v19 = vunpack.c.h.bf16 %v4371_v0 }
 0x220   :  { %v4181_v34 = vpack.c.bf16 %v1277_v26, %v1276_v20 }
 0x221   :  { %v759_v18 = vmul.f32 %v5504_v13, %v3560_v10  ;;  %v760_v21 = vmul.f32 %v5504_v13, %v3561_v14  ;;  %v761_v22 = vmul.f32 %v5504_v13, %v3564_v15  ;;  %v762_v28 = vmul.f32 %v5504_v13, %v3565_v19 }
 0x223   :  { %v1022_v27 = vadd.f32 %v5498_v41, %v759_v18  ;;  %v1023_v29 = vadd.f32 %v5498_v41, %v760_v21  ;;  %v1024_v30 = vadd.f32 %v5498_v41, %v761_v22  ;;  %v1025_v36 = vadd.f32 %v5498_v41, %v762_v28 }
 0x225   :  { %v1278_v35 = vmax.f32 %v1022_v27, 0.0  ;;  %v1279_v38 = vmax.f32 %v1023_v29, 0.0  ;;  %v1280_v39 = vmax.f32 %v1024_v30, 0.0  ;;  %v1281_v7 = vmax.f32 %v1025_v36, 0.0 }
 0x226   :  { %v4372_v11 = vld [vmem:[%s5846_s0 + $0x398] sm:$0xff]  }
 0x227   :  { %4493 = vst [vmem:[%s5849_s3 + $0x368] sm:$0xff] %v4166_v2   ;;  %4494 = vst [vmem:[%s5849_s3 + $0x370] sm:$0xff] %v4171_v12   ;;  %v3568_v23 = vunpack.c.l.bf16 %v4372_v11  ;;  %v3569_v31 = vunpack.c.h.bf16 %v4372_v11  ;;  %v4186_v47 = vpack.c.bf16 %v1279_v38, %v1278_v35  ;;  %v4191_v52 = vpack.c.bf16 %v1281_v7, %v1280_v39 }
 0x229   :  { %v763_v32 = vmul.f32 %v5504_v13, %v3568_v23  ;;  %v764_v40 = vmul.f32 %v5504_v13, %v3569_v31 }
 0x22b   :  { %v1026_v1 = vadd.f32 %v5498_v41, %v763_v32  ;;  %v1027_v48 = vadd.f32 %v5498_v41, %v764_v40 }
 0x22d   :  { %v1282_v49 = vmax.f32 %v1026_v1, 0.0  ;;  %v1283_v56 = vmax.f32 %v1027_v48, 0.0 }
 0x22e   :  { %v4373_v24 = vld [vmem:[%s5846_s0 + $0x3a0] sm:$0xff]   ;;  %v4374_v33 = vld [vmem:[%s5846_s0 + $0x3a8] sm:$0xff]  }
 0x22f   :  { %4495 = vst [vmem:[%s5849_s3 + $0x378] sm:$0xff] %v4176_v25   ;;  %v3572_v37 = vunpack.c.l.bf16 %v4373_v24  ;;  %4496 = vst [vmem:[%s5849_s3 + $0x380] sm:$0xff] %v4181_v34   ;;  %v3573_v43 = vunpack.c.h.bf16 %v4373_v24  ;;  %v3576_v45 = vunpack.c.l.bf16 %v4374_v33  ;;  %v3577_v50 = vunpack.c.h.bf16 %v4374_v33 }
 0x230   :  { %v4196_v2 = vpack.c.bf16 %v1283_v56, %v1282_v49 }
 0x231   :  { %v765_v44 = vmul.f32 %v5504_v13, %v3572_v37  ;;  %v766_v53 = vmul.f32 %v5504_v13, %v3573_v43  ;;  %v767_v55 = vmul.f32 %v5504_v13, %v3576_v45  ;;  %v768_v57 = vmul.f32 %v5504_v13, %v3577_v50 }
 0x233   :  { %v1028_v54 = vadd.f32 %v5498_v41, %v765_v44  ;;  %v1029_v60 = vadd.f32 %v5498_v41, %v766_v53  ;;  %v1030_v62 = vadd.f32 %v5498_v41, %v767_v55  ;;  %v1031_v3 = vadd.f32 %v5498_v41, %v768_v57 }
 0x235   :  { %v1284_v61 = vmax.f32 %v1028_v54, 0.0  ;;  %v1285_v6 = vmax.f32 %v1029_v60, 0.0  ;;  %v1286_v8 = vmax.f32 %v1030_v62, 0.0  ;;  %v1287_v11 = vmax.f32 %v1031_v3, 0.0 }
 0x236   :  { %v4375_v46 = vld [vmem:[%s5846_s0 + $0x3b0] sm:$0xff]   ;;  %v4376_v51 = vld [vmem:[%s5846_s0 + $0x3b8] sm:$0xff]  }
 0x237   :  { %4497 = vst [vmem:[%s5849_s3 + $0x388] sm:$0xff] %v4186_v47   ;;  %v3580_v58 = vunpack.c.l.bf16 %v4375_v46  ;;  %v3581_v59 = vunpack.c.h.bf16 %v4375_v46  ;;  %4498 = vst [vmem:[%s5849_s3 + $0x390] sm:$0xff] %v4191_v52   ;;  %v3584_v63 = vunpack.c.l.bf16 %v4376_v51  ;;  %v3585_v9 = vunpack.c.h.bf16 %v4376_v51 }
 0x238   :  { %v4201_v16 = vpack.c.bf16 %v1285_v6, %v1284_v61  ;;  %v4206_v21 = vpack.c.bf16 %v1287_v11, %v1286_v8 }
 0x239   :  { %v769_v4 = vmul.f32 %v5504_v13, %v3580_v58  ;;  %v770_v5 = vmul.f32 %v5504_v13, %v3581_v59  ;;  %v771_v10 = vmul.f32 %v5504_v13, %v3584_v63  ;;  %v772_v17 = vmul.f32 %v5504_v13, %v3585_v9 }
 0x23b   :  { %v1032_v12 = vadd.f32 %v5498_v41, %v769_v4  ;;  %v1033_v42 = vadd.f32 %v5498_v41, %v770_v5  ;;  %v1034_v18 = vadd.f32 %v5498_v41, %v771_v10  ;;  %v1035_v25 = vadd.f32 %v5498_v41, %v772_v17 }
 0x23d   :  { %v1288_v22 = vmax.f32 %v1032_v12, 0.0  ;;  %v1289_v23 = vmax.f32 %v1033_v42, 0.0  ;;  %v1290_v26 = vmax.f32 %v1034_v18, 0.0  ;;  %v1291_v34 = vmax.f32 %v1035_v25, 0.0 }
 0x23e   :  { %v4377_v0 = vld [vmem:[%s5846_s0 + $0x3c0] sm:$0xff]  }
 0x23f   :  { %4499 = vst [vmem:[%s5849_s3 + $0x398] sm:$0xff] %v4196_v2   ;;  %v3588_v14 = vunpack.c.l.bf16 %v4377_v0  ;;  %v3589_v19 = vunpack.c.h.bf16 %v4377_v0  ;;  %v4211_v30 = vpack.c.bf16 %v1289_v23, %v1288_v22  ;;  %v4216_v43 = vpack.c.bf16 %v1291_v34, %v1290_v26 }
 0x241   :  { %v773_v24 = vmul.f32 %v5504_v13, %v3588_v14  ;;  %v774_v27 = vmul.f32 %v5504_v13, %v3589_v19 }
 0x243   :  { %v1036_v31 = vadd.f32 %v5498_v41, %v773_v24  ;;  %v1037_v35 = vadd.f32 %v5498_v41, %v774_v27 }
 0x245   :  { %v1292_v38 = vmax.f32 %v1036_v31, 0.0  ;;  %v1293_v44 = vmax.f32 %v1037_v35, 0.0 }
 0x246   :  { %v4378_v15 = vld [vmem:[%s5846_s0 + $0x3c8] sm:$0xff]   ;;  %v4379_v20 = vld [vmem:[%s5846_s0 + $0x3d0] sm:$0xff]  }
 0x247   :  { %4500 = vst [vmem:[%s5849_s3 + $0x3a0] sm:$0xff] %v4201_v16   ;;  %v3592_v28 = vunpack.c.l.bf16 %v4378_v15  ;;  %v3593_v32 = vunpack.c.h.bf16 %v4378_v15  ;;  %v3596_v33 = vunpack.c.l.bf16 %v4379_v20  ;;  %v3597_v37 = vunpack.c.h.bf16 %v4379_v20 }
 0x248   :  { %v4221_v52 = vpack.c.bf16 %v1293_v44, %v1292_v38 }
 0x249   :  { %v775_v36 = vmul.f32 %v5504_v13, %v3592_v28  ;;  %v776_v39 = vmul.f32 %v5504_v13, %v3593_v32  ;;  %v777_v40 = vmul.f32 %v5504_v13, %v3596_v33  ;;  %v778_v46 = vmul.f32 %v5504_v13, %v3597_v37 }
 0x24b   :  { %v1038_v45 = vadd.f32 %v5498_v41, %v775_v36  ;;  %v1039_v47 = vadd.f32 %v5498_v41, %v776_v39  ;;  %v1040_v48 = vadd.f32 %v5498_v41, %v777_v40  ;;  %v1041_v54 = vadd.f32 %v5498_v41, %v778_v46 }
 0x24d   :  { %v1294_v53 = vmax.f32 %v1038_v45, 0.0  ;;  %v1295_v56 = vmax.f32 %v1039_v47, 0.0  ;;  %v1296_v57 = vmax.f32 %v1040_v48, 0.0  ;;  %v1297_v60 = vmax.f32 %v1041_v54, 0.0 }
 0x24e   :  { %v4380_v29 = vld [vmem:[%s5846_s0 + $0x3d8] sm:$0xff]  }
 0x24f   :  { %4501 = vst [vmem:[%s5849_s3 + $0x3a8] sm:$0xff] %v4206_v21   ;;  %4502 = vst [vmem:[%s5849_s3 + $0x3b0] sm:$0xff] %v4211_v30   ;;  %v3600_v1 = vunpack.c.l.bf16 %v4380_v29  ;;  %v3601_v49 = vunpack.c.h.bf16 %v4380_v29  ;;  %v4226_v2 = vpack.c.bf16 %v1295_v56, %v1294_v53  ;;  %v4231_v8 = vpack.c.bf16 %v1297_v60, %v1296_v57 }
 0x251   :  { %v779_v50 = vmul.f32 %v5504_v13, %v3600_v1  ;;  %v780_v58 = vmul.f32 %v5504_v13, %v3601_v49 }
 0x253   :  { %v1042_v59 = vadd.f32 %v5498_v41, %v779_v50  ;;  %v1043_v3 = vadd.f32 %v5498_v41, %v780_v58 }
 0x255   :  { %v1298_v4 = vmax.f32 %v1042_v59, 0.0  ;;  %v1299_v12 = vmax.f32 %v1043_v3, 0.0 }
 0x256   :  { %v4381_v7 = vld [vmem:[%s5846_s0 + $0x3e0] sm:$0xff]   ;;  %v4382_v51 = vld [vmem:[%s5846_s0 + $0x3e8] sm:$0xff]  }
 0x257   :  { %4503 = vst [vmem:[%s5849_s3 + $0x3b8] sm:$0xff] %v4216_v43   ;;  %v3604_v55 = vunpack.c.l.bf16 %v4381_v7  ;;  %4504 = vst [vmem:[%s5849_s3 + $0x3c0] sm:$0xff] %v4221_v52   ;;  %v3605_v61 = vunpack.c.h.bf16 %v4381_v7  ;;  %v3608_v63 = vunpack.c.l.bf16 %v4382_v51  ;;  %v3609_v5 = vunpack.c.h.bf16 %v4382_v51 }
 0x258   :  { %v4236_v20 = vpack.c.bf16 %v1299_v12, %v1298_v4 }
 0x259   :  { %v781_v62 = vmul.f32 %v5504_v13, %v3604_v55  ;;  %v782_v9 = vmul.f32 %v5504_v13, %v3605_v61  ;;  %v783_v11 = vmul.f32 %v5504_v13, %v3608_v63  ;;  %v784_v42 = vmul.f32 %v5504_v13, %v3609_v5 }
 0x25b   :  { %v1044_v10 = vadd.f32 %v5498_v41, %v781_v62  ;;  %v1045_v16 = vadd.f32 %v5498_v41, %v782_v9  ;;  %v1046_v18 = vadd.f32 %v5498_v41, %v783_v11  ;;  %v1047_v21 = vadd.f32 %v5498_v41, %v784_v42 }
 0x25d   :  { %v1300_v17 = vmax.f32 %v1044_v10, 0.0  ;;  %v1301_v24 = vmax.f32 %v1045_v16, 0.0  ;;  %v1302_v25 = vmax.f32 %v1046_v18, 0.0  ;;  %v1303_v28 = vmax.f32 %v1047_v21, 0.0 }
 0x25e   :  { %v4383_v0 = vld [vmem:[%s5846_s0 + $0x3f0] sm:$0xff]   ;;  %v4384_v6 = vld [vmem:[%s5846_s0 + $0x3f8] sm:$0xff]  }
 0x25f   :  { %4505 = vst [vmem:[%s5849_s3 + $0x3c8] sm:$0xff] %v4226_v2   ;;  %v3612_v14 = vunpack.c.l.bf16 %v4383_v0  ;;  %v3613_v15 = vunpack.c.h.bf16 %v4383_v0  ;;  %4506 = vst [vmem:[%s5849_s3 + $0x3d0] sm:$0xff] %v4231_v8   ;;  %v3616_v19 = vunpack.c.l.bf16 %v4384_v6  ;;  %v3617_v26 = vunpack.c.h.bf16 %v4384_v6 }
 0x260   :  { %4507 = vst [vmem:[%s5849_s3 + $0x3d8] sm:$0xff] %v4236_v20   ;;  %v4241_v31 = vpack.c.bf16 %v1301_v24, %v1300_v17  ;;  %v4246_v34 = vpack.c.bf16 %v1303_v28, %v1302_v25 }
 0x261   :  { %v785_v22 = vmul.f32 %v5504_v13, %v3612_v14  ;;  %v786_v23 = vmul.f32 %v5504_v13, %v3613_v15  ;;  %v787_v27 = vmul.f32 %v5504_v13, %v3616_v19  ;;  %v788_v32 = vmul.f32 %v5504_v13, %v3617_v26 }
 0x262   :  { %4508 = vst [vmem:[%s5849_s3 + $0x3e0] sm:$0xff] %v4241_v31   ;;  %4509 = vst [vmem:[%s5849_s3 + $0x3e8] sm:$0xff] %v4246_v34  }
 0x263   :  { %v1048_v29 = vadd.f32 %v5498_v41, %v785_v22  ;;  %v1049_v30 = vadd.f32 %v5498_v41, %v786_v23  ;;  %v1050_v33 = vadd.f32 %v5498_v41, %v787_v27  ;;  %v1051_v37 = vadd.f32 %v5498_v41, %v788_v32 }
 0x265   :  { %v1304_v35 = vmax.f32 %v1048_v29, 0.0  ;;  %v1305_v36 = vmax.f32 %v1049_v30, 0.0  ;;  %v1306_v38 = vmax.f32 %v1050_v33, 0.0  ;;  %v1307_v40 = vmax.f32 %v1051_v37, 0.0 }
 0x267   :  { %v4251_v39 = vpack.c.bf16 %v1305_v36, %v1304_v35  ;;  %v4256_v13 = vpack.c.bf16 %v1307_v40, %v1306_v38 }
 0x269   :  { %4510 = vst [vmem:[%s5849_s3 + $0x3f0] sm:$0xff] %v4251_v39   ;;  %4511 = vst [vmem:[%s5849_s3 + $0x3f8] sm:$0xff] %v4256_v13  }

// kernel: double_conv.4
= control target key start
LH: loop header
LB: loop body
LE: loop exit
PB: predicated region body
PF: predicated region fallthrough
CT: control target
= control target key end

     0   :  { %s7994_s24 = smov 0   ;;  %s7996_s25 = smov 0   ;;  %s9969_s0 = inlined_call_operand.vmem [shape: bf16[16,128,128], index: 0, kind: input, shape index: {}, may-alias: {0,1,2}]   ;;  %s9970_s1 = inlined_call_operand.vmem [shape: bf16[16,128,128], index: 1, kind: input, shape index: {}, may-alias: {0,1,2}]   ;;  %s9971_s2 = inlined_call_operand.vmem [shape: bf16[16,128,128], index: 2, kind: input, shape index: {}, may-alias: {0,1,2}]   ;;  %s9972_s3 = inlined_call_operand.vmem [shape: f32[1,128], index: 3, kind: input, shape index: {}]   ;;  %s9973_s4 = inlined_call_operand.vmem [shape: f32[1,128], index: 4, kind: input, shape index: {}]   ;;  %s9974_s5 = inlined_call_operand.vmem [shape: bf16[9,384,128], index: 5, kind: input, shape index: {}]   ;;  %s9975_s6 = inlined_call_operand.vmem [shape: bf16[16,128,128], index: 6, kind: output, shape index: {0}]   ;;  %s9976_s7 = inlined_call_operand.vmem [shape: f32[16,8,128], index: 7, kind: output, shape index: {1}]  }
   0x1   :  { %s7998_s26 = smov 0   ;;  %s8000_s27 = smov 0  }
   0x2   :  { %s8002_s28 = smov 0  }
   0x3 LB: > { %s27_s29 = sadd.s32 1, %s7942_s26  ;;  %s30_s30 = sadd.s32 1, %s7946_s27  ;;  %s7950_s28 = sphi %s8002_s28, %s18_s28   ;;  %s7946_s27 = sphi %s8000_s27, %s10008_s27   ;;  %s7942_s26 = sphi %s7998_s26, %s10007_s26   ;;  %s7938_s25 = sphi %s7996_s25, %s10006_s25   ;;  %s7934_s24 = sphi %s7994_s24, %s10005_s24  }
   0x4   : > { %p28_p0 = scmp.ge.s32.totalorder %s27_s29, 8  ;;  %p5636_p1 = scmp.ge.s32.totalorder %s7950_s28, 1 }
   0x5   : > { %p360_p2 = scmp.lt.s32.totalorder %s7950_s28, 17 }
   0x6   : > { %s10010_s29 = smov (%p28_p0, %s27_s29), 0  ;;  %s10012_s30 = smov (!%p28_p0, %s30_s30), %s7946_s27 }
   0x7   : > { %p361_p3 = pnand %p5636_p1, %p360_p2  ;;  %p32_p4 = scmp.ge.s32.totalorder %s10012_s30, 2 }
   0x9   : > { %s10014_s30 = smov (%p32_p4, %s10012_s30), 0  ;;  %364 = sbr.rel (%p361_p3) target bundleno = 741 (0x2e5), region = 44 }
  0x10   : > { %v7696_v0 = vld [vmem:[%s9974_s5 + $0x280] sm:$0xff]   ;;  %p449_p5 = scmp.gt.s32.totalorder %s7934_s24, 0  ;;  %p5645_p6 = scmp.lt.s32.totalorder %s7934_s24, 7  ;;  %v7699_v3 = vld [vmem:[%s9974_s5 + $0x288] sm:$0xff]   ;;  %v7702_v6 = vld [vmem:[%s9974_s5 + $0x290] sm:$0xff]   ;;  %vm942_vm2 = vcmask 1040384  }
  0x11   : > { %v7697_v1 = vld [vmem:[%s9974_s5 + $0x2c0] sm:$0xff]   ;;  %6374 = vmatprep.subr.bf16.mxu0 %v7696_v0  ;;  %v7700_v4 = vld [vmem:[%s9974_s5 + $0x2c8] sm:$0xff]   ;;  %s8044_s19 = sshll.u32 %s7938_s25, 3  ;;  %v7703_v7 = vld [vmem:[%s9974_s5 + $0x2d0] sm:$0xff]   ;;  %s8071_s18 = sadd.s32 1, %s7934_s24  ;;  %v7952_v51 = vmov 0.0  }
  0x12   : > { %v7698_v2 = vld [vmem:[%s9974_s5 + $0x240] sm:$0xff]   ;;  %7094 = vmatprep.subr.bf16.mxu1 %v7697_v1  ;;  %s450_s16 = scalar_select %p449_p5, %s7934_s24, 0  ;;  %v7701_v5 = vld [vmem:[%s9974_s5 + $0x248] sm:$0xff]   ;;  %v7704_v8 = vld [vmem:[%s9974_s5 + $0x250] sm:$0xff]   ;;  %vm869_vm0 = vsmask.f32 256 }
  0x13   : > { %6375 = vmatpush3.bf16.msra.mxu0 %v7698_v2  ;;  %7095 = vmatpush3.bf16.msra.mxu1 %v7697_v1  ;;  %v7705_v9 = vld [vmem:[%s9974_s5 + $0x298] sm:$0xff]   ;;  %v7708_v12 = vld [vmem:[%s9974_s5 + $0x2a0] sm:$0xff]   ;;  %p1027_p8 = scmp.ge.s32.totalorder %s8071_s18, 1  ;;  %p1028_p9 = scmp.le.s32.totalorder %s8071_s18, 8  ;;  %v7711_v15 = vld [vmem:[%s9974_s5 + $0x2a8] sm:$0xff]   ;;  %vm4045_vm7 = vcmask 1046528  }
  0x14   : > { %6376 = vmatprep.subr.bf16.mxu0 %v7699_v3  ;;  %s10016_s16 = smov (!%p5645_p6, %s450_s16), 7  ;;  %7096 = vmatprep.subr.bf16.mxu1 %v7700_v4  ;;  %v7706_v10 = vld [vmem:[%s9974_s5 + $0x2d8] sm:$0xff]   ;;  %v7709_v13 = vld [vmem:[%s9974_s5 + $0x2e0] sm:$0xff]   ;;  %p467_p10 = scmp.gt.s32.totalorder %s8071_s18, 0  ;;  %v7712_v16 = vld [vmem:[%s9974_s5 + $0x2e8] sm:$0xff]   ;;  %vm5455_vm8 = vcmask 1041408  }
  0x15   : > { %s454_s10 = sadd.s32 %s10016_s16, %s8044_s19  ;;  %v7707_v11 = vld [vmem:[%s9974_s5 + $0x258] sm:$0xff]   ;;  %v7710_v14 = vld [vmem:[%s9974_s5 + $0x260] sm:$0xff]   ;;  %p5653_p11 = scmp.lt.s32.totalorder %s8071_s18, 7  ;;  %v7713_v17 = vld [vmem:[%s9974_s5 + $0x268] sm:$0xff]   ;;  %vm2575_vm6 = vsmask.f32 7424 }
  0x16   : > { %p455_p7 = scmp.lt.s32.totalorder %s454_s10, 15  ;;  %s1228_s15 = sadd.s32 2, %s7934_s24  ;;  %v7714_v18 = vld [vmem:[%s9974_s5 + $0x2b0] sm:$0xff]   ;;  %v7717_v21 = vld [vmem:[%s9974_s5 + $0x2b8] sm:$0xff]   ;;  %v8141_v23 = vld [vmem:[%s9972_s3] ss:$0 sm:$0xff] }
  0x17   : > { %6377 = vmatpush3.bf16.msra.mxu0 %v7701_v5  ;;  %7097 = vmatpush3.bf16.msra.mxu1 %v7700_v4  ;;  %s468_s13 = scalar_select %p467_p10, %s8071_s18, 0  ;;  %v7715_v19 = vld [vmem:[%s9974_s5 + $0x2f0] sm:$0xff]   ;;  %v7718_v22 = vld [vmem:[%s9974_s5 + $0x2f8] sm:$0xff]   ;;  %v8153_v25 = vld [vmem:[%s9973_s4] ss:$0 sm:$0xff] }
  0x18   : > { %6378 = vmatprep.subr.bf16.mxu0 %v7702_v6  ;;  %7098 = vmatprep.subr.bf16.mxu1 %v7703_v7  ;;  %s10018_s10 = smov (!%p455_p7, %s454_s10), 15  ;;  %p8098_p12 = scmp.ge.s32.totalorder %s1228_s15, 1  ;;  %v7716_v20 = vld [vmem:[%s9974_s5 + $0x270] sm:$0xff]   ;;  %v7719_v28 = vld [vmem:[%s9974_s5 + $0x278] sm:$0xff]   ;;  %v7720_v32 = vld [vmem:[%s9974_s5 + $0x40] sm:$0xff]  }
  0x19   : > { %s6306_s8 = sshll.u32 %s10018_s10, 6  ;;  %s10020_s13 = smov (!%p5653_p11, %s468_s13), 7  ;;  %v7721_v36 = vld [vmem:[%s9974_s5 + $0x4c0] sm:$0xff]   ;;  %vm8232_vm5 = vmand %vm942_vm2, %vm869_vm0  ;;  %v7746_v44 = vld [vmem:[%s9974_s5 + $0x4e8] sm:$0xff]  }
  0x1a   : > { %s472_s23 = sadd.s32 %s10020_s13, %s8044_s19  ;;  %p8106_p13 = scmp.le.s32.totalorder %s1228_s15, 8  ;;  %v7792_v6 = vld [vmem:[%s9974_s5 + $0x160] sm:$0xff]  }
  0x1b   : > { %6379 = vmatpush3.bf16.msra.mxu0 %v7704_v8  ;;  %7099 = vmatpush3.bf16.msra.mxu1 %v7703_v7  ;;  %p8117_p0 = pnand %p1028_p9, %p1027_p8  ;;  %p473_p1 = scmp.lt.s32.totalorder %s472_s23, 15 }
  0x1c   : > { %6380 = vmatprep.subr.bf16.mxu0 %v7705_v9  ;;  %7100 = vmatprep.subr.bf16.mxu1 %v7706_v10  ;;  %s8124_s10 = scalar_lea.vmem %s9970_s1, %s6306_s8  ;;  %s8127_s15 = sadd.s32 4294967295, %s7934_s24 }
  0x1d   : > { %s10022_s23 = smov (!%p473_p1, %s472_s23), 15  ;;  %p1231_p2 = pnand %p8106_p13, %p8098_p12  ;;  %v946_v24 = vld [vmem:[%s8124_s10] ss:$8 sps:$4 sm:$0xff]  }
  0x1e   : > { %s5669_s13 = scalar_select %p8117_p0, 0, 1  ;;  %v962_v26 = vunpack.c.l.bf16 %v946_v24  ;;  %v964_v27 = vunpack.c.h.bf16 %v946_v24 }
  0x1f   : > { %6381 = vmatpush3.bf16.msra.mxu0 %v7707_v11  ;;  %7101 = vmatpush3.bf16.msra.mxu1 %v7706_v10  ;;  %s6309_s17 = sshll.u32 %s10022_s23, 6  ;;  %p431_p3 = scmp.gt.s32.totalorder %s8127_s15, 0 }
  0x20   : > { %6382 = vmatprep.subr.bf16.mxu0 %v7708_v12  ;;  %7102 = vmatprep.subr.bf16.mxu1 %v7709_v13  ;;  %s8159_s22 = scalar_lea.vmem %s9971_s2, %s6309_s17  ;;  %p5637_p4 = scmp.lt.s32.totalorder %s8127_s15, 7  ;;  %v978_v29 = vmul.f32 %v8141_v23, %v962_v26  ;;  %v8166_v30 = vstv %s5669_s13  ;;  %v980_v33 = vmul.f32 %v8141_v23, %v964_v27  ;;  %v8247_v26 = vld [vmem:[%s8124_s10 + $0x10] ss:$8 sps:$4 sm:$0xff]  }
  0x21   : > { %v1148_v31 = vld [vmem:[%s8159_s22] ss:$8 sps:$4 sm:$0xff]   ;;  %s5670_s23 = scalar_select %p1231_p2, 0, 1  ;;  %vm1033_vm1 = vcmp.eq.s32.totalorder %v8166_v30, 1  ;;  %v7759_v30 = vld [vmem:[%s9974_s5 + $0x98] sm:$0xff]  }
  0x22   : > { %v1164_v34 = vunpack.c.l.bf16 %v1148_v31  ;;  %s432_s14 = scalar_select %p431_p3, %s8127_s15, 0  ;;  %v1166_v35 = vunpack.c.h.bf16 %v1148_v31  ;;  %v994_v37 = vadd.f32 %v8153_v25, %v978_v29  ;;  %v996_v39 = vadd.f32 %v8153_v25, %v980_v33  ;;  %v1152_v47 = vld [vmem:[%s8159_s22 + $0x10] ss:$8 sps:$4 sm:$0xff]  }
  0x23   : > { %6383 = vmatpush3.bf16.msra.mxu0 %v7710_v14  ;;  %7103 = vmatpush3.bf16.msra.mxu1 %v7709_v13  ;;  %v1234_v38 = vstv %s5670_s23  ;;  %p806_p5 = scmp.ge.s32.totalorder %s7934_s24, 1  ;;  %p807_p6 = scmp.le.s32.totalorder %s7934_s24, 8  ;;  %v1168_v49 = vunpack.c.l.bf16 %v1152_v47  ;;  %v1170_v50 = vunpack.c.h.bf16 %v1152_v47  ;;  %v7725_v47 = vld [vmem:[%s9974_s5 + $0x8] sm:$0xff]  }
  0x24   : > { %6384 = vmatprep.subr.bf16.mxu0 %v7711_v15  ;;  %7104 = vmatprep.subr.bf16.mxu1 %v7712_v16  ;;  %v1180_v40 = vmul.f32 %v8141_v23, %v1164_v34  ;;  %s10024_s14 = smov (!%p5637_p4, %s432_s14), 7  ;;  %v1182_v41 = vmul.f32 %v8141_v23, %v1166_v35  ;;  %v1010_v42 = vmax.f32 %v994_v37, 0.0  ;;  %vm8198_vm3 = vcmp.eq.s32.totalorder %v1234_v38, 1  ;;  %s486_s8 = sadd.s32 %s7934_s24, %s8044_s19 }
  0x25   : > { %p8193_p7 = pnand %p807_p6, %p806_p5  ;;  %s436_s9 = sadd.s32 %s10024_s14, %s8044_s19  ;;  %v1012_v46 = vmax.f32 %v996_v39, 0.0  ;;  %v1184_v57 = vmul.f32 %v8141_v23, %v1168_v49  ;;  %v1186_v58 = vmul.f32 %v8141_v23, %v1170_v50 }
  0x26   : > { %v1196_v43 = vadd.f32 %v8153_v25, %v1180_v40  ;;  %v1198_v45 = vadd.f32 %v8153_v25, %v1182_v41  ;;  %v1050_v48 = vsel %vm1033_vm1, %v1010_v42, 0.0  ;;  %p437_p8 = scmp.lt.s32.totalorder %s436_s9, 15  ;;  %v7724_v40 = vld [vmem:[%s9974_s5 + $0x48] sm:$0xff]   ;;  %p487_p9 = scmp.lt.s32.totalorder %s486_s8, 15 }
  0x27   : > { %6385 = vmatpush3.bf16.msra.mxu0 %v7713_v17  ;;  %7105 = vmatpush3.bf16.msra.mxu1 %v7712_v16  ;;  %v1066_v52 = vpack.c.bf16 %v7952_v51, %v1050_v48  ;;  %s5668_s15 = scalar_select %p8193_p7, 0, 1  ;;  %v1052_v55 = vsel %vm1033_vm1, %v1012_v46, 0.0  ;;  %v1200_v5 = vadd.f32 %v8153_v25, %v1184_v57  ;;  %v1202_v11 = vadd.f32 %v8153_v25, %v1186_v58 }
  0x28   : > { %6386 = vmatprep.subr.bf16.mxu0 %v7714_v18  ;;  %7106 = vmatprep.subr.bf16.mxu1 %v7715_v19  ;;  %v1212_v53 = vmax.f32 %v1196_v43, 0.0  ;;  %v1214_v54 = vmax.f32 %v1198_v45, 0.0  ;;  %s10026_s9 = smov (!%p437_p8, %s436_s9), 15  ;;  %v1067_v56 = vpack.c.bf16 %v7952_v51, %v1052_v55  ;;  %v966_v43 = vunpack.c.l.bf16 %v8247_v26  ;;  %s10028_s8 = smov (!%p487_p9, %s486_s8), 15 }
  0x29   : > { %v1075_v59 = vshrl.u32 %v1066_v52, 16  ;;  %v1078_v60 = vshll.u32 %v1066_v52, 16  ;;  %v8217_v62 = vstv %s5668_s15  ;;  %s6303_s17 = sshll.u32 %s10026_s9, 6  ;;  %v1216_v18 = vmax.f32 %v1200_v5, 0.0  ;;  %s6310_s24 = sshll.u32 %s10028_s8, 6 }
  0x2a   : > { %v1252_v61 = vsel %vm8198_vm3, %v1212_v53, 0.0  ;;  %vm828_vm4 = vcmp.eq.s32.totalorder %v8217_v62, 1  ;;  %v1254_v0 = vsel %vm8198_vm3, %v1214_v54, 0.0  ;;  %v1082_v1 = vshrl.u32 %v1067_v56, 16  ;;  %s8226_s12 = scalar_lea.vmem %s9969_s0, %s6303_s17  ;;  %v7726_v54 = vld [vmem:[%s9974_s5 + $0x50] sm:$0xff]   ;;  %s9919_s14 = scalar_lea.vmem %s9975_s6, %s6310_s24 }
  0x2b   : > { %6387 = vmatpush3.bf16.msra.mxu0 %v7716_v20  ;;  %7107 = vmatpush3.bf16.msra.mxu1 %v7715_v19  ;;  %v1268_v63 = vpack.c.bf16 %v7952_v51, %v1252_v61  ;;  %v1077_v2 = vrot.slane %v1075_v59, 7  ;;  %v1269_v3 = vpack.c.bf16 %v7952_v51, %v1254_v0  ;;  %v1085_v4 = vshll.u32 %v1067_v56, 16  ;;  %v503_v9 = vld [vmem:[%s8226_s12] ss:$8 sps:$4 sm:$0xff]   ;;  %v8260_v33 = vld [vmem:[%s8226_s12 + $0x10] ss:$8 sps:$4 sm:$0xff]  }
  0x2c   : > { %6388 = vmatprep.subr.bf16.mxu0 %v7717_v21  ;;  %7108 = vmatprep.subr.bf16.mxu1 %v7718_v22  ;;  %v8237_v10 = vrot.slane %v1082_v1, 7  ;;  %v519_v13 = vunpack.c.l.bf16 %v503_v9  ;;  %v521_v19 = vunpack.c.h.bf16 %v503_v9  ;;  %v1218_v24 = vmax.f32 %v1202_v11, 0.0  ;;  %s5665_s13 = sshll.u32 %s10028_s8, 3 }
  0x2d   : > { %v1277_v7 = vshrl.u32 %v1268_v63, 16  ;;  %v1280_v8 = vshll.u32 %v1268_v63, 16  ;;  %v1080_v12 = vor.u32 %v1078_v60, %v1077_v2  ;;  %v1284_v14 = vshrl.u32 %v1269_v3, 16  ;;  %s499_s9 = scalar_lea.vmem %s9976_s7, %s5665_s13 }
  0x2e   : > { %v1287_v15 = vshll.u32 %v1269_v3, 16  ;;  %v1087_v17 = vor.u32 %v1085_v4, %v8237_v10  ;;  %v542_v21 = vmul.f32 %v8141_v23, %v519_v13  ;;  %v1256_v29 = vsel %vm8198_vm3, %v1216_v18, 0.0  ;;  %v7728_v3 = vld [vmem:[%s9974_s5 + $0x10] sm:$0xff]  }
  0x2f   : > { %6389 = vmatpush3.bf16.msra.mxu0 %v7719_v28  ;;  %7109 = vmatpush3.bf16.msra.mxu1 %v7718_v22  ;;  %v1279_v16 = vrot.slane %v1277_v7, 7  ;;  %v8243_v20 = vsel %vm8232_vm5, 0, %v1080_v12  ;;  %v1286_v22 = vrot.slane %v1284_v14, 7  ;;  %v544_v31 = vmul.f32 %v8141_v23, %v521_v19  ;;  %v8308_v7 = vld [vmem:[%s8159_s22 + $0x30] ss:$8 sps:$4 sm:$0xff]  }
  0x30   : > { %6454 = vmatprep.subr.bf16.mxu1 %v7720_v32  ;;  %6534 = vmatprep.subr.bf16.mxu0 %v7721_v36  ;;  %v8251_v28 = vsel %vm869_vm0, %v1077_v2, %v1087_v17  ;;  %v8257_v32 = vld [vmem:[%s8159_s22 + $0x20] ss:$8 sps:$4 sm:$0xff]   ;;  %v565_v34 = vadd.f32 %v8153_v25, %v542_v21  ;;  %v1270_v37 = vpack.c.bf16 %v7952_v51, %v1256_v29  ;;  %v1258_v38 = vsel %vm8198_vm3, %v1218_v24, 0.0  ;;  %v7730_v12 = vld [vmem:[%s9974_s5 + $0x58] sm:$0xff]  }
  0x31   : > { %1623 = vmatprep.mubr.bf16.mxu0 %v8243_v20  ;;  %v1282_v27 = vor.u32 %v1280_v8, %v1279_v16  ;;  %v1289_v35 = vor.u32 %v1287_v15, %v1286_v22  ;;  %v7722_v36 = vld [vmem:[%s9974_s5] sm:$0xff]   ;;  %v567_v41 = vadd.f32 %v8153_v25, %v544_v31  ;;  %v1271_v42 = vpack.c.bf16 %v7952_v51, %v1258_v38  ;;  %v7727_v29 = vld [vmem:[%s9974_s5 + $0x4c8] sm:$0xff]  }
  0x32   : > { %v581_v45 = vmax.f32 %v565_v34, 0.0  ;;  %v1292_v48 = vshrl.u32 %v1270_v37, 16  ;;  %v1295_v49 = vshll.u32 %v1270_v37, 16  ;;  %v982_v55 = vmul.f32 %v8141_v23, %v966_v43  ;;  %v7731_v37 = vld [vmem:[%s9974_s5 + $0x18] sm:$0xff]  }
  0x33   : > { %v8271_v39 = vsel %vm8232_vm5, 0, %v1282_v27  ;;  %v8281_v46 = vsel %vm869_vm0, %v1279_v16, %v1289_v35  ;;  %v583_v50 = vmax.f32 %v567_v41, 0.0  ;;  %v1300_v52 = vshrl.u32 %v1271_v42, 16 }
  0x34   : > { %7110 = vmatprep.mubr.bf16.mxu1 %v8271_v39  ;;  %v1303_v53 = vshll.u32 %v1271_v42, 16  ;;  %v845_v56 = vsel %vm828_vm4, %v581_v45, 0.0  ;;  %v1294_v57 = vrot.slane %v1292_v48, 7  ;;  %v1172_v58 = vunpack.c.l.bf16 %v8257_v32 }
  0x35   : > { %7111 = vmatmul.mubr.bf16.vlgmr.msra.gmra.mrb[0].mxu1 %v8281_v46  ;;  %v523_v59 = vunpack.c.l.bf16 %v8260_v33  ;;  %v861_v60 = vpack.c.bf16 %v7952_v51, %v845_v56  ;;  %v847_v61 = vsel %vm828_vm4, %v583_v50, 0.0  ;;  %v8298_v63 = vrot.slane %v1300_v52, 7 }
  0x36   : > { %6455 = vmatpush3.bf16.msra.mxu1 %v7722_v36  ;;  %v998_v0 = vadd.f32 %v8153_v25, %v982_v55  ;;  %v1297_v1 = vor.u32 %v1295_v49, %v1294_v57  ;;  %v862_v2 = vpack.c.bf16 %v7952_v51, %v847_v61  ;;  %v1188_v4 = vmul.f32 %v8141_v23, %v1172_v58  ;;  %v7734_v61 = vld [vmem:[%s9974_s5 + $0x20] sm:$0xff]  }
  0x37   : > { %6456 = vmatprep.subr.bf16.mxu1 %v7724_v40  ;;  %v546_v5 = vmul.f32 %v8141_v23, %v523_v59  ;;  %v871_v8 = vshrl.u32 %v861_v60, 16  ;;  %v874_v9 = vshll.u32 %v861_v60, 16  ;;  %v1305_v11 = vor.u32 %v1303_v53, %v8298_v63  ;;  %v7729_v53 = vld [vmem:[%s9974_s5 + $0x488] sm:$0xff]   ;;  %v7733_v60 = vld [vmem:[%s9974_s5 + $0x4d0] sm:$0xff]  }
  0x38   : > { %v1014_v13 = vmax.f32 %v998_v0, 0.0  ;;  %v8315_v14 = vsel %vm869_vm0, %v1286_v22, %v1297_v1  ;;  %v878_v15 = vshrl.u32 %v862_v2, 16  ;;  %v881_v16 = vshll.u32 %v862_v2, 16  ;;  %v7723_v22 = vld [vmem:[%s9974_s5 + $0x480] sm:$0xff]  }
  0x39   : > { %v1204_v17 = vadd.f32 %v8153_v25, %v1188_v4  ;;  %v873_v18 = vrot.slane %v871_v8, 7  ;;  %7114 = vmatprep.mubr.bf16.mxu1 %v8315_v14  ;;  %v8320_v19 = vsel %vm869_vm0, %v1294_v57, %v1305_v11  ;;  %v569_v24 = vadd.f32 %v8153_v25, %v546_v5  ;;  %v7736_v11 = vld [vmem:[%s9974_s5 + $0x68] sm:$0xff]  }
  0x3a   : > { %6457 = vmatpush3.bf16.msra.mxu1 %v7725_v47  ;;  %9993 = vst [vmem:[#allocation2_spill] sm:$0xff] %v8320_v19  ;;  %v1054_v21 = vsel %vm1033_vm1, %v1014_v13, 0.0  ;;  %v8328_v27 = vrot.slane %v878_v15, 7  ;;  %v1174_v35 = vunpack.c.h.bf16 %v8257_v32  ;;  %v968_v40 = vunpack.c.h.bf16 %v8247_v26  ;;  %v7732_v47 = vld [vmem:[%s9974_s5 + $0x60] sm:$0xff]  }
  0x3b   : > { %6458 = vmatprep.subr.bf16.mxu1 %v7726_v54  ;;  %v1068_v31 = vpack.c.bf16 %v7952_v51, %v1054_v21  ;;  %v1220_v34 = vmax.f32 %v1204_v17, 0.0  ;;  %v876_v36 = vor.u32 %v874_v9, %v873_v18  ;;  %v585_v38 = vmax.f32 %v569_v24, 0.0  ;;  %v7735_v9 = vld [vmem:[%s9974_s5 + $0x490] sm:$0xff]  }
  0x3c   : > { %v1176_v41 = vunpack.c.l.bf16 %v8308_v7  ;;  %v883_v42 = vor.u32 %v881_v16, %v8328_v27  ;;  %v1190_v50 = vmul.f32 %v8141_v23, %v1174_v35  ;;  %v984_v56 = vmul.f32 %v8141_v23, %v968_v40  ;;  %v7739_v35 = vld [vmem:[%s9974_s5 + $0x4d8] sm:$0xff]  }
  0x3d   : > { %7115 = vmatmul.mubr.bf16.gmra.mrb[4].mxu1 %v8320_v19  ;;  %v1090_v43 = vshrl.u32 %v1068_v31, 16  ;;  %v1093_v45 = vshll.u32 %v1068_v31, 16  ;;  %v1260_v32 = vsel %vm8198_vm3, %v1220_v34, 0.0  ;;  %v8349_v48 = vsel %vm8232_vm5, 0, %v876_v36  ;;  %v7737_v31 = vld [vmem:[%s9974_s5 + $0x28] sm:$0xff]  }
  0x3e   : > { %6459 = vmatpush3.bf16.msra.mxu1 %v7728_v3  ;;  %v1272_v26 = vpack.c.bf16 %v7952_v51, %v1260_v32  ;;  %v849_v49 = vsel %vm828_vm4, %v585_v38, 0.0  ;;  %1624 = vmatmul.mubr.bf16.vlgmr.msra.gmra.mrb[0].mxu0 %v8349_v48  ;;  %v8357_v52 = vsel %vm869_vm0, %v873_v18, %v883_v42  ;;  %v1206_v59 = vadd.f32 %v8153_v25, %v1190_v50  ;;  %v8410_v36 = vld [vmem:[%s8124_s10 + $0x20] ss:$8 sps:$4 sm:$0xff]   ;;  %v7738_v42 = vld [vmem:[%s9974_s5 + $0x70] sm:$0xff]  }
  0x3f   : > { %6460 = vmatprep.subr.bf16.mxu1 %v7730_v12  ;;  %v8362_v54 = vrot.slane %v1090_v43, 7  ;;  %v863_v55 = vpack.c.bf16 %v7952_v51, %v849_v49  ;;  %6535 = vmatpush3.bf16.msra.mxu0 %v7723_v22  ;;  %v1192_v0 = vmul.f32 %v8141_v23, %v1176_v41  ;;  %v1000_v4 = vadd.f32 %v8153_v25, %v984_v56  ;;  %v7740_v32 = vld [vmem:[%s9974_s5 + $0x30] sm:$0xff]  }
  0x40   : > { %1631 = vmatprep.mubr.bf16.mxu0 %v8251_v28  ;;  %v1308_v57 = vshrl.u32 %v1272_v26, 16  ;;  %v1311_v58 = vshll.u32 %v1272_v26, 16  ;;  %6536 = vmatprep.subr.bf16.mxu0 %v7727_v29  ;;  %v1222_v8 = vmax.f32 %v1206_v59, 0.0  ;;  %v525_v13 = vunpack.c.h.bf16 %v8260_v33 }
  0x41   : > { %v1095_v1 = vor.u32 %v1093_v45, %v8362_v54  ;;  %v886_v2 = vshrl.u32 %v863_v55, 16  ;;  %v889_v3 = vshll.u32 %v863_v55, 16  ;;  %v1208_v12 = vadd.f32 %v8153_v25, %v1192_v0  ;;  %v7741_v55 = vld [vmem:[%s9974_s5 + $0x498] sm:$0xff]  }
  0x42   : > { %6461 = vmatpush3.bf16.msra.mxu1 %v7731_v37  ;;  %v8377_v5 = vrot.slane %v1308_v57, 7  ;;  %v1016_v17 = vmax.f32 %v1000_v4, 0.0  ;;  %v1178_v18 = vunpack.c.h.bf16 %v8308_v7  ;;  %v1262_v24 = vsel %vm8198_vm3, %v1222_v8, 0.0 }
  0x43   : > { %6462 = vmatprep.subr.bf16.mxu1 %v7732_v47  ;;  %v8389_v15 = vsel %vm869_vm0, %v8237_v10, %v1095_v1  ;;  %v8391_v16 = vrot.slane %v886_v2, 7  ;;  %6537 = vmatpush3.bf16.msra.mxu0 %v7729_v53  ;;  %v1224_v22 = vmax.f32 %v1208_v12, 0.0  ;;  %v548_v29 = vmul.f32 %v8141_v23, %v525_v13  ;;  %v511_v47 = vld [vmem:[%s8226_s12 + $0x20] ss:$8 sps:$4 sm:$0xff]  }
  0x44   : > { %v1313_v21 = vor.u32 %v1311_v58, %v8377_v5  ;;  %v1273_v10 = vpack.c.bf16 %v7952_v51, %v1262_v24  ;;  %6538 = vmatprep.subr.bf16.mxu0 %v7733_v60  ;;  %v1056_v7 = vsel %vm1033_vm1, %v1016_v17, 0.0  ;;  %v1194_v34 = vmul.f32 %v8141_v23, %v1178_v18  ;;  %v7744_v60 = vld [vmem:[%s9974_s5 + $0x4e0] sm:$0xff]   ;;  %v8465_v24 = vld [vmem:[%s8124_s10 + $0x30] ss:$8 sps:$4 sm:$0xff]  }
  0x45   : > { %v891_v33 = vor.u32 %v889_v3, %v8391_v16  ;;  %v1069_v38 = vpack.c.bf16 %v7952_v51, %v1056_v7  ;;  %v1264_v40 = vsel %vm8198_vm3, %v1224_v22, 0.0  ;;  %v571_v41 = vadd.f32 %v8153_v25, %v548_v29  ;;  %v7742_v3 = vld [vmem:[%s9974_s5 + $0x78] sm:$0xff]   ;;  %v7745_v18 = vld [vmem:[%s9974_s5 + $0x4a0] sm:$0xff]  }
  0x46   : > { %6463 = vmatpush3.bf16.msra.mxu1 %v7734_v61  ;;  %v8414_v37 = vsel %vm869_vm0, %v8298_v63, %v1313_v21  ;;  %1632 = vmatmul.mubr.bf16.gmra.mrb[4].mxu0 %v8357_v52  ;;  %v1316_v43 = vshrl.u32 %v1273_v10, 16  ;;  %v1319_v45 = vshll.u32 %v1273_v10, 16  ;;  %v1274_v63 = vpack.c.bf16 %v7952_v51, %v1264_v40  ;;  %v8481_v7 = vld [vmem:[%s9974_s5 + $0x80] sm:$0xff]  }
  0x47   : > { %9994 = vst [vmem:[#allocation3_spill] sm:$0xff] %v8414_v37  ;;  %6464 = vmatprep.subr.bf16.mxu1 %v7736_v11  ;;  %7118 = vmatprep.mubr.bf16.mxu1 %v8414_v37  ;;  %v1098_v26 = vshrl.u32 %v1069_v38, 16  ;;  %v1101_v49 = vshll.u32 %v1069_v38, 16  ;;  %v587_v50 = vmax.f32 %v571_v41, 0.0  ;;  %v1210_v53 = vadd.f32 %v8153_v25, %v1194_v34 }
  0x48   : > { %1639 = vmatprep.mubr.bf16.mxu0 %v8389_v15  ;;  %6539 = vmatpush3.bf16.msra.mxu0 %v7735_v9  ;;  %v1318_v56 = vrot.slane %v1316_v43, 7  ;;  %v1324_v57 = vshrl.u32 %v1274_v63, 16  ;;  %v1327_v58 = vshll.u32 %v1274_v63, 16  ;;  %v970_v59 = vunpack.c.l.bf16 %v8410_v36 }
  0x49   : > { %6540 = vmatprep.subr.bf16.mxu0 %v7739_v35  ;;  %v8441_v61 = vsel %vm869_vm0, %v8328_v27, %v891_v33  ;;  %v8443_v0 = vrot.slane %v1098_v26, 7  ;;  %v851_v1 = vsel %vm828_vm4, %v587_v50, 0.0  ;;  %v1226_v2 = vmax.f32 %v1210_v53, 0.0  ;;  %v7743_v27 = vld [vmem:[%s9974_s5 + $0x38] sm:$0xff]   ;;  %v7748_v53 = vld [vmem:[%s9974_s5 + $0x4f0] sm:$0xff]  }
  0x4a   : > { %6465 = vmatpush3.bf16.msra.mxu1 %v7737_v31  ;;  %v1321_v4 = vor.u32 %v1319_v45, %v1318_v56  ;;  %v8450_v8 = vrot.slane %v1324_v57, 7  ;;  %v864_v9 = vpack.c.bf16 %v7952_v51, %v851_v1  ;;  %v986_v11 = vmul.f32 %v8141_v23, %v970_v59  ;;  %v8476_v31 = vld [vmem:[%s8226_s12 + $0x30] ss:$8 sps:$4 sm:$0xff]  }
  0x4b   : > { %6466 = vmatprep.subr.bf16.mxu1 %v7738_v42  ;;  %v1103_v12 = vor.u32 %v1101_v49, %v8443_v0  ;;  %v1266_v13 = vsel %vm8198_vm3, %v1226_v2, 0.0  ;;  %v527_v17 = vunpack.c.l.bf16 %v511_v47  ;;  %v972_v21 = vunpack.c.h.bf16 %v8410_v36 }
  0x4c   : > { %6541 = vmatpush3.bf16.msra.mxu0 %v7741_v55  ;;  %v8469_v22 = vsel %vm869_vm0, %v8377_v5, %v1321_v4  ;;  %v1329_v29 = vor.u32 %v1327_v58, %v8450_v8  ;;  %v894_v33 = vshrl.u32 %v864_v9, 16  ;;  %v897_v10 = vshll.u32 %v864_v9, 16 }
  0x4d   : > { %9995 = vst [vmem:[#allocation4_spill] sm:$0xff] %v8469_v22  ;;  %6542 = vmatprep.subr.bf16.mxu0 %v7744_v60  ;;  %7119 = vmatmul.mubr.bf16.gmra.mrb[8].mxu1 %v8469_v22  ;;  %v8486_v5 = vsel %vm869_vm0, %v8362_v54, %v1103_v12  ;;  %v1275_v34 = vpack.c.bf16 %v7952_v51, %v1266_v13  ;;  %v529_v36 = vunpack.c.h.bf16 %v511_v47  ;;  %v974_v50 = vunpack.c.l.bf16 %v8465_v24 }
  0x4e   : > { %6467 = vmatpush3.bf16.msra.mxu1 %v7740_v32  ;;  %v1002_v35 = vadd.f32 %v8153_v25, %v986_v11  ;;  %1640 = vmatmul.mubr.bf16.gmra.mrb[8].mxu0 %v8441_v61  ;;  %v8492_v38 = vsel %vm869_vm0, %v1318_v56, %v1329_v29  ;;  %v8494_v40 = vrot.slane %v894_v33, 7  ;;  %v550_v41 = vmul.f32 %v8141_v23, %v527_v17  ;;  %v7747_v32 = vld [vmem:[%s9974_s5 + $0x4a8] sm:$0xff]   ;;  %v7749_v11 = vld [vmem:[%s9974_s5 + $0x4b0] sm:$0xff]  }
  0x4f   : > { %6468 = vmatprep.subr.bf16.mxu1 %v7742_v3  ;;  %9996 = vst [vmem:[#allocation5_spill] sm:$0xff] %v8492_v38  ;;  %v988_v42 = vmul.f32 %v8141_v23, %v972_v21  ;;  %1647 = vmatprep.mubr.bf16.mxu0 %v8486_v5  ;;  %v1332_v54 = vshrl.u32 %v1275_v34, 16  ;;  %v1335_v43 = vshll.u32 %v1275_v34, 16  ;;  %v552_v63 = vmul.f32 %v8141_v23, %v529_v36 }
  0x50   : > { %7122 = vmatprep.mubr.bf16.mxu1 %v8492_v38  ;;  %v1018_v45 = vmax.f32 %v1002_v35, 0.0  ;;  %v899_v47 = vor.u32 %v897_v10, %v8494_v40  ;;  %v573_v26 = vadd.f32 %v8153_v25, %v550_v41  ;;  %6543 = vmatpush3.bf16.msra.mxu0 %v7745_v18  ;;  %v531_v58 = vunpack.c.l.bf16 %v8476_v31  ;;  %v7750_v10 = vld [vmem:[%s9974_s5 + $0x4f8] sm:$0xff]  }
  0x51   : > { %v1004_v49 = vadd.f32 %v8153_v25, %v988_v42  ;;  %v8511_v55 = vrot.slane %v1332_v54, 7  ;;  %v575_v57 = vadd.f32 %v8153_v25, %v552_v63  ;;  %6544 = vmatprep.subr.bf16.mxu0 %v7746_v44  ;;  %v990_v9 = vmul.f32 %v8141_v23, %v974_v50 }
  0x52   : > { %6469 = vmatpush3.bf16.msra.mxu1 %v7743_v27  ;;  %v1058_v56 = vsel %vm1033_vm1, %v1018_v45, 0.0  ;;  %v8520_v59 = vsel %vm869_vm0, %v8391_v16, %v899_v47  ;;  %v589_v1 = vmax.f32 %v573_v26, 0.0  ;;  %v554_v27 = vmul.f32 %v8141_v23, %v531_v58  ;;  %v7751_v26 = vld [vmem:[%s9974_s5 + $0x4b8] sm:$0xff]  }
  0x53   : > { %7126 = vmatprep.subr.bf16.mxu1 %v8481_v7  ;;  %v1070_v60 = vpack.c.bf16 %v7952_v51, %v1058_v56  ;;  %v1020_v2 = vmax.f32 %v1004_v49, 0.0  ;;  %v1337_v3 = vor.u32 %v1335_v43, %v8511_v55  ;;  %v591_v4 = vmax.f32 %v575_v57, 0.0  ;;  %v7753_v57 = vld [vmem:[%s9974_s5 + $0x100] sm:$0xff]  }
  0x54   : > { %v853_v16 = vsel %vm828_vm4, %v589_v1, 0.0  ;;  %6545 = vmatpush3.bf16.msra.mxu0 %v7747_v32  ;;  %v1006_v34 = vadd.f32 %v8153_v25, %v990_v9  ;;  %v577_v35 = vadd.f32 %v8153_v25, %v554_v27  ;;  %v7953_v36 = vmov 0  }
  0x55   : > { %v1106_v12 = vshrl.u32 %v1070_v60, 16  ;;  %v1109_v13 = vshll.u32 %v1070_v60, 16  ;;  %v1060_v17 = vsel %vm1033_vm1, %v1020_v2, 0.0  ;;  %v8535_v18 = vsel %vm869_vm0, %v8450_v8, %v1337_v3  ;;  %6546 = vmatprep.subr.bf16.mxu0 %v7748_v53 }
  0x56   : > { %9997 = vst [vmem:[#allocation6_spill] sm:$0xff] %v8535_v18  ;;  %v865_v21 = vpack.c.bf16 %v7952_v51, %v853_v16  ;;  %v1071_v29 = vpack.c.bf16 %v7952_v51, %v1060_v17  ;;  %v855_v33 = vsel %vm828_vm4, %v591_v4, 0.0  ;;  %1648 = vmatmul.mubr.bf16.gmra.mrb[12].mxu0 %v8520_v59  ;;  %7123 = vmatmul.mubr.bf16.gmra.mrb[12].mxu1 %v8535_v18  ;;  %v1022_v47 = vmax.f32 %v1006_v34, 0.0  ;;  %v7755_v17 = vld [vmem:[%s9974_s5 + $0x88] sm:$0xff]   ;;  %v7756_v34 = vld [vmem:[%s9974_s5 + $0x90] sm:$0xff]  }
  0x57   : > { %v1108_v44 = vrot.slane %v1106_v12, 7  ;;  %v866_v8 = vpack.c.bf16 %v7952_v51, %v855_v33  ;;  %1961 = vmatprep.mubr.bf16.mxu1 %v7953_v36  ;;  %v593_v53 = vmax.f32 %v577_v35, 0.0  ;;  %v976_v56 = vunpack.c.h.bf16 %v8465_v24 }
  0x58   : > { %v902_v41 = vshrl.u32 %v865_v21, 16  ;;  %v905_v42 = vshll.u32 %v865_v21, 16  ;;  %v1114_v54 = vshrl.u32 %v1071_v29, 16  ;;  %v1117_v43 = vshll.u32 %v1071_v29, 16  ;;  %6547 = vmatpush3.bf16.msra.mxu0 %v7749_v11 }
  0x59   : > { %v1111_v45 = vor.u32 %v1109_v13, %v1108_v44  ;;  %v910_v63 = vshrl.u32 %v866_v8, 16  ;;  %v913_v32 = vshll.u32 %v866_v8, 16  ;;  %6548 = vmatprep.subr.bf16.mxu0 %v7750_v10  ;;  %v1062_v1 = vsel %vm1033_vm1, %v1022_v47, 0.0 }
  0x5a   : > { %v904_v49 = vrot.slane %v902_v41, 7  ;;  %v1116_v50 = vrot.slane %v1114_v54, 7  ;;  %v533_v2 = vunpack.c.h.bf16 %v8476_v31  ;;  %v1072_v24 = vpack.c.bf16 %v7952_v51, %v1062_v1  ;;  %v7763_v1 = vld [vmem:[%s9974_s5 + $0xa8] sm:$0xff]  }
  0x5b   : > { %v8559_v58 = vsel %vm869_vm0, %v8443_v0, %v1111_v45  ;;  %v912_v60 = vrot.slane %v910_v63, 7  ;;  %v857_v9 = vsel %vm828_vm4, %v593_v53, 0.0  ;;  %v992_v0 = vmul.f32 %v8141_v23, %v976_v56 }
  0x5c   : > { %1655 = vmatprep.mubr.bf16.mxu0 %v8559_v58  ;;  %v907_v3 = vor.u32 %v905_v42, %v904_v49  ;;  %v1119_v4 = vor.u32 %v1117_v43, %v1116_v50  ;;  %v867_v27 = vpack.c.bf16 %v7952_v51, %v857_v9  ;;  %v556_v11 = vmul.f32 %v8141_v23, %v533_v2  ;;  %v7764_v2 = vld [vmem:[%s9974_s5 + $0xb0] sm:$0xff]   ;;  %v7754_v9 = vld [vmem:[%s9974_s5 + $0xc0] sm:$0xff]  }
  0x5d   : > { %6549 = vmatpush3.bf16.msra.mxu0 %v7751_v26  ;;  %v1122_v13 = vshrl.u32 %v1072_v24, 16  ;;  %v1125_v16 = vshll.u32 %v1072_v24, 16  ;;  %v1008_v23 = vadd.f32 %v8153_v25, %v992_v0  ;;  %v7768_v24 = vld [vmem:[%s9974_s5 + $0x500] sm:$0xff]   ;;  %v7758_v0 = vld [vmem:[%s9974_s5 + $0xc8] sm:$0xff]  }
  0x5e   : > { %v8573_v12 = vsel %vm869_vm0, %v8494_v40, %v907_v3  ;;  %v8576_v31 = vsel %vm869_vm0, %v1108_v44, %v1119_v4  ;;  %6614 = vmatprep.subr.bf16.mxu0 %v7753_v57  ;;  %1962 = vmatmul.mubr.bf16.vlgmr.msra.gmra.mrb[16].mxu1 %v7953_v36  ;;  %v915_v40 = vor.u32 %v913_v32, %v912_v60  ;;  %v918_v29 = vshrl.u32 %v867_v27, 16  ;;  %v7767_v4 = vld [vmem:[%s9974_s5 + $0xb8] sm:$0xff]  }
  0x5f   : > { %1656 = vmatmul.mubr.bf16.gmra.mrb[16].mxu0 %v8573_v12  ;;  %1969 = vmatprep.mubr.bf16.mxu1 %v8243_v20  ;;  %v1124_v21 = vrot.slane %v1122_v13, 7  ;;  %v579_v33 = vadd.f32 %v8153_v25, %v556_v11  ;;  %v1024_v10 = vmax.f32 %v1008_v23, 0.0  ;;  %v921_v35 = vshll.u32 %v867_v27, 16  ;;  %v7757_v27 = vld [vmem:[%s9974_s5 + $0x108] sm:$0xff]   ;;  %v7761_v11 = vld [vmem:[%s9974_s5 + $0x110] sm:$0xff]   ;;  %v7769_v23 = vld [vmem:[%s9974_s5 + $0x120] sm:$0xff]  }
  0x60   : > { %1663 = vmatprep.mubr.bf16.mxu0 %v8576_v31  ;;  %7127 = vmatpush3.bf16.msra.mxu1 %v8481_v7  ;;  %v8594_v42 = vsel %vm869_vm0, %v904_v49, %v915_v40  ;;  %v920_v54 = vrot.slane %v918_v29, 7  ;;  %v7760_v49 = vld [vmem:[%s9974_s5 + $0xa0] sm:$0xff]   ;;  %v7762_v13 = vld [vmem:[%s9974_s5 + $0xd0] sm:$0xff]   ;;  %v7774_v29 = vld [vmem:[%s9974_s5 + $0xe8] sm:$0xff]  }
  0x61   : > { %v1127_v44 = vor.u32 %v1125_v16, %v1124_v21  ;;  %v595_v8 = vmax.f32 %v579_v33, 0.0  ;;  %7128 = vmatprep.subr.bf16.mxu1 %v7755_v17  ;;  %v1064_v41 = vsel %vm1033_vm1, %v1024_v10, 0.0  ;;  %v7765_v16 = vld [vmem:[%s9974_s5 + $0x118] sm:$0xff]   ;;  %v7770_v40 = vld [vmem:[%s9974_s5 + $0xe0] sm:$0xff]   ;;  %v7777_v33 = vld [vmem:[%s9974_s5 + $0x130] sm:$0xff]  }
  0x62   : > { %v1073_v25 = vpack.c.bf16 %v7952_v51, %v1064_v41  ;;  %v923_v62 = vor.u32 %v921_v35, %v920_v54  ;;  %v7778_v10 = vld [vmem:[%s9974_s5 + $0xf0] sm:$0xff]   ;;  %v7771_v35 = vld [vmem:[%s9974_s5 + $0x508] sm:$0xff]  }
  0x63   : > { %v859_v7 = vsel %vm828_vm4, %v595_v8, 0.0  ;;  %v8600_v43 = vsel %vm869_vm0, %v1116_v50, %v1127_v44  ;;  %v7781_v44 = vld [vmem:[%s9974_s5 + $0x138] sm:$0xff]   ;;  %v7772_v41 = vld [vmem:[%s9974_s5 + $0x510] sm:$0xff]  }
  0x64   : > { %v868_v45 = vpack.c.bf16 %v7952_v51, %v859_v7  ;;  %7129 = vmatpush3.bf16.msra.mxu1 %v7755_v17  ;;  %v1130_v63 = vshrl.u32 %v1073_v25, 16  ;;  %v1133_v32 = vshll.u32 %v1073_v25, 16  ;;  %v8617_v50 = vsel %vm869_vm0, %v912_v60, %v923_v62  ;;  %v7766_v17 = vld [vmem:[%s9974_s5 + $0xd8] sm:$0xff]   ;;  %v7776_v25 = vld [vmem:[%s9974_s5 + $0x520] sm:$0xff]   ;;  %v7779_v7 = vld [vmem:[%s9974_s5 + $0x528] sm:$0xff]  }
  0x65   : > { %7130 = vmatprep.subr.bf16.mxu1 %v7756_v34  ;;  %v7782_v8 = vld [vmem:[%s9974_s5 + $0xf8] sm:$0xff]  }
  0x66   : > { %1970 = vmatmul.mubr.bf16.gmra.mrb[20].mxu1 %v8349_v48  ;;  %v8610_v47 = vrot.slane %v1130_v63, 7  ;;  %v926_v51 = vshrl.u32 %v868_v45, 16  ;;  %v929_v56 = vshll.u32 %v868_v45, 16  ;;  %v2589_v63 = vshll.u32 %v8243_v20, 16 }
  0x67   : > { %1664 = vmatmul.mubr.bf16.gmra.mrb[20].mxu0 %v8594_v42  ;;  %1977 = vmatprep.mubr.bf16.mxu1 %v8251_v28 }
  0x68   : > { %1671 = vmatprep.mubr.bf16.mxu0 %v8600_v43  ;;  %7131 = vmatpush3.bf16.msra.mxu1 %v7756_v34  ;;  %v1135_v26 = vor.u32 %v1133_v32, %v8610_v47  ;;  %v8619_v53 = vrot.slane %v926_v51, 7  ;;  %v7785_v34 = vld [vmem:[%s9974_s5 + $0x340] sm:$0xff]   ;;  %v8738_v45 = vsel %vm8232_vm5, %v8610_v47, 0  ;;  %v8745_v32 = vrot.slane %v7953_v36, 1 }
  0x69   : > { %7132 = vmatprep.subr.bf16.mxu1 %v7759_v30  ;;  %9998 = vst [vmem:[#allocation7_spill] sm:$0xff] %v8738_v45  ;;  %v2591_v47 = vrot.slane %v2589_v63, 1  ;;  %v2584_v51 = vshll.u32 %v8349_v48, 16  ;;  %v7794_v63 = vld [vmem:[%s9974_s5 + $0x310] sm:$0xff]  }
  0x6a   : > { %v8622_v57 = vsel %vm869_vm0, %v1124_v21, %v1135_v26  ;;  %v931_v60 = vor.u32 %v929_v56, %v8619_v53  ;;  %v7773_v21 = vld [vmem:[%s9974_s5 + $0x128] sm:$0xff]   ;;  %v8754_v62 = vsel %vm8232_vm5, %v8619_v53, 0  ;;  %v2610_v56 = vshll.u32 %v8251_v28, 16 }
  0x6b   : > { %v2592_v26 = vsel %vm2575_vm6, %v8745_v32, %v2591_v47  ;;  %v2586_v53 = vrot.slane %v2584_v51, 1  ;;  %v7797_v51 = vld [vmem:[%s9974_s5 + $0x358] sm:$0xff]  }
  0x6c   : > { %7133 = vmatpush3.bf16.msra.mxu1 %v7759_v30  ;;  %v8636_v3 = vsel %vm869_vm0, %v920_v54, %v931_v60  ;;  %v7775_v54 = vld [vmem:[%s9974_s5 + $0x518] sm:$0xff]   ;;  %v7780_v30 = vld [vmem:[%s9974_s5 + $0x530] sm:$0xff]   ;;  %v2598_v60 = vshrl.u32 %v8349_v48, 16 }
  0x6d   : > { %7134 = vmatprep.subr.bf16.mxu1 %v7760_v49 }
  0x6e   : > { %1978 = vmatmul.mubr.bf16.gmra.mrb[24].mxu1 %v8357_v52 }
  0x6f   : > { %1672 = vmatmul.mubr.bf16.gmra.mrb[24].mxu0 %v8617_v50  ;;  %1985 = vmatprep.mubr.bf16.mxu1 %v8389_v15 }
  0x70   : > { %1679 = vmatprep.mubr.bf16.mxu0 %v8622_v57  ;;  %7135 = vmatpush3.bf16.msra.mxu1 %v7760_v49  ;;  %v2606_v49 = vshrl.u32 %v8243_v20, 16 }
  0x71   : > { %7136 = vmatprep.subr.bf16.mxu1 %v7763_v1 }
  0x74   : > { %7137 = vmatpush3.bf16.msra.mxu1 %v7763_v1  ;;  %v7784_v1 = vld [vmem:[%s9974_s5 + $0x140] sm:$0xff]  }
  0x75   : > { %7138 = vmatprep.subr.bf16.mxu1 %v7764_v2 }
  0x76   : > { %1986 = vmatmul.mubr.bf16.gmra.mrb[28].mxu1 %v8441_v61 }
  0x77   : > { %1680 = vmatmul.mubr.bf16.gmra.mrb[28].mxu0 %v8636_v3  ;;  %1993 = vmatprep.mubr.bf16.mxu1 %v8486_v5 }
  0x78   : > { %2348 = vmatprep.mubr.bf16.mxu0 %v8251_v28  ;;  %7139 = vmatpush3.bf16.msra.mxu1 %v7764_v2  ;;  %v7786_v2 = vld [vmem:[%s9974_s5 + $0x300] sm:$0xff]  }
  0x79   : > { %7140 = vmatprep.subr.bf16.mxu1 %v7767_v4 }
  0x7c   : > { %7141 = vmatpush3.bf16.msra.mxu1 %v7767_v4  ;;  %v7787_v4 = vld [vmem:[%s9974_s5 + $0x148] sm:$0xff]  }
  0x7d   : > { %7158 = vmatprep.subr.bf16.mxu1 %v7768_v24 }
  0x7e   : > { %1994 = vmatmul.mubr.bf16.gmra.mrb[32].mxu1 %v8520_v59 }
  0x7f   : > { %2349 = vmatmul.mubr.bf16.vlgmr.msra.gmra.mrb[32].mxu0 %v8357_v52  ;;  %2001 = vmatprep.mubr.bf16.mxu1 %v8559_v58 }
  0x80   : > { %6615 = vmatpush3.bf16.msra.mxu0 %v7754_v9  ;;  %2356 = vmatprep.mubr.bf16.mxu0 %v8389_v15  ;;  %v2612_v9 = vrot.slane %v2610_v56, 1 }
  0x81   : > { %6616 = vmatprep.subr.bf16.mxu0 %v7757_v27  ;;  %v2602_v27 = vshll.u32 %v8357_v52, 16 }
  0x84   : > { %6617 = vmatpush3.bf16.msra.mxu0 %v7758_v0  ;;  %v2587_v0 = vsel %vm2575_vm6, %v8745_v32, %v2586_v53 }
  0x85   : > { %6618 = vmatprep.subr.bf16.mxu0 %v7761_v11  ;;  %v2630_v11 = vshrl.u32 %v8251_v28, 16 }
  0x86   : > { %2002 = vmatmul.mubr.bf16.gmra.mrb[36].mxu1 %v8573_v12 }
  0x87   : > { %2357 = vmatmul.mubr.bf16.gmra.mrb[36].mxu0 %v8441_v61  ;;  %2009 = vmatprep.mubr.bf16.mxu1 %v8576_v31 }
  0x88   : > { %2364 = vmatprep.mubr.bf16.mxu0 %v8486_v5  ;;  %6619 = vmatpush3.bf16.msra.mxu0 %v7762_v13  ;;  %v2634_v13 = vshll.u32 %v8389_v15, 16 }
  0x89   : > { %6620 = vmatprep.subr.bf16.mxu0 %v7765_v16  ;;  %v7789_v16 = vld [vmem:[%s9974_s5 + $0x348] sm:$0xff]  }
  0x8c   : > { %6621 = vmatpush3.bf16.msra.mxu0 %v7766_v17  ;;  %v2626_v17 = vshll.u32 %v8441_v61, 16 }
  0x8d   : > { %6622 = vmatprep.subr.bf16.mxu0 %v7769_v23 }
  0x8e   : > { %2010 = vmatmul.mubr.bf16.gmra.mrb[40].mxu1 %v8594_v42 }
  0x8f   : > { %2365 = vmatmul.mubr.bf16.gmra.mrb[40].mxu0 %v8520_v59  ;;  %2017 = vmatprep.mubr.bf16.mxu1 %v8600_v43 }
  0x90   : > { %2372 = vmatprep.mubr.bf16.mxu0 %v8559_v58  ;;  %6623 = vmatpush3.bf16.msra.mxu0 %v7770_v40  ;;  %v7788_v40 = vld [vmem:[%s9974_s5 + $0x150] sm:$0xff]  }
  0x91   : > { %6624 = vmatprep.subr.bf16.mxu0 %v7773_v21  ;;  %v2600_v21 = vor.u32 %v2598_v60, %v2586_v53  ;;  %v7798_v53 = vld [vmem:[%s9974_s5 + $0x318] sm:$0xff]   ;;  %v2682_v60 = vshll.u32 %v8559_v58, 16 }
  0x94   : > { %6625 = vmatpush3.bf16.msra.mxu0 %v7774_v29  ;;  %v2604_v29 = vrot.slane %v2602_v27, 1  ;;  %v2670_v27 = vshrl.u32 %v8520_v59, 16 }
  0x95   : > { %6626 = vmatprep.subr.bf16.mxu0 %v7777_v33  ;;  %v7790_v33 = vld [vmem:[%s9974_s5 + $0x308] sm:$0xff]  }
  0x96   : > { %2018 = vmatmul.mubr.bf16.gmra.mrb[44].mxu1 %v8617_v50 }
  0x97   : > { %2373 = vmatmul.mubr.bf16.gmra.mrb[44].mxu0 %v8573_v12  ;;  %7142 = vmatprep.mubr.bf16.mxu1 %v7953_v36  ;;  %v7783_v36 = vld [vmem:[%s9974_s5 + $0x538] sm:$0xff]  }
  0x98   : > { %2380 = vmatprep.mubr.bf16.mxu0 %v8576_v31  ;;  %6627 = vmatpush3.bf16.msra.mxu0 %v7778_v10  ;;  %v2636_v10 = vrot.slane %v2634_v13, 1  ;;  %v2618_v13 = vshll.u32 %v8281_v46, 16 }
  0x99   : > { %6628 = vmatprep.subr.bf16.mxu0 %v7781_v44  ;;  %v2622_v44 = vshrl.u32 %v8357_v52, 16 }
  0x9c   : > { %6629 = vmatpush3.bf16.msra.mxu0 %v7782_v8  ;;  %v2628_v8 = vrot.slane %v2626_v17, 1  ;;  %v2684_v17 = vrot.slane %v2682_v60, 1 }
  0x9d   : > { %6694 = vmatprep.subr.bf16.mxu0 %v7785_v34  ;;  %v7793_v34 = vld [vmem:[%s9974_s5 + $0x350] sm:$0xff]  }
  0x9e   : > { %7143 = vmatmul.mubr.bf16.vlgmr.msra.gmra.mrb[0].mxu1 %v8271_v39 }
  0x9f   : > { %2381 = vmatmul.mubr.bf16.gmra.mrb[48].mxu0 %v8594_v42  ;;  %7159 = vmatpush3.bf16.msra.mxu1 %v7768_v24  ;;  %v2608_v24 = vor.u32 %v2606_v49, %v2591_v47  ;;  %v2650_v47 = vshll.u32 %v8520_v59, 16 }
  0xa0   : > { %7146 = vmatprep.mubr.bf16.mxu1 %v8281_v46  ;;  %7160 = vmatprep.subr.bf16.mxu1 %v7771_v35 }
  0xa1   : > { %2388 = vmatprep.mubr.bf16.mxu0 %v8600_v43  ;;  %v8788_v23 = vsel %vm2575_vm6, %v2608_v24, %v2612_v9  ;;  %v2652_v56 = vrot.slane %v2650_v47, 1  ;;  %v7795_v24 = vld [vmem:[%s9974_s5 + $0x168] sm:$0xff]   ;;  %v2642_v47 = vshll.u32 %v8315_v14, 16 }
  0xa3   : > { %7161 = vmatpush3.bf16.msra.mxu1 %v7771_v35  ;;  %v2632_v35 = vor.u32 %v2630_v11, %v2612_v9  ;;  %v2614_v9 = vshrl.u32 %v8271_v39, 16  ;;  %v2674_v11 = vshll.u32 %v8573_v12, 16 }
  0xa4   : > { %7162 = vmatprep.subr.bf16.mxu1 %v7772_v41 }
  0xa6   : > { %7147 = vmatmul.mubr.bf16.gmra.mrb[4].mxu1 %v8315_v14 }
  0xa7   : > { %2389 = vmatmul.mubr.bf16.gmra.mrb[52].mxu0 %v8617_v50  ;;  %7163 = vmatpush3.bf16.msra.mxu1 %v7772_v41  ;;  %v7791_v41 = vld [vmem:[%s9974_s5 + $0x158] sm:$0xff]  }
  0xa8   : > { %7150 = vmatprep.mubr.bf16.mxu1 %v8320_v19  ;;  %7164 = vmatprep.subr.bf16.mxu1 %v7775_v54 }
  0xa9   : > { %2396 = vmatprep.mubr.bf16.mxu0 %v8622_v57 }
  0xab   : > { %7165 = vmatpush3.bf16.msra.mxu1 %v7775_v54  ;;  %v2654_v54 = vshrl.u32 %v8389_v15, 16 }
  0xac   : > { %7166 = vmatprep.subr.bf16.mxu1 %v7776_v25 }
  0xae   : > { %7151 = vmatmul.mubr.bf16.gmra.mrb[8].mxu1 %v8414_v37 }
  0xaf   : > { %2397 = vmatmul.mubr.bf16.gmra.mrb[56].mxu0 %v8636_v3  ;;  %7167 = vmatpush3.bf16.msra.mxu1 %v7776_v25  ;;  %v2658_v25 = vshll.u32 %v8486_v5, 16 }
  0xb0   : > { %7154 = vmatprep.mubr.bf16.mxu1 %v8469_v22  ;;  %7168 = vmatprep.subr.bf16.mxu1 %v7779_v7 }
  0xb1   : > { %2404 = vmatprep.mubr.bf16.mxu0 %v8738_v45  ;;  %v2660_v49 = vrot.slane %v2658_v25, 1  ;;  %v2706_v25 = vshll.u32 %v8576_v31, 16 }
  0xb3   : > { %7169 = vmatpush3.bf16.msra.mxu1 %v7779_v7  ;;  %v8808_v7 = vsel %vm2575_vm6, %v2600_v21, %v2604_v29 }
  0xb4   : > { %7170 = vmatprep.subr.bf16.mxu1 %v7780_v30 }
  0xb6   : > { %7155 = vmatmul.mubr.bf16.gmra.mrb[12].mxu1 %v8492_v38 }
  0xb7   : > { %2405 = vmatmul.mubr.bf16.gmra.mrb[60].mxu0 %v8754_v62  ;;  %7171 = vmatpush3.bf16.msra.mxu1 %v7780_v30  ;;  %v8816_v30 = vsel %vm8232_vm5, %v8511_v55, 0  ;;  %v2624_v55 = vor.u32 %v2622_v44, %v2604_v29  ;;  %v7796_v29 = vld [vmem:[%s9974_s5 + $0x170] sm:$0xff]   ;;  %v2676_v44 = vrot.slane %v2674_v11, 1  ;;  %v2644_v11 = vrot.slane %v2642_v47, 1 }
  0xb8   : > { %7174 = vmatprep.mubr.bf16.mxu1 %v8281_v46  ;;  %7172 = vmatprep.subr.bf16.mxu1 %v7783_v36 }
  0xb9   : > { %2966 = vmatprep.mubr.bf16.mxu0 %v2592_v26  ;;  %v8824_v26 = vsel %vm2575_vm6, %v2632_v35, %v2636_v10  ;;  %v7804_v35 = vld [vmem:[%s9974_s5 + $0x368] sm:$0xff]  }
  0xbb   : > { %7173 = vmatpush3.bf16.msra.mxu1 %v7783_v36  ;;  %v2646_v36 = vshrl.u32 %v8441_v61, 16 }
  0xbc   : > { %7190 = vmatprep.subr.bf16.mxu1 %v7784_v1 }
  0xbe   : > { %7175 = vmatmul.mubr.bf16.vlgmr.msra.gmra.mrb[0].mxu1 %v8315_v14 }
  0xbf   : > { %2967 = vmatmul.mubr.bf16.vlgmr.msra.gmra.mrb[64].mxu0 %v2587_v0  ;;  %7191 = vmatpush3.bf16.msra.mxu1 %v7784_v1  ;;  %v2678_v1 = vshrl.u32 %v8486_v5, 16  ;;  %v8845_v0 = vsel %vm2575_vm6, %v2624_v55, %v2628_v8 }
  0xc0   : > { %6695 = vmatpush3.bf16.msra.mxu0 %v7786_v2  ;;  %7192 = vmatprep.subr.bf16.mxu1 %v7787_v4  ;;  %v2594_v2 = vshll.u32 %v8271_v39, 16 }
  0xc1   : > { %7178 = vmatprep.mubr.bf16.mxu1 %v8320_v19  ;;  %2974 = vmatprep.mubr.bf16.mxu0 %v8788_v23 }
  0xc2   : > { %6696 = vmatprep.subr.bf16.mxu0 %v7789_v16  ;;  %v7800_v16 = vld [vmem:[%s9974_s5 + $0x360] sm:$0xff]  }
  0xc3   : > { %7193 = vmatpush3.bf16.msra.mxu1 %v7787_v4  ;;  %v2656_v4 = vor.u32 %v2654_v54, %v2636_v10  ;;  %v2596_v10 = vrot.slane %v2594_v2, 1  ;;  %v2702_v54 = vshrl.u32 %v8559_v58, 16  ;;  %v2672_v2 = vor.u32 %v2670_v27, %v2652_v56  ;;  %v7803_v27 = vld [vmem:[%s9974_s5 + $0x388] sm:$0xff]  }
  0xc4   : > { %6697 = vmatpush3.bf16.msra.mxu0 %v7790_v33  ;;  %7194 = vmatprep.subr.bf16.mxu1 %v7788_v40  ;;  %v2648_v33 = vor.u32 %v2646_v36, %v2628_v8  ;;  %v7799_v8 = vld [vmem:[%s9974_s5 + $0x178] sm:$0xff]  }
  0xc5   : > { %6698 = vmatprep.subr.bf16.mxu0 %v7793_v34  ;;  %v8856_v21 = vsel %vm2575_vm6, %v2656_v4, %v2660_v49  ;;  %v2620_v34 = vrot.slane %v2618_v13, 1  ;;  %v2616_v60 = vor.u32 %v2614_v9, %v2596_v10  ;;  %v7801_v4 = vld [vmem:[%s9974_s5 + $0x380] sm:$0xff]  }
  0xc6   : > { %7179 = vmatmul.mubr.bf16.gmra.mrb[4].mxu1 %v8414_v37  ;;  %v8876_v36 = vsel %vm2575_vm6, %v2648_v33, %v2652_v56  ;;  %v2666_v33 = vshll.u32 %v8320_v19, 16  ;;  %v7810_v56 = vld [vmem:[%s9974_s5 + $0x330] sm:$0xff]  }
  0xc7   : > { %2975 = vmatmul.mubr.bf16.gmra.mrb[68].mxu0 %v8808_v7  ;;  %7195 = vmatpush3.bf16.msra.mxu1 %v7788_v40  ;;  %v7802_v40 = vld [vmem:[%s9974_s5 + $0x320] sm:$0xff]  }
  0xc8   : > { %7182 = vmatprep.mubr.bf16.mxu1 %v8469_v22  ;;  %7196 = vmatprep.subr.bf16.mxu1 %v7791_v41 }
  0xc9   : > { %2982 = vmatprep.mubr.bf16.mxu0 %v8824_v26  ;;  %6699 = vmatpush3.bf16.msra.mxu0 %v7794_v63  ;;  %v2638_v63 = vshrl.u32 %v8281_v46, 16 }
  0xca   : > { %6700 = vmatprep.subr.bf16.mxu0 %v7797_v51  ;;  %v2698_v51 = vshll.u32 %v8594_v42, 16 }
  0xcb   : > { %7197 = vmatpush3.bf16.msra.mxu1 %v7791_v41  ;;  %v2680_v41 = vor.u32 %v2678_v1, %v2660_v49  ;;  %v2694_v49 = vshrl.u32 %v8573_v12, 16  ;;  %v2597_v1 = vsel %vm2575_vm6, %v8745_v32, %v2596_v10  ;;  %v2640_v9 = vor.u32 %v2638_v63, %v2620_v34 }
  0xcc   : > { %7198 = vmatprep.subr.bf16.mxu1 %v7792_v6  ;;  %v2700_v13 = vrot.slane %v2698_v51, 1  ;;  %v2730_v10 = vshll.u32 %v8600_v43, 16  ;;  %v2690_v63 = vshll.u32 %v8414_v37, 16  ;;  %v7805_v51 = vld [vmem:[%s9974_s5 + $0x390] sm:$0xff]  }
  0xcd   : > { %6701 = vmatpush3.bf16.msra.mxu0 %v7798_v53  ;;  %v8883_v55 = vsel %vm2575_vm6, %v2680_v41, %v2684_v17  ;;  %v7808_v53 = vld [vmem:[%s9974_s5 + $0x370] sm:$0xff]   ;;  %v2686_v41 = vshrl.u32 %v8320_v19, 16  ;;  %v8925_v47 = vsel %vm2575_vm6, %v2640_v9, %v2644_v11 }
  0xce   : > { %7183 = vmatmul.mubr.bf16.gmra.mrb[8].mxu1 %v8492_v38  ;;  %6702 = vmatprep.subr.bf16.mxu0 %v7800_v16  ;;  %v2662_v16 = vshrl.u32 %v8315_v14, 16 }
  0xcf   : > { %2983 = vmatmul.mubr.bf16.gmra.mrb[72].mxu0 %v8845_v0  ;;  %7199 = vmatpush3.bf16.msra.mxu1 %v7792_v6  ;;  %v7806_v6 = vld [vmem:[%s9974_s5 + $0x328] sm:$0xff]  }
  0xd0   : > { %7186 = vmatprep.mubr.bf16.mxu1 %v8535_v18  ;;  %7200 = vmatprep.subr.bf16.mxu1 %v7795_v24 }
  0xd1   : > { %2990 = vmatprep.mubr.bf16.mxu0 %v8856_v21  ;;  %6703 = vmatpush3.bf16.msra.mxu0 %v7802_v40  ;;  %v2704_v40 = vor.u32 %v2702_v54, %v2684_v17  ;;  %v8908_v17 = vsel %vm2575_vm6, %v2672_v2, %v2676_v44  ;;  %v7812_v54 = vld [vmem:[%s9974_s5 + $0x378] sm:$0xff]   ;;  %v7817_v2 = vld [vmem:[%s9974_s5 + $0x1c0] sm:$0xff]  }
  0xd2   : > { %6704 = vmatprep.subr.bf16.mxu0 %v7804_v35  ;;  %v8911_v35 = vsel %vm2575_vm6, %v2616_v60, %v2620_v34  ;;  %v2696_v34 = vor.u32 %v2694_v49, %v2676_v44  ;;  %v2722_v60 = vshll.u32 %v8617_v50, 16  ;;  %v2732_v49 = vrot.slane %v2730_v10, 1 }
  0xd3   : > { %7201 = vmatpush3.bf16.msra.mxu1 %v7795_v24  ;;  %v2708_v24 = vrot.slane %v2706_v25, 1 }
  0xd4   : > { %7202 = vmatprep.subr.bf16.mxu1 %v7796_v29 }
  0xd5   : > { %6705 = vmatpush3.bf16.msra.mxu0 %v7806_v6  ;;  %v8918_v25 = vsel %vm2575_vm6, %v2704_v40, %v2708_v24  ;;  %v2664_v6 = vor.u32 %v2662_v16, %v2644_v11  ;;  %v2692_v40 = vrot.slane %v2690_v63, 1  ;;  %v2710_v11 = vshrl.u32 %v8414_v37, 16 }
  0xd6   : > { %7187 = vmatmul.mubr.bf16.gmra.mrb[12].mxu1 %v8816_v30  ;;  %6706 = vmatprep.subr.bf16.mxu0 %v7808_v53  ;;  %v2668_v53 = vrot.slane %v2666_v33, 1  ;;  %v2714_v16 = vshll.u32 %v8469_v22, 16  ;;  %v8945_v33 = vsel %vm2575_vm6, %v2696_v34, %v2700_v13  ;;  %v2746_v37 = vshll.u32 %v8636_v3, 16 }
  0xd7   : > { %2991 = vmatmul.mubr.bf16.gmra.mrb[76].mxu0 %v8876_v36  ;;  %7203 = vmatpush3.bf16.msra.mxu1 %v7796_v29  ;;  %v2726_v29 = vshrl.u32 %v8576_v31, 16  ;;  %v2712_v34 = vor.u32 %v2710_v11, %v2692_v40 }
  0xd8   : > { %2998 = vmatprep.mubr.bf16.mxu0 %v8883_v55  ;;  %7204 = vmatprep.subr.bf16.mxu1 %v7799_v8  ;;  %v8948_v9 = vsel %vm2575_vm6, %v2664_v6, %v2668_v53  ;;  %v2716_v6 = vrot.slane %v2714_v16, 1 }
  0xd9   : > { %7206 = vmatprep.mubr.bf16.mxu1 %v2597_v1  ;;  %6707 = vmatpush3.bf16.msra.mxu0 %v7810_v56  ;;  %v2718_v1 = vshrl.u32 %v8594_v42, 16  ;;  %v2728_v44 = vor.u32 %v2726_v29, %v2708_v24  ;;  %v2688_v56 = vor.u32 %v2686_v41, %v2668_v53  ;;  %v2750_v24 = vshrl.u32 %v8600_v43, 16  ;;  %v7809_v53 = vld [vmem:[%s9974_s5 + $0x3a0] sm:$0xff]  }
  0xda   : > { %6708 = vmatprep.subr.bf16.mxu0 %v7812_v54  ;;  %v2754_v29 = vshll.u32 %v8622_v57, 16  ;;  %v2734_v41 = vshrl.u32 %v8469_v22, 16  ;;  %v2738_v54 = vshll.u32 %v8492_v38, 16 }
  0xdb   : > { %7205 = vmatpush3.bf16.msra.mxu1 %v7799_v8  ;;  %v7814_v8 = vld [vmem:[%s9974_s5 + $0x338] sm:$0xff]   ;;  %v8953_v10 = vsel %vm2575_vm6, %v2728_v44, %v2732_v49  ;;  %v2720_v63 = vor.u32 %v2718_v1, %v2700_v13  ;;  %v8975_v1 = vsel %vm2575_vm6, %v2712_v34, %v2716_v6  ;;  %v7818_v34 = vld [vmem:[%s9974_s5 + $0x540] sm:$0xff]  }
  0xdc   : > { %7222 = vmatprep.subr.bf16.mxu1 %v7801_v4  ;;  %v8967_v44 = vrot.slane %v2754_v29, 1  ;;  %v2736_v22 = vor.u32 %v2734_v41, %v2716_v6  ;;  %v7819_v6 = vld [vmem:[%s9974_s5 + $0x180] sm:$0xff]  }
  0xdd   : > { %6709 = vmatpush3.bf16.msra.mxu0 %v7814_v8  ;;  %v2724_v8 = vrot.slane %v2722_v60, 1  ;;  %v2758_v60 = vshrl.u32 %v8492_v38, 16 }
  0xde   : > { %7207 = vmatmul.mubr.bf16.vlgmr.msra.gmra.mrb[0].mxu1 %v8911_v35  ;;  %6854 = vmatprep.subr.bf16.mxu0 %v7817_v2  ;;  %v2752_v2 = vor.u32 %v2750_v24, %v2732_v49  ;;  %v7811_v49 = vld [vmem:[%s9974_s5 + $0x3a8] sm:$0xff]   ;;  %v8992_v24 = vrot.slane %v2746_v37, 1  ;;  %v7815_v37 = vld [vmem:[%s9974_s5 + $0x3b8] sm:$0xff]  }
  0xdf   : > { %2999 = vmatmul.mubr.bf16.gmra.mrb[80].mxu0 %v8908_v17  ;;  %7223 = vmatpush3.bf16.msra.mxu1 %v7801_v4  ;;  %v7807_v4 = vld [vmem:[%s9974_s5 + $0x398] sm:$0xff]   ;;  %v8972_v13 = vsel %vm2575_vm6, %v2720_v63, %v2724_v8 }
  0xe0   : > { %3006 = vmatprep.mubr.bf16.mxu0 %v8918_v25  ;;  %7224 = vmatprep.subr.bf16.mxu1 %v7803_v27  ;;  %v8984_v11 = vsel %vm2575_vm6, %v2752_v2, %v8967_v44  ;;  %v7825_v2 = vld [vmem:[%s9974_s5 + $0x188] sm:$0xff]  }
  0xe1   : > { %7210 = vmatprep.mubr.bf16.mxu1 %v8925_v47 }
  0xe3   : > { %7225 = vmatpush3.bf16.msra.mxu1 %v7803_v27  ;;  %v8958_v27 = vsel %vm2575_vm6, %v2688_v56, %v2692_v40  ;;  %v2740_v56 = vrot.slane %v2738_v54, 1  ;;  %v2762_v40 = vshll.u32 %v8535_v18, 16 }
  0xe4   : > { %7226 = vmatprep.subr.bf16.mxu1 %v7805_v51 }
  0xe5   : > { %v2760_v29 = vor.u32 %v2758_v60, %v2740_v56  ;;  %v8994_v41 = vrot.slane %v2762_v40, 1  ;;  %v7826_v60 = vld [vmem:[%s9974_s5 + $0x598] sm:$0xff]   ;;  %v7831_v40 = vld [vmem:[%s9974_s5 + $0x190] sm:$0xff]  }
  0xe6   : > { %7211 = vmatmul.mubr.bf16.gmra.mrb[4].mxu1 %v8948_v9 }
  0xe7   : > { %3007 = vmatmul.mubr.bf16.gmra.mrb[84].mxu0 %v8945_v33  ;;  %7227 = vmatpush3.bf16.msra.mxu1 %v7805_v51  ;;  %v2742_v51 = vshrl.u32 %v8617_v50, 16  ;;  %v9006_v63 = vsel %vm2575_vm6, %v2760_v29, %v8994_v41  ;;  %v7828_v29 = vld [vmem:[%s9974_s5 + $0x5a0] sm:$0xff]  }
  0xe8   : > { %3014 = vmatprep.mubr.bf16.mxu0 %v8953_v10  ;;  %7228 = vmatprep.subr.bf16.mxu1 %v7807_v4 }
  0xe9   : > { %7214 = vmatprep.mubr.bf16.mxu1 %v8958_v27  ;;  %v2744_v16 = vor.u32 %v2742_v51, %v2724_v8  ;;  %v7816_v8 = vld [vmem:[%s9974_s5 + $0x580] sm:$0xff]   ;;  %v7824_v51 = vld [vmem:[%s9974_s5 + $0x550] sm:$0xff]  }
  0xeb   : > { %7229 = vmatpush3.bf16.msra.mxu1 %v7807_v4  ;;  %v8987_v4 = vsel %vm2575_vm6, %v2736_v22, %v2740_v56  ;;  %v7813_v22 = vld [vmem:[%s9974_s5 + $0x3b0] sm:$0xff]   ;;  %v9002_v54 = vsel %vm2575_vm6, %v2744_v16, %v8992_v24  ;;  %v7827_v16 = vld [vmem:[%s9974_s5 + $0x558] sm:$0xff]  }
  0xec   : > { %7230 = vmatprep.subr.bf16.mxu1 %v7809_v53  ;;  %v7822_v56 = vld [vmem:[%s9974_s5 + $0x590] sm:$0xff]  }
  0xee   : > { %7215 = vmatmul.mubr.bf16.gmra.mrb[8].mxu1 %v8975_v1 }
  0xef   : > { %3015 = vmatmul.mubr.bf16.gmra.mrb[88].mxu0 %v8972_v13  ;;  %7231 = vmatpush3.bf16.msra.mxu1 %v7809_v53  ;;  %v7821_v53 = vld [vmem:[%s9974_s5 + $0x548] sm:$0xff]  }
  0xf0   : > { %3022 = vmatprep.mubr.bf16.mxu0 %v8984_v11  ;;  %7232 = vmatprep.subr.bf16.mxu1 %v7811_v49 }
  0xf1   : > { %7218 = vmatprep.mubr.bf16.mxu1 %v8987_v4 }
  0xf3   : > { %7233 = vmatpush3.bf16.msra.mxu1 %v7811_v49  ;;  %v7835_v49 = vld [vmem:[%s9974_s5 + $0x1d8] sm:$0xff]  }
  0xf4   : > { %7234 = vmatprep.subr.bf16.mxu1 %v7813_v22 }
  0xf6   : > { %7219 = vmatmul.mubr.bf16.gmra.mrb[12].mxu1 %v9006_v63 }
  0xf7   : > { %3023 = vmatmul.mubr.bf16.gmra.mrb[92].mxu0 %v9002_v54  ;;  %7235 = vmatpush3.bf16.msra.mxu1 %v7813_v22  ;;  %v7837_v22 = vld [vmem:[%s9974_s5 + $0x198] sm:$0xff]  }
  0xf8   : > { %3396 = vmatprep.mubr.bf16.mxu0 %v8788_v23  ;;  %7236 = vmatprep.subr.bf16.mxu1 %v7815_v37  ;;  %v7820_v23 = vld [vmem:[%s9974_s5 + $0x588] sm:$0xff]  }
  0xf9   : > { %7238 = vmatprep.mubr.bf16.mxu1 %v8911_v35  ;;  %v7823_v35 = vld [vmem:[%s9974_s5 + $0x1c8] sm:$0xff]  }
  0xfb   : > { %7237 = vmatpush3.bf16.msra.mxu1 %v7815_v37  ;;  %v7830_v37 = vld [vmem:[%s9974_s5 + $0x560] sm:$0xff]  }
  0xfc   : > { %6774 = vmatprep.subr.bf16.mxu1 %v7816_v8  ;;  %v3209_v8 = vshrl.u32 %v8535_v18, 16 }
  0xfe   : > { %7239 = vmatmul.mubr.bf16.vlgmr.msra.gmra.mrb[0].mxu1 %v8925_v47 }
  0xff   : > { %3397 = vmatmul.mubr.bf16.vlgmr.msra.gmra.mrb[96].mxu0 %v8808_v7  ;;  %6775 = vmatpush3.bf16.msra.mxu1 %v7818_v34  ;;  %v7829_v7 = vld [vmem:[%s9974_s5 + $0x1d0] sm:$0xff]   ;;  %v3213_v34 = vshll.u32 %v8816_v30, 16 }
 0x100   : > { %6855 = vmatpush3.bf16.msra.mxu0 %v7819_v6  ;;  %6776 = vmatprep.subr.bf16.mxu1 %v7820_v23  ;;  %v7832_v6 = vld [vmem:[%s9974_s5 + $0x5a8] sm:$0xff]   ;;  %v7840_v23 = vld [vmem:[%s9974_s5 + $0x1e0] sm:$0xff]  }
 0x101   : > { %3404 = vmatprep.mubr.bf16.mxu0 %v8824_v26  ;;  %7242 = vmatprep.mubr.bf16.mxu1 %v8948_v9 }
 0x102   : > { %6856 = vmatprep.subr.bf16.mxu0 %v7823_v35  ;;  %v7841_v35 = vld [vmem:[%s9974_s5 + $0x1a0] sm:$0xff]  }
 0x103   : > { %6777 = vmatpush3.bf16.msra.mxu1 %v7821_v53  ;;  %v7833_v53 = vld [vmem:[%s9974_s5 + $0x568] sm:$0xff]  }
 0x104   : > { %6857 = vmatpush3.bf16.msra.mxu0 %v7825_v2  ;;  %6778 = vmatprep.subr.bf16.mxu1 %v7822_v56  ;;  %v3211_v2 = vor.u32 %v3209_v8, %v8994_v41  ;;  %v9092_v56 = vrot.slane %v3213_v34, 1  ;;  %v7843_v34 = vld [vmem:[%s9974_s5 + $0x1a8] sm:$0xff]  }
 0x105   : > { %6858 = vmatprep.subr.bf16.mxu0 %v7829_v7  ;;  %v7842_v7 = vld [vmem:[%s9974_s5 + $0x1e8] sm:$0xff]  }
 0x106   : > { %7243 = vmatmul.mubr.bf16.gmra.mrb[4].mxu1 %v8958_v27 }
 0x107   : > { %3405 = vmatmul.mubr.bf16.gmra.mrb[100].mxu0 %v8845_v0  ;;  %6779 = vmatpush3.bf16.msra.mxu1 %v7824_v51  ;;  %v7834_v51 = vld [vmem:[%s9974_s5 + $0x5b0] sm:$0xff]  }
 0x108   : > { %3412 = vmatprep.mubr.bf16.mxu0 %v8856_v21  ;;  %6780 = vmatprep.subr.bf16.mxu1 %v7826_v60 }
 0x109   : > { %7246 = vmatprep.mubr.bf16.mxu1 %v8975_v1  ;;  %6859 = vmatpush3.bf16.msra.mxu0 %v7831_v40 }
 0x10a   : > { %6860 = vmatprep.subr.bf16.mxu0 %v7835_v49 }
 0x10b   : > { %6781 = vmatpush3.bf16.msra.mxu1 %v7827_v16  ;;  %v9105_v16 = vsel %vm2575_vm6, %v3211_v2, %v9092_v56  ;;  %v7845_v2 = vld [vmem:[%s9974_s5 + $0x1b0] sm:$0xff]  }
 0x10c   : > { %6782 = vmatprep.subr.bf16.mxu1 %v7828_v29  ;;  %v7836_v29 = vld [vmem:[%s9974_s5 + $0x570] sm:$0xff]  }
 0x10d   : > { %6861 = vmatpush3.bf16.msra.mxu0 %v7837_v22 }
 0x10e   : > { %7247 = vmatmul.mubr.bf16.gmra.mrb[8].mxu1 %v8987_v4  ;;  %6862 = vmatprep.subr.bf16.mxu0 %v7840_v23  ;;  %v7839_v23 = vld [vmem:[%s9974_s5 + $0x578] sm:$0xff]  }
 0x10f   : > { %3413 = vmatmul.mubr.bf16.gmra.mrb[104].mxu0 %v8876_v36  ;;  %6783 = vmatpush3.bf16.msra.mxu1 %v7830_v37  ;;  %v7838_v37 = vld [vmem:[%s9974_s5 + $0x5b8] sm:$0xff]  }
 0x110   : > { %3420 = vmatprep.mubr.bf16.mxu0 %v8883_v55  ;;  %6784 = vmatprep.subr.bf16.mxu1 %v7832_v6  ;;  %v7844_v6 = vld [vmem:[%s9974_s5 + $0x1f0] sm:$0xff]  }
 0x111   : > { %7250 = vmatprep.mubr.bf16.mxu1 %v9006_v63  ;;  %v6390_v60 = vpop.f32.mrb[0].mxu0  ;;  %6863 = vmatpush3.bf16.msra.mxu0 %v7841_v35  ;;  %v7848_v35 = vld [vmem:[%s9974_s5 + $0x5c0] sm:$0xff]  }
 0x112   : > { %v6391_v40 = vpop.f32.mrb[1].mxu0  ;;  %6864 = vmatprep.subr.bf16.mxu0 %v7842_v7 }
 0x113   : > { %v9101_v49 = vadd.f32 %v6391_v40, %v6390_v60  ;;  %v6393_v41 = vpop.f32.mrb[2].mxu0  ;;  %6785 = vmatpush3.bf16.msra.mxu1 %v7833_v53 }
 0x114   : > { %v6394_v22 = vpop.f32.mrb[3].mxu0  ;;  %6786 = vmatprep.subr.bf16.mxu1 %v7834_v51 }
 0x115   : > { %v9113_v8 = vadd.f32 %v6394_v22, %v6393_v41  ;;  %6865 = vmatpush3.bf16.msra.mxu0 %v7843_v34  ;;  %v7851_v22 = vld [vmem:[%s9974_s5 + $0x5c8] sm:$0xff]  }
 0x116   : > { %7251 = vmatmul.mubr.bf16.gmra.mrb[12].mxu1 %v9105_v16  ;;  %6866 = vmatprep.subr.bf16.mxu0 %v7844_v6  ;;  %v7852_v6 = vld [vmem:[%s9974_s5 + $0x5d0] sm:$0xff]  }
 0x117   : > { %3421 = vmatmul.mubr.bf16.gmra.mrb[108].mxu0 %v8908_v17  ;;  %6787 = vmatpush3.bf16.msra.mxu1 %v7836_v29  ;;  %v7847_v29 = vld [vmem:[%s9974_s5 + $0x1b8] sm:$0xff]  }
 0x118   : > { %3428 = vmatprep.mubr.bf16.mxu0 %v8918_v25  ;;  %6788 = vmatprep.subr.bf16.mxu1 %v7838_v37  ;;  %v7849_v37 = vld [vmem:[%s9974_s5 + $0x400] sm:$0xff]  }
 0x119   : > { %3814 = vmatprep.mubr.bf16.mxu1 %v8824_v26  ;;  %v6396_v53 = vpop.f32.mrb[4].mxu0  ;;  %v7846_v26 = vld [vmem:[%s9974_s5 + $0x1f8] sm:$0xff]   ;;  %6867 = vmatpush3.bf16.msra.mxu0 %v7845_v2 }
 0x11a   : > { %v6397_v7 = vpop.f32.mrb[5].mxu0  ;;  %6868 = vmatprep.subr.bf16.mxu0 %v7846_v26 }
 0x11b   : > { %v9134_v51 = vadd.f32 %v6397_v7, %v6396_v53  ;;  %v6399_v60 = vpop.f32.mrb[6].mxu0  ;;  %6789 = vmatpush3.bf16.msra.mxu1 %v7839_v23  ;;  %v3201_v7 = vshrl.u32 %v8622_v57, 16 }
 0x11c   : > { %v6400_v40 = vpop.f32.mrb[7].mxu0  ;;  %7254 = vmatprep.subr.bf16.mxu1 %v7848_v35 }
 0x11d   : > { %v9139_v41 = vadd.f32 %v6400_v40, %v6399_v60  ;;  %6869 = vmatpush3.bf16.msra.mxu0 %v7847_v29  ;;  %v3205_v60 = vshll.u32 %v8738_v45, 16  ;;  %v3203_v40 = vor.u32 %v3201_v7, %v8967_v44 }
 0x11e   : > { %3815 = vmatmul.mubr.bf16.vlgmr.msra.gmra.mrb[48].mxu1 %v8845_v0  ;;  %6934 = vmatprep.subr.bf16.mxu0 %v7849_v37 }
 0x11f   : > { %3429 = vmatmul.mubr.bf16.gmra.mrb[112].mxu0 %v8945_v33  ;;  %3822 = vmatprep.mubr.bf16.mxu1 %v8856_v21  ;;  %v9171_v26 = vrot.slane %v3205_v60, 1 }
 0x120   : > { %3436 = vmatprep.mubr.bf16.mxu0 %v8953_v10  ;;  %7255 = vmatpush3.bf16.msra.mxu1 %v7848_v35  ;;  %v7855_v35 = vld [vmem:[%s9974_s5 + $0x5d8] sm:$0xff]  }
 0x121   : > { %v6402_v34 = vpop.f32.mrb[8].mxu0  ;;  %7256 = vmatprep.subr.bf16.mxu1 %v7851_v22  ;;  %v9182_v44 = vsel %vm2575_vm6, %v3203_v40, %v9171_v26 }
 0x122   : > { %v6403_v23 = vpop.f32.mrb[9].mxu0 }
 0x123   : > { %v9157_v0 = vadd.f32 %v6403_v23, %v6402_v34  ;;  %v6405_v53 = vpop.f32.mrb[10].mxu0 }
 0x124   : > { %v6406_v2 = vpop.f32.mrb[11].mxu0  ;;  %7257 = vmatpush3.bf16.msra.mxu1 %v7851_v22  ;;  %v7856_v22 = vld [vmem:[%s9974_s5 + $0x5e0] sm:$0xff]  }
 0x125   : > { %v9161_v21 = vadd.f32 %v6406_v2, %v6405_v53  ;;  %7258 = vmatprep.subr.bf16.mxu1 %v7852_v6  ;;  %v3197_v53 = vshll.u32 %v8754_v62, 16  ;;  %v7859_v2 = vld [vmem:[%s9974_s5 + $0x5e8] sm:$0xff]  }
 0x126   : > { %3823 = vmatmul.mubr.bf16.gmra.mrb[52].mxu1 %v8876_v36  ;;  %v3193_v36 = vshrl.u32 %v8636_v3, 16 }
 0x127   : > { %3437 = vmatmul.mubr.bf16.gmra.mrb[116].mxu0 %v8972_v13  ;;  %3830 = vmatprep.mubr.bf16.mxu1 %v8883_v55  ;;  %v9194_v60 = vrot.slane %v3197_v53, 1 }
 0x128   : > { %3444 = vmatprep.mubr.bf16.mxu0 %v8984_v11  ;;  %7259 = vmatpush3.bf16.msra.mxu1 %v7852_v6  ;;  %v3195_v7 = vor.u32 %v3193_v36, %v8992_v24 }
 0x129   : > { %v6408_v29 = vpop.f32.mrb[12].mxu0  ;;  %7260 = vmatprep.subr.bf16.mxu1 %v7855_v35 }
 0x12a   : > { %v6409_v37 = vpop.f32.mrb[13].mxu0  ;;  %v9204_v36 = vsel %vm2575_vm6, %v3195_v7, %v9194_v60 }
 0x12b   : > { %v9176_v34 = vadd.f32 %v6409_v37, %v6408_v29  ;;  %v6411_v23 = vpop.f32.mrb[14].mxu0  ;;  %v7860_v37 = vld [vmem:[%s9974_s5 + $0x5f0] sm:$0xff]  }
 0x12c   : > { %v6412_v55 = vpop.f32.mrb[15].mxu0  ;;  %7261 = vmatpush3.bf16.msra.mxu1 %v7855_v35  ;;  %v4049_v35 = vrot.slane %v8243_v20, 1 }
 0x12d   : > { %v9184_v6 = vadd.f32 %v6412_v55, %v6411_v23  ;;  %7262 = vmatprep.subr.bf16.mxu1 %v7856_v22 }
 0x12e   : > { %3831 = vmatmul.mubr.bf16.gmra.mrb[56].mxu1 %v8908_v17  ;;  %v4050_v53 = vsel %vm4045_vm7, %v8745_v32, %v4049_v35 }
 0x12f   : > { %3445 = vmatmul.mubr.bf16.gmra.mrb[120].mxu0 %v9002_v54  ;;  %3838 = vmatprep.mubr.bf16.mxu1 %v8918_v25 }
 0x130   : > { %3452 = vmatprep.mubr.bf16.mxu0 %v9182_v44  ;;  %7263 = vmatpush3.bf16.msra.mxu1 %v7856_v22 }
 0x131   : > { %v6470_v29 = vpop.f32.mrb[16].mxu1  ;;  %7264 = vmatprep.subr.bf16.mxu1 %v7859_v2 }
 0x132   : > { %v6414_v40 = vpop.f32.mrb[16].mxu0  ;;  %v6471_v23 = vpop.f32.mrb[17].mxu1 }
 0x133   : > { %v6415_v17 = vpop.f32.mrb[17].mxu0  ;;  %v6472_v25 = vadd.f32 %v6471_v23, %v6470_v29  ;;  %v6473_v24 = vpop.f32.mrb[18].mxu1  ;;  %v7863_v29 = vld [vmem:[%s9974_s5 + $0x5f8] sm:$0xff]   ;;  %v9227_v23 = vld [vmem:[%s9974_s5 + $0x200] sm:$0xff]  }
 0x134   : > { %v9200_v55 = vadd.f32 %v6415_v17, %v6414_v40  ;;  %v6417_v18 = vpop.f32.mrb[18].mxu0  ;;  %v6474_v22 = vpop.f32.mrb[19].mxu1  ;;  %7265 = vmatpush3.bf16.msra.mxu1 %v7859_v2  ;;  %v4055_v17 = vrot.slane %v8251_v28, 1  ;;  %v7850_v28 = vld [vmem:[%s9974_s5 + $0x3c0] sm:$0xff]  }
 0x135   : > { %v6418_v20 = vpop.f32.mrb[19].mxu0  ;;  %v9209_v38 = vadd.f32 %v6472_v25, %v9101_v49  ;;  %v6475_v40 = vadd.f32 %v6474_v22, %v6473_v24  ;;  %7266 = vmatprep.subr.bf16.mxu1 %v7860_v37  ;;  %v4047_v49 = vrot.slane %v8349_v48, 1 }
 0x136   : > { %v9211_v19 = vadd.f32 %v6418_v20, %v6417_v18  ;;  %3839 = vmatmul.mubr.bf16.gmra.mrb[60].mxu1 %v8945_v33 }
 0x137   : > { %3453 = vmatmul.mubr.bf16.gmra.mrb[124].mxu0 %v9204_v36  ;;  %v9219_v7 = vadd.f32 %v6475_v40, %v9113_v8  ;;  %3846 = vmatprep.mubr.bf16.mxu1 %v8953_v10  ;;  %v4048_v48 = vsel %vm4045_vm7, %v8745_v32, %v4047_v49 }
 0x138   : > { %4295 = vmatprep.mubr.bf16.mxu0 %v4050_v53  ;;  %7267 = vmatpush3.bf16.msra.mxu1 %v7860_v37  ;;  %v7853_v53 = vld [vmem:[%s9974_s5 + $0x408] sm:$0xff]  }
 0x139   : > { %v6476_v2 = vpop.f32.mrb[20].mxu1  ;;  %7268 = vmatprep.subr.bf16.mxu1 %v7863_v29 }
 0x13a   : > { %v6420_v18 = vpop.f32.mrb[20].mxu0  ;;  %v6477_v25 = vpop.f32.mrb[21].mxu1 }
 0x13b   : > { %v6421_v33 = vpop.f32.mrb[21].mxu0  ;;  %v6478_v24 = vadd.f32 %v6477_v25, %v6476_v2  ;;  %v6479_v20 = vpop.f32.mrb[22].mxu1 }
 0x13c   : > { %v9229_v8 = vadd.f32 %v6421_v33, %v6420_v18  ;;  %v6423_v10 = vpop.f32.mrb[22].mxu0  ;;  %v6480_v22 = vpop.f32.mrb[23].mxu1  ;;  %7269 = vmatpush3.bf16.msra.mxu1 %v7863_v29  ;;  %v9245_v33 = vsel %vm4045_vm7, %v4049_v35, %v4055_v17  ;;  %v7854_v29 = vld [vmem:[%s9974_s5 + $0x3c8] sm:$0xff]   ;;  %v4061_v35 = vrot.slane %v8389_v15, 1 }
 0x13d   : > { %v6424_v37 = vpop.f32.mrb[23].mxu0  ;;  %v9240_v40 = vadd.f32 %v6478_v24, %v9134_v51  ;;  %v6481_v2 = vadd.f32 %v6480_v22, %v6479_v20  ;;  %7286 = vmatprep.subr.bf16.mxu1 %v9227_v23  ;;  %v4053_v51 = vrot.slane %v8357_v52, 1  ;;  %v3627_v22 = vshrl.u32 %v8738_v45, 16 }
 0x13e   : > { %v9242_v18 = vadd.f32 %v6424_v37, %v6423_v10  ;;  %3847 = vmatmul.mubr.bf16.gmra.mrb[64].mxu1 %v8972_v13  ;;  %v7857_v13 = vld [vmem:[%s9974_s5 + $0x410] sm:$0xff]  }
 0x13f   : > { %4296 = vmatmul.mubr.bf16.vlgmr.msra.gmra.mrb[128].mxu0 %v4048_v48  ;;  %v9250_v25 = vadd.f32 %v6481_v2, %v9139_v41  ;;  %3854 = vmatprep.mubr.bf16.mxu1 %v8984_v11  ;;  %v9265_v37 = vsel %vm4045_vm7, %v4047_v49, %v4053_v51  ;;  %v9269_v2 = vsel %vm4045_vm7, %v4055_v17, %v4061_v35 }
 0x140   : > { %6935 = vmatpush3.bf16.msra.mxu0 %v7850_v28  ;;  %4303 = vmatprep.mubr.bf16.mxu0 %v9245_v33 }
 0x141   : > { %6936 = vmatprep.subr.bf16.mxu0 %v7853_v53  ;;  %v6482_v24 = vpop.f32.mrb[24].mxu1 }
 0x142   : > { %v6426_v41 = vpop.f32.mrb[24].mxu0  ;;  %v6483_v20 = vpop.f32.mrb[25].mxu1 }
 0x143   : > { %v6427_v10 = vpop.f32.mrb[25].mxu0  ;;  %v6484_v52 = vadd.f32 %v6483_v20, %v6482_v24  ;;  %v6485_v28 = vpop.f32.mrb[26].mxu1  ;;  %v4067_v20 = vrot.slane %v8486_v5, 1 }
 0x144   : > { %v9262_v11 = vadd.f32 %v6427_v10, %v6426_v41  ;;  %v6429_v48 = vpop.f32.mrb[26].mxu0  ;;  %6937 = vmatpush3.bf16.msra.mxu0 %v7854_v29  ;;  %v6486_v53 = vpop.f32.mrb[27].mxu1  ;;  %v7858_v41 = vld [vmem:[%s9974_s5 + $0x3d0] sm:$0xff]   ;;  %v7861_v29 = vld [vmem:[%s9974_s5 + $0x418] sm:$0xff]  }
 0x145   : > { %v6430_v15 = vpop.f32.mrb[27].mxu0  ;;  %6938 = vmatprep.subr.bf16.mxu0 %v7857_v13  ;;  %v9275_v24 = vadd.f32 %v6484_v52, %v9157_v0  ;;  %v6487_v49 = vadd.f32 %v6486_v53, %v6485_v28  ;;  %v4059_v0 = vrot.slane %v8441_v61, 1  ;;  %v3629_v13 = vor.u32 %v3627_v22, %v9171_v26 }
 0x146   : > { %v9277_v10 = vadd.f32 %v6430_v15, %v6429_v48  ;;  %3855 = vmatmul.mubr.bf16.gmra.mrb[68].mxu1 %v9002_v54  ;;  %v7862_v54 = vld [vmem:[%s9974_s5 + $0x3d8] sm:$0xff]   ;;  %v3623_v61 = vshrl.u32 %v8754_v62, 16  ;;  %v9307_v45 = vsel %vm4045_vm7, %v4061_v35, %v4067_v20 }
 0x147   : > { %4304 = vmatmul.mubr.bf16.gmra.mrb[132].mxu0 %v9265_v37  ;;  %v9285_v17 = vadd.f32 %v6487_v49, %v9161_v21  ;;  %3862 = vmatprep.mubr.bf16.mxu1 %v9182_v44  ;;  %v7865_v21 = vld [vmem:[%s9974_s5 + $0x420] sm:$0xff]   ;;  %v9302_v53 = vsel %vm4045_vm7, %v4053_v51, %v4059_v0 }
 0x148   : > { %4311 = vmatprep.mubr.bf16.mxu0 %v9269_v2  ;;  %6939 = vmatpush3.bf16.msra.mxu0 %v7858_v41 }
 0x149   : > { %v6488_v48 = vpop.f32.mrb[28].mxu1  ;;  %6940 = vmatprep.subr.bf16.mxu0 %v7861_v29  ;;  %v3630_v29 = vsel %vm2575_vm6, %v3629_v13, %v8745_v32  ;;  %v4065_v13 = vrot.slane %v8520_v59, 1 }
 0x14a   : > { %v6432_v52 = vpop.f32.mrb[28].mxu0  ;;  %v6489_v28 = vpop.f32.mrb[29].mxu1 }
 0x14b   : > { %v6433_v44 = vpop.f32.mrb[29].mxu0  ;;  %v6490_v26 = vadd.f32 %v6489_v28, %v6488_v48  ;;  %v6491_v5 = vpop.f32.mrb[30].mxu1  ;;  %v7869_v28 = vld [vmem:[%s9974_s5 + $0x428] sm:$0xff]  }
 0x14c   : > { %v9299_v15 = vadd.f32 %v6433_v44, %v6432_v52  ;;  %v6435_v22 = vpop.f32.mrb[30].mxu0  ;;  %v6492_v49 = vpop.f32.mrb[31].mxu1  ;;  %6941 = vmatpush3.bf16.msra.mxu0 %v7862_v54  ;;  %v7866_v52 = vld [vmem:[%s9974_s5 + $0x3e0] sm:$0xff]   ;;  %v4073_v54 = vrot.slane %v8559_v58, 1 }
 0x14d   : > { %v6436_v41 = vpop.f32.mrb[31].mxu0  ;;  %v9313_v48 = vadd.f32 %v6490_v26, %v9176_v34  ;;  %v6493_v51 = vadd.f32 %v6492_v49, %v6491_v5  ;;  %6942 = vmatprep.subr.bf16.mxu0 %v7865_v21  ;;  %v3625_v34 = vor.u32 %v3623_v61, %v9194_v60  ;;  %v7870_v21 = vld [vmem:[%s9974_s5 + $0x3e8] sm:$0xff]   ;;  %v9338_v49 = vsel %vm4045_vm7, %v4059_v0, %v4065_v13  ;;  %v7877_v0 = vld [vmem:[%s9974_s5 + $0x438] sm:$0xff]  }
 0x14e   : > { %v9315_v44 = vadd.f32 %v6436_v41, %v6435_v22  ;;  %3863 = vmatmul.mubr.bf16.gmra.mrb[72].mxu1 %v9204_v36 }
 0x14f   : > { %4312 = vmatmul.mubr.bf16.gmra.mrb[136].mxu0 %v9302_v53  ;;  %v9323_v35 = vadd.f32 %v6493_v51, %v9184_v6  ;;  %3870 = vmatprep.mubr.bf16.mxu1 %v3630_v29  ;;  %v7873_v6 = vld [vmem:[%s9974_s5 + $0x430] sm:$0xff]   ;;  %v3626_v58 = vsel %vm2575_vm6, %v3625_v34, %v8745_v32  ;;  %v9341_v51 = vsel %vm4045_vm7, %v4067_v20, %v4073_v54 }
 0x150   : > { %4319 = vmatprep.mubr.bf16.mxu0 %v9307_v45  ;;  %6943 = vmatpush3.bf16.msra.mxu0 %v7866_v52 }
 0x151   : > { %v6494_v36 = vpop.f32.mrb[32].mxu1  ;;  %6944 = vmatprep.subr.bf16.mxu0 %v7869_v28  ;;  %v7874_v28 = vld [vmem:[%s9974_s5 + $0x3f0] sm:$0xff]  }
 0x152   : > { %v6550_v26 = vpop.f32.mrb[32].mxu0  ;;  %v6495_v22 = vpop.f32.mrb[33].mxu1 }
 0x153   : > { %v6551_v5 = vpop.f32.mrb[33].mxu0  ;;  %v6496_v41 = vadd.f32 %v6495_v22, %v6494_v36  ;;  %v6497_v61 = vpop.f32.mrb[34].mxu1 }
 0x154   : > { %v6552_v60 = vadd.f32 %v6551_v5, %v6550_v26  ;;  %v6553_v59 = vpop.f32.mrb[34].mxu0  ;;  %v6498_v29 = vpop.f32.mrb[35].mxu1  ;;  %6945 = vmatpush3.bf16.msra.mxu0 %v7870_v21 }
 0x155   : > { %v6554_v52 = vpop.f32.mrb[35].mxu0  ;;  %v9347_v36 = vadd.f32 %v6496_v41, %v9200_v55  ;;  %v6499_v34 = vadd.f32 %v6498_v29, %v6497_v61  ;;  %6946 = vmatprep.subr.bf16.mxu0 %v7873_v6  ;;  %v4079_v55 = vrot.slane %v8576_v31, 1  ;;  %v7878_v6 = vld [vmem:[%s9974_s5 + $0x3f8] sm:$0xff]  }
 0x156   : > { %v9350_v26 = vadd.f32 %v9209_v38, %v6552_v60  ;;  %v6555_v22 = vadd.f32 %v6554_v52, %v6553_v59  ;;  %3871 = vmatmul.mubr.bf16.gmra.mrb[76].mxu1 %v3626_v58  ;;  %v4071_v38 = vrot.slane %v8573_v12, 1  ;;  %v7867_v52 = vld [vmem:[%s9974_s5 + $0x208] sm:$0xff]  }
 0x157   : > { %4320 = vmatmul.mubr.bf16.gmra.mrb[140].mxu0 %v9338_v49  ;;  %v9357_v20 = vadd.f32 %v6499_v34, %v9211_v19  ;;  %7270 = vmatprep.mubr.bf16.mxu1 %v8925_v47  ;;  %v7881_v19 = vld [vmem:[%s9974_s5 + $0x640] sm:$0xff]  }
 0x158   : > { %v9360_v21 = vadd.f32 %v9219_v7, %v6555_v22  ;;  %4327 = vmatprep.mubr.bf16.mxu0 %v9341_v51  ;;  %6947 = vmatpush3.bf16.msra.mxu0 %v7874_v28  ;;  %v9373_v31 = vsel %vm4045_vm7, %v4065_v13, %v4071_v38  ;;  %v9379_v28 = vsel %vm4045_vm7, %v4073_v54, %v4079_v55 }
 0x159   : > { %v6500_v5 = vpop.f32.mrb[36].mxu1  ;;  %6948 = vmatprep.subr.bf16.mxu0 %v7877_v0 }
 0x15a   : > { %v6556_v41 = vpop.f32.mrb[36].mxu0  ;;  %v6501_v7 = vpop.f32.mrb[37].mxu1 }
 0x15b   : > { %v6557_v47 = vpop.f32.mrb[37].mxu0  ;;  %v6502_v60 = vadd.f32 %v6501_v7, %v6500_v5  ;;  %v6503_v59 = vpop.f32.mrb[38].mxu1 }
 0x15c   : > { %v6558_v61 = vadd.f32 %v6557_v47, %v6556_v41  ;;  %v6559_v12 = vpop.f32.mrb[38].mxu0  ;;  %v6504_v58 = vpop.f32.mrb[39].mxu1  ;;  %6949 = vmatpush3.bf16.msra.mxu0 %v7878_v6 }
 0x15d   : > { %v6560_v29 = vpop.f32.mrb[39].mxu0  ;;  %v9382_v34 = vadd.f32 %v6502_v60, %v9229_v8  ;;  %v6505_v0 = vadd.f32 %v6504_v58, %v6503_v59  ;;  %7014 = vmatprep.subr.bf16.mxu0 %v7881_v19  ;;  %v4077_v8 = vrot.slane %v8594_v42, 1 }
 0x15e   : > { %v9385_v22 = vadd.f32 %v9240_v40, %v6558_v61  ;;  %v6561_v5 = vadd.f32 %v6560_v29, %v6559_v12  ;;  %7271 = vmatmul.mubr.bf16.vlgmr.msra.gmra.mrb[0].mxu1 %v8948_v9  ;;  %v7868_v9 = vld [vmem:[%s9974_s5 + $0x210] sm:$0xff]   ;;  %v4085_v40 = vrot.slane %v8600_v43, 1  ;;  %v7871_v61 = vld [vmem:[%s9974_s5 + $0x218] sm:$0xff]  }
 0x15f   : > { %4328 = vmatmul.mubr.bf16.gmra.mrb[144].mxu0 %v9373_v31  ;;  %v9390_v13 = vadd.f32 %v6505_v0, %v9242_v18  ;;  %7287 = vmatpush3.bf16.msra.mxu1 %v9227_v23  ;;  %v9404_v42 = vsel %vm4045_vm7, %v4071_v38, %v4077_v8 }
 0x160   : > { %v9393_v54 = vadd.f32 %v9250_v25, %v6561_v5  ;;  %7274 = vmatprep.mubr.bf16.mxu1 %v8958_v27  ;;  %7288 = vmatprep.subr.bf16.mxu1 %v7867_v52  ;;  %v9410_v43 = vsel %vm4045_vm7, %v4079_v55, %v4085_v40 }
 0x161   : > { %4335 = vmatprep.mubr.bf16.mxu0 %v9379_v28  ;;  %v6506_v18 = vpop.f32.mrb[40].mxu1 }
 0x162   : > { %v6562_v6 = vpop.f32.mrb[40].mxu0  ;;  %v6507_v41 = vpop.f32.mrb[41].mxu1 }
 0x163   : > { %v6563_v25 = vpop.f32.mrb[41].mxu0  ;;  %v6508_v19 = vadd.f32 %v6507_v41, %v6506_v18  ;;  %v6509_v23 = vpop.f32.mrb[42].mxu1  ;;  %7289 = vmatpush3.bf16.msra.mxu1 %v7867_v52 }
 0x164   : > { %v6564_v7 = vadd.f32 %v6563_v25, %v6562_v6  ;;  %v6565_v47 = vpop.f32.mrb[42].mxu0  ;;  %v6510_v27 = vpop.f32.mrb[43].mxu1  ;;  %7290 = vmatprep.subr.bf16.mxu1 %v7868_v9 }
 0x165   : > { %v6566_v60 = vpop.f32.mrb[43].mxu0  ;;  %v9413_v59 = vadd.f32 %v6508_v19, %v9262_v11  ;;  %v6511_v58 = vadd.f32 %v6510_v27, %v6509_v23  ;;  %v4083_v11 = vrot.slane %v8617_v50, 1  ;;  %v7875_v19 = vld [vmem:[%s9974_s5 + $0x228] sm:$0xff]  }
 0x166   : > { %v9416_v12 = vadd.f32 %v9275_v24, %v6564_v7  ;;  %v6567_v29 = vadd.f32 %v6566_v60, %v6565_v47  ;;  %7275 = vmatmul.mubr.bf16.gmra.mrb[4].mxu1 %v8975_v1  ;;  %v7872_v1 = vld [vmem:[%s9974_s5 + $0x220] sm:$0xff]   ;;  %v4091_v24 = vrot.slane %v8622_v57, 1  ;;  %v4529_v57 = vrot.slane %v8816_v30, 1 }
 0x167   : > { %4336 = vmatmul.mubr.bf16.gmra.mrb[148].mxu0 %v9404_v42  ;;  %v9421_v38 = vadd.f32 %v6511_v58, %v9277_v10  ;;  %7291 = vmatpush3.bf16.msra.mxu1 %v7868_v9  ;;  %v9435_v50 = vsel %vm4045_vm7, %v4077_v8, %v4083_v11 }
 0x168   : > { %v9424_v52 = vadd.f32 %v9285_v17, %v6567_v29  ;;  %7278 = vmatprep.mubr.bf16.mxu1 %v8987_v4  ;;  %7292 = vmatprep.subr.bf16.mxu1 %v7871_v61  ;;  %v3631_v17 = vshrl.u32 %v8816_v30, 16  ;;  %v9443_v7 = vsel %vm4045_vm7, %v4085_v40, %v4091_v24 }
 0x169   : > { %4343 = vmatprep.mubr.bf16.mxu0 %v9410_v43  ;;  %v6512_v55 = vpop.f32.mrb[44].mxu1 }
 0x16a   : > { %v6568_v10 = vpop.f32.mrb[44].mxu0  ;;  %v6513_v0 = vpop.f32.mrb[45].mxu1 }
 0x16b   : > { %v6569_v5 = vpop.f32.mrb[45].mxu0  ;;  %v6514_v9 = vadd.f32 %v6513_v0, %v6512_v55  ;;  %v6515_v4 = vpop.f32.mrb[46].mxu1  ;;  %7293 = vmatpush3.bf16.msra.mxu1 %v7871_v61  ;;  %v7879_v55 = vld [vmem:[%s9974_s5 + $0x238] sm:$0xff]  }
 0x16c   : > { %v6570_v18 = vadd.f32 %v6569_v5, %v6568_v10  ;;  %v6571_v6 = vpop.f32.mrb[46].mxu0  ;;  %v6516_v41 = vpop.f32.mrb[47].mxu1  ;;  %7294 = vmatprep.subr.bf16.mxu1 %v7872_v1 }
 0x16d   : > { %v6572_v25 = vpop.f32.mrb[47].mxu0  ;;  %v9446_v23 = vadd.f32 %v6514_v9, %v9299_v15  ;;  %v6517_v8 = vadd.f32 %v6516_v41, %v6515_v4  ;;  %v3633_v15 = vor.u32 %v3631_v17, %v9092_v56  ;;  %v7880_v17 = vld [vmem:[%s9974_s5 + $0x440] sm:$0xff]   ;;  %v4063_v9 = vrot.slane %v8315_v14, 1 }
 0x16e   : > { %v9449_v47 = vadd.f32 %v9313_v48, %v6570_v18  ;;  %v6573_v27 = vadd.f32 %v6572_v25, %v6571_v6  ;;  %7279 = vmatmul.mubr.bf16.gmra.mrb[8].mxu1 %v9006_v63  ;;  %v4089_v48 = vrot.slane %v8636_v3, 1  ;;  %v7876_v63 = vld [vmem:[%s9974_s5 + $0x230] sm:$0xff]  }
 0x16f   : > { %4344 = vmatmul.mubr.bf16.gmra.mrb[152].mxu0 %v9435_v50  ;;  %v9454_v60 = vadd.f32 %v6517_v8, %v9315_v44  ;;  %7295 = vmatpush3.bf16.msra.mxu1 %v7872_v1  ;;  %v4051_v44 = vrot.slane %v8271_v39, 1  ;;  %v7885_v8 = vld [vmem:[%s9974_s5 + $0x648] sm:$0xff]  }
 0x170   : > { %v9457_v61 = vadd.f32 %v9323_v35, %v6573_v27  ;;  %7282 = vmatprep.mubr.bf16.mxu1 %v9105_v16  ;;  %7296 = vmatprep.subr.bf16.mxu1 %v7875_v19  ;;  %v3634_v16 = vsel %vm2575_vm6, %v3633_v15, %v8745_v32  ;;  %v9472_v56 = vsel %vm4045_vm7, %v4083_v11, %v4089_v48  ;;  %v4057_v11 = vrot.slane %v8281_v46, 1  ;;  %v7882_v46 = vld [vmem:[%s9974_s5 + $0x600] sm:$0xff]  }
 0x171   : > { %4351 = vmatprep.mubr.bf16.mxu0 %v9443_v7  ;;  %v4052_v39 = vsel %vm4045_vm7, %v8745_v32, %v4051_v44  ;;  %v9999_v15 = vld [vmem:[#allocation2_spill] sm:$0xff] }
 0x172   : > { %v6574_v40 = vpop.f32.mrb[48].mxu0 }
 0x173   : > { %v6575_v58 = vpop.f32.mrb[49].mxu0  ;;  %7297 = vmatpush3.bf16.msra.mxu1 %v7875_v19  ;;  %v9505_v19 = vsel %vm4045_vm7, %v4057_v11, %v4063_v9 }
 0x174   : > { %v6576_v35 = vadd.f32 %v6575_v58, %v6574_v40  ;;  %v6577_v29 = vpop.f32.mrb[50].mxu0  ;;  %7298 = vmatprep.subr.bf16.mxu1 %v7876_v63  ;;  %v10000_v40 = vld [vmem:[#allocation3_spill] sm:$0xff] }
 0x175   : > { %v6578_v1 = vpop.f32.mrb[51].mxu0 }
 0x176   : > { %v9480_v10 = vadd.f32 %v9347_v36, %v6576_v35  ;;  %v6579_v0 = vadd.f32 %v6578_v1, %v6577_v29  ;;  %7283 = vmatmul.mubr.bf16.gmra.mrb[12].mxu1 %v3634_v16 }
 0x177   : > { %4352 = vmatmul.mubr.bf16.gmra.mrb[156].mxu0 %v9472_v56  ;;  %7299 = vmatpush3.bf16.msra.mxu1 %v7876_v63  ;;  %v7886_v63 = vld [vmem:[%s9974_s5 + $0x608] sm:$0xff]  }
 0x178   : > { %v9484_v5 = vadd.f32 %v9357_v20, %v6579_v0  ;;  %7302 = vmatprep.mubr.bf16.mxu1 %v4052_v39  ;;  %7300 = vmatprep.subr.bf16.mxu1 %v7879_v55  ;;  %v9493_v20 = vsel %vm4045_vm7, %v4051_v44, %v4057_v11  ;;  %v7884_v44 = vld [vmem:[%s9974_s5 + $0x450] sm:$0xff]   ;;  %v7887_v39 = vld [vmem:[%s9974_s5 + $0x458] sm:$0xff]  }
 0x179   : > { %4710 = vmatprep.mubr.bf16.mxu0 %v9245_v33  ;;  %v7883_v33 = vld [vmem:[%s9974_s5 + $0x448] sm:$0xff]  }
 0x17a   : > { %v6580_v36 = vpop.f32.mrb[52].mxu0 }
 0x17b   : > { %v6581_v18 = vpop.f32.mrb[53].mxu0  ;;  %7301 = vmatpush3.bf16.msra.mxu1 %v7879_v55 }
 0x17c   : > { %v6582_v4 = vadd.f32 %v6581_v18, %v6580_v36  ;;  %v6583_v6 = vpop.f32.mrb[54].mxu0  ;;  %7318 = vmatprep.subr.bf16.mxu1 %v7880_v17  ;;  %v7890_v36 = vld [vmem:[%s9974_s5 + $0x610] sm:$0xff]  }
 0x17d   : > { %v6584_v41 = vpop.f32.mrb[55].mxu0 }
 0x17e   : > { %v9502_v25 = vadd.f32 %v9382_v34, %v6582_v4  ;;  %v6585_v14 = vadd.f32 %v6584_v41, %v6583_v6  ;;  %7303 = vmatmul.mubr.bf16.vlgmr.msra.gmra.mrb[0].mxu1 %v9493_v20  ;;  %v4069_v34 = vrot.slane %v9999_v15, 1  ;;  %v7888_v6 = vld [vmem:[%s9974_s5 + $0x460] sm:$0xff]  }
 0x17f   : > { %4711 = vmatmul.mubr.bf16.vlgmr.msra.gmra.mrb[160].mxu0 %v9265_v37  ;;  %7319 = vmatpush3.bf16.msra.mxu1 %v7880_v17  ;;  %v4075_v37 = vrot.slane %v10000_v40, 1 }
 0x180   : > { %v9513_v27 = vadd.f32 %v9390_v13, %v6585_v14  ;;  %7015 = vmatpush3.bf16.msra.mxu0 %v7882_v46  ;;  %7320 = vmatprep.subr.bf16.mxu1 %v7883_v33  ;;  %v7889_v13 = vld [vmem:[%s9974_s5 + $0x650] sm:$0xff]   ;;  %v9529_v1 = vsel %vm4045_vm7, %v4063_v9, %v4069_v34  ;;  %v7893_v9 = vld [vmem:[%s9974_s5 + $0x658] sm:$0xff]  }
 0x181   : > { %7306 = vmatprep.mubr.bf16.mxu1 %v9505_v19  ;;  %4718 = vmatprep.mubr.bf16.mxu0 %v9269_v2  ;;  %v9535_v0 = vsel %vm4045_vm7, %v4069_v34, %v4075_v37  ;;  %v10002_v46 = vld [vmem:[#allocation5_spill] sm:$0xff] }
 0x182   : > { %v6586_v58 = vpop.f32.mrb[56].mxu0  ;;  %7016 = vmatprep.subr.bf16.mxu0 %v7885_v8  ;;  %v4087_v41 = vrot.slane %v10002_v46, 1 }
 0x183   : > { %v6587_v35 = vpop.f32.mrb[57].mxu0  ;;  %7321 = vmatpush3.bf16.msra.mxu1 %v7883_v33 }
 0x184   : > { %v6588_v29 = vadd.f32 %v6587_v35, %v6586_v58  ;;  %v6589_v16 = vpop.f32.mrb[58].mxu0  ;;  %7017 = vmatpush3.bf16.msra.mxu0 %v7886_v63  ;;  %7322 = vmatprep.subr.bf16.mxu1 %v7884_v44  ;;  %v7896_v35 = vld [vmem:[%s9974_s5 + $0x660] sm:$0xff]  }
 0x185   : > { %v6590_v55 = vpop.f32.mrb[59].mxu0  ;;  %7018 = vmatprep.subr.bf16.mxu0 %v7889_v13 }
 0x186   : > { %v9538_v11 = vadd.f32 %v9413_v59, %v6588_v29  ;;  %v6591_v17 = vadd.f32 %v6590_v55, %v6589_v16  ;;  %7307 = vmatmul.mubr.bf16.gmra.mrb[4].mxu1 %v9529_v1  ;;  %v10001_v59 = vld [vmem:[#allocation4_spill] sm:$0xff]  ;;  %v7900_v55 = vld [vmem:[%s9974_s5 + $0x668] sm:$0xff]  }
 0x187   : > { %4719 = vmatmul.mubr.bf16.gmra.mrb[164].mxu0 %v9302_v53  ;;  %7323 = vmatpush3.bf16.msra.mxu1 %v7884_v44  ;;  %v4081_v4 = vrot.slane %v10001_v59, 1  ;;  %v7891_v44 = vld [vmem:[%s9974_s5 + $0x468] sm:$0xff]  }
 0x188   : > { %v9549_v18 = vadd.f32 %v9421_v38, %v6591_v17  ;;  %7310 = vmatprep.mubr.bf16.mxu1 %v9535_v0  ;;  %7324 = vmatprep.subr.bf16.mxu1 %v7887_v39  ;;  %v7894_v38 = vld [vmem:[%s9974_s5 + $0x618] sm:$0xff]  }
 0x189   : > { %4726 = vmatprep.mubr.bf16.mxu0 %v9307_v45  ;;  %7019 = vmatpush3.bf16.msra.mxu0 %v7890_v36  ;;  %v9562_v34 = vsel %vm4045_vm7, %v4075_v37, %v4081_v4  ;;  %v9568_v40 = vsel %vm4045_vm7, %v4081_v4, %v4087_v41  ;;  %v7898_v37 = vld [vmem:[%s9974_s5 + $0x620] sm:$0xff]  }
 0x18a   : > { %v6592_v33 = vpop.f32.mrb[60].mxu0  ;;  %7020 = vmatprep.subr.bf16.mxu0 %v7893_v9 }
 0x18b   : > { %v6593_v14 = vpop.f32.mrb[61].mxu0  ;;  %7325 = vmatpush3.bf16.msra.mxu1 %v7887_v39  ;;  %v7892_v39 = vld [vmem:[%s9974_s5 + $0x470] sm:$0xff]  }
 0x18c   : > { %v6594_v8 = vadd.f32 %v6593_v14, %v6592_v33  ;;  %v6595_v15 = vpop.f32.mrb[62].mxu0  ;;  %7326 = vmatprep.subr.bf16.mxu1 %v7888_v6 }
 0x18d   : > { %v6596_v63 = vpop.f32.mrb[63].mxu0  ;;  %7021 = vmatpush3.bf16.msra.mxu0 %v7894_v38  ;;  %v7902_v38 = vld [vmem:[%s9974_s5 + $0x628] sm:$0xff]  }
 0x18e   : > { %v9571_v13 = vadd.f32 %v9446_v23, %v6594_v8  ;;  %v6597_v58 = vadd.f32 %v6596_v63, %v6595_v15  ;;  %7311 = vmatmul.mubr.bf16.gmra.mrb[8].mxu1 %v9562_v34  ;;  %v10003_v23 = vld [vmem:[#allocation6_spill] sm:$0xff]  ;;  %7022 = vmatprep.subr.bf16.mxu0 %v7896_v35  ;;  %v7906_v15 = vld [vmem:[%s9974_s5 + $0x630] sm:$0xff]  }
 0x18f   : > { %4727 = vmatmul.mubr.bf16.gmra.mrb[168].mxu0 %v9338_v49  ;;  %7327 = vmatpush3.bf16.msra.mxu1 %v7888_v6  ;;  %v4093_v16 = vrot.slane %v10003_v23, 1  ;;  %v7895_v6 = vld [vmem:[%s9974_s5 + $0x478] sm:$0xff]  }
 0x190   : > { %v9582_v29 = vadd.f32 %v9454_v60, %v6597_v58  ;;  %7314 = vmatprep.mubr.bf16.mxu1 %v9568_v40  ;;  %7328 = vmatprep.subr.bf16.mxu1 %v7891_v44 }
 0x191   : > { %4734 = vmatprep.mubr.bf16.mxu0 %v9341_v51  ;;  %7023 = vmatpush3.bf16.msra.mxu0 %v7898_v37  ;;  %v9596_v59 = vsel %vm4045_vm7, %v4087_v41, %v4093_v16  ;;  %v7904_v41 = vld [vmem:[%s9974_s5 + $0x670] sm:$0xff]  }
 0x192   : > { %v6630_v17 = vpop.f32.mrb[64].mxu0  ;;  %7024 = vmatprep.subr.bf16.mxu0 %v7900_v55  ;;  %v7908_v55 = vld [vmem:[%s9974_s5 + $0x678] sm:$0xff]  }
 0x193   : > { %v6631_v60 = vpop.f32.mrb[65].mxu0  ;;  %7329 = vmatpush3.bf16.msra.mxu1 %v7891_v44 }
 0x194   : > { %v6632_v36 = vadd.f32 %v6631_v60, %v6630_v17  ;;  %v6633_v9 = vpop.f32.mrb[66].mxu0  ;;  %7330 = vmatprep.subr.bf16.mxu1 %v7892_v39 }
 0x195   : > { %v6634_v4 = vpop.f32.mrb[67].mxu0  ;;  %7025 = vmatpush3.bf16.msra.mxu0 %v7902_v38 }
 0x196   : > { %v9602_v46 = vadd.f32 %v9350_v26, %v6632_v36  ;;  %v6635_v33 = vadd.f32 %v6634_v4, %v6633_v9  ;;  %7315 = vmatmul.mubr.bf16.gmra.mrb[12].mxu1 %v9596_v59  ;;  %v7897_v26 = vld [vmem:[%s9974_s5 + $0x680] sm:$0xff]   ;;  %7026 = vmatprep.subr.bf16.mxu0 %v7904_v41 }
 0x197   : > { %4735 = vmatmul.mubr.bf16.gmra.mrb[172].mxu0 %v9373_v31  ;;  %7331 = vmatpush3.bf16.msra.mxu1 %v7892_v39  ;;  %v7910_v39 = vld [vmem:[%s9974_s5 + $0x638] sm:$0xff]  }
 0x198   : > { %v9613_v14 = vadd.f32 %v9360_v21, %v6635_v33  ;;  %4742 = vmatprep.mubr.bf16.mxu0 %v9379_v28  ;;  %7332 = vmatprep.subr.bf16.mxu1 %v7895_v6 }
 0x199   : > { %7334 = vmatprep.mubr.bf16.mxu1 %v9493_v20  ;;  %v7899_v20 = vld [vmem:[%s9974_s5 + $0x688] sm:$0xff]   ;;  %7027 = vmatpush3.bf16.msra.mxu0 %v7906_v15 }
 0x19a   : > { %v6636_v8 = vpop.f32.mrb[68].mxu0  ;;  %7028 = vmatprep.subr.bf16.mxu0 %v7908_v55 }
 0x19b   : > { %v6637_v63 = vpop.f32.mrb[69].mxu0  ;;  %7333 = vmatpush3.bf16.msra.mxu1 %v7895_v6 }
 0x19c   : > { %v6638_v21 = vadd.f32 %v6637_v63, %v6636_v8  ;;  %v6639_v44 = vpop.f32.mrb[70].mxu0  ;;  %7350 = vmatprep.subr.bf16.mxu1 %v7897_v26 }
 0x19d   : > { %v6640_v58 = vpop.f32.mrb[71].mxu0  ;;  %7029 = vmatpush3.bf16.msra.mxu0 %v7910_v39 }
 0x19e   : > { %v9627_v35 = vadd.f32 %v9385_v22, %v6638_v21  ;;  %v6641_v37 = vadd.f32 %v6640_v58, %v6639_v44  ;;  %7335 = vmatmul.mubr.bf16.vlgmr.msra.gmra.mrb[0].mxu1 %v9505_v19  ;;  %v7901_v22 = vld [vmem:[%s9974_s5 + $0x690] sm:$0xff]  }
 0x19f   : > { %4743 = vmatmul.mubr.bf16.gmra.mrb[176].mxu0 %v9404_v42  ;;  %7351 = vmatpush3.bf16.msra.mxu1 %v7897_v26  ;;  %v7905_v26 = vld [vmem:[%s9974_s5 + $0x6a0] sm:$0xff]  }
 0x1a0   : > { %v9638_v17 = vadd.f32 %v9393_v54, %v6641_v37  ;;  %4750 = vmatprep.mubr.bf16.mxu0 %v9410_v43  ;;  %7352 = vmatprep.subr.bf16.mxu1 %v7899_v20  ;;  %v7903_v54 = vld [vmem:[%s9974_s5 + $0x698] sm:$0xff]  }
 0x1a1   : > { %7338 = vmatprep.mubr.bf16.mxu1 %v9529_v1 }
 0x1a2   : > { %v6642_v60 = vpop.f32.mrb[72].mxu0 }
 0x1a3   : > { %v6643_v36 = vpop.f32.mrb[73].mxu0  ;;  %7353 = vmatpush3.bf16.msra.mxu1 %v7899_v20 }
 0x1a4   : > { %v6644_v9 = vadd.f32 %v6643_v36, %v6642_v60  ;;  %v6645_v4 = vpop.f32.mrb[74].mxu0  ;;  %7354 = vmatprep.subr.bf16.mxu1 %v7901_v22 }
 0x1a5   : > { %v6646_v6 = vpop.f32.mrb[75].mxu0 }
 0x1a6   : > { %v9649_v33 = vadd.f32 %v9416_v12, %v6644_v9  ;;  %v6647_v38 = vadd.f32 %v6646_v6, %v6645_v4  ;;  %7339 = vmatmul.mubr.bf16.gmra.mrb[4].mxu1 %v9535_v0  ;;  %v10004_v12 = vld [vmem:[#allocation7_spill] sm:$0xff]  ;;  %v4530_v4 = vsel %vm4045_vm7, %v4093_v16, %v4529_v57 }
 0x1a7   : > { %4751 = vmatmul.mubr.bf16.gmra.mrb[180].mxu0 %v9435_v50  ;;  %7355 = vmatpush3.bf16.msra.mxu1 %v7901_v22  ;;  %v4527_v8 = vrot.slane %v10004_v12, 1  ;;  %v4525_v22 = vrot.slane %v8754_v62, 1 }
 0x1a8   : > { %v9654_v41 = vadd.f32 %v9424_v52, %v6647_v38  ;;  %4758 = vmatprep.mubr.bf16.mxu0 %v9443_v7  ;;  %7356 = vmatprep.subr.bf16.mxu1 %v7903_v54  ;;  %v7907_v52 = vld [vmem:[%s9974_s5 + $0x6a8] sm:$0xff]  }
 0x1a9   : > { %7342 = vmatprep.mubr.bf16.mxu1 %v9562_v34  ;;  %v9670_v20 = vsel %vm4045_vm7, %v4091_v24, %v4527_v8  ;;  %v7909_v24 = vld [vmem:[%s9974_s5 + $0x6b0] sm:$0xff]  }
 0x1aa   : > { %v6648_v15 = vpop.f32.mrb[76].mxu0 }
 0x1ab   : > { %v6649_v63 = vpop.f32.mrb[77].mxu0  ;;  %7357 = vmatpush3.bf16.msra.mxu1 %v7903_v54  ;;  %v7911_v54 = vld [vmem:[%s9974_s5 + $0x6b8] sm:$0xff]  }
 0x1ac   : > { %v6650_v21 = vadd.f32 %v6649_v63, %v6648_v15  ;;  %v6651_v44 = vpop.f32.mrb[78].mxu0  ;;  %7358 = vmatprep.subr.bf16.mxu1 %v7905_v26 }
 0x1ad   : > { %v6652_v58 = vpop.f32.mrb[79].mxu0 }
 0x1ae   : > { %v9673_v37 = vadd.f32 %v9449_v47, %v6650_v21  ;;  %v6653_v55 = vadd.f32 %v6652_v58, %v6651_v44  ;;  %7343 = vmatmul.mubr.bf16.gmra.mrb[8].mxu1 %v9568_v40 }
 0x1af   : > { %4759 = vmatmul.mubr.bf16.gmra.mrb[184].mxu0 %v9472_v56  ;;  %7359 = vmatpush3.bf16.msra.mxu1 %v7905_v26 }
 0x1b0   : > { %v9678_v39 = vadd.f32 %v9457_v61, %v6653_v55  ;;  %4766 = vmatprep.mubr.bf16.mxu0 %v9670_v20  ;;  %7360 = vmatprep.subr.bf16.mxu1 %v7907_v52  ;;  %v9692_v61 = vsel %vm4045_vm7, %v4089_v48, %v4525_v22 }
 0x1b1   : > { %7346 = vmatprep.mubr.bf16.mxu1 %v9596_v59 }
 0x1b2   : > { %v6654_v47 = vpop.f32.mrb[80].mxu0 }
 0x1b3   : > { %v6655_v60 = vpop.f32.mrb[81].mxu0  ;;  %7361 = vmatpush3.bf16.msra.mxu1 %v7907_v52 }
 0x1b4   : > { %v6656_v36 = vadd.f32 %v6655_v60, %v6654_v47  ;;  %v6657_v9 = vpop.f32.mrb[82].mxu0  ;;  %7362 = vmatprep.subr.bf16.mxu1 %v7909_v24 }
 0x1b5   : > { %v6658_v6 = vpop.f32.mrb[83].mxu0 }
 0x1b6   : > { %v9703_v38 = vadd.f32 %v9480_v10, %v6656_v36  ;;  %v6659_v26 = vadd.f32 %v6658_v6, %v6657_v9  ;;  %7347 = vmatmul.mubr.bf16.gmra.mrb[12].mxu1 %v4530_v4 }
 0x1b7   : > { %4767 = vmatmul.mubr.bf16.gmra.mrb[188].mxu0 %v9692_v61  ;;  %7363 = vmatpush3.bf16.msra.mxu1 %v7909_v24 }
 0x1b8   : > { %v9707_v3 = vadd.f32 %v9484_v5, %v6659_v26  ;;  %5119 = vmatprep.mubr.bf16.mxu0 %v9269_v2  ;;  %7364 = vmatprep.subr.bf16.mxu1 %v7911_v54 }
 0x1b9   : > { %7366 = vmatprep.mubr.bf16.mxu1 %v9505_v19 }
 0x1ba   : > { %v6660_v48 = vpop.f32.mrb[84].mxu0 }
 0x1bb   : > { %v6661_v23 = vpop.f32.mrb[85].mxu0  ;;  %7365 = vmatpush3.bf16.msra.mxu1 %v7911_v54 }
 0x1bc   : > { %v6662_v16 = vadd.f32 %v6661_v23, %v6660_v48  ;;  %v6663_v15 = vpop.f32.mrb[86].mxu0 }
 0x1bd   : > { %v6664_v10 = vpop.f32.mrb[87].mxu0 }
 0x1be   : > { %v9712_v63 = vadd.f32 %v9502_v25, %v6662_v16  ;;  %v6665_v21 = vadd.f32 %v6664_v10, %v6663_v15  ;;  %7367 = vmatmul.mubr.bf16.vlgmr.msra.gmra.mrb[0].mxu1 %v9529_v1 }
 0x1bf   : > { %5120 = vmatmul.mubr.bf16.vlgmr.msra.gmra.mrb[192].mxu0 %v9302_v53  ;;  %7370 = vmatprep.mubr.bf16.mxu1 %v9535_v0 }
 0x1c0   : > { %v9717_v5 = vadd.f32 %v9513_v27, %v6665_v21  ;;  %5127 = vmatprep.mubr.bf16.mxu0 %v9307_v45 }
 0x1c2   : > { %v6666_v2 = vpop.f32.mrb[88].mxu0 }
 0x1c3   : > { %v6667_v19 = vpop.f32.mrb[89].mxu0 }
 0x1c4   : > { %v6668_v44 = vadd.f32 %v6667_v19, %v6666_v2  ;;  %v6669_v58 = vpop.f32.mrb[90].mxu0 }
 0x1c5   : > { %v6670_v52 = vpop.f32.mrb[91].mxu0 }
 0x1c6   : > { %v9722_v25 = vadd.f32 %v9538_v11, %v6668_v44  ;;  %v6671_v55 = vadd.f32 %v6670_v52, %v6669_v58  ;;  %7371 = vmatmul.mubr.bf16.gmra.mrb[4].mxu1 %v9562_v34 }
 0x1c7   : > { %5128 = vmatmul.mubr.bf16.gmra.mrb[196].mxu0 %v9338_v49  ;;  %7374 = vmatprep.mubr.bf16.mxu1 %v9568_v40 }
 0x1c8   : > { %v9727_v53 = vadd.f32 %v9549_v18, %v6671_v55  ;;  %5135 = vmatprep.mubr.bf16.mxu0 %v9341_v51 }
 0x1ca   : > { %v6672_v45 = vpop.f32.mrb[92].mxu0 }
 0x1cb   : > { %v6673_v27 = vpop.f32.mrb[93].mxu0 }
 0x1cc   : > { %v6674_v1 = vadd.f32 %v6673_v27, %v6672_v45  ;;  %v6675_v0 = vpop.f32.mrb[94].mxu0 }
 0x1cd   : > { %v6676_v24 = vpop.f32.mrb[95].mxu0 }
 0x1ce   : > { %v9732_v11 = vadd.f32 %v9571_v13, %v6674_v1  ;;  %v6677_v47 = vadd.f32 %v6676_v24, %v6675_v0  ;;  %7375 = vmatmul.mubr.bf16.gmra.mrb[8].mxu1 %v9596_v59  ;;  %v4939_v13 = vsel %vm4045_vm7, %v4529_v57, %v8745_v32 }
 0x1cf   : > { %5136 = vmatmul.mubr.bf16.gmra.mrb[200].mxu0 %v9373_v31  ;;  %7378 = vmatprep.mubr.bf16.mxu1 %v4530_v4 }
 0x1d0   : > { %v9737_v49 = vadd.f32 %v9582_v29, %v6677_v47  ;;  %5143 = vmatprep.mubr.bf16.mxu0 %v9379_v28 }
 0x1d2   : > { %v6710_v51 = vpop.f32.mrb[96].mxu0 }
 0x1d3   : > { %v6711_v18 = vpop.f32.mrb[97].mxu0 }
 0x1d4   : > { %v6712_v34 = vadd.f32 %v6711_v18, %v6710_v51  ;;  %v6713_v40 = vpop.f32.mrb[98].mxu0 }
 0x1d5   : > { %v6714_v60 = vpop.f32.mrb[99].mxu0 }
 0x1d6   : > { %v7394_v31 = vadd.f32 %v9602_v46, %v6712_v34  ;;  %v6715_v36 = vadd.f32 %v6714_v60, %v6713_v40  ;;  %7379 = vmatmul.mubr.bf16.gmra.mrb[12].mxu1 %v4939_v13 }
 0x1d7   : > { %5144 = vmatmul.mubr.bf16.gmra.mrb[204].mxu0 %v9404_v42 }
 0x1d8   : > { %v7412_v29 = vadd.f32 %v9613_v14, %v6715_v36  ;;  %5151 = vmatprep.mubr.bf16.mxu0 %v9410_v43 }
 0x1da   : > { %v6716_v28 = vpop.f32.mrb[100].mxu0 }
 0x1db   : > { %v6717_v59 = vpop.f32.mrb[101].mxu0 }
 0x1dc   : > { %v6718_v9 = vadd.f32 %v6717_v59, %v6716_v28  ;;  %v6719_v4 = vpop.f32.mrb[102].mxu0 }
 0x1dd   : > { %v6720_v6 = vpop.f32.mrb[103].mxu0 }
 0x1de   : > { %v7385_v30 = vadd.f32 %v9627_v35, %v6718_v9  ;;  %v6721_v54 = vadd.f32 %v6720_v6, %v6719_v4 }
 0x1df   : > { %5152 = vmatmul.mubr.bf16.gmra.mrb[208].mxu0 %v9435_v50 }
 0x1e0   : > { %v7403_v46 = vadd.f32 %v9638_v17, %v6721_v54  ;;  %5159 = vmatprep.mubr.bf16.mxu0 %v9443_v7  ;;  %v4938_v7 = vsel %vm4045_vm7, %v4527_v8, %v8745_v32  ;;  %v4937_v8 = vsel %vm4045_vm7, %v4525_v22, %v8745_v32 }
 0x1e2   : > { %v6722_v42 = vpop.f32.mrb[104].mxu0 }
 0x1e3   : > { %v6723_v57 = vpop.f32.mrb[105].mxu0 }
 0x1e4   : > { %v6724_v26 = vadd.f32 %v6723_v57, %v6722_v42  ;;  %v6725_v14 = vpop.f32.mrb[106].mxu0 }
 0x1e5   : > { %v6726_v48 = vpop.f32.mrb[107].mxu0 }
 0x1e6   : > { %v7430_v43 = vadd.f32 %v9649_v33, %v6724_v26  ;;  %v6727_v23 = vadd.f32 %v6726_v48, %v6725_v14 }
 0x1e7   : > { %5160 = vmatmul.mubr.bf16.gmra.mrb[212].mxu0 %v9472_v56 }
 0x1e8   : > { %v7448_v16 = vadd.f32 %v9654_v41, %v6727_v23  ;;  %5167 = vmatprep.mubr.bf16.mxu0 %v9670_v20 }
 0x1ea   : > { %v6728_v35 = vpop.f32.mrb[108].mxu0 }
 0x1eb   : > { %v6729_v50 = vpop.f32.mrb[109].mxu0 }
 0x1ec   : > { %v6730_v15 = vadd.f32 %v6729_v50, %v6728_v35  ;;  %v6731_v17 = vpop.f32.mrb[110].mxu0 }
 0x1ed   : > { %v6732_v10 = vpop.f32.mrb[111].mxu0 }
 0x1ee   : > { %v9761_v21 = vadd.f32 %v9673_v37, %v6730_v15  ;;  %v6733_v33 = vadd.f32 %v6732_v10, %v6731_v17 }
 0x1ef   : > { %5168 = vmatmul.mubr.bf16.gmra.mrb[216].mxu0 %v9692_v61 }
 0x1f0   : > { %v9765_v56 = vadd.f32 %v9678_v39, %v6733_v33  ;;  %5175 = vmatprep.mubr.bf16.mxu0 %v4938_v7 }
 0x1f1   : > { %v6790_v20 = vpop.f32.mrb[48].mxu1 }
 0x1f2   : > { %v6734_v41 = vpop.f32.mrb[112].mxu0  ;;  %v6791_v19 = vpop.f32.mrb[49].mxu1 }
 0x1f3   : > { %v6735_v2 = vpop.f32.mrb[113].mxu0  ;;  %v6792_v58 = vadd.f32 %v6791_v19, %v6790_v20  ;;  %v6793_v12 = vpop.f32.mrb[50].mxu1 }
 0x1f4   : > { %v6736_v44 = vadd.f32 %v6735_v2, %v6734_v41  ;;  %v6737_v52 = vpop.f32.mrb[114].mxu0  ;;  %v6794_v55 = vpop.f32.mrb[51].mxu1 }
 0x1f5   : > { %v6738_v37 = vpop.f32.mrb[115].mxu0  ;;  %v9774_v39 = vadd.f32 %v7394_v31, %v6792_v58  ;;  %v6795_v27 = vadd.f32 %v6794_v55, %v6793_v12 }
 0x1f6   : > { %v9772_v61 = vadd.f32 %v9703_v38, %v6736_v44  ;;  %v6739_v45 = vadd.f32 %v6738_v37, %v6737_v52 }
 0x1f7   : > { %5176 = vmatmul.mubr.bf16.gmra.mrb[220].mxu0 %v4937_v8  ;;  %v9779_v0 = vadd.f32 %v7412_v29, %v6795_v27 }
 0x1f8   : > { %v9777_v1 = vadd.f32 %v9707_v3, %v6739_v45 }
 0x1f9   : > { %v6796_v47 = vpop.f32.mrb[52].mxu1 }
 0x1fa   : > { %v6740_v24 = vpop.f32.mrb[116].mxu0  ;;  %v6797_v51 = vpop.f32.mrb[53].mxu1 }
 0x1fb   : > { %v6741_v62 = vpop.f32.mrb[117].mxu0  ;;  %v6798_v22 = vadd.f32 %v6797_v51, %v6796_v47  ;;  %v6799_v34 = vpop.f32.mrb[54].mxu1 }
 0x1fc   : > { %v6742_v32 = vadd.f32 %v6741_v62, %v6740_v24  ;;  %v6743_v18 = vpop.f32.mrb[118].mxu0  ;;  %v6800_v40 = vpop.f32.mrb[55].mxu1 }
 0x1fd   : > { %v6744_v38 = vpop.f32.mrb[119].mxu0  ;;  %v9784_v60 = vadd.f32 %v7385_v30, %v6798_v22  ;;  %v6801_v3 = vadd.f32 %v6800_v40, %v6799_v34 }
 0x1fe   : > { %v9782_v13 = vadd.f32 %v9712_v63, %v6742_v32  ;;  %v6745_v31 = vadd.f32 %v6744_v38, %v6743_v18 }
 0x1ff   : > { %v9789_v29 = vadd.f32 %v7403_v46, %v6801_v3 }
 0x200   : > { %v9787_v36 = vadd.f32 %v9717_v5, %v6745_v31 }
 0x201   : > { %v6802_v59 = vpop.f32.mrb[56].mxu1 }
 0x202   : > { %v6746_v28 = vpop.f32.mrb[120].mxu0  ;;  %v6803_v4 = vpop.f32.mrb[57].mxu1 }
 0x203   : > { %v6747_v9 = vpop.f32.mrb[121].mxu0  ;;  %v6804_v54 = vadd.f32 %v6803_v4, %v6802_v59  ;;  %v6805_v57 = vpop.f32.mrb[58].mxu1 }
 0x204   : > { %v6748_v6 = vadd.f32 %v6747_v9, %v6746_v28  ;;  %v6749_v42 = vpop.f32.mrb[122].mxu0  ;;  %v6806_v63 = vpop.f32.mrb[59].mxu1 }
 0x205   : > { %v6750_v26 = vpop.f32.mrb[123].mxu0  ;;  %v9794_v14 = vadd.f32 %v7430_v43, %v6804_v54  ;;  %v6807_v5 = vadd.f32 %v6806_v63, %v6805_v57 }
 0x206   : > { %v9792_v30 = vadd.f32 %v9722_v25, %v6748_v6  ;;  %v6751_v48 = vadd.f32 %v6750_v26, %v6749_v42 }
 0x207   : > { %v9799_v23 = vadd.f32 %v7448_v16, %v6807_v5 }
 0x208   : > { %v9797_v46 = vadd.f32 %v9727_v53, %v6751_v48 }
 0x209   : > { %v6808_v50 = vpop.f32.mrb[60].mxu1 }
 0x20a   : > { %v6752_v35 = vpop.f32.mrb[124].mxu0  ;;  %v6809_v17 = vpop.f32.mrb[61].mxu1 }
 0x20b   : > { %v6753_v15 = vpop.f32.mrb[125].mxu0  ;;  %v6810_v7 = vadd.f32 %v6809_v17, %v6808_v50  ;;  %v6811_v41 = vpop.f32.mrb[62].mxu1 }
 0x20c   : > { %v6754_v10 = vadd.f32 %v6753_v15, %v6752_v35  ;;  %v6755_v33 = vpop.f32.mrb[126].mxu0  ;;  %v6812_v25 = vpop.f32.mrb[63].mxu1 }
 0x20d   : > { %v6756_v20 = vpop.f32.mrb[127].mxu0  ;;  %v9805_v2 = vadd.f32 %v9761_v21, %v6810_v7  ;;  %v6813_v19 = vadd.f32 %v6812_v25, %v6811_v41 }
 0x20e   : > { %v9802_v43 = vadd.f32 %v9732_v11, %v6754_v10  ;;  %v6757_v53 = vadd.f32 %v6756_v20, %v6755_v33 }
 0x20f   : > { %v9811_v44 = vadd.f32 %v9765_v56, %v6813_v19 }
 0x210   : > { %v9808_v16 = vadd.f32 %v9737_v49, %v6757_v53 }
 0x211   : > { %v6814_v58 = vpop.f32.mrb[64].mxu1 }
 0x212   : > { %v6870_v52 = vpop.f32.mrb[128].mxu0  ;;  %v6815_v12 = vpop.f32.mrb[65].mxu1 }
 0x213   : > { %v6871_v8 = vpop.f32.mrb[129].mxu0  ;;  %v6816_v37 = vadd.f32 %v6815_v12, %v6814_v58  ;;  %v6817_v45 = vpop.f32.mrb[66].mxu1 }
 0x214   : > { %v6872_v55 = vadd.f32 %v6871_v8, %v6870_v52  ;;  %v6873_v11 = vpop.f32.mrb[130].mxu0  ;;  %v6818_v27 = vpop.f32.mrb[67].mxu1 }
 0x215   : > { %v6874_v24 = vpop.f32.mrb[131].mxu0  ;;  %v7467_v21 = vadd.f32 %v9772_v61, %v6816_v37  ;;  %v6819_v49 = vadd.f32 %v6818_v27, %v6817_v45 }
 0x216   : > { %v9815_v47 = vadd.f32 %v9774_v39, %v6872_v55  ;;  %v6875_v62 = vadd.f32 %v6874_v24, %v6873_v11 }
 0x217   : > { %v7485_v56 = vadd.f32 %v9777_v1, %v6819_v49 }
 0x218   : > { %v9819_v51 = vadd.f32 %v9779_v0, %v6875_v62 }
 0x219   : > { %v6820_v32 = vpop.f32.mrb[68].mxu1 }
 0x21a   : > { %v6876_v22 = vpop.f32.mrb[132].mxu0  ;;  %v6821_v18 = vpop.f32.mrb[69].mxu1 }
 0x21b   : > { %v6877_v34 = vpop.f32.mrb[133].mxu0  ;;  %v6822_v38 = vadd.f32 %v6821_v18, %v6820_v32  ;;  %v6823_v31 = vpop.f32.mrb[70].mxu1 }
 0x21c   : > { %v6878_v40 = vadd.f32 %v6877_v34, %v6876_v22  ;;  %v6879_v3 = vpop.f32.mrb[134].mxu0  ;;  %v6824_v28 = vpop.f32.mrb[71].mxu1 }
 0x21d   : > { %v6880_v61 = vpop.f32.mrb[135].mxu0  ;;  %v7458_v39 = vadd.f32 %v9782_v13, %v6822_v38  ;;  %v6825_v9 = vadd.f32 %v6824_v28, %v6823_v31 }
 0x21e   : > { %v9823_v59 = vadd.f32 %v9784_v60, %v6878_v40  ;;  %v6881_v1 = vadd.f32 %v6880_v61, %v6879_v3 }
 0x21f   : > { %v7476_v0 = vadd.f32 %v9787_v36, %v6825_v9 }
 0x220   : > { %v9827_v4 = vadd.f32 %v9789_v29, %v6881_v1 }
 0x221   : > { %v6826_v6 = vpop.f32.mrb[72].mxu1 }
 0x222   : > { %v6882_v54 = vpop.f32.mrb[136].mxu0  ;;  %v6827_v42 = vpop.f32.mrb[73].mxu1 }
 0x223   : > { %v6883_v57 = vpop.f32.mrb[137].mxu0  ;;  %v6828_v26 = vadd.f32 %v6827_v42, %v6826_v6  ;;  %v6829_v48 = vpop.f32.mrb[74].mxu1 }
 0x224   : > { %v6884_v63 = vadd.f32 %v6883_v57, %v6882_v54  ;;  %v6885_v5 = vpop.f32.mrb[138].mxu0  ;;  %v6830_v35 = vpop.f32.mrb[75].mxu1 }
 0x225   : > { %v6886_v13 = vpop.f32.mrb[139].mxu0  ;;  %v7503_v60 = vadd.f32 %v9792_v30, %v6828_v26  ;;  %v6831_v15 = vadd.f32 %v6830_v35, %v6829_v48 }
 0x226   : > { %v9831_v50 = vadd.f32 %v9794_v14, %v6884_v63  ;;  %v6887_v36 = vadd.f32 %v6886_v13, %v6885_v5 }
 0x227   : > { %v7521_v29 = vadd.f32 %v9797_v46, %v6831_v15 }
 0x228   : > { %v9835_v17 = vadd.f32 %v9799_v23, %v6887_v36 }
 0x229   : > { %v6832_v10 = vpop.f32.mrb[76].mxu1 }
 0x22a   : > { %v6888_v7 = vpop.f32.mrb[140].mxu0  ;;  %v6833_v33 = vpop.f32.mrb[77].mxu1 }
 0x22b   : > { %v6889_v41 = vpop.f32.mrb[141].mxu0  ;;  %v6834_v20 = vadd.f32 %v6833_v33, %v6832_v10  ;;  %v6835_v53 = vpop.f32.mrb[78].mxu1 }
 0x22c   : > { %v6890_v25 = vadd.f32 %v6889_v41, %v6888_v7  ;;  %v6891_v19 = vpop.f32.mrb[142].mxu0  ;;  %v6836_v58 = vpop.f32.mrb[79].mxu1 }
 0x22d   : > { %v6892_v30 = vpop.f32.mrb[143].mxu0  ;;  %v7494_v14 = vadd.f32 %v9802_v43, %v6834_v20  ;;  %v6837_v12 = vadd.f32 %v6836_v58, %v6835_v53 }
 0x22e   : > { %v9839_v52 = vadd.f32 %v9805_v2, %v6890_v25  ;;  %v6893_v46 = vadd.f32 %v6892_v30, %v6891_v19 }
 0x22f   : > { %v7512_v23 = vadd.f32 %v9808_v16, %v6837_v12 }
 0x230   : > { %v9843_v8 = vadd.f32 %v9811_v44, %v6893_v46 }
 0x232   : > { %v6894_v37 = vpop.f32.mrb[144].mxu0 }
 0x233   : > { %v6895_v55 = vpop.f32.mrb[145].mxu0 }
 0x234   : > { %v6896_v45 = vadd.f32 %v6895_v55, %v6894_v37  ;;  %v6897_v11 = vpop.f32.mrb[146].mxu0 }
 0x235   : > { %v6898_v27 = vpop.f32.mrb[147].mxu0 }
 0x236   : > { %v9845_v24 = vadd.f32 %v7467_v21, %v6896_v45  ;;  %v6899_v49 = vadd.f32 %v6898_v27, %v6897_v11 }
 0x238   : > { %v9847_v62 = vadd.f32 %v7485_v56, %v6899_v49 }
 0x23a   : > { %v6900_v43 = vpop.f32.mrb[148].mxu0 }
 0x23b   : > { %v6901_v2 = vpop.f32.mrb[149].mxu0 }
 0x23c   : > { %v6902_v32 = vadd.f32 %v6901_v2, %v6900_v43  ;;  %v6903_v22 = vpop.f32.mrb[150].mxu0 }
 0x23d   : > { %v6904_v18 = vpop.f32.mrb[151].mxu0 }
 0x23e   : > { %v9849_v34 = vadd.f32 %v7458_v39, %v6902_v32  ;;  %v6905_v16 = vadd.f32 %v6904_v18, %v6903_v22 }
 0x240   : > { %v9851_v44 = vadd.f32 %v7476_v0, %v6905_v16 }
 0x242   : > { %v6906_v38 = vpop.f32.mrb[152].mxu0 }
 0x243   : > { %v6907_v40 = vpop.f32.mrb[153].mxu0 }
 0x244   : > { %v6908_v31 = vadd.f32 %v6907_v40, %v6906_v38  ;;  %v6909_v3 = vpop.f32.mrb[154].mxu0 }
 0x245   : > { %v6910_v28 = vpop.f32.mrb[155].mxu0 }
 0x246   : > { %v9853_v21 = vadd.f32 %v7503_v60, %v6908_v31  ;;  %v6911_v61 = vadd.f32 %v6910_v28, %v6909_v3 }
 0x248   : > { %v9855_v56 = vadd.f32 %v7521_v29, %v6911_v61 }
 0x24a   : > { %v6912_v9 = vpop.f32.mrb[156].mxu0 }
 0x24b   : > { %v6913_v1 = vpop.f32.mrb[157].mxu0 }
 0x24c   : > { %v6914_v6 = vadd.f32 %v6913_v1, %v6912_v9  ;;  %v6915_v54 = vpop.f32.mrb[158].mxu0 }
 0x24d   : > { %v6916_v42 = vpop.f32.mrb[159].mxu0 }
 0x24e   : > { %v9857_v39 = vadd.f32 %v7494_v14, %v6914_v6  ;;  %v6917_v57 = vadd.f32 %v6916_v42, %v6915_v54 }
 0x250   : > { %v9859_v0 = vadd.f32 %v7512_v23, %v6917_v57 }
 0x252   : > { %v6950_v26 = vpop.f32.mrb[160].mxu0 }
 0x253   : > { %v6951_v63 = vpop.f32.mrb[161].mxu0 }
 0x254   : > { %v6952_v48 = vadd.f32 %v6951_v63, %v6950_v26  ;;  %v6953_v5 = vpop.f32.mrb[162].mxu0 }
 0x255   : > { %v6954_v35 = vpop.f32.mrb[163].mxu0 }
 0x256   : > { %v9862_v13 = vadd.f32 %v9815_v47, %v6952_v48  ;;  %v6955_v60 = vadd.f32 %v6954_v35, %v6953_v5 }
 0x258   : > { %v9865_v15 = vadd.f32 %v9819_v51, %v6955_v60 }
 0x25a   : > { %v6956_v36 = vpop.f32.mrb[164].mxu0 }
 0x25b   : > { %v6957_v29 = vpop.f32.mrb[165].mxu0 }
 0x25c   : > { %v6958_v10 = vadd.f32 %v6957_v29, %v6956_v36  ;;  %v6959_v7 = vpop.f32.mrb[166].mxu0 }
 0x25d   : > { %v6960_v33 = vpop.f32.mrb[167].mxu0 }
 0x25e   : > { %v9868_v41 = vadd.f32 %v9823_v59, %v6958_v10  ;;  %v6961_v20 = vadd.f32 %v6960_v33, %v6959_v7 }
 0x260   : > { %v9871_v25 = vadd.f32 %v9827_v4, %v6961_v20 }
 0x262   : > { %v6962_v53 = vpop.f32.mrb[168].mxu0 }
 0x263   : > { %v6963_v19 = vpop.f32.mrb[169].mxu0 }
 0x264   : > { %v6964_v47 = vadd.f32 %v6963_v19, %v6962_v53  ;;  %v6965_v58 = vpop.f32.mrb[170].mxu0 }
 0x265   : > { %v6966_v30 = vpop.f32.mrb[171].mxu0 }
 0x266   : > { %v9874_v51 = vadd.f32 %v9831_v50, %v6964_v47  ;;  %v6967_v14 = vadd.f32 %v6966_v30, %v6965_v58 }
 0x268   : > { %v9877_v12 = vadd.f32 %v9835_v17, %v6967_v14 }
 0x26a   : > { %v6968_v46 = vpop.f32.mrb[172].mxu0 }
 0x26b   : > { %v6969_v23 = vpop.f32.mrb[173].mxu0 }
 0x26c   : > { %v6970_v59 = vadd.f32 %v6969_v23, %v6968_v46  ;;  %v6971_v37 = vpop.f32.mrb[174].mxu0 }
 0x26d   : > { %v6972_v55 = vpop.f32.mrb[175].mxu0 }
 0x26e   : > { %v9880_v4 = vadd.f32 %v9839_v52, %v6970_v59  ;;  %v6973_v45 = vadd.f32 %v6972_v55, %v6971_v37 }
 0x270   : > { %v9883_v11 = vadd.f32 %v9843_v8, %v6973_v45 }
 0x272   : > { %v6974_v27 = vpop.f32.mrb[176].mxu0 }
 0x273   : > { %v6975_v49 = vpop.f32.mrb[177].mxu0 }
 0x274   : > { %v6976_v50 = vadd.f32 %v6975_v49, %v6974_v27  ;;  %v6977_v43 = vpop.f32.mrb[178].mxu0 }
 0x275   : > { %v6978_v2 = vpop.f32.mrb[179].mxu0 }
 0x276   : > { %v9886_v17 = vadd.f32 %v9845_v24, %v6976_v50  ;;  %v6979_v32 = vadd.f32 %v6978_v2, %v6977_v43 }
 0x278   : > { %v9889_v22 = vadd.f32 %v9847_v62, %v6979_v32 }
 0x27a   : > { %v6980_v18 = vpop.f32.mrb[180].mxu0 }
 0x27b   : > { %v6981_v16 = vpop.f32.mrb[181].mxu0 }
 0x27c   : > { %v6982_v52 = vadd.f32 %v6981_v16, %v6980_v18  ;;  %v6983_v38 = vpop.f32.mrb[182].mxu0 }
 0x27d   : > { %v6984_v40 = vpop.f32.mrb[183].mxu0 }
 0x27e   : > { %v9892_v8 = vadd.f32 %v9849_v34, %v6982_v52  ;;  %v6985_v31 = vadd.f32 %v6984_v40, %v6983_v38 }
 0x280   : > { %v9895_v3 = vadd.f32 %v9851_v44, %v6985_v31 }
 0x282   : > { %v6986_v24 = vpop.f32.mrb[184].mxu0 }
 0x283   : > { %v6987_v28 = vpop.f32.mrb[185].mxu0 }
 0x284   : > { %v6988_v61 = vadd.f32 %v6987_v28, %v6986_v24  ;;  %v6989_v9 = vpop.f32.mrb[186].mxu0 }
 0x285   : > { %v6990_v62 = vpop.f32.mrb[187].mxu0 }
 0x286   : > { %v9898_v1 = vadd.f32 %v9853_v21, %v6988_v61  ;;  %v6991_v6 = vadd.f32 %v6990_v62, %v6989_v9 }
 0x288   : > { %v9901_v54 = vadd.f32 %v9855_v56, %v6991_v6 }
 0x28a   : > { %v6992_v34 = vpop.f32.mrb[188].mxu0 }
 0x28b   : > { %v6993_v42 = vpop.f32.mrb[189].mxu0 }
 0x28c   : > { %v6994_v57 = vadd.f32 %v6993_v42, %v6992_v34  ;;  %v6995_v26 = vpop.f32.mrb[190].mxu0 }
 0x28d   : > { %v6996_v63 = vpop.f32.mrb[191].mxu0 }
 0x28e   : > { %v9906_v44 = vadd.f32 %v9857_v39, %v6994_v57  ;;  %v6997_v48 = vadd.f32 %v6996_v63, %v6995_v26 }
 0x290   : > { %v9909_v5 = vadd.f32 %v9859_v0, %v6997_v48 }
 0x291   : > { %v7368_v35 = vpop.f32.mrb[0].mxu1 }
 0x292   : > { %v7030_v21 = vpop.f32.mrb[192].mxu0  ;;  %v5218_v36 = vpop.f32.mrb[1].mxu1 }
 0x293   : > { %v7031_v60 = vpop.f32.mrb[193].mxu0  ;;  %v7369_v10 = vpop.f32.mrb[2].mxu1 }
 0x294   : > { %v7032_v56 = vadd.f32 %v7031_v60, %v7030_v21  ;;  %v7033_v29 = vpop.f32.mrb[194].mxu0  ;;  %v5221_v33 = vpop.f32.mrb[3].mxu1 }
 0x295   : > { %v7034_v7 = vpop.f32.mrb[195].mxu0 }
 0x296   : > { %v7398_v39 = vadd.f32 %v9862_v13, %v7032_v56  ;;  %v7035_v20 = vadd.f32 %v7034_v7, %v7033_v29 }
 0x298   : > { %v7399_v53 = vadd.f32 %v7398_v39, %v5218_v36  ;;  %v7416_v0 = vadd.f32 %v9865_v15, %v7035_v20 }
 0x299   : > { %v7372_v58 = vpop.f32.mrb[4].mxu1 }
 0x29a   : > { %v7417_v19 = vadd.f32 %v7416_v0, %v5221_v33  ;;  %v7036_v47 = vpop.f32.mrb[196].mxu0  ;;  %v5234_v14 = vpop.f32.mrb[5].mxu1  ;;  %v5415_v50 = vmul.f32 %v7399_v53, %v7399_v53 }
 0x29b   : > { %v7037_v30 = vpop.f32.mrb[197].mxu0  ;;  %v7373_v13 = vpop.f32.mrb[6].mxu1 }
 0x29c   : > { %v6330_v46 = vpack.c.bf16 %v7417_v19, %v7399_v53  ;;  %v7038_v23 = vadd.f32 %v7037_v30, %v7036_v47  ;;  %v7039_v59 = vpop.f32.mrb[198].mxu0  ;;  %v5237_v55 = vpop.f32.mrb[7].mxu1 }
 0x29d   : > { %v7040_v37 = vpop.f32.mrb[199].mxu0 }
 0x29e   : > { %6331 = vst [vmem:[%s9919_s14] sm:$0xff] %v6330_v46   ;;  %v7389_v15 = vadd.f32 %v9868_v41, %v7038_v23  ;;  %v7041_v45 = vadd.f32 %v7040_v37, %v7039_v59 }
 0x2a0   : > { %v7390_v27 = vadd.f32 %v7389_v15, %v7368_v35  ;;  %v7407_v49 = vadd.f32 %v9871_v25, %v7041_v45 }
 0x2a1   : > { %v7376_v16 = vpop.f32.mrb[8].mxu1 }
 0x2a2   : > { %v5394_v43 = vadd.f32 %v7399_v53, %v7390_v27  ;;  %v5417_v2 = vmul.f32 %v7390_v27, %v7390_v27  ;;  %v7408_v32 = vadd.f32 %v7407_v49, %v7369_v10  ;;  %v7042_v18 = vpop.f32.mrb[200].mxu0  ;;  %v5250_v38 = vpop.f32.mrb[9].mxu1 }
 0x2a3   : > { %v7043_v52 = vpop.f32.mrb[201].mxu0  ;;  %v7377_v61 = vpop.f32.mrb[10].mxu1 }
 0x2a4   : > { %v5432_v40 = vadd.f32 %v5417_v2, %v5415_v50  ;;  %v6335_v31 = vpack.c.bf16 %v7408_v32, %v7390_v27  ;;  %v7044_v24 = vadd.f32 %v7043_v52, %v7042_v18  ;;  %v7045_v28 = vpop.f32.mrb[202].mxu0  ;;  %v5253_v41 = vpop.f32.mrb[11].mxu1 }
 0x2a5   : > { %v7046_v9 = vpop.f32.mrb[203].mxu0 }
 0x2a6   : > { %6367 = vst [vmem:[%s9919_s14 + $0x8] sm:$0xff] %v6335_v31   ;;  %v7434_v62 = vadd.f32 %v9874_v51, %v7044_v24  ;;  %v7047_v25 = vadd.f32 %v7046_v9, %v7045_v28 }
 0x2a8   : > { %v7435_v6 = vadd.f32 %v7434_v62, %v5234_v14  ;;  %v7452_v34 = vadd.f32 %v9877_v12, %v7047_v25 }
 0x2a9   : > { %v9927_v48 = vpop.f32.mrb[12].mxu1 }
 0x2aa   : > { %v5396_v42 = vadd.f32 %v7435_v6, %v5394_v43  ;;  %v5419_v57 = vmul.f32 %v7435_v6, %v7435_v6  ;;  %v7453_v26 = vadd.f32 %v7452_v34, %v5237_v55  ;;  %v7048_v63 = vpop.f32.mrb[204].mxu0  ;;  %v5266_v35 = vpop.f32.mrb[13].mxu1 }
 0x2ab   : > { %v7049_v21 = vpop.f32.mrb[205].mxu0  ;;  %v9929_v10 = vpop.f32.mrb[14].mxu1 }
 0x2ac   : > { %v5434_v60 = vadd.f32 %v5432_v40, %v5419_v57  ;;  %v6340_v36 = vpack.c.bf16 %v7453_v26, %v7435_v6  ;;  %v7050_v56 = vadd.f32 %v7049_v21, %v7048_v63  ;;  %v7051_v29 = vpop.f32.mrb[206].mxu0  ;;  %v5269_v7 = vpop.f32.mrb[15].mxu1 }
 0x2ad   : > { %v7052_v51 = vpop.f32.mrb[207].mxu0 }
 0x2ae   : > { %6368 = vst [vmem:[%s9919_s14 + $0x10] sm:$0xff] %v6340_v36   ;;  %v7425_v12 = vadd.f32 %v9880_v4, %v7050_v56  ;;  %v7053_v33 = vadd.f32 %v7052_v51, %v7051_v29 }
 0x2b0   : > { %v7426_v39 = vadd.f32 %v7425_v12, %v7372_v58  ;;  %v7443_v20 = vadd.f32 %v9883_v11, %v7053_v33 }
 0x2b2   : > { %v5398_v53 = vadd.f32 %v7426_v39, %v5396_v42  ;;  %v5421_v0 = vmul.f32 %v7426_v39, %v7426_v39  ;;  %v7444_v19 = vadd.f32 %v7443_v20, %v7373_v13  ;;  %v7054_v47 = vpop.f32.mrb[208].mxu0 }
 0x2b3   : > { %v7055_v30 = vpop.f32.mrb[209].mxu0 }
 0x2b4   : > { %v5436_v14 = vadd.f32 %v5434_v60, %v5421_v0  ;;  %v6345_v46 = vpack.c.bf16 %v7444_v19, %v7426_v39  ;;  %v7056_v23 = vadd.f32 %v7055_v30, %v7054_v47  ;;  %v7057_v59 = vpop.f32.mrb[210].mxu0 }
 0x2b5   : > { %v7058_v37 = vpop.f32.mrb[211].mxu0 }
 0x2b6   : > { %6369 = vst [vmem:[%s9919_s14 + $0x18] sm:$0xff] %v6345_v46   ;;  %v7470_v55 = vadd.f32 %v9886_v17, %v7056_v23  ;;  %v7059_v15 = vadd.f32 %v7058_v37, %v7057_v59 }
 0x2b8   : > { %v7471_v4 = vadd.f32 %v7470_v55, %v5250_v38  ;;  %v7488_v58 = vadd.f32 %v9889_v22, %v7059_v15 }
 0x2ba   : > { %v5400_v45 = vadd.f32 %v7471_v4, %v5398_v53  ;;  %v5423_v11 = vmul.f32 %v7471_v4, %v7471_v4  ;;  %v7489_v27 = vadd.f32 %v7488_v58, %v5253_v41  ;;  %v7060_v49 = vpop.f32.mrb[212].mxu0 }
 0x2bb   : > { %v7061_v13 = vpop.f32.mrb[213].mxu0 }
 0x2bc   : > { %v5438_v50 = vadd.f32 %v5436_v14, %v5423_v11  ;;  %v6350_v43 = vpack.c.bf16 %v7489_v27, %v7471_v4  ;;  %v7062_v2 = vadd.f32 %v7061_v13, %v7060_v49  ;;  %v7063_v32 = vpop.f32.mrb[214].mxu0 }
 0x2bd   : > { %v7064_v18 = vpop.f32.mrb[215].mxu0 }
 0x2be   : > { %6370 = vst [vmem:[%s9919_s14 + $0x20] sm:$0xff] %v6350_v43   ;;  %v7461_v52 = vadd.f32 %v9892_v8, %v7062_v2  ;;  %v7065_v40 = vadd.f32 %v7064_v18, %v7063_v32 }
 0x2c0   : > { %v7462_v17 = vadd.f32 %v7461_v52, %v7376_v16  ;;  %v7479_v38 = vadd.f32 %v9895_v3, %v7065_v40 }
 0x2c2   : > { %v5402_v31 = vadd.f32 %v7462_v17, %v5400_v45  ;;  %v5425_v22 = vmul.f32 %v7462_v17, %v7462_v17  ;;  %v7480_v24 = vadd.f32 %v7479_v38, %v7377_v61  ;;  %v7066_v28 = vpop.f32.mrb[216].mxu0 }
 0x2c3   : > { %v7067_v9 = vpop.f32.mrb[217].mxu0 }
 0x2c4   : > { %v5440_v41 = vadd.f32 %v5438_v50, %v5425_v22  ;;  %v6355_v62 = vpack.c.bf16 %v7480_v24, %v7462_v17  ;;  %v7068_v25 = vadd.f32 %v7067_v9, %v7066_v28  ;;  %v7069_v6 = vpop.f32.mrb[218].mxu0 }
 0x2c5   : > { %v7070_v34 = vpop.f32.mrb[219].mxu0 }
 0x2c6   : > { %6371 = vst [vmem:[%s9919_s14 + $0x28] sm:$0xff] %v6355_v62   ;;  %v7506_v42 = vadd.f32 %v9898_v1, %v7068_v25  ;;  %v7071_v57 = vadd.f32 %v7070_v34, %v7069_v6 }
 0x2c8   : > { %v7507_v8 = vadd.f32 %v7506_v42, %v5266_v35  ;;  %v7524_v16 = vadd.f32 %v9901_v54, %v7071_v57 }
 0x2ca   : > { %v5404_v26 = vadd.f32 %v7507_v8, %v5402_v31  ;;  %v5427_v3 = vmul.f32 %v7507_v8, %v7507_v8  ;;  %v7525_v63 = vadd.f32 %v7524_v16, %v5269_v7  ;;  %v7072_v21 = vpop.f32.mrb[220].mxu0 }
 0x2cb   : > { %v7073_v61 = vpop.f32.mrb[221].mxu0 }
 0x2cc   : > { %v5442_v60 = vadd.f32 %v5440_v41, %v5427_v3  ;;  %v6360_v36 = vpack.c.bf16 %v7525_v63, %v7507_v8  ;;  %v7074_v56 = vadd.f32 %v7073_v61, %v7072_v21  ;;  %v7075_v29 = vpop.f32.mrb[222].mxu0 }
 0x2cd   : > { %v7076_v51 = vpop.f32.mrb[223].mxu0 }
 0x2ce   : > { %6372 = vst [vmem:[%s9919_s14 + $0x30] sm:$0xff] %v6360_v36   ;;  %v7497_v12 = vadd.f32 %v9906_v44, %v7074_v56  ;;  %v7077_v33 = vadd.f32 %v7076_v51, %v7075_v29 }
 0x2d0   : > { %v7498_v1 = vadd.f32 %v7497_v12, %v9927_v48  ;;  %v7515_v35 = vadd.f32 %v9909_v5, %v7077_v33 }
 0x2d2   : > { %v5406_v54 = vadd.f32 %v7498_v1, %v5404_v26  ;;  %v5429_v39 = vmul.f32 %v7498_v1, %v7498_v1  ;;  %v7516_v7 = vadd.f32 %v7515_v35, %v9929_v10 }
 0x2d4   : > { %v5408_v20 = vrot.slane %v5406_v54, 4  ;;  %v5444_v53 = vadd.f32 %v5442_v60, %v5429_v39  ;;  %v6365_v0 = vpack.c.bf16 %v7516_v7, %v7498_v1 }
 0x2d6   : > { %v5409_v19 = vadd.f32 %v5408_v20, %v5406_v54  ;;  %v5446_v47 = vrot.slane %v5444_v53, 4  ;;  %6373 = vst [vmem:[%s9919_s14 + $0x38] sm:$0xff] %v6365_v0  }
 0x2d8   : > { %v5410_v30 = vrot.slane %v5409_v19, 2  ;;  %v5447_v14 = vadd.f32 %v5446_v47, %v5444_v53 }
 0x2da   : > { %v5411_v46 = vadd.f32 %v5410_v30, %v5409_v19  ;;  %v5448_v44 = vrot.slane %v5447_v14, 2 }
 0x2dc   : > { %v5412_v23 = vrot.slane %v5411_v46, 1  ;;  %v5449_v59 = vadd.f32 %v5448_v44, %v5447_v14 }
 0x2de   : > { %v5450_v48 = vrot.slane %v5449_v59, 1  ;;  %v5413_v5 = vadd.f32 %v5412_v23, %v5411_v46 }
 0x2e0   : > { %v5451_v37 = vadd.f32 %v5450_v48, %v5449_v59 }
 0x2e2   : > { %v5454_v10 = vsel %vm942_vm2, %v5413_v5, %v5451_v37 }
 0x2e3   : > { %v5456_v55 = vsel %vm5455_vm8, %v5454_v10, 0.0 }
 0x2e4   : > { %5457 = vst [vmem:[%s499_s9] sm:$0xff] %v5456_v55 }
 0x2e5 PF: > { %s18_s28 = sadd.s32 1, %s7950_s28   ;;  %s10005_s24 = smov %s7942_s26 }
 0x2e6   : > { %p15_p10 = scmp.ge.s32.totalorder %s18_s28, 18   ;;  %s10006_s25 = smov %s7946_s27 }
 0x2e7   : > { %s10007_s26 = smov %s10010_s29  ;;  %s10008_s27 = smov %s10014_s30 }
 0x2e8   :  { %17 = sbr.rel (!%p15_p10) target bundleno = 3 (0x3), region = 100 }

</bundles_post_ra>
